<compile_context>
chip_gen: v7x
topology: tpu7x:2x2x1
jax: 0.10.0
libtpu: 0.0.40
codegen_flags: <defaults>
</compile_context>

<pallas_src>
import jax
import jax.numpy as jnp
from jax.experimental import pallas as pl
from jax.experimental.pallas import tpu as pltpu


# ------------- fused conv (+folded BN) + ReLU + 2x2 maxpool, single step -------

def _conv_pool_kernel(p_ref, w_ref, shift_ref, o_ref):
    # p_ref: (4*Np, K) bf16, pooling-position-major rows.
    # w_ref: (K, Cout) bf16 (BN scale folded in), shift_ref: (1, Cout) f32.
    np_rows = o_ref.shape[0]
    y = jnp.dot(p_ref[...], w_ref[...], preferred_element_type=jnp.float32)
    # max over the 4 pooling-window positions (sublane-aligned static slices)
    m = jnp.maximum(
        jnp.maximum(y[0 * np_rows:1 * np_rows], y[1 * np_rows:2 * np_rows]),
        jnp.maximum(y[2 * np_rows:3 * np_rows], y[3 * np_rows:4 * np_rows]))
    # shift add + ReLU once, in the epilogue (max commutes with the j-invariant
    # shift; relu(max(.)) == max(relu(.)) since relu is monotone).
    o_ref[...] = jnp.maximum(m + shift_ref[...], 0.0).astype(o_ref.dtype)


def conv_pool_matmul(patches, w_mat, shift):
    """patches: (4*Np, K) bf16, w_mat: (K, Cout) bf16, shift: (1, Cout) f32.
    Returns maxpool2x2(relu(conv + shift)) as (Np, Cout) bf16."""
    rows, k_dim = patches.shape
    np_rows = rows // 4
    cout = w_mat.shape[1]
    return pl.pallas_call(
        _conv_pool_kernel,
        out_shape=jax.ShapeDtypeStruct((np_rows, cout), jnp.bfloat16),
        grid_spec=pltpu.PrefetchScalarGridSpec(
            num_scalar_prefetch=0,
            grid=(1,),                                   # single step: no grid overhead
            in_specs=[
                pl.BlockSpec((rows, k_dim), lambda i: (0, 0)),
                pl.BlockSpec((k_dim, cout), lambda i: (0, 0)),
                pl.BlockSpec((1, cout), lambda i: (0, 0)),
            ],
            out_specs=pl.BlockSpec((np_rows, cout), lambda i: (0, 0)),
        ),
        compiler_params=pltpu.CompilerParams(
            dimension_semantics=("arbitrary",)),
    )(patches, w_mat, shift)


def conv_bn_relu_pool(x_nhwc, w_mat, shift):
    """3x3 stride-1 pad-1 conv + folded BN + ReLU + 2x2/2 maxpool (NHWC)."""
    N, H, W, C = x_nhwc.shape
    ho, wo = H // 2, W // 2
    cout = w_mat.shape[1]
    xp = jnp.pad(x_nhwc, ((0, 0), (1, 1), (1, 1), (0, 0)))
    # im2col columns in (dh, dw, cin) order
    taps = [xp[:, dh:dh + H, dw:dw + W, :] for dh in range(3) for dw in range(3)]
    cols = jnp.concatenate(taps, axis=-1)                        # (N, H, W, 9C)
    # Regroup rows so the 4 pooling-window positions are the leading row groups
    # of one big GEMM (pool + ReLU then happen inside the kernel, and only the
    # pooled tensor is written back).
    cols = cols.reshape(N, ho, 2, wo, 2, 9 * C)
    cols = jnp.transpose(cols, (2, 4, 0, 1, 3, 5))               # (jh, jw, N, ho, wo, 9C)
    patches = cols.reshape(4 * N * ho * wo, 9 * C)
    out = conv_pool_matmul(patches, w_mat, shift)                # (N*ho*wo, cout)
    return out.reshape(N, ho, wo, cout)


# ------------- fused fc1 + bn4 + relu + fc2, weights resident -------------------

def _fc_fused_kernel(x_ref, w1_ref, s1_ref, w2_ref, s2_ref, o_ref):
    h = jnp.maximum(
        jnp.dot(x_ref[...], w1_ref[...], preferred_element_type=jnp.float32)
        + s1_ref[...], 0.0)
    # TODO(synk): dropout is identity here (eval-mode semantics; train-mode
    # RNG mask is not implemented).
    o_ref[...] = (jnp.dot(h.astype(w2_ref.dtype), w2_ref[...],
                          preferred_element_type=jnp.float32)
                  + s2_ref[...]).astype(o_ref.dtype)


def fc_block(x, w1, s1, w2, s2, *, col_split=2):
    """x:(M,K) bf16, w1:(K,H) bf16 (bn4 folded), s1:(1,H) f32, w2:(H,N) bf16,
    s2:(1,N) f32.  Grid splits fc2's output columns so both v7x TCs share the
    fc weight DMA; on single-core chips the revisited blocks are not re-fetched."""
    M, kin = x.shape
    hdim = w1.shape[1]
    nout = w2.shape[1]
    assert nout % (col_split * 128) == 0
    tn = nout // col_split
    return pl.pallas_call(
        _fc_fused_kernel,
        out_shape=jax.ShapeDtypeStruct((M, nout), jnp.float32),
        grid_spec=pltpu.PrefetchScalarGridSpec(
            num_scalar_prefetch=0,
            grid=(col_split,),
            in_specs=[
                pl.BlockSpec((M, kin), lambda p: (0, 0)),      # resident / revisited
                pl.BlockSpec((kin, hdim), lambda p: (0, 0)),   # resident / revisited
                pl.BlockSpec((1, hdim), lambda p: (0, 0)),
                pl.BlockSpec((hdim, tn), lambda p: (0, p)),    # split across cores
                pl.BlockSpec((1, tn), lambda p: (0, p)),
            ],
            out_specs=pl.BlockSpec((M, tn), lambda p: (0, p)),
        ),
        compiler_params=pltpu.CompilerParams(
            dimension_semantics=("parallel",)),
    )(x, w1, s1, w2, s2)


# ------------- parameters (BN folded into weights) ------------------------------

def _fold_bn(w_mat, bias, gamma, beta, mean, var, eps=1e-5):
    scale = gamma / jnp.sqrt(var + eps)
    w_folded = (w_mat * scale[None, :]).astype(jnp.bfloat16)
    shift = (beta + scale * (bias - mean))[None, :].astype(jnp.float32)
    return w_folded, shift


def init_params(key, patch_size):
    def convpool(s):
        return ((s - 3 + 2) // 1 + 1 - 2) // 2 + 1
    final = convpool(convpool(convpool(patch_size)))
    num_flat = 256 * final * final

    ks = iter(jax.random.split(key, 32))
    p = {}

    def conv_layer(cin, cout, cin_pad=None, cout_pad=None):
        cin_pad = cin if cin_pad is None else cin_pad
        cout_pad = cout if cout_pad is None else cout_pad
        w = jax.random.normal(next(ks), (cout, cin, 3, 3), jnp.float32) * 0.05
        b = jax.random.normal(next(ks), (cout,), jnp.float32) * 0.05
        gamma = 1.0 + 0.1 * jax.random.normal(next(ks), (cout,), jnp.float32)
        beta = 0.1 * jax.random.normal(next(ks), (cout,), jnp.float32)
        mean = 0.05 * jax.random.normal(next(ks), (cout,), jnp.float32)
        var = jnp.ones((cout,), jnp.float32)
        # reorder to im2col column order (dh, dw, cin), output channels on lanes
        w_mat = jnp.transpose(w, (2, 3, 1, 0)).reshape(9 * cin, cout)
        w_mat, shift = _fold_bn(w_mat, b, gamma, beta, mean, var)
        # zero rows for the padded input channels of the previous layer (exact)
        if cin_pad != cin:
            w_mat = jnp.pad(w_mat.reshape(9, cin, cout),
                            ((0, 0), (0, cin_pad - cin), (0, 0))
                            ).reshape(9 * cin_pad, cout)
        # zero columns + zero shift for padded output channels: relu(0)=0, and
        # the next layer has zero weight rows for them -> lane-dense but exact.
        if cout_pad != cout:
            w_mat = jnp.pad(w_mat, ((0, 0), (0, cout_pad - cout)))
            shift = jnp.pad(shift, ((0, 0), (0, cout_pad - cout)))
        return w_mat.astype(jnp.bfloat16), shift

    p["c1"] = conv_layer(3, 64, cout_pad=128)     # lane-dense 128-channel output
    p["c2"] = conv_layer(64, 128, cin_pad=128)    # zero rows for the pad channels
    p["c3"] = conv_layer(128, 256)

    # fc1 (+ bn4) and fc2
    w1 = jax.random.normal(next(ks), (num_flat, 1024), jnp.float32) * 0.02
    b1 = jax.random.normal(next(ks), (1024,), jnp.float32) * 0.02
    g4 = 1.0 + 0.1 * jax.random.normal(next(ks), (1024,), jnp.float32)
    be4 = 0.1 * jax.random.normal(next(ks), (1024,), jnp.float32)
    m4 = 0.05 * jax.random.normal(next(ks), (1024,), jnp.float32)
    v4 = jnp.ones((1024,), jnp.float32)

    # Fold PyTorch's NCHW flatten into fc1's row order so the NHWC conv output
    # feeds fc1 directly:  NHWC row (h*F*C + w*C + c) <- NCHW row (c*F*F + h*F + w)
    C3 = 256
    hg, wg, cg = jnp.meshgrid(jnp.arange(final), jnp.arange(final),
                              jnp.arange(C3), indexing="ij")
    perm = (cg * final * final + hg * final + wg).reshape(-1)
    w1_nhwc = w1[perm]
    w1f, s1 = _fold_bn(w1_nhwc, b1, g4, be4, m4, v4)

    w2 = (jax.random.normal(next(ks), (1024, 768), jnp.float32) * 0.02
          ).astype(jnp.bfloat16)
    b2 = (jax.random.normal(next(ks), (768,), jnp.float32) * 0.02)[None, :]
    p["fc"] = (w1f, s1, w2, b2.astype(jnp.float32))
    return p, num_flat


# ------------- forward -----------------------------------------------------------

def forward(params, x_nchw):
    x = jnp.transpose(x_nchw, (0, 2, 3, 1)).astype(jnp.bfloat16)   # NCHW -> NHWC
    for name in ("c1", "c2", "c3"):
        w_mat, shift = params[name]
        x = conv_bn_relu_pool(x, w_mat, shift)
    # Flatten in NHWC order (contiguous reshape); the NCHW permutation required
    # to match PyTorch's x.view(-1, num_flat) is folded into w1's rows at init.
    N = x.shape[0]
    x = x.reshape(N, -1)
    w1, s1, w2, s2 = params["fc"]
    return fc_block(x, w1, s1, w2, s2)


# ------------- main --------------------------------------------------------------

if __name__ == "__main__":
    key = jax.random.PRNGKey(0)
    k_param, k_x = jax.random.split(key)

    patch_size = 16                 # small, consistent with the module's conv/pool math
    batch = 2
    params, num_flat = init_params(k_param, patch_size)
    x = jax.random.normal(k_x, (batch, 3, patch_size, patch_size), jnp.float32)

    out = jax.jit(forward)(params, x)
    out = jax.block_until_ready(out)
    assert out.shape == (batch, 768), out.shape
    print("KERNEL_OK")
</pallas_src>

<mosaic_0001>
module attributes {stable_mosaic.version = 11 : i64} {
  func.func @_conv_pool_kernel(%arg0: i32, %arg1: memref<512x27xbf16, #tpu.memory_space<vmem>>, %arg2: memref<27x128xbf16, #tpu.memory_space<vmem>>, %arg3: memref<1x128xf32, #tpu.memory_space<vmem>>, %arg4: memref<128x128xbf16, #tpu.memory_space<vmem>>) attributes {dimension_semantics = [#tpu.dimension_semantics<arbitrary>], iteration_bounds = array<i64: 1>, scalar_prefetch = 0 : i64, scratch_operands = 0 : i64, tpu.core_type = #tpu.core_type<tc>, window_params = [{pipeline_mode = #tpu.pipeline_mode<synchronous>, transform_indices = @transform_0, window_bounds = array<i64: 512, 27>}, {pipeline_mode = #tpu.pipeline_mode<synchronous>, transform_indices = @transform_1, window_bounds = array<i64: 27, 128>}, {pipeline_mode = #tpu.pipeline_mode<synchronous>, transform_indices = @transform_2, window_bounds = array<i64: 1, 128>}, {pipeline_mode = #tpu.pipeline_mode<synchronous>, transform_indices = @transform_3, window_bounds = array<i64: 128, 128>}]} {
    %c0 = arith.constant 0 : index
    %c0_0 = arith.constant 0 : index
    %0 = vector.load %arg1[%c0, %c0_0] : memref<512x27xbf16, #tpu.memory_space<vmem>>, vector<512x27xbf16>
    %c0_1 = arith.constant 0 : index
    %c0_2 = arith.constant 0 : index
    %1 = vector.load %arg2[%c0_1, %c0_2] : memref<27x128xbf16, #tpu.memory_space<vmem>>, vector<27x128xbf16>
    %cst = arith.constant dense<0.000000e+00> : vector<512x128xf32>
    %2 = tpu.matmul %0, %1, %cst {dimension_numbers = #tpu.dot_dimension_numbers<[1], [0], [0], [1], [0, 0, 1, 1], [], []>} : vector<512x27xbf16>, vector<27x128xbf16>, vector<512x128xf32> -> vector<512x128xf32>
    %3 = vector.extract_strided_slice %2 {offsets = [0, 0], sizes = [128, 128], strides = [1, 1]} : vector<512x128xf32> to vector<128x128xf32>
    %4 = vector.extract_strided_slice %2 {offsets = [128, 0], sizes = [128, 128], strides = [1, 1]} : vector<512x128xf32> to vector<128x128xf32>
    %5 = arith.maximumf %3, %4 : vector<128x128xf32>
    %6 = vector.extract_strided_slice %2 {offsets = [256, 0], sizes = [128, 128], strides = [1, 1]} : vector<512x128xf32> to vector<128x128xf32>
    %7 = vector.extract_strided_slice %2 {offsets = [384, 0], sizes = [128, 128], strides = [1, 1]} : vector<512x128xf32> to vector<128x128xf32>
    %8 = arith.maximumf %6, %7 : vector<128x128xf32>
    %9 = arith.maximumf %5, %8 : vector<128x128xf32>
    %c0_3 = arith.constant 0 : index
    %c0_4 = arith.constant 0 : index
    %10 = vector.load %arg3[%c0_3, %c0_4] : memref<1x128xf32, #tpu.memory_space<vmem>>, vector<1x128xf32>
    %11 = vector.broadcast %10 : vector<1x128xf32> to vector<128x128xf32>
    %12 = arith.addf %9, %11 : vector<128x128xf32>
    %cst_5 = arith.constant 0.000000e+00 : f32
    %13 = vector.broadcast %cst_5 : f32 to vector<128x128xf32>
    %14 = arith.maximumf %12, %13 : vector<128x128xf32>
    %15 = arith.truncf %14 : vector<128x128xf32> to vector<128x128xbf16>
    %c0_6 = arith.constant 0 : index
    %c0_7 = arith.constant 0 : index
    %16 = vector.load %arg4[%c0_6, %c0_7] : memref<128x128xbf16, #tpu.memory_space<vmem>>, vector<128x128xbf16>
    tpu.vector_store %arg4[%c0_6, %c0_7], %15 {strides = array<i32>} : memref<128x128xbf16, #tpu.memory_space<vmem>>, vector<128x128xbf16>,
    return
  }
  func.func @transform_0(%arg0: i32) -> (i32, i32) {
    %c0_i32 = arith.constant 0 : i32
    %c0_i32_0 = arith.constant 0 : i32
    %c0_i32_1 = arith.constant 0 : i32
    return %c0_i32, %c0_i32_0 : i32, i32
  }
  func.func @transform_1(%arg0: i32) -> (i32, i32) {
    %c0_i32 = arith.constant 0 : i32
    %c0_i32_0 = arith.constant 0 : i32
    %c0_i32_1 = arith.constant 0 : i32
    return %c0_i32, %c0_i32_0 : i32, i32
  }
  func.func @transform_2(%arg0: i32) -> (i32, i32) {
    %c0_i32 = arith.constant 0 : i32
    %c0_i32_0 = arith.constant 0 : i32
    %c0_i32_1 = arith.constant 0 : i32
    return %c0_i32, %c0_i32_0 : i32, i32
  }
  func.func @transform_3(%arg0: i32) -> (i32, i32) {
    %c0_i32 = arith.constant 0 : i32
    %c0_i32_0 = arith.constant 0 : i32
    %c0_i32_1 = arith.constant 0 : i32
    return %c0_i32, %c0_i32_0 : i32, i32
  }
}

module attributes {stable_mosaic.version = 11 : i64} {
  func.func @_conv_pool_kernel(%arg0: i32, %arg1: memref<128x1152xbf16, #tpu.memory_space<vmem>>, %arg2: memref<1152x128xbf16, #tpu.memory_space<vmem>>, %arg3: memref<1x128xf32, #tpu.memory_space<vmem>>, %arg4: memref<32x128xbf16, #tpu.memory_space<vmem>>) attributes {dimension_semantics = [#tpu.dimension_semantics<arbitrary>], iteration_bounds = array<i64: 1>, scalar_prefetch = 0 : i64, scratch_operands = 0 : i64, tpu.core_type = #tpu.core_type<tc>, window_params = [{pipeline_mode = #tpu.pipeline_mode<synchronous>, transform_indices = @transform_0, window_bounds = array<i64: 128, 1152>}, {pipeline_mode = #tpu.pipeline_mode<synchronous>, transform_indices = @transform_1, window_bounds = array<i64: 1152, 128>}, {pipeline_mode = #tpu.pipeline_mode<synchronous>, transform_indices = @transform_2, window_bounds = array<i64: 1, 128>}, {pipeline_mode = #tpu.pipeline_mode<synchronous>, transform_indices = @transform_3, window_bounds = array<i64: 32, 128>}]} {
    %c0 = arith.constant 0 : index
    %c0_0 = arith.constant 0 : index
    %0 = vector.load %arg1[%c0, %c0_0] : memref<128x1152xbf16, #tpu.memory_space<vmem>>, vector<128x1152xbf16>
    %c0_1 = arith.constant 0 : index
    %c0_2 = arith.constant 0 : index
    %1 = vector.load %arg2[%c0_1, %c0_2] : memref<1152x128xbf16, #tpu.memory_space<vmem>>, vector<1152x128xbf16>
    %cst = arith.constant dense<0.000000e+00> : vector<128x128xf32>
    %2 = tpu.matmul %0, %1, %cst {dimension_numbers = #tpu.dot_dimension_numbers<[1], [0], [0], [1], [0, 0, 1, 1], [], []>} : vector<128x1152xbf16>, vector<1152x128xbf16>, vector<128x128xf32> -> vector<128x128xf32>
    %3 = vector.extract_strided_slice %2 {offsets = [0, 0], sizes = [32, 128], strides = [1, 1]} : vector<128x128xf32> to vector<32x128xf32>
    %4 = vector.extract_strided_slice %2 {offsets = [32, 0], sizes = [32, 128], strides = [1, 1]} : vector<128x128xf32> to vector<32x128xf32>
    %5 = arith.maximumf %3, %4 : vector<32x128xf32>
    %6 = vector.extract_strided_slice %2 {offsets = [64, 0], sizes = [32, 128], strides = [1, 1]} : vector<128x128xf32> to vector<32x128xf32>
    %7 = vector.extract_strided_slice %2 {offsets = [96, 0], sizes = [32, 128], strides = [1, 1]} : vector<128x128xf32> to vector<32x128xf32>
    %8 = arith.maximumf %6, %7 : vector<32x128xf32>
    %9 = arith.maximumf %5, %8 : vector<32x128xf32>
    %c0_3 = arith.constant 0 : index
    %c0_4 = arith.constant 0 : index
    %10 = vector.load %arg3[%c0_3, %c0_4] : memref<1x128xf32, #tpu.memory_space<vmem>>, vector<1x128xf32>
    %11 = vector.broadcast %10 : vector<1x128xf32> to vector<32x128xf32>
    %12 = arith.addf %9, %11 : vector<32x128xf32>
    %cst_5 = arith.constant 0.000000e+00 : f32
    %13 = vector.broadcast %cst_5 : f32 to vector<32x128xf32>
    %14 = arith.maximumf %12, %13 : vector<32x128xf32>
    %15 = arith.truncf %14 : vector<32x128xf32> to vector<32x128xbf16>
    %c0_6 = arith.constant 0 : index
    %c0_7 = arith.constant 0 : index
    %16 = vector.load %arg4[%c0_6, %c0_7] : memref<32x128xbf16, #tpu.memory_space<vmem>>, vector<32x128xbf16>
    tpu.vector_store %arg4[%c0_6, %c0_7], %15 {strides = array<i32>} : memref<32x128xbf16, #tpu.memory_space<vmem>>, vector<32x128xbf16>,
    return
  }
  func.func @transform_0(%arg0: i32) -> (i32, i32) {
    %c0_i32 = arith.constant 0 : i32
    %c0_i32_0 = arith.constant 0 : i32
    %c0_i32_1 = arith.constant 0 : i32
    return %c0_i32, %c0_i32_0 : i32, i32
  }
  func.func @transform_1(%arg0: i32) -> (i32, i32) {
    %c0_i32 = arith.constant 0 : i32
    %c0_i32_0 = arith.constant 0 : i32
    %c0_i32_1 = arith.constant 0 : i32
    return %c0_i32, %c0_i32_0 : i32, i32
  }
  func.func @transform_2(%arg0: i32) -> (i32, i32) {
    %c0_i32 = arith.constant 0 : i32
    %c0_i32_0 = arith.constant 0 : i32
    %c0_i32_1 = arith.constant 0 : i32
    return %c0_i32, %c0_i32_0 : i32, i32
  }
  func.func @transform_3(%arg0: i32) -> (i32, i32) {
    %c0_i32 = arith.constant 0 : i32
    %c0_i32_0 = arith.constant 0 : i32
    %c0_i32_1 = arith.constant 0 : i32
    return %c0_i32, %c0_i32_0 : i32, i32
  }
}

module attributes {stable_mosaic.version = 11 : i64} {
  func.func @_conv_pool_kernel(%arg0: i32, %arg1: memref<32x1152xbf16, #tpu.memory_space<vmem>>, %arg2: memref<1152x256xbf16, #tpu.memory_space<vmem>>, %arg3: memref<1x256xf32, #tpu.memory_space<vmem>>, %arg4: memref<8x256xbf16, #tpu.memory_space<vmem>>) attributes {dimension_semantics = [#tpu.dimension_semantics<arbitrary>], iteration_bounds = array<i64: 1>, scalar_prefetch = 0 : i64, scratch_operands = 0 : i64, tpu.core_type = #tpu.core_type<tc>, window_params = [{pipeline_mode = #tpu.pipeline_mode<synchronous>, transform_indices = @transform_0, window_bounds = array<i64: 32, 1152>}, {pipeline_mode = #tpu.pipeline_mode<synchronous>, transform_indices = @transform_1, window_bounds = array<i64: 1152, 256>}, {pipeline_mode = #tpu.pipeline_mode<synchronous>, transform_indices = @transform_2, window_bounds = array<i64: 1, 256>}, {pipeline_mode = #tpu.pipeline_mode<synchronous>, transform_indices = @transform_3, window_bounds = array<i64: 8, 256>}]} {
    %c0 = arith.constant 0 : index
    %c0_0 = arith.constant 0 : index
    %0 = vector.load %arg1[%c0, %c0_0] : memref<32x1152xbf16, #tpu.memory_space<vmem>>, vector<32x1152xbf16>
    %c0_1 = arith.constant 0 : index
    %c0_2 = arith.constant 0 : index
    %1 = vector.load %arg2[%c0_1, %c0_2] : memref<1152x256xbf16, #tpu.memory_space<vmem>>, vector<1152x256xbf16>
    %cst = arith.constant dense<0.000000e+00> : vector<32x256xf32>
    %2 = tpu.matmul %0, %1, %cst {dimension_numbers = #tpu.dot_dimension_numbers<[1], [0], [0], [1], [0, 0, 1, 1], [], []>} : vector<32x1152xbf16>, vector<1152x256xbf16>, vector<32x256xf32> -> vector<32x256xf32>
    %3 = vector.extract_strided_slice %2 {offsets = [0, 0], sizes = [8, 256], strides = [1, 1]} : vector<32x256xf32> to vector<8x256xf32>
    %4 = vector.extract_strided_slice %2 {offsets = [8, 0], sizes = [8, 256], strides = [1, 1]} : vector<32x256xf32> to vector<8x256xf32>
    %5 = arith.maximumf %3, %4 : vector<8x256xf32>
    %6 = vector.extract_strided_slice %2 {offsets = [16, 0], sizes = [8, 256], strides = [1, 1]} : vector<32x256xf32> to vector<8x256xf32>
    %7 = vector.extract_strided_slice %2 {offsets = [24, 0], sizes = [8, 256], strides = [1, 1]} : vector<32x256xf32> to vector<8x256xf32>
    %8 = arith.maximumf %6, %7 : vector<8x256xf32>
    %9 = arith.maximumf %5, %8 : vector<8x256xf32>
    %c0_3 = arith.constant 0 : index
    %c0_4 = arith.constant 0 : index
    %10 = vector.load %arg3[%c0_3, %c0_4] : memref<1x256xf32, #tpu.memory_space<vmem>>, vector<1x256xf32>
    %11 = vector.broadcast %10 : vector<1x256xf32> to vector<8x256xf32>
    %12 = arith.addf %9, %11 : vector<8x256xf32>
    %cst_5 = arith.constant 0.000000e+00 : f32
    %13 = vector.broadcast %cst_5 : f32 to vector<8x256xf32>
    %14 = arith.maximumf %12, %13 : vector<8x256xf32>
    %15 = arith.truncf %14 : vector<8x256xf32> to vector<8x256xbf16>
    %c0_6 = arith.constant 0 : index
    %c0_7 = arith.constant 0 : index
    %16 = vector.load %arg4[%c0_6, %c0_7] : memref<8x256xbf16, #tpu.memory_space<vmem>>, vector<8x256xbf16>
    tpu.vector_store %arg4[%c0_6, %c0_7], %15 {strides = array<i32>} : memref<8x256xbf16, #tpu.memory_space<vmem>>, vector<8x256xbf16>,
    return
  }
  func.func @transform_0(%arg0: i32) -> (i32, i32) {
    %c0_i32 = arith.constant 0 : i32
    %c0_i32_0 = arith.constant 0 : i32
    %c0_i32_1 = arith.constant 0 : i32
    return %c0_i32, %c0_i32_0 : i32, i32
  }
  func.func @transform_1(%arg0: i32) -> (i32, i32) {
    %c0_i32 = arith.constant 0 : i32
    %c0_i32_0 = arith.constant 0 : i32
    %c0_i32_1 = arith.constant 0 : i32
    return %c0_i32, %c0_i32_0 : i32, i32
  }
  func.func @transform_2(%arg0: i32) -> (i32, i32) {
    %c0_i32 = arith.constant 0 : i32
    %c0_i32_0 = arith.constant 0 : i32
    %c0_i32_1 = arith.constant 0 : i32
    return %c0_i32, %c0_i32_0 : i32, i32
  }
  func.func @transform_3(%arg0: i32) -> (i32, i32) {
    %c0_i32 = arith.constant 0 : i32
    %c0_i32_0 = arith.constant 0 : i32
    %c0_i32_1 = arith.constant 0 : i32
    return %c0_i32, %c0_i32_0 : i32, i32
  }
}

module attributes {stable_mosaic.version = 11 : i64} {
  func.func @_fc_fused_kernel(%arg0: i32, %arg1: memref<2x1024xbf16, #tpu.memory_space<vmem>>, %arg2: memref<1024x1024xbf16, #tpu.memory_space<vmem>>, %arg3: memref<1x1024xf32, #tpu.memory_space<vmem>>, %arg4: memref<1024x384xbf16, #tpu.memory_space<vmem>>, %arg5: memref<1x384xf32, #tpu.memory_space<vmem>>, %arg6: memref<2x384xf32, #tpu.memory_space<vmem>>) attributes {dimension_semantics = [#tpu.dimension_semantics<parallel>], iteration_bounds = array<i64: 2>, scalar_prefetch = 0 : i64, scratch_operands = 0 : i64, tpu.core_type = #tpu.core_type<tc>, window_params = [{pipeline_mode = #tpu.pipeline_mode<synchronous>, transform_indices = @transform_0, window_bounds = array<i64: 2, 1024>}, {pipeline_mode = #tpu.pipeline_mode<synchronous>, transform_indices = @transform_1, window_bounds = array<i64: 1024, 1024>}, {pipeline_mode = #tpu.pipeline_mode<synchronous>, transform_indices = @transform_2, window_bounds = array<i64: 1, 1024>}, {transform_indices = @transform_3, window_bounds = array<i64: 1024, 384>}, {transform_indices = @transform_4, window_bounds = array<i64: 1, 384>}, {transform_indices = @transform_5, window_bounds = array<i64: 2, 384>}]} {
    %c0 = arith.constant 0 : index
    %c0_0 = arith.constant 0 : index
    %0 = vector.load %arg1[%c0, %c0_0] : memref<2x1024xbf16, #tpu.memory_space<vmem>>, vector<2x1024xbf16>
    %c0_1 = arith.constant 0 : index
    %c0_2 = arith.constant 0 : index
    %1 = vector.load %arg2[%c0_1, %c0_2] : memref<1024x1024xbf16, #tpu.memory_space<vmem>>, vector<1024x1024xbf16>
    %cst = arith.constant dense<0.000000e+00> : vector<2x1024xf32>
    %2 = tpu.matmul %0, %1, %cst {dimension_numbers = #tpu.dot_dimension_numbers<[1], [0], [0], [1], [0, 0, 1, 1], [], []>} : vector<2x1024xbf16>, vector<1024x1024xbf16>, vector<2x1024xf32> -> vector<2x1024xf32>
    %c0_3 = arith.constant 0 : index
    %c0_4 = arith.constant 0 : index
    %3 = vector.load %arg3[%c0_3, %c0_4] : memref<1x1024xf32, #tpu.memory_space<vmem>>, vector<1x1024xf32>
    %4 = vector.broadcast %3 : vector<1x1024xf32> to vector<2x1024xf32>
    %5 = arith.addf %2, %4 : vector<2x1024xf32>
    %cst_5 = arith.constant 0.000000e+00 : f32
    %6 = vector.broadcast %cst_5 : f32 to vector<2x1024xf32>
    %7 = arith.maximumf %5, %6 : vector<2x1024xf32>
    %8 = arith.truncf %7 : vector<2x1024xf32> to vector<2x1024xbf16>
    %c0_6 = arith.constant 0 : index
    %c0_7 = arith.constant 0 : index
    %9 = vector.load %arg4[%c0_6, %c0_7] : memref<1024x384xbf16, #tpu.memory_space<vmem>>, vector<1024x384xbf16>
    %cst_8 = arith.constant dense<0.000000e+00> : vector<2x384xf32>
    %10 = tpu.matmul %8, %9, %cst_8 {dimension_numbers = #tpu.dot_dimension_numbers<[1], [0], [0], [1], [0, 0, 1, 1], [], []>} : vector<2x1024xbf16>, vector<1024x384xbf16>, vector<2x384xf32> -> vector<2x384xf32>
    %c0_9 = arith.constant 0 : index
    %c0_10 = arith.constant 0 : index
    %11 = vector.load %arg5[%c0_9, %c0_10] : memref<1x384xf32, #tpu.memory_space<vmem>>, vector<1x384xf32>
    %12 = vector.broadcast %11 : vector<1x384xf32> to vector<2x384xf32>
    %13 = arith.addf %10, %12 : vector<2x384xf32>
    %c0_11 = arith.constant 0 : index
    %c0_12 = arith.constant 0 : index
    %14 = vector.load %arg6[%c0_11, %c0_12] : memref<2x384xf32, #tpu.memory_space<vmem>>, vector<2x384xf32>
    tpu.vector_store %arg6[%c0_11, %c0_12], %13 {strides = array<i32>} : memref<2x384xf32, #tpu.memory_space<vmem>>, vector<2x384xf32>,
    return
  }
  func.func @transform_0(%arg0: i32) -> (i32, i32) {
    %c0_i32 = arith.constant 0 : i32
    %c0_i32_0 = arith.constant 0 : i32
    %c0_i32_1 = arith.constant 0 : i32
    return %c0_i32, %c0_i32_0 : i32, i32
  }
  func.func @transform_1(%arg0: i32) -> (i32, i32) {
    %c0_i32 = arith.constant 0 : i32
    %c0_i32_0 = arith.constant 0 : i32
    %c0_i32_1 = arith.constant 0 : i32
    return %c0_i32, %c0_i32_0 : i32, i32
  }
  func.func @transform_2(%arg0: i32) -> (i32, i32) {
    %c0_i32 = arith.constant 0 : i32
    %c0_i32_0 = arith.constant 0 : i32
    %c0_i32_1 = arith.constant 0 : i32
    return %c0_i32, %c0_i32_0 : i32, i32
  }
  func.func @transform_3(%arg0: i32) -> (i32, i32) {
    %c0_i32 = arith.constant 0 : i32
    %c0_i32_0 = arith.constant 0 : i32
    return %c0_i32, %arg0 : i32, i32
  }
  func.func @transform_4(%arg0: i32) -> (i32, i32) {
    %c0_i32 = arith.constant 0 : i32
    %c0_i32_0 = arith.constant 0 : i32
    return %c0_i32, %arg0 : i32, i32
  }
  func.func @transform_5(%arg0: i32) -> (i32, i32) {
    %c0_i32 = arith.constant 0 : i32
    %c0_i32_0 = arith.constant 0 : i32
    return %c0_i32, %arg0 : i32, i32
  }
}

</mosaic_0001>

<bundles_post_ra>
// kernel: forward.4
= control target key start
LH: loop header
LB: loop body
LE: loop exit
PB: predicated region body
PF: predicated region fallthrough
CT: control target
= control target key end

     0   :  { %8 = vsyncpa [#allocation3], 0  ;;  %s1476_s0 = inlined_call_operand.vmem [shape: bf16[512,27], index: 0, kind: input, shape index: {}]   ;;  %s1477_s1 = inlined_call_operand.hbm [shape: bf16[27,128], index: 1, kind: input, shape index: {}]   ;;  %s1478_s2 = inlined_call_operand.hbm [shape: f32[1,128], index: 2, kind: input, shape index: {}]   ;;  %s1479_s3 = inlined_call_operand.vmem [shape: bf16[128,128], index: 3, kind: output, shape index: {}]  }
   0x1   :  { %9 = vsyncpa [#allocation5], 0  ;;  %s1185_s12 = smov [#allocation2]   ;;  %s1137_s16 = scalar_lea.hbm %s1477_s1, 256 }
   0x2   :  { %s17_s13 = sshll.u32 %s1185_s12, 4  ;;  %p1138_p0 = scmp.ne.s32.totalorder %s1477_s1, %s1137_s16  ;;  %s18_s13 = int_to_ptr.vmem [resolvable:$true] %s17_s13 }
   0x3   :  { %p1141_p1 = scmp.lt.u32.totalorder %s1137_s16, %s1477_s1 }
   0x5   :  { %p1143_p2 = pnand %p1141_p1, %p1138_p0 }
   0x7   :  { %1146 = shalt.err (!%p1143_p2)
}
   0x8   :  { %s1147_s21 = scalar_lea.vmem %s18_s13, 256  ;;  %p1152_p4 = scmp.lt.s32.totalorder %s18_s13, %s18_s13 }
   0x9   :  { %p1148_p3 = scmp.ne.s32.totalorder %s18_s13, %s1147_s21  ;;  %p1153_p5 = scmp.lt.s32.totalorder %s1147_s21, %s1147_s21 }
   0xb   :  { %p1154_p6 = por %p1153_p5, %p1152_p4 }
   0xd   :  { %p1155_p7 = pnand %p1154_p6, %p1148_p3 }
   0xf   :  { %1158 = shalt.err (!%p1155_p7)
}
  0x10   :  { %s1186_s22 = smov 64   ;;  %s1187_s23 = smov 4  }
  0x11   :  { %23 = dma.hbm_to_vmem [thread:$0]  %s1477_s1, 256, %s18_s13, [#allocation3], %s1186_s22, %s1186_s22, %s1187_s23  }
  0x12   :  { %s1188_s26 = smov [#allocation4]   ;;  %s1159_s30 = scalar_lea.hbm %s1478_s2, 16 }
  0x13   :  { %s30_s27 = sshll.u32 %s1188_s26, 4  ;;  %p1160_p8 = scmp.ne.s32.totalorder %s1478_s2, %s1159_s30  ;;  %s31_s27 = int_to_ptr.vmem [resolvable:$true] %s30_s27 }
  0x14   :  { %p1163_p9 = scmp.lt.u32.totalorder %s1159_s30, %s1478_s2 }
  0x16   :  { %p1165_p10 = pnand %p1163_p9, %p1160_p8 }
  0x18   :  { %1168 = shalt.err (!%p1165_p10)
}
  0x19   :  { %s1169_s8 = scalar_lea.vmem %s31_s27, 16  ;;  %s1173_s1 = scalar_lea.vmem %s31_s27, 32 }
  0x1a   :  { %p1170_p11 = scmp.ne.s32.totalorder %s31_s27, %s1169_s8  ;;  %p1174_p12 = scmp.lt.s32.totalorder %s31_s27, %s31_s27 }
  0x1b   :  { %p1175_p13 = scmp.lt.s32.totalorder %s1173_s1, %s1169_s8 }
  0x1d   :  { %p1176_p0 = por %p1175_p13, %p1174_p12 }
  0x1f   :  { %p1177_p1 = pnand %p1176_p0, %p1170_p11 }
  0x21   :  { %1180 = shalt.err (!%p1177_p1)
}
  0x22   :  { %33 = dma.hbm_to_vmem [thread:$0]  %s1478_s2, 16, %s31_s27, [#allocation5]  }
  0x23   :  { %1181 = dma.done.wait [#allocation3], 256  }
  0x24   :  { %1182 = vsyncadd [#allocation3], 4294967040 }
  0x25   :  { %1183 = dma.done.wait [#allocation5], 16  }
  0x26   :  { %1184 = vsyncadd [#allocation5], 4294967280  ;;  %vm377_vm0 = vcmask 1044480   ;;  %vm378_vm1 = vcmask 1045504   ;;  %v1189_v0 = vmov 65535   ;;  %vm280_vm2 = vcmask 220160  }
  0x27   :  { %v379_v1 = vsel %vm377_vm0, 4294967295, %v1189_v0  ;;  %v1103_v2 = vld [vmem:[#allocation2] sm:$0xff]   ;;  %v1104_v4 = vld [vmem:[#allocation2 + $0x8] sm:$0x3f]   ;;  %v1109_v10 = vld [vmem:[%s1476_s0 + $0x10] sm:$0xff]  }
  0x28   :  { %v380_v3 = vsel %vm378_vm1, %v379_v1, 0  ;;  %1026 = vmatprep.subr.bf16.mxu0 %v1103_v2  ;;  %1094 = vmatprep.subr.bf16.mxu1 %v1103_v2  ;;  %v1105_v5 = vld [vmem:[%s1476_s0] sm:$0xff]   ;;  %v1107_v8 = vld [vmem:[%s1476_s0 + $0x8] sm:$0xff]   ;;  %v1110_v11 = vld [vmem:[%s1476_s0 + $0x90] sm:$0xff]  }
  0x29   :  { %1027 = vmatpush3.bf16.msra.mxu0 %v1103_v2  ;;  %1096 = vmatpush3.bf16.msra.mxu1 %v1103_v2  ;;  %v382_v6 = vand.u32 %v1104_v4, %v380_v3  ;;  %v1106_v7 = vld [vmem:[%s1476_s0 + $0x80] sm:$0xff]   ;;  %v1108_v9 = vld [vmem:[%s1476_s0 + $0x88] sm:$0xff]   ;;  %v1111_v12 = vld [vmem:[%s1476_s0 + $0x18] sm:$0xff]  }
  0x2a   :  { %1030 = vmatprep.mubr.msk.bf16.mxu0 %vm280_vm2, %v1105_v5  ;;  %1062 = vmatprep.mubr.msk.bf16.mxu1 %vm280_vm2, %v1106_v7  ;;  %v1112_v13 = vld [vmem:[%s1476_s0 + $0x98] sm:$0xff]   ;;  %v1113_v14 = vld [vmem:[%s1476_s0 + $0x20] sm:$0xff]   ;;  %v1115_v16 = vld [vmem:[%s1476_s0 + $0x28] sm:$0xff]  }
  0x2b   :  { %1028 = vmatprep.subr.bf16.mxu0 %v382_v6  ;;  %1095 = vmatprep.subr.bf16.mxu1 %v382_v6  ;;  %v1114_v15 = vld [vmem:[%s1476_s0 + $0xa0] sm:$0xff]   ;;  %v1116_v17 = vld [vmem:[%s1476_s0 + $0xa8] sm:$0xff]   ;;  %v1117_v18 = vld [vmem:[%s1476_s0 + $0x30] sm:$0xff]  }
  0x2c   :  { %v1118_v19 = vld [vmem:[%s1476_s0 + $0xb0] sm:$0xff]   ;;  %v1119_v20 = vld [vmem:[%s1476_s0 + $0x38] sm:$0xff]   ;;  %v1121_v22 = vld [vmem:[%s1476_s0 + $0x40] sm:$0xff]  }
  0x2d   :  { %1029 = vmatpush3.bf16.msra.mxu0 %v382_v6  ;;  %1097 = vmatpush3.bf16.msra.mxu1 %v382_v6  ;;  %v1120_v21 = vld [vmem:[%s1476_s0 + $0xb8] sm:$0xff]   ;;  %v1122_v23 = vld [vmem:[%s1476_s0 + $0xc0] sm:$0xff]   ;;  %v1123_v24 = vld [vmem:[%s1476_s0 + $0x48] sm:$0xff]  }
  0x2e   :  { %v1124_v25 = vld [vmem:[%s1476_s0 + $0xc8] sm:$0xff]   ;;  %v1125_v26 = vld [vmem:[%s1476_s0 + $0x50] sm:$0xff]   ;;  %v1127_v28 = vld [vmem:[%s1476_s0 + $0x58] sm:$0xff]  }
  0x2f   :  { %v1126_v27 = vld [vmem:[%s1476_s0 + $0xd0] sm:$0xff]   ;;  %v1128_v29 = vld [vmem:[%s1476_s0 + $0xd8] sm:$0xff]   ;;  %v1129_v30 = vld [vmem:[%s1476_s0 + $0x60] sm:$0xff]  }
  0x30   :  { %1031 = vmatmul.mubr.msk.bf16.vlgmr.msra.gmra.mrb[0].mxu0 %vm280_vm2, %v1107_v8  ;;  %1063 = vmatmul.mubr.msk.bf16.vlgmr.msra.gmra.mrb[0].mxu1 %vm280_vm2, %v1108_v9  ;;  %v1130_v31 = vld [vmem:[%s1476_s0 + $0xe0] sm:$0xff]   ;;  %v1131_v32 = vld [vmem:[%s1476_s0 + $0x68] sm:$0xff]   ;;  %v1133_v34 = vld [vmem:[%s1476_s0 + $0x70] sm:$0xff]  }
  0x31   :  { %1034 = vmatprep.mubr.msk.bf16.mxu0 %vm280_vm2, %v1109_v10  ;;  %1066 = vmatprep.mubr.msk.bf16.mxu1 %vm280_vm2, %v1110_v11  ;;  %v1132_v33 = vld [vmem:[%s1476_s0 + $0xe8] sm:$0xff]   ;;  %v1134_v35 = vld [vmem:[%s1476_s0 + $0xf0] sm:$0xff]   ;;  %v1135_v36 = vld [vmem:[%s1476_s0 + $0x78] sm:$0xff]  }
  0x32   :  { %v1136_v37 = vld [vmem:[%s1476_s0 + $0xf8] sm:$0xff]  }
  0x38   :  { %1035 = vmatmul.mubr.msk.bf16.gmra.mrb[4].mxu0 %vm280_vm2, %v1111_v12  ;;  %1067 = vmatmul.mubr.msk.bf16.gmra.mrb[4].mxu1 %vm280_vm2, %v1112_v13  ;;  %v1410_v12 = vld [vmem:[#allocation4] ss:$0 sm:$0xff] }
  0x39   :  { %1038 = vmatprep.mubr.msk.bf16.mxu0 %vm280_vm2, %v1113_v14  ;;  %1070 = vmatprep.mubr.msk.bf16.mxu1 %vm280_vm2, %v1114_v15 }
  0x40   :  { %1039 = vmatmul.mubr.msk.bf16.gmra.mrb[8].mxu0 %vm280_vm2, %v1115_v16  ;;  %1071 = vmatmul.mubr.msk.bf16.gmra.mrb[8].mxu1 %vm280_vm2, %v1116_v17 }
  0x41   :  { %1042 = vmatprep.mubr.msk.bf16.mxu0 %vm280_vm2, %v1117_v18  ;;  %1074 = vmatprep.mubr.msk.bf16.mxu1 %vm280_vm2, %v1118_v19 }
  0x48   :  { %1043 = vmatmul.mubr.msk.bf16.gmra.mrb[12].mxu0 %vm280_vm2, %v1119_v20  ;;  %1075 = vmatmul.mubr.msk.bf16.gmra.mrb[12].mxu1 %vm280_vm2, %v1120_v21 }
  0x49   :  { %1046 = vmatprep.mubr.msk.bf16.mxu0 %vm280_vm2, %v1121_v22  ;;  %1078 = vmatprep.mubr.msk.bf16.mxu1 %vm280_vm2, %v1122_v23 }
  0x50   :  { %1047 = vmatmul.mubr.msk.bf16.gmra.mrb[16].mxu0 %vm280_vm2, %v1123_v24  ;;  %1079 = vmatmul.mubr.msk.bf16.gmra.mrb[16].mxu1 %vm280_vm2, %v1124_v25 }
  0x51   :  { %1050 = vmatprep.mubr.msk.bf16.mxu0 %vm280_vm2, %v1125_v26  ;;  %1082 = vmatprep.mubr.msk.bf16.mxu1 %vm280_vm2, %v1126_v27 }
  0x58   :  { %1051 = vmatmul.mubr.msk.bf16.gmra.mrb[20].mxu0 %vm280_vm2, %v1127_v28  ;;  %1083 = vmatmul.mubr.msk.bf16.gmra.mrb[20].mxu1 %vm280_vm2, %v1128_v29 }
  0x59   :  { %1054 = vmatprep.mubr.msk.bf16.mxu0 %vm280_vm2, %v1129_v30  ;;  %1086 = vmatprep.mubr.msk.bf16.mxu1 %vm280_vm2, %v1130_v31 }
  0x60   :  { %1055 = vmatmul.mubr.msk.bf16.gmra.mrb[24].mxu0 %vm280_vm2, %v1131_v32  ;;  %1087 = vmatmul.mubr.msk.bf16.gmra.mrb[24].mxu1 %vm280_vm2, %v1132_v33 }
  0x61   :  { %1058 = vmatprep.mubr.msk.bf16.mxu0 %vm280_vm2, %v1133_v34  ;;  %1090 = vmatprep.mubr.msk.bf16.mxu1 %vm280_vm2, %v1134_v35 }
  0x68   :  { %1059 = vmatmul.mubr.msk.bf16.gmra.mrb[28].mxu0 %vm280_vm2, %v1135_v36  ;;  %1091 = vmatmul.mubr.msk.bf16.gmra.mrb[28].mxu1 %vm280_vm2, %v1136_v37 }
 0x103   :  { %v1032_v38 = vpop.f32.mrb[0].mxu0  ;;  %v1064_v39 = vpop.f32.mrb[0].mxu1 }
 0x104   :  { %v418_v40 = vpop.f32.mrb[1].mxu0  ;;  %v546_v41 = vpop.f32.mrb[1].mxu1 }
 0x105   :  { %v1033_v42 = vpop.f32.mrb[2].mxu0  ;;  %v1065_v43 = vpop.f32.mrb[2].mxu1 }
 0x106   :  { %v421_v44 = vpop.f32.mrb[3].mxu0  ;;  %v549_v45 = vpop.f32.mrb[3].mxu1 }
 0x10b   :  { %v1362_v46 = vpop.f32.mrb[4].mxu0  ;;  %v1364_v47 = vpop.f32.mrb[4].mxu1 }
 0x10c   :  { %v1366_v48 = vpop.f32.mrb[5].mxu0  ;;  %v1368_v49 = vpop.f32.mrb[5].mxu1 }
 0x10d   :  { %v1370_v50 = vpop.f32.mrb[6].mxu0  ;;  %v1372_v51 = vpop.f32.mrb[6].mxu1 }
 0x10e   :  { %v1374_v52 = vpop.f32.mrb[7].mxu0  ;;  %v1376_v53 = vpop.f32.mrb[7].mxu1 }
 0x113   :  { %v1378_v54 = vpop.f32.mrb[8].mxu0  ;;  %v1380_v55 = vpop.f32.mrb[8].mxu1 }
 0x114   :  { %v1382_v56 = vpop.f32.mrb[9].mxu0  ;;  %v1384_v57 = vpop.f32.mrb[9].mxu1 }
 0x115   :  { %v1386_v58 = vpop.f32.mrb[10].mxu0  ;;  %v1388_v59 = vpop.f32.mrb[10].mxu1 }
 0x116   :  { %v1390_v60 = vpop.f32.mrb[11].mxu0  ;;  %v1392_v61 = vpop.f32.mrb[11].mxu1 }
 0x11b   :  { %v1394_v62 = vpop.f32.mrb[12].mxu0  ;;  %v1396_v63 = vpop.f32.mrb[12].mxu1 }
 0x11c   :  { %v1398_v0 = vpop.f32.mrb[13].mxu0  ;;  %v1400_v1 = vpop.f32.mrb[13].mxu1 }
 0x11d   :  { %v1402_v2 = vpop.f32.mrb[14].mxu0  ;;  %v1404_v3 = vpop.f32.mrb[14].mxu1 }
 0x11e   :  { %v1406_v4 = vpop.f32.mrb[15].mxu0  ;;  %v1408_v5 = vpop.f32.mrb[15].mxu1 }
 0x123   :  { %v1048_v6 = vpop.f32.mrb[16].mxu0  ;;  %v1080_v7 = vpop.f32.mrb[16].mxu1 }
 0x124   :  { %v675_v8 = vmax.f32 %v1032_v38, %v1048_v6  ;;  %v691_v9 = vmax.f32 %v1064_v39, %v1080_v7  ;;  %v482_v10 = vpop.f32.mrb[17].mxu0  ;;  %v610_v11 = vpop.f32.mrb[17].mxu1 }
 0x125   :  { %v673_v13 = vmax.f32 %v418_v40, %v482_v10  ;;  %v689_v14 = vmax.f32 %v546_v41, %v610_v11  ;;  %v1049_v15 = vpop.f32.mrb[18].mxu0  ;;  %v1081_v16 = vpop.f32.mrb[18].mxu1 }
 0x126   :  { %v707_v17 = vmax.f32 %v675_v8, %v691_v9  ;;  %v676_v18 = vmax.f32 %v1033_v42, %v1049_v15  ;;  %v692_v19 = vmax.f32 %v1065_v43, %v1081_v16  ;;  %v485_v20 = vpop.f32.mrb[19].mxu0  ;;  %v613_v21 = vpop.f32.mrb[19].mxu1 }
 0x127   :  { %v705_v22 = vmax.f32 %v673_v13, %v689_v14  ;;  %v674_v23 = vmax.f32 %v421_v44, %v485_v20  ;;  %v690_v24 = vmax.f32 %v549_v45, %v613_v21 }
 0x128   :  { %v730_v25 = vadd.f32 %v1410_v12, %v707_v17  ;;  %v708_v26 = vmax.f32 %v676_v18, %v692_v19 }
 0x129   :  { %v728_v27 = vadd.f32 %v1410_v12, %v705_v22  ;;  %v706_v28 = vmax.f32 %v674_v23, %v690_v24 }
 0x12a   :  { %v731_v29 = vadd.f32 %v1410_v12, %v708_v26  ;;  %v746_v33 = vmax.f32 %v730_v25, 0.0 }
 0x12b   :  { %v729_v30 = vadd.f32 %v1410_v12, %v706_v28  ;;  %v1052_v31 = vpop.f32.mrb[20].mxu0  ;;  %v1084_v32 = vpop.f32.mrb[20].mxu1  ;;  %v744_v39 = vmax.f32 %v728_v27, 0.0 }
 0x12c   :  { %v747_v34 = vmax.f32 %v731_v29, 0.0  ;;  %v679_v35 = vmax.f32 %v1362_v46, %v1052_v31  ;;  %v695_v36 = vmax.f32 %v1364_v47, %v1084_v32  ;;  %v498_v37 = vpop.f32.mrb[21].mxu0  ;;  %v626_v38 = vpop.f32.mrb[21].mxu1 }
 0x12d   :  { %v745_v40 = vmax.f32 %v729_v30, 0.0  ;;  %v677_v41 = vmax.f32 %v1366_v48, %v498_v37  ;;  %v693_v42 = vmax.f32 %v1368_v49, %v626_v38  ;;  %v1053_v43 = vpop.f32.mrb[22].mxu0  ;;  %v1085_v44 = vpop.f32.mrb[22].mxu1 }
 0x12e   :  { %v953_v45 = vpack.c.bf16 %v747_v34, %v746_v33  ;;  %v711_v6 = vmax.f32 %v679_v35, %v695_v36  ;;  %v680_v7 = vmax.f32 %v1370_v50, %v1053_v43  ;;  %v696_v8 = vmax.f32 %v1372_v51, %v1085_v44  ;;  %v501_v9 = vpop.f32.mrb[23].mxu0  ;;  %v629_v46 = vpop.f32.mrb[23].mxu1 }
 0x12f   :  { %v948_v10 = vpack.c.bf16 %v745_v40, %v744_v39  ;;  %v709_v47 = vmax.f32 %v677_v41, %v693_v42  ;;  %v678_v11 = vmax.f32 %v1374_v52, %v501_v9  ;;  %v694_v13 = vmax.f32 %v1376_v53, %v629_v46 }
 0x130   :  { %985 = vst [vmem:[%s1479_s3 + $0x8] sm:$0xff] %v953_v45   ;;  %v734_v48 = vadd.f32 %v1410_v12, %v711_v6  ;;  %v712_v49 = vmax.f32 %v680_v7, %v696_v8 }
 0x131   :  { %949 = vst [vmem:[%s1479_s3] sm:$0xff] %v948_v10   ;;  %v732_v50 = vadd.f32 %v1410_v12, %v709_v47  ;;  %v710_v51 = vmax.f32 %v678_v11, %v694_v13 }
 0x132   :  { %v735_v14 = vadd.f32 %v1410_v12, %v712_v49  ;;  %v750_v16 = vmax.f32 %v734_v48, 0.0 }
 0x133   :  { %v733_v52 = vadd.f32 %v1410_v12, %v710_v51  ;;  %v1056_v15 = vpop.f32.mrb[24].mxu0  ;;  %v1088_v53 = vpop.f32.mrb[24].mxu1  ;;  %v748_v22 = vmax.f32 %v732_v50, 0.0 }
 0x134   :  { %v751_v17 = vmax.f32 %v735_v14, 0.0  ;;  %v683_v18 = vmax.f32 %v1378_v54, %v1056_v15  ;;  %v699_v19 = vmax.f32 %v1380_v55, %v1088_v53  ;;  %v514_v20 = vpop.f32.mrb[25].mxu0  ;;  %v642_v21 = vpop.f32.mrb[25].mxu1 }
 0x135   :  { %v749_v23 = vmax.f32 %v733_v52, 0.0  ;;  %v681_v24 = vmax.f32 %v1382_v56, %v514_v20  ;;  %v697_v25 = vmax.f32 %v1384_v57, %v642_v21  ;;  %v1057_v26 = vpop.f32.mrb[26].mxu0  ;;  %v1089_v27 = vpop.f32.mrb[26].mxu1 }
 0x136   :  { %v963_v28 = vpack.c.bf16 %v751_v17, %v750_v16  ;;  %v715_v29 = vmax.f32 %v683_v18, %v699_v19  ;;  %v684_v30 = vmax.f32 %v1386_v58, %v1057_v26  ;;  %v700_v31 = vmax.f32 %v1388_v59, %v1089_v27  ;;  %v517_v32 = vpop.f32.mrb[27].mxu0  ;;  %v645_v54 = vpop.f32.mrb[27].mxu1 }
 0x137   :  { %v958_v33 = vpack.c.bf16 %v749_v23, %v748_v22  ;;  %v713_v55 = vmax.f32 %v681_v24, %v697_v25  ;;  %v682_v34 = vmax.f32 %v1390_v60, %v517_v32  ;;  %v698_v35 = vmax.f32 %v1392_v61, %v645_v54 }
 0x138   :  { %987 = vst [vmem:[%s1479_s3 + $0x18] sm:$0xff] %v963_v28   ;;  %v738_v56 = vadd.f32 %v1410_v12, %v715_v29  ;;  %v716_v57 = vmax.f32 %v684_v30, %v700_v31 }
 0x139   :  { %986 = vst [vmem:[%s1479_s3 + $0x10] sm:$0xff] %v958_v33   ;;  %v736_v58 = vadd.f32 %v1410_v12, %v713_v55  ;;  %v714_v59 = vmax.f32 %v682_v34, %v698_v35 }
 0x13a   :  { %v739_v36 = vadd.f32 %v1410_v12, %v716_v57  ;;  %v754_v38 = vmax.f32 %v738_v56, 0.0 }
 0x13b   :  { %v737_v60 = vadd.f32 %v1410_v12, %v714_v59  ;;  %v1060_v37 = vpop.f32.mrb[28].mxu0  ;;  %v1092_v61 = vpop.f32.mrb[28].mxu1  ;;  %v752_v44 = vmax.f32 %v736_v58, 0.0 }
 0x13c   :  { %v755_v39 = vmax.f32 %v739_v36, 0.0  ;;  %v687_v40 = vmax.f32 %v1394_v62, %v1060_v37  ;;  %v703_v41 = vmax.f32 %v1396_v63, %v1092_v61  ;;  %v530_v42 = vpop.f32.mrb[29].mxu0  ;;  %v658_v43 = vpop.f32.mrb[29].mxu1 }
 0x13d   :  { %v753_v45 = vmax.f32 %v737_v60, 0.0  ;;  %v685_v6 = vmax.f32 %v1398_v0, %v530_v42  ;;  %v701_v7 = vmax.f32 %v1400_v1, %v658_v43  ;;  %v1061_v8 = vpop.f32.mrb[30].mxu0  ;;  %v1093_v9 = vpop.f32.mrb[30].mxu1 }
 0x13e   :  { %v973_v46 = vpack.c.bf16 %v755_v39, %v754_v38  ;;  %v719_v10 = vmax.f32 %v687_v40, %v703_v41  ;;  %v688_v47 = vmax.f32 %v1402_v2, %v1061_v8  ;;  %v704_v11 = vmax.f32 %v1404_v3, %v1093_v9  ;;  %v533_v13 = vpop.f32.mrb[31].mxu0  ;;  %v661_v62 = vpop.f32.mrb[31].mxu1 }
 0x13f   :  { %v968_v48 = vpack.c.bf16 %v753_v45, %v752_v44  ;;  %v717_v63 = vmax.f32 %v685_v6, %v701_v7  ;;  %v686_v49 = vmax.f32 %v1406_v4, %v533_v13  ;;  %v702_v50 = vmax.f32 %v1408_v5, %v661_v62 }
 0x140   :  { %989 = vst [vmem:[%s1479_s3 + $0x28] sm:$0xff] %v973_v46   ;;  %v742_v0 = vadd.f32 %v1410_v12, %v719_v10  ;;  %v720_v1 = vmax.f32 %v688_v47, %v704_v11 }
 0x141   :  { %988 = vst [vmem:[%s1479_s3 + $0x20] sm:$0xff] %v968_v48   ;;  %v740_v2 = vadd.f32 %v1410_v12, %v717_v63  ;;  %v718_v3 = vmax.f32 %v686_v49, %v702_v50 }
 0x142   :  { %v743_v51 = vadd.f32 %v1410_v12, %v720_v1  ;;  %v758_v14 = vmax.f32 %v742_v0, 0.0 }
 0x143   :  { %v741_v4 = vadd.f32 %v1410_v12, %v718_v3  ;;  %v756_v52 = vmax.f32 %v740_v2, 0.0 }
 0x144   :  { %v759_v5 = vmax.f32 %v743_v51, 0.0 }
 0x145   :  { %v757_v15 = vmax.f32 %v741_v4, 0.0 }
 0x146   :  { %v983_v53 = vpack.c.bf16 %v759_v5, %v758_v14 }
 0x147   :  { %v978_v16 = vpack.c.bf16 %v757_v15, %v756_v52 }
 0x148   :  { %991 = vst [vmem:[%s1479_s3 + $0x38] sm:$0xff] %v983_v53  }
 0x149   :  { %990 = vst [vmem:[%s1479_s3 + $0x30] sm:$0xff] %v978_v16  }
 0x14a   :  { %844 = vsyncpa [#allocation3], 1 }
 0x14b   :  { %845 = vsyncpa [#allocation5], 1 }

// kernel: forward.5
= control target key start
LH: loop header
LB: loop body
LE: loop exit
PB: predicated region body
PF: predicated region fallthrough
CT: control target
= control target key end

     0   :  { %s2771_s1 = inlined_call_operand.vmem [shape: bf16[1152,128], index: 1, kind: input, shape index: {}]   ;;  %s2772_s0 = inlined_call_operand.vmem [shape: bf16[128,1152], index: 0, kind: input, shape index: {}]   ;;  %s2773_s2 = inlined_call_operand.vmem [shape: f32[1,128], index: 2, kind: input, shape index: {}]   ;;  %s2774_s3 = inlined_call_operand.vmem [shape: bf16[32,128], index: 3, kind: output, shape index: {}]  }
   0x1   :  { %v2059_v0 = vld [vmem:[%s2771_s1 + $0x40] sm:$0xff]   ;;  %v2063_v4 = vld [vmem:[%s2771_s1 + $0x48] sm:$0xff]   ;;  %v2067_v8 = vld [vmem:[%s2771_s1 + $0x50] sm:$0xff]  }
   0x2   :  { %v2060_v1 = vld [vmem:[%s2771_s1 + $0xc0] sm:$0xff]   ;;  %1739 = vmatprep.subr.bf16.mxu0 %v2059_v0  ;;  %v2064_v5 = vld [vmem:[%s2771_s1 + $0xc8] sm:$0xff]   ;;  %v2068_v9 = vld [vmem:[%s2771_s1 + $0xd0] sm:$0xff]  }
   0x3   :  { %v2061_v2 = vld [vmem:[%s2771_s1] sm:$0xff]   ;;  %1803 = vmatprep.subr.bf16.mxu1 %v2060_v1  ;;  %v2065_v6 = vld [vmem:[%s2771_s1 + $0x8] sm:$0xff]   ;;  %v2069_v10 = vld [vmem:[%s2771_s1 + $0x10] sm:$0xff]  }
   0x4   :  { %v2062_v3 = vld [vmem:[%s2771_s1 + $0x80] sm:$0xff]   ;;  %1740 = vmatpush3.bf16.msra.mxu0 %v2061_v2  ;;  %v2066_v7 = vld [vmem:[%s2771_s1 + $0x88] sm:$0xff]   ;;  %v2070_v11 = vld [vmem:[%s2771_s1 + $0x90] sm:$0xff]  }
   0x5   :  { %1804 = vmatpush3.bf16.msra.mxu1 %v2062_v3  ;;  %1741 = vmatprep.subr.bf16.mxu0 %v2063_v4  ;;  %v2071_v12 = vld [vmem:[%s2771_s1 + $0x58] sm:$0xff]   ;;  %v2075_v16 = vld [vmem:[%s2771_s1 + $0x60] sm:$0xff]   ;;  %v2079_v20 = vld [vmem:[%s2771_s1 + $0x68] sm:$0xff]  }
   0x6   :  { %1805 = vmatprep.subr.bf16.mxu1 %v2064_v5  ;;  %v2072_v13 = vld [vmem:[%s2771_s1 + $0xd8] sm:$0xff]   ;;  %v2076_v17 = vld [vmem:[%s2771_s1 + $0xe0] sm:$0xff]   ;;  %v2080_v21 = vld [vmem:[%s2771_s1 + $0xe8] sm:$0xff]  }
   0x7   :  { %v2073_v14 = vld [vmem:[%s2771_s1 + $0x18] sm:$0xff]   ;;  %v2077_v18 = vld [vmem:[%s2771_s1 + $0x20] sm:$0xff]   ;;  %v2081_v22 = vld [vmem:[%s2771_s1 + $0x28] sm:$0xff]  }
   0x8   :  { %1742 = vmatpush3.bf16.msra.mxu0 %v2065_v6  ;;  %v2074_v15 = vld [vmem:[%s2771_s1 + $0x98] sm:$0xff]   ;;  %v2078_v19 = vld [vmem:[%s2771_s1 + $0xa0] sm:$0xff]   ;;  %v2082_v23 = vld [vmem:[%s2771_s1 + $0xa8] sm:$0xff]  }
   0x9   :  { %1806 = vmatpush3.bf16.msra.mxu1 %v2066_v7  ;;  %1743 = vmatprep.subr.bf16.mxu0 %v2067_v8  ;;  %v2083_v24 = vld [vmem:[%s2771_s1 + $0x70] sm:$0xff]   ;;  %v2087_v28 = vld [vmem:[%s2771_s1 + $0x78] sm:$0xff]   ;;  %v2091_v32 = vld [vmem:[%s2772_s0] ss:$36 sps:$4 sm:$0xff]  }
   0xa   :  { %1807 = vmatprep.subr.bf16.mxu1 %v2068_v9  ;;  %v2084_v25 = vld [vmem:[%s2771_s1 + $0xf0] sm:$0xff]   ;;  %v2088_v29 = vld [vmem:[%s2771_s1 + $0xf8] sm:$0xff]   ;;  %v2093_v33 = vld [vmem:[%s2772_s0 + $0x4] ss:$36 sps:$4 sm:$0xff]  }
   0xb   :  { %v2085_v26 = vld [vmem:[%s2771_s1 + $0x30] sm:$0xff]   ;;  %v2089_v30 = vld [vmem:[%s2771_s1 + $0x38] sm:$0xff]   ;;  %v2094_v34 = vld [vmem:[%s2772_s0 + $0x8] ss:$36 sps:$4 sm:$0xff]   ;;  %1071 = vmatprep.mubr.bf16.mxu0 %v2093_v33 }
   0xc   :  { %1744 = vmatpush3.bf16.msra.mxu0 %v2069_v10  ;;  %v2086_v27 = vld [vmem:[%s2771_s1 + $0xb0] sm:$0xff]   ;;  %v2090_v31 = vld [vmem:[%s2771_s1 + $0xb8] sm:$0xff]   ;;  %v2097_v36 = vld [vmem:[%s2771_s1 + $0x140] sm:$0xff]  }
   0xd   :  { %1808 = vmatpush3.bf16.msra.mxu1 %v2070_v11  ;;  %1745 = vmatprep.subr.bf16.mxu0 %v2071_v12  ;;  %v2096_v35 = vld [vmem:[%s2772_s0 + $0xc] ss:$36 sps:$4 sm:$0xff]   ;;  %v2098_v37 = vld [vmem:[%s2771_s1 + $0x1c0] sm:$0xff]   ;;  %v2103_v41 = vld [vmem:[%s2772_s0 + $0x54] ss:$36 sps:$4 sm:$0xff]  }
   0xe   :  { %1809 = vmatprep.subr.bf16.mxu1 %v2072_v13  ;;  %1168 = vmatprep.mubr.bf16.mxu1 %v2096_v35  ;;  %v2099_v38 = vld [vmem:[%s2771_s1 + $0x100] sm:$0xff]   ;;  %v2101_v40 = vld [vmem:[%s2772_s0 + $0x4c] ss:$36 sps:$4 sm:$0xff]   ;;  %v2111_v48 = vld [vmem:[%s2772_s0 + $0x94] ss:$36 sps:$4 sm:$0xff]  }
   0xf   :  { %v2100_v39 = vld [vmem:[%s2771_s1 + $0x180] sm:$0xff]   ;;  %v2105_v42 = vld [vmem:[%s2772_s0 + $0x48] ss:$36 sps:$4 sm:$0xff]   ;;  %v2106_v43 = vld [vmem:[%s2772_s0 + $0x50] ss:$36 sps:$4 sm:$0xff]  }
  0x10   :  { %1746 = vmatpush3.bf16.msra.mxu0 %v2073_v14  ;;  %v2107_v44 = vld [vmem:[%s2771_s1 + $0x148] sm:$0xff]   ;;  %v2113_v49 = vld [vmem:[%s2772_s0 + $0x9c] ss:$36 sps:$4 sm:$0xff]   ;;  %v2115_v50 = vld [vmem:[%s2772_s0 + $0x90] ss:$36 sps:$4 sm:$0xff]  }
  0x11   :  { %1810 = vmatpush3.bf16.msra.mxu1 %v2074_v15  ;;  %1747 = vmatprep.subr.bf16.mxu0 %v2075_v16  ;;  %v2108_v45 = vld [vmem:[%s2771_s1 + $0x1c8] sm:$0xff]   ;;  %v2116_v51 = vld [vmem:[%s2772_s0 + $0x98] ss:$36 sps:$4 sm:$0xff]   ;;  %v2117_v52 = vld [vmem:[%s2771_s1 + $0x150] sm:$0xff]  }
  0x12   :  { %1811 = vmatprep.subr.bf16.mxu1 %v2076_v17  ;;  %v2109_v46 = vld [vmem:[%s2771_s1 + $0x108] sm:$0xff]   ;;  %v2118_v53 = vld [vmem:[%s2771_s1 + $0x1d0] sm:$0xff]   ;;  %v2121_v56 = vld [vmem:[%s2772_s0 + $0xdc] ss:$36 sps:$4 sm:$0xff]  }
  0x13   :  { %v2110_v47 = vld [vmem:[%s2771_s1 + $0x188] sm:$0xff]   ;;  %v2119_v54 = vld [vmem:[%s2771_s1 + $0x110] sm:$0xff]   ;;  %v2125_v58 = vld [vmem:[%s2772_s0 + $0xd8] ss:$36 sps:$4 sm:$0xff]  }
  0x14   :  { %1748 = vmatpush3.bf16.msra.mxu0 %v2077_v18  ;;  %v2120_v55 = vld [vmem:[%s2771_s1 + $0x190] sm:$0xff]   ;;  %v2123_v57 = vld [vmem:[%s2772_s0 + $0xe4] ss:$36 sps:$4 sm:$0xff]   ;;  %v2127_v60 = vld [vmem:[%s2771_s1 + $0x158] sm:$0xff]  }
  0x15   :  { %1812 = vmatpush3.bf16.msra.mxu1 %v2078_v19  ;;  %1749 = vmatprep.subr.bf16.mxu0 %v2079_v20  ;;  %v2126_v59 = vld [vmem:[%s2772_s0 + $0xe0] ss:$36 sps:$4 sm:$0xff]   ;;  %v2128_v61 = vld [vmem:[%s2771_s1 + $0x1d8] sm:$0xff]   ;;  %v2133_v1 = vld [vmem:[%s2772_s0 + $0x12c] ss:$36 sps:$4 sm:$0xff]  }
  0x16   :  { %1813 = vmatprep.subr.bf16.mxu1 %v2080_v21  ;;  %v2129_v62 = vld [vmem:[%s2771_s1 + $0x118] sm:$0xff]   ;;  %v2131_v0 = vld [vmem:[%s2772_s0 + $0x124] ss:$36 sps:$4 sm:$0xff]   ;;  %v2141_v8 = vld [vmem:[%s2772_s0 + $0x16c] ss:$36 sps:$4 sm:$0xff]  }
  0x17   :  { %v2130_v63 = vld [vmem:[%s2771_s1 + $0x198] sm:$0xff]   ;;  %v2135_v2 = vld [vmem:[%s2772_s0 + $0x120] ss:$36 sps:$4 sm:$0xff]   ;;  %v2136_v4 = vld [vmem:[%s2772_s0 + $0x128] ss:$36 sps:$4 sm:$0xff]  }
  0x18   :  { %1750 = vmatpush3.bf16.msra.mxu0 %v2081_v22  ;;  %v2137_v3 = vld [vmem:[%s2771_s1 + $0x160] sm:$0xff]   ;;  %v2143_v9 = vld [vmem:[%s2772_s0 + $0x174] ss:$36 sps:$4 sm:$0xff]   ;;  %v2147_v10 = vld [vmem:[%s2771_s1 + $0x168] sm:$0xff]  }
  0x19   :  { %1814 = vmatpush3.bf16.msra.mxu1 %v2082_v23  ;;  %1751 = vmatprep.subr.bf16.mxu0 %v2083_v24  ;;  %v2138_v5 = vld [vmem:[%s2771_s1 + $0x1e0] sm:$0xff]   ;;  %v2148_v11 = vld [vmem:[%s2771_s1 + $0x1e8] sm:$0xff]   ;;  %v2146_v15 = vld [vmem:[%s2772_s0 + $0x170] ss:$36 sps:$4 sm:$0xff]  }
  0x1a   :  { %1815 = vmatprep.subr.bf16.mxu1 %v2084_v25  ;;  %v2139_v6 = vld [vmem:[%s2771_s1 + $0x120] sm:$0xff]   ;;  %v2145_v12 = vld [vmem:[%s2772_s0 + $0x168] ss:$36 sps:$4 sm:$0xff]   ;;  %v2151_v16 = vld [vmem:[%s2772_s0 + $0x1b4] ss:$36 sps:$4 sm:$0xff]  }
  0x1b   :  { %v2140_v7 = vld [vmem:[%s2771_s1 + $0x1a0] sm:$0xff]   ;;  %v2149_v13 = vld [vmem:[%s2771_s1 + $0x128] sm:$0xff]   ;;  %v2157_v18 = vld [vmem:[%s2771_s1 + $0x170] sm:$0xff]  }
  0x1c   :  { %1752 = vmatpush3.bf16.msra.mxu0 %v2085_v26  ;;  %v2150_v14 = vld [vmem:[%s2771_s1 + $0x1a8] sm:$0xff]   ;;  %v2153_v17 = vld [vmem:[%s2772_s0 + $0x1bc] ss:$36 sps:$4 sm:$0xff]   ;;  %v2158_v19 = vld [vmem:[%s2771_s1 + $0x1f0] sm:$0xff]  }
  0x1d   :  { %1816 = vmatpush3.bf16.msra.mxu1 %v2086_v27  ;;  %1753 = vmatprep.subr.bf16.mxu0 %v2087_v28  ;;  %v2159_v20 = vld [vmem:[%s2771_s1 + $0x130] sm:$0xff]   ;;  %v2156_v23 = vld [vmem:[%s2772_s0 + $0x1b8] ss:$36 sps:$4 sm:$0xff]   ;;  %v2163_v25 = vld [vmem:[%s2772_s0 + $0x204] ss:$36 sps:$4 sm:$0xff]  }
  0x1e   :  { %1817 = vmatprep.subr.bf16.mxu1 %v2088_v29  ;;  %v2160_v21 = vld [vmem:[%s2771_s1 + $0x1b0] sm:$0xff]   ;;  %v2161_v24 = vld [vmem:[%s2772_s0 + $0x1fc] ss:$36 sps:$4 sm:$0xff]  }
  0x1f   :  { %v2155_v22 = vld [vmem:[%s2772_s0 + $0x1b0] ss:$36 sps:$4 sm:$0xff]   ;;  %v2167_v26 = vld [vmem:[%s2771_s1 + $0x178] sm:$0xff]  }
  0x20   :  { %1754 = vmatpush3.bf16.msra.mxu0 %v2089_v30  ;;  %v2168_v27 = vld [vmem:[%s2771_s1 + $0x1f8] sm:$0xff]   ;;  %v2171_v35 = vld [vmem:[%s2772_s0 + $0x10] ss:$36 sps:$4 sm:$0xff]  }
  0x21   :  { %1818 = vmatpush3.bf16.msra.mxu1 %v2090_v31  ;;  %1867 = vmatprep.subr.bf16.mxu0 %v2097_v36  ;;  %v2169_v28 = vld [vmem:[%s2771_s1 + $0x138] sm:$0xff]   ;;  %v2166_v31 = vld [vmem:[%s2772_s0 + $0x200] ss:$36 sps:$4 sm:$0xff]  }
  0x22   :  { %1931 = vmatprep.subr.bf16.mxu1 %v2098_v37  ;;  %v2170_v29 = vld [vmem:[%s2771_s1 + $0x1b8] sm:$0xff]  }
  0x23   :  { %1072 = vmatmul.mubr.bf16.vlgmr.msra.gmra.mrb[0].mxu0 %v2091_v32  ;;  %v2165_v30 = vld [vmem:[%s2772_s0 + $0x1f8] ss:$36 sps:$4 sm:$0xff]   ;;  %v2177_v32 = vld [vmem:[%s2771_s1 + $0x200] sm:$0xff]  }
  0x24   :  { %1169 = vmatmul.mubr.bf16.vlgmr.msra.gmra.mrb[0].mxu1 %v2094_v34  ;;  %1868 = vmatpush3.bf16.msra.mxu0 %v2099_v38  ;;  %v2173_v33 = vld [vmem:[%s2772_s0 + $0x14] ss:$36 sps:$4 sm:$0xff]   ;;  %v2176_v34 = vld [vmem:[%s2772_s0 + $0x1c] ss:$36 sps:$4 sm:$0xff]   ;;  %v2180_v38 = vld [vmem:[%s2772_s0 + $0x64] ss:$36 sps:$4 sm:$0xff]  }
  0x25   :  { %1932 = vmatpush3.bf16.msra.mxu1 %v2100_v39  ;;  %1079 = vmatprep.mubr.bf16.mxu0 %v2101_v40  ;;  %v2174_v36 = vld [vmem:[%s2772_s0 + $0x18] ss:$36 sps:$4 sm:$0xff]   ;;  %v2184_v39 = vld [vmem:[%s2771_s1 + $0x208] sm:$0xff]   ;;  %v2191_v40 = vld [vmem:[%s2771_s1 + $0x210] sm:$0xff]  }
  0x26   :  { %1176 = vmatprep.mubr.bf16.mxu1 %v2103_v41  ;;  %1869 = vmatprep.subr.bf16.mxu0 %v2107_v44  ;;  %v2178_v37 = vld [vmem:[%s2772_s0 + $0x5c] ss:$36 sps:$4 sm:$0xff]   ;;  %v2187_v44 = vld [vmem:[%s2772_s0 + $0xac] ss:$36 sps:$4 sm:$0xff]  }
  0x27   :  { %1933 = vmatprep.subr.bf16.mxu1 %v2108_v45  ;;  %v2182_v41 = vld [vmem:[%s2772_s0 + $0x58] ss:$36 sps:$4 sm:$0xff]  }
  0x28   :  { %1870 = vmatpush3.bf16.msra.mxu0 %v2109_v46  ;;  %v2198_v45 = vld [vmem:[%s2771_s1 + $0x218] sm:$0xff]   ;;  %v2205_v46 = vld [vmem:[%s2771_s1 + $0x220] sm:$0xff]  }
  0x29   :  { %1934 = vmatpush3.bf16.msra.mxu1 %v2110_v47  ;;  %1871 = vmatprep.subr.bf16.mxu0 %v2117_v52  ;;  %v2189_v47 = vld [vmem:[%s2772_s0 + $0xa0] ss:$36 sps:$4 sm:$0xff]   ;;  %v2196_v52 = vld [vmem:[%s2772_s0 + $0xe8] ss:$36 sps:$4 sm:$0xff]  }
  0x2a   :  { %1935 = vmatprep.subr.bf16.mxu1 %v2118_v53  ;;  %v2219_v53 = vld [vmem:[%s2771_s1 + $0x230] sm:$0xff]  }
  0x2b   :  { %1080 = vmatmul.mubr.bf16.gmra.mrb[4].mxu0 %v2105_v42  ;;  %v2183_v42 = vld [vmem:[%s2772_s0 + $0x60] ss:$36 sps:$4 sm:$0xff]  }
  0x2c   :  { %1177 = vmatmul.mubr.bf16.gmra.mrb[4].mxu1 %v2106_v43  ;;  %1087 = vmatprep.mubr.bf16.mxu0 %v2111_v48  ;;  %v2185_v43 = vld [vmem:[%s2772_s0 + $0xa4] ss:$36 sps:$4 sm:$0xff]  }
  0x2d   :  { %1184 = vmatprep.mubr.bf16.mxu1 %v2113_v49  ;;  %1872 = vmatpush3.bf16.msra.mxu0 %v2119_v54  ;;  %v2190_v48 = vld [vmem:[%s2772_s0 + $0xa8] ss:$36 sps:$4 sm:$0xff]   ;;  %v2197_v54 = vld [vmem:[%s2772_s0 + $0xf0] ss:$36 sps:$4 sm:$0xff]  }
  0x2e   :  { %1936 = vmatpush3.bf16.msra.mxu1 %v2120_v55  ;;  %1873 = vmatprep.subr.bf16.mxu0 %v2127_v60  ;;  %v2192_v49 = vld [vmem:[%s2772_s0 + $0xec] ss:$36 sps:$4 sm:$0xff]   ;;  %v2199_v55 = vld [vmem:[%s2772_s0 + $0x134] ss:$36 sps:$4 sm:$0xff]   ;;  %v2206_v60 = vld [vmem:[%s2772_s0 + $0x17c] ss:$36 sps:$4 sm:$0xff]  }
  0x2f   :  { %1937 = vmatprep.subr.bf16.mxu1 %v2128_v61  ;;  %v2208_v61 = vld [vmem:[%s2772_s0 + $0x184] ss:$36 sps:$4 sm:$0xff]  }
  0x31   :  { %1874 = vmatpush3.bf16.msra.mxu0 %v2129_v62  ;;  %v2210_v62 = vld [vmem:[%s2772_s0 + $0x178] ss:$36 sps:$4 sm:$0xff]  }
  0x32   :  { %1938 = vmatpush3.bf16.msra.mxu1 %v2130_v63  ;;  %1875 = vmatprep.subr.bf16.mxu0 %v2137_v3  ;;  %v2211_v63 = vld [vmem:[%s2772_s0 + $0x180] ss:$36 sps:$4 sm:$0xff]   ;;  %v2218_v3 = vld [vmem:[%s2772_s0 + $0x1c8] ss:$36 sps:$4 sm:$0xff]  }
  0x33   :  { %1088 = vmatmul.mubr.bf16.gmra.mrb[8].mxu0 %v2115_v50  ;;  %1939 = vmatprep.subr.bf16.mxu1 %v2138_v5  ;;  %v2194_v50 = vld [vmem:[%s2772_s0 + $0xf4] ss:$36 sps:$4 sm:$0xff]  }
  0x34   :  { %1185 = vmatmul.mubr.bf16.gmra.mrb[8].mxu1 %v2116_v51  ;;  %1095 = vmatprep.mubr.bf16.mxu0 %v2121_v56  ;;  %v2212_v51 = vld [vmem:[%s2771_s1 + $0x228] sm:$0xff]   ;;  %v2201_v56 = vld [vmem:[%s2772_s0 + $0x13c] ss:$36 sps:$4 sm:$0xff]   ;;  %v2222_v5 = vld [vmem:[%s2772_s0 + $0x214] ss:$36 sps:$4 sm:$0xff]  }
  0x35   :  { %1192 = vmatprep.mubr.bf16.mxu1 %v2123_v57  ;;  %1876 = vmatpush3.bf16.msra.mxu0 %v2139_v6  ;;  %v2226_v57 = vld [vmem:[%s2771_s1 + $0x238] sm:$0xff]   ;;  %v2224_v6 = vld [vmem:[%s2772_s0 + $0x208] ss:$36 sps:$4 sm:$0xff]  }
  0x36   :  { %1940 = vmatpush3.bf16.msra.mxu1 %v2140_v7  ;;  %1877 = vmatprep.subr.bf16.mxu0 %v2147_v10  ;;  %v2225_v7 = vld [vmem:[%s2772_s0 + $0x210] ss:$36 sps:$4 sm:$0xff]   ;;  %v2229_v10 = vld [vmem:[%s2772_s0 + $0x68] ss:$36 sps:$4 sm:$0xff]  }
  0x37   :  { %1941 = vmatprep.subr.bf16.mxu1 %v2148_v11  ;;  %v2230_v11 = vld [vmem:[%s2772_s0 + $0x188] ss:$36 sps:$4 sm:$0xff]  }
  0x39   :  { %1878 = vmatpush3.bf16.msra.mxu0 %v2149_v13  ;;  %v2232_v13 = vld [vmem:[%s2772_s0 + $0x1d0] ss:$36 sps:$4 sm:$0xff]  }
  0x3a   :  { %1942 = vmatpush3.bf16.msra.mxu1 %v2150_v14  ;;  %1879 = vmatprep.subr.bf16.mxu0 %v2157_v18  ;;  %v2233_v14 = vld [vmem:[%s2772_s0 + $0xf8] ss:$36 sps:$4 sm:$0xff]  }
  0x3b   :  { %1096 = vmatmul.mubr.bf16.gmra.mrb[12].mxu0 %v2125_v58  ;;  %1943 = vmatprep.subr.bf16.mxu1 %v2158_v19  ;;  %v2203_v58 = vld [vmem:[%s2772_s0 + $0x130] ss:$36 sps:$4 sm:$0xff]  }
  0x3c   :  { %1193 = vmatmul.mubr.bf16.gmra.mrb[12].mxu1 %v2126_v59  ;;  %1103 = vmatprep.mubr.bf16.mxu0 %v2131_v0  ;;  %v2204_v59 = vld [vmem:[%s2772_s0 + $0x138] ss:$36 sps:$4 sm:$0xff]   ;;  %v2213_v0 = vld [vmem:[%s2772_s0 + $0x1c4] ss:$36 sps:$4 sm:$0xff]  }
  0x3d   :  { %1200 = vmatprep.mubr.bf16.mxu1 %v2133_v1  ;;  %1880 = vmatpush3.bf16.msra.mxu0 %v2159_v20  ;;  %v2215_v1 = vld [vmem:[%s2772_s0 + $0x1cc] ss:$36 sps:$4 sm:$0xff]  }
  0x3e   :  { %1944 = vmatpush3.bf16.msra.mxu1 %v2160_v21  ;;  %1881 = vmatprep.subr.bf16.mxu0 %v2167_v26 }
  0x3f   :  { %1945 = vmatprep.subr.bf16.mxu1 %v2168_v27 }
  0x41   :  { %1882 = vmatpush3.bf16.msra.mxu0 %v2169_v28 }
  0x42   :  { %1946 = vmatpush3.bf16.msra.mxu1 %v2170_v29  ;;  %2011 = vmatprep.subr.bf16.mxu0 %v2177_v32 }
  0x43   :  { %1104 = vmatmul.mubr.bf16.gmra.mrb[16].mxu0 %v2135_v2  ;;  %2043 = vmatprep.subr.bf16.mxu1 %v2177_v32  ;;  %v2217_v2 = vld [vmem:[%s2772_s0 + $0x1c0] ss:$36 sps:$4 sm:$0xff]  }
  0x44   :  { %1201 = vmatmul.mubr.bf16.gmra.mrb[16].mxu1 %v2136_v4  ;;  %1111 = vmatprep.mubr.bf16.mxu0 %v2141_v8  ;;  %v2220_v4 = vld [vmem:[%s2772_s0 + $0x20c] ss:$36 sps:$4 sm:$0xff]   ;;  %v2227_v8 = vld [vmem:[%s2772_s0 + $0x20] ss:$36 sps:$4 sm:$0xff]  }
  0x45   :  { %1208 = vmatprep.mubr.bf16.mxu1 %v2143_v9  ;;  %v2228_v9 = vld [vmem:[%s2772_s0 + $0x140] ss:$36 sps:$4 sm:$0xff]  }
  0x4b   :  { %1112 = vmatmul.mubr.bf16.gmra.mrb[20].mxu0 %v2145_v12  ;;  %v2231_v12 = vld [vmem:[%s2772_s0 + $0xb0] ss:$36 sps:$4 sm:$0xff]  }
  0x4c   :  { %1209 = vmatmul.mubr.bf16.gmra.mrb[20].mxu1 %v2146_v15  ;;  %1119 = vmatprep.mubr.bf16.mxu0 %v2151_v16  ;;  %v2234_v15 = vld [vmem:[%s2772_s0 + $0x218] ss:$36 sps:$4 sm:$0xff]  }
  0x4d   :  { %1216 = vmatprep.mubr.bf16.mxu1 %v2153_v17 }
  0x53   :  { %1120 = vmatmul.mubr.bf16.gmra.mrb[24].mxu0 %v2155_v22 }
  0x54   :  { %1217 = vmatmul.mubr.bf16.gmra.mrb[24].mxu1 %v2156_v23  ;;  %1127 = vmatprep.mubr.bf16.mxu0 %v2161_v24 }
  0x55   :  { %1224 = vmatprep.mubr.bf16.mxu1 %v2163_v25 }
  0x5b   :  { %1128 = vmatmul.mubr.bf16.gmra.mrb[28].mxu0 %v2165_v30 }
  0x5c   :  { %1225 = vmatmul.mubr.bf16.gmra.mrb[28].mxu1 %v2166_v31  ;;  %1265 = vmatprep.mubr.bf16.mxu0 %v2173_v33 }
  0x5d   :  { %1362 = vmatprep.mubr.bf16.mxu1 %v2176_v34 }
  0x63   :  { %1266 = vmatmul.mubr.bf16.vlgmr.msra.gmra.mrb[32].mxu0 %v2171_v35 }
  0x64   :  { %1363 = vmatmul.mubr.bf16.vlgmr.msra.gmra.mrb[32].mxu1 %v2174_v36  ;;  %2012 = vmatpush3.bf16.msra.mxu0 %v2177_v32 }
  0x65   :  { %2051 = vmatpush3.bf16.msra.mxu1 %v2177_v32  ;;  %1273 = vmatprep.mubr.bf16.mxu0 %v2178_v37 }
  0x66   :  { %1370 = vmatprep.mubr.bf16.mxu1 %v2180_v38  ;;  %2013 = vmatprep.subr.bf16.mxu0 %v2184_v39 }
  0x67   :  { %2044 = vmatprep.subr.bf16.mxu1 %v2184_v39 }
  0x68   :  { %2014 = vmatpush3.bf16.msra.mxu0 %v2184_v39 }
  0x69   :  { %2052 = vmatpush3.bf16.msra.mxu1 %v2184_v39  ;;  %2015 = vmatprep.subr.bf16.mxu0 %v2191_v40 }
  0x6a   :  { %2045 = vmatprep.subr.bf16.mxu1 %v2191_v40 }
  0x6b   :  { %1274 = vmatmul.mubr.bf16.gmra.mrb[36].mxu0 %v2182_v41 }
  0x6c   :  { %1371 = vmatmul.mubr.bf16.gmra.mrb[36].mxu1 %v2183_v42  ;;  %1281 = vmatprep.mubr.bf16.mxu0 %v2185_v43 }
  0x6d   :  { %1378 = vmatprep.mubr.bf16.mxu1 %v2187_v44  ;;  %2016 = vmatpush3.bf16.msra.mxu0 %v2191_v40 }
  0x6e   :  { %2053 = vmatpush3.bf16.msra.mxu1 %v2191_v40  ;;  %2017 = vmatprep.subr.bf16.mxu0 %v2198_v45 }
  0x6f   :  { %2046 = vmatprep.subr.bf16.mxu1 %v2198_v45 }
  0x71   :  { %2018 = vmatpush3.bf16.msra.mxu0 %v2198_v45 }
  0x72   :  { %2054 = vmatpush3.bf16.msra.mxu1 %v2198_v45  ;;  %2019 = vmatprep.subr.bf16.mxu0 %v2205_v46 }
  0x73   :  { %1282 = vmatmul.mubr.bf16.gmra.mrb[40].mxu0 %v2189_v47  ;;  %2047 = vmatprep.subr.bf16.mxu1 %v2205_v46 }
  0x74   :  { %1379 = vmatmul.mubr.bf16.gmra.mrb[40].mxu1 %v2190_v48  ;;  %1289 = vmatprep.mubr.bf16.mxu0 %v2192_v49 }
  0x75   :  { %1386 = vmatprep.mubr.bf16.mxu1 %v2194_v50  ;;  %2020 = vmatpush3.bf16.msra.mxu0 %v2205_v46 }
  0x76   :  { %2055 = vmatpush3.bf16.msra.mxu1 %v2205_v46  ;;  %2021 = vmatprep.subr.bf16.mxu0 %v2212_v51 }
  0x77   :  { %2048 = vmatprep.subr.bf16.mxu1 %v2212_v51 }
  0x79   :  { %2022 = vmatpush3.bf16.msra.mxu0 %v2212_v51 }
  0x7a   :  { %2056 = vmatpush3.bf16.msra.mxu1 %v2212_v51  ;;  %2023 = vmatprep.subr.bf16.mxu0 %v2219_v53 }
  0x7b   :  { %1290 = vmatmul.mubr.bf16.gmra.mrb[44].mxu0 %v2196_v52  ;;  %2049 = vmatprep.subr.bf16.mxu1 %v2219_v53 }
  0x7c   :  { %1387 = vmatmul.mubr.bf16.gmra.mrb[44].mxu1 %v2197_v54  ;;  %1297 = vmatprep.mubr.bf16.mxu0 %v2199_v55 }
  0x7d   :  { %1394 = vmatprep.mubr.bf16.mxu1 %v2201_v56  ;;  %2024 = vmatpush3.bf16.msra.mxu0 %v2219_v53 }
  0x7e   :  { %2057 = vmatpush3.bf16.msra.mxu1 %v2219_v53  ;;  %2025 = vmatprep.subr.bf16.mxu0 %v2226_v57 }
  0x7f   :  { %2050 = vmatprep.subr.bf16.mxu1 %v2226_v57 }
  0x81   :  { %2026 = vmatpush3.bf16.msra.mxu0 %v2226_v57 }
  0x82   :  { %2058 = vmatpush3.bf16.msra.mxu1 %v2226_v57 }
  0x83   :  { %1298 = vmatmul.mubr.bf16.gmra.mrb[48].mxu0 %v2203_v58 }
  0x84   :  { %1395 = vmatmul.mubr.bf16.gmra.mrb[48].mxu1 %v2204_v59  ;;  %1305 = vmatprep.mubr.bf16.mxu0 %v2206_v60 }
  0x85   :  { %1402 = vmatprep.mubr.bf16.mxu1 %v2208_v61 }
  0x8b   :  { %1306 = vmatmul.mubr.bf16.gmra.mrb[52].mxu0 %v2210_v62 }
  0x8c   :  { %1403 = vmatmul.mubr.bf16.gmra.mrb[52].mxu1 %v2211_v63  ;;  %1313 = vmatprep.mubr.bf16.mxu0 %v2213_v0 }
  0x8d   :  { %1410 = vmatprep.mubr.bf16.mxu1 %v2215_v1 }
  0x93   :  { %1314 = vmatmul.mubr.bf16.gmra.mrb[56].mxu0 %v2217_v2 }
  0x94   :  { %1411 = vmatmul.mubr.bf16.gmra.mrb[56].mxu1 %v2218_v3  ;;  %1321 = vmatprep.mubr.bf16.mxu0 %v2220_v4 }
  0x95   :  { %1418 = vmatprep.mubr.bf16.mxu1 %v2222_v5 }
  0x9b   :  { %1322 = vmatmul.mubr.bf16.gmra.mrb[60].mxu0 %v2224_v6 }
  0x9c   :  { %1419 = vmatmul.mubr.bf16.gmra.mrb[60].mxu1 %v2225_v7  ;;  %2027 = vmatprep.mubr.bf16.mxu0 %v2227_v8 }
  0x9d   :  { %2035 = vmatprep.mubr.bf16.mxu1 %v2228_v9 }
  0xa3   :  { %2028 = vmatmul.mubr.bf16.vlgmr.msra.gmra.mrb[64].mxu0 %v2229_v10 }
  0xa4   :  { %2036 = vmatmul.mubr.bf16.vlgmr.msra.gmra.mrb[64].mxu1 %v2230_v11  ;;  %2031 = vmatprep.mubr.bf16.mxu0 %v2231_v12 }
  0xa5   :  { %2039 = vmatprep.mubr.bf16.mxu1 %v2232_v13 }
  0xab   :  { %2032 = vmatmul.mubr.bf16.gmra.mrb[68].mxu0 %v2233_v14 }
  0xac   :  { %2040 = vmatmul.mubr.bf16.gmra.mrb[68].mxu1 %v2234_v15 }
  0xf6   :  { %v1755_v16 = vpop.f32.mrb[0].mxu0 }
  0xf7   :  { %v1819_v17 = vpop.f32.mrb[0].mxu1  ;;  %v1756_v18 = vpop.f32.mrb[1].mxu0 }
  0xf8   :  { %v1757_v19 = vadd.f32 %v1756_v18, %v1755_v16  ;;  %v1820_v20 = vpop.f32.mrb[1].mxu1  ;;  %v1758_v21 = vpop.f32.mrb[2].mxu0 }
  0xf9   :  { %v1821_v22 = vadd.f32 %v1820_v20, %v1819_v17  ;;  %v1822_v23 = vpop.f32.mrb[2].mxu1  ;;  %v1759_v24 = vpop.f32.mrb[3].mxu0 }
  0xfa   :  { %v1760_v25 = vadd.f32 %v1759_v24, %v1758_v21  ;;  %v1823_v26 = vpop.f32.mrb[3].mxu1 }
  0xfb   :  { %v2687_v27 = vadd.f32 %v1821_v22, %v1757_v19  ;;  %v1824_v28 = vadd.f32 %v1823_v26, %v1822_v23 }
  0xfd   :  { %v2689_v29 = vadd.f32 %v1824_v28, %v1760_v25 }
  0xfe   :  { %v1761_v30 = vpop.f32.mrb[4].mxu0 }
  0xff   :  { %v1825_v31 = vpop.f32.mrb[4].mxu1  ;;  %v1762_v32 = vpop.f32.mrb[5].mxu0 }
 0x100   :  { %v1763_v33 = vadd.f32 %v1762_v32, %v1761_v30  ;;  %v1826_v34 = vpop.f32.mrb[5].mxu1  ;;  %v1764_v35 = vpop.f32.mrb[6].mxu0 }
 0x101   :  { %v1827_v36 = vadd.f32 %v1826_v34, %v1825_v31  ;;  %v1828_v37 = vpop.f32.mrb[6].mxu1  ;;  %v1765_v38 = vpop.f32.mrb[7].mxu0 }
 0x102   :  { %v1766_v39 = vadd.f32 %v1765_v38, %v1764_v35  ;;  %v1829_v40 = vpop.f32.mrb[7].mxu1 }
 0x103   :  { %v2691_v41 = vadd.f32 %v1827_v36, %v1763_v33  ;;  %v1830_v42 = vadd.f32 %v1829_v40, %v1828_v37 }
 0x105   :  { %v2693_v43 = vadd.f32 %v1830_v42, %v1766_v39 }
 0x106   :  { %v1767_v44 = vpop.f32.mrb[8].mxu0 }
 0x107   :  { %v1831_v45 = vpop.f32.mrb[8].mxu1  ;;  %v1768_v46 = vpop.f32.mrb[9].mxu0 }
 0x108   :  { %v1769_v47 = vadd.f32 %v1768_v46, %v1767_v44  ;;  %v1832_v48 = vpop.f32.mrb[9].mxu1  ;;  %v1770_v49 = vpop.f32.mrb[10].mxu0 }
 0x109   :  { %v1833_v50 = vadd.f32 %v1832_v48, %v1831_v45  ;;  %v1834_v51 = vpop.f32.mrb[10].mxu1  ;;  %v1771_v52 = vpop.f32.mrb[11].mxu0 }
 0x10a   :  { %v1772_v53 = vadd.f32 %v1771_v52, %v1770_v49  ;;  %v1835_v54 = vpop.f32.mrb[11].mxu1 }
 0x10b   :  { %v2695_v55 = vadd.f32 %v1833_v50, %v1769_v47  ;;  %v1836_v56 = vadd.f32 %v1835_v54, %v1834_v51 }
 0x10d   :  { %v2697_v57 = vadd.f32 %v1836_v56, %v1772_v53 }
 0x10e   :  { %v1773_v58 = vpop.f32.mrb[12].mxu0 }
 0x10f   :  { %v1837_v59 = vpop.f32.mrb[12].mxu1  ;;  %v1774_v60 = vpop.f32.mrb[13].mxu0 }
 0x110   :  { %v1775_v61 = vadd.f32 %v1774_v60, %v1773_v58  ;;  %v1838_v62 = vpop.f32.mrb[13].mxu1  ;;  %v1776_v63 = vpop.f32.mrb[14].mxu0 }
 0x111   :  { %v1839_v0 = vadd.f32 %v1838_v62, %v1837_v59  ;;  %v1840_v1 = vpop.f32.mrb[14].mxu1  ;;  %v1777_v2 = vpop.f32.mrb[15].mxu0 }
 0x112   :  { %v1778_v3 = vadd.f32 %v1777_v2, %v1776_v63  ;;  %v1841_v4 = vpop.f32.mrb[15].mxu1 }
 0x113   :  { %v2699_v5 = vadd.f32 %v1839_v0, %v1775_v61  ;;  %v1842_v6 = vadd.f32 %v1841_v4, %v1840_v1 }
 0x115   :  { %v2701_v7 = vadd.f32 %v1842_v6, %v1778_v3 }
 0x116   :  { %v1779_v8 = vpop.f32.mrb[16].mxu0 }
 0x117   :  { %v1843_v9 = vpop.f32.mrb[16].mxu1  ;;  %v1780_v10 = vpop.f32.mrb[17].mxu0 }
 0x118   :  { %v1781_v11 = vadd.f32 %v1780_v10, %v1779_v8  ;;  %v1844_v12 = vpop.f32.mrb[17].mxu1  ;;  %v1782_v13 = vpop.f32.mrb[18].mxu0 }
 0x119   :  { %v1845_v14 = vadd.f32 %v1844_v12, %v1843_v9  ;;  %v1846_v15 = vpop.f32.mrb[18].mxu1  ;;  %v1783_v16 = vpop.f32.mrb[19].mxu0 }
 0x11a   :  { %v1784_v17 = vadd.f32 %v1783_v16, %v1782_v13  ;;  %v1847_v18 = vpop.f32.mrb[19].mxu1 }
 0x11b   :  { %v2703_v19 = vadd.f32 %v1845_v14, %v1781_v11  ;;  %v1848_v20 = vadd.f32 %v1847_v18, %v1846_v15 }
 0x11d   :  { %v2705_v21 = vadd.f32 %v1848_v20, %v1784_v17 }
 0x11e   :  { %v1785_v22 = vpop.f32.mrb[20].mxu0 }
 0x11f   :  { %v1849_v23 = vpop.f32.mrb[20].mxu1  ;;  %v1786_v24 = vpop.f32.mrb[21].mxu0 }
 0x120   :  { %v1787_v25 = vadd.f32 %v1786_v24, %v1785_v22  ;;  %v1850_v26 = vpop.f32.mrb[21].mxu1  ;;  %v1788_v28 = vpop.f32.mrb[22].mxu0 }
 0x121   :  { %v1851_v30 = vadd.f32 %v1850_v26, %v1849_v23  ;;  %v1852_v31 = vpop.f32.mrb[22].mxu1  ;;  %v1789_v32 = vpop.f32.mrb[23].mxu0 }
 0x122   :  { %v1790_v33 = vadd.f32 %v1789_v32, %v1788_v28  ;;  %v1853_v34 = vpop.f32.mrb[23].mxu1 }
 0x123   :  { %v2707_v35 = vadd.f32 %v1851_v30, %v1787_v25  ;;  %v1854_v36 = vadd.f32 %v1853_v34, %v1852_v31 }
 0x125   :  { %v2709_v37 = vadd.f32 %v1854_v36, %v1790_v33 }
 0x126   :  { %v1791_v38 = vpop.f32.mrb[24].mxu0 }
 0x127   :  { %v1855_v39 = vpop.f32.mrb[24].mxu1  ;;  %v1792_v40 = vpop.f32.mrb[25].mxu0 }
 0x128   :  { %v1793_v42 = vadd.f32 %v1792_v40, %v1791_v38  ;;  %v1856_v44 = vpop.f32.mrb[25].mxu1  ;;  %v1794_v45 = vpop.f32.mrb[26].mxu0 }
 0x129   :  { %v1857_v46 = vadd.f32 %v1856_v44, %v1855_v39  ;;  %v1858_v47 = vpop.f32.mrb[26].mxu1  ;;  %v1795_v48 = vpop.f32.mrb[27].mxu0 }
 0x12a   :  { %v1796_v49 = vadd.f32 %v1795_v48, %v1794_v45  ;;  %v1859_v50 = vpop.f32.mrb[27].mxu1 }
 0x12b   :  { %v2711_v51 = vadd.f32 %v1857_v46, %v1793_v42  ;;  %v1860_v52 = vadd.f32 %v1859_v50, %v1858_v47 }
 0x12d   :  { %v2713_v53 = vadd.f32 %v1860_v52, %v1796_v49 }
 0x12e   :  { %v1797_v54 = vpop.f32.mrb[28].mxu0 }
 0x12f   :  { %v1861_v56 = vpop.f32.mrb[28].mxu1  ;;  %v1798_v58 = vpop.f32.mrb[29].mxu0 }
 0x130   :  { %v1799_v59 = vadd.f32 %v1798_v58, %v1797_v54  ;;  %v1862_v60 = vpop.f32.mrb[29].mxu1  ;;  %v1800_v61 = vpop.f32.mrb[30].mxu0 }
 0x131   :  { %v1863_v62 = vadd.f32 %v1862_v60, %v1861_v56  ;;  %v1864_v63 = vpop.f32.mrb[30].mxu1  ;;  %v1801_v0 = vpop.f32.mrb[31].mxu0 }
 0x132   :  { %v1802_v1 = vadd.f32 %v1801_v0, %v1800_v61  ;;  %v1865_v2 = vpop.f32.mrb[31].mxu1 }
 0x133   :  { %v2715_v3 = vadd.f32 %v1863_v62, %v1799_v59  ;;  %v1866_v4 = vadd.f32 %v1865_v2, %v1864_v63 }
 0x135   :  { %v2717_v6 = vadd.f32 %v1866_v4, %v1802_v1 }
 0x136   :  { %v1883_v8 = vpop.f32.mrb[32].mxu0 }
 0x137   :  { %v1947_v9 = vpop.f32.mrb[32].mxu1  ;;  %v1884_v10 = vpop.f32.mrb[33].mxu0 }
 0x138   :  { %v1885_v11 = vadd.f32 %v1884_v10, %v1883_v8  ;;  %v1948_v12 = vpop.f32.mrb[33].mxu1  ;;  %v1886_v13 = vpop.f32.mrb[34].mxu0 }
 0x139   :  { %v1949_v14 = vadd.f32 %v1948_v12, %v1947_v9  ;;  %v1950_v15 = vpop.f32.mrb[34].mxu1  ;;  %v1887_v16 = vpop.f32.mrb[35].mxu0 }
 0x13a   :  { %v1268_v17 = vadd.f32 %v1885_v11, %v2687_v27  ;;  %v1888_v18 = vadd.f32 %v1887_v16, %v1886_v13  ;;  %v1951_v20 = vpop.f32.mrb[35].mxu1 }
 0x13b   :  { %v1952_v22 = vadd.f32 %v1951_v20, %v1950_v15 }
 0x13c   :  { %v1271_v23 = vadd.f32 %v1888_v18, %v2689_v29  ;;  %v2721_v24 = vadd.f32 %v1949_v14, %v1268_v17 }
 0x13e   :  { %v1889_v25 = vpop.f32.mrb[36].mxu0  ;;  %v2723_v26 = vadd.f32 %v1952_v22, %v1271_v23 }
 0x13f   :  { %v1953_v28 = vpop.f32.mrb[36].mxu1  ;;  %v1890_v30 = vpop.f32.mrb[37].mxu0 }
 0x140   :  { %v1891_v31 = vadd.f32 %v1890_v30, %v1889_v25  ;;  %v1954_v32 = vpop.f32.mrb[37].mxu1  ;;  %v1892_v33 = vpop.f32.mrb[38].mxu0 }
 0x141   :  { %v1955_v34 = vadd.f32 %v1954_v32, %v1953_v28  ;;  %v1956_v36 = vpop.f32.mrb[38].mxu1  ;;  %v1893_v38 = vpop.f32.mrb[39].mxu0 }
 0x142   :  { %v1276_v27 = vadd.f32 %v1891_v31, %v2691_v41  ;;  %v1894_v39 = vadd.f32 %v1893_v38, %v1892_v33  ;;  %v1957_v40 = vpop.f32.mrb[39].mxu1 }
 0x143   :  { %v1958_v42 = vadd.f32 %v1957_v40, %v1956_v36 }
 0x144   :  { %v1279_v29 = vadd.f32 %v1894_v39, %v2693_v43  ;;  %v2727_v44 = vadd.f32 %v1955_v34, %v1276_v27 }
 0x146   :  { %v1895_v45 = vpop.f32.mrb[40].mxu0  ;;  %v2729_v46 = vadd.f32 %v1958_v42, %v1279_v29 }
 0x147   :  { %v1959_v47 = vpop.f32.mrb[40].mxu1  ;;  %v1896_v48 = vpop.f32.mrb[41].mxu0 }
 0x148   :  { %v1897_v49 = vadd.f32 %v1896_v48, %v1895_v45  ;;  %v1960_v50 = vpop.f32.mrb[41].mxu1  ;;  %v1898_v52 = vpop.f32.mrb[42].mxu0 }
 0x149   :  { %v1961_v54 = vadd.f32 %v1960_v50, %v1959_v47  ;;  %v1962_v56 = vpop.f32.mrb[42].mxu1  ;;  %v1899_v58 = vpop.f32.mrb[43].mxu0 }
 0x14a   :  { %v1284_v41 = vadd.f32 %v1897_v49, %v2695_v55  ;;  %v1900_v59 = vadd.f32 %v1899_v58, %v1898_v52  ;;  %v1963_v60 = vpop.f32.mrb[43].mxu1 }
 0x14b   :  { %v1964_v61 = vadd.f32 %v1963_v60, %v1962_v56 }
 0x14c   :  { %v1287_v43 = vadd.f32 %v1900_v59, %v2697_v57  ;;  %v2733_v62 = vadd.f32 %v1961_v54, %v1284_v41 }
 0x14e   :  { %v1901_v63 = vpop.f32.mrb[44].mxu0  ;;  %v2735_v0 = vadd.f32 %v1964_v61, %v1287_v43 }
 0x14f   :  { %v1965_v1 = vpop.f32.mrb[44].mxu1  ;;  %v1902_v2 = vpop.f32.mrb[45].mxu0 }
 0x150   :  { %v1903_v4 = vadd.f32 %v1902_v2, %v1901_v63  ;;  %v1966_v8 = vpop.f32.mrb[45].mxu1  ;;  %v1904_v9 = vpop.f32.mrb[46].mxu0 }
 0x151   :  { %v1967_v10 = vadd.f32 %v1966_v8, %v1965_v1  ;;  %v1968_v11 = vpop.f32.mrb[46].mxu1  ;;  %v1905_v12 = vpop.f32.mrb[47].mxu0 }
 0x152   :  { %v1292_v55 = vadd.f32 %v1903_v4, %v2699_v5  ;;  %v1906_v13 = vadd.f32 %v1905_v12, %v1904_v9  ;;  %v1969_v14 = vpop.f32.mrb[47].mxu1 }
 0x153   :  { %v1970_v15 = vadd.f32 %v1969_v14, %v1968_v11 }
 0x154   :  { %v1295_v57 = vadd.f32 %v1906_v13, %v2701_v7  ;;  %v2739_v16 = vadd.f32 %v1967_v10, %v1292_v55 }
 0x156   :  { %v1907_v17 = vpop.f32.mrb[48].mxu0  ;;  %v2741_v18 = vadd.f32 %v1970_v15, %v1295_v57 }
 0x157   :  { %v1971_v20 = vpop.f32.mrb[48].mxu1  ;;  %v1908_v22 = vpop.f32.mrb[49].mxu0 }
 0x158   :  { %v1909_v23 = vadd.f32 %v1908_v22, %v1907_v17  ;;  %v1972_v25 = vpop.f32.mrb[49].mxu1  ;;  %v1910_v28 = vpop.f32.mrb[50].mxu0 }
 0x159   :  { %v1973_v30 = vadd.f32 %v1972_v25, %v1971_v20  ;;  %v1974_v31 = vpop.f32.mrb[50].mxu1  ;;  %v1911_v32 = vpop.f32.mrb[51].mxu0 }
 0x15a   :  { %v1300_v5 = vadd.f32 %v1909_v23, %v2703_v19  ;;  %v1912_v33 = vadd.f32 %v1911_v32, %v1910_v28  ;;  %v1975_v34 = vpop.f32.mrb[51].mxu1 }
 0x15b   :  { %v1976_v36 = vadd.f32 %v1975_v34, %v1974_v31 }
 0x15c   :  { %v1303_v7 = vadd.f32 %v1912_v33, %v2705_v21  ;;  %v1397_v38 = vadd.f32 %v1973_v30, %v1300_v5 }
 0x15e   :  { %v1913_v27 = vpop.f32.mrb[52].mxu0  ;;  %v2745_v39 = vadd.f32 %v1976_v36, %v1303_v7 }
 0x15f   :  { %v1977_v40 = vpop.f32.mrb[52].mxu1  ;;  %v1914_v42 = vpop.f32.mrb[53].mxu0 }
 0x160   :  { %v1915_v29 = vadd.f32 %v1914_v42, %v1913_v27  ;;  %v1978_v45 = vpop.f32.mrb[53].mxu1  ;;  %v1916_v47 = vpop.f32.mrb[54].mxu0 }
 0x161   :  { %v1979_v48 = vadd.f32 %v1978_v45, %v1977_v40  ;;  %v1980_v49 = vpop.f32.mrb[54].mxu1  ;;  %v1917_v50 = vpop.f32.mrb[55].mxu0 }
 0x162   :  { %v1308_v52 = vadd.f32 %v1915_v29, %v2707_v35  ;;  %v1918_v19 = vadd.f32 %v1917_v50, %v1916_v47  ;;  %v1981_v54 = vpop.f32.mrb[55].mxu1 }
 0x163   :  { %v1982_v56 = vadd.f32 %v1981_v54, %v1980_v49 }
 0x164   :  { %v1311_v58 = vadd.f32 %v1918_v19, %v2709_v37  ;;  %v1405_v21 = vadd.f32 %v1979_v48, %v1308_v52 }
 0x166   :  { %v1919_v41 = vpop.f32.mrb[56].mxu0  ;;  %v1408_v59 = vadd.f32 %v1982_v56, %v1311_v58 }
 0x167   :  { %v1983_v60 = vpop.f32.mrb[56].mxu1  ;;  %v1920_v61 = vpop.f32.mrb[57].mxu0 }
 0x168   :  { %v1921_v43 = vadd.f32 %v1920_v61, %v1919_v41  ;;  %v1984_v63 = vpop.f32.mrb[57].mxu1  ;;  %v1922_v1 = vpop.f32.mrb[58].mxu0 }
 0x169   :  { %v1985_v2 = vadd.f32 %v1984_v63, %v1983_v60  ;;  %v1986_v4 = vpop.f32.mrb[58].mxu1  ;;  %v1923_v8 = vpop.f32.mrb[59].mxu0 }
 0x16a   :  { %v1316_v9 = vadd.f32 %v1921_v43, %v2711_v51  ;;  %v1924_v10 = vadd.f32 %v1923_v8, %v1922_v1  ;;  %v1987_v35 = vpop.f32.mrb[59].mxu1 }
 0x16b   :  { %v1988_v11 = vadd.f32 %v1987_v35, %v1986_v4 }
 0x16c   :  { %v1319_v12 = vadd.f32 %v1924_v10, %v2713_v53  ;;  %v1413_v55 = vadd.f32 %v1985_v2, %v1316_v9 }
 0x16e   :  { %v1925_v37 = vpop.f32.mrb[60].mxu0  ;;  %v1416_v13 = vadd.f32 %v1988_v11, %v1319_v12 }
 0x16f   :  { %v1989_v14 = vpop.f32.mrb[60].mxu1  ;;  %v1926_v15 = vpop.f32.mrb[61].mxu0 }
 0x170   :  { %v1927_v57 = vadd.f32 %v1926_v15, %v1925_v37  ;;  %v1990_v17 = vpop.f32.mrb[61].mxu1  ;;  %v1928_v20 = vpop.f32.mrb[62].mxu0 }
 0x171   :  { %v1991_v22 = vadd.f32 %v1990_v17, %v1989_v14  ;;  %v1992_v23 = vpop.f32.mrb[62].mxu1  ;;  %v1929_v25 = vpop.f32.mrb[63].mxu0 }
 0x172   :  { %v1324_v28 = vadd.f32 %v1927_v57, %v2715_v3  ;;  %v1930_v30 = vadd.f32 %v1929_v25, %v1928_v20  ;;  %v1993_v51 = vpop.f32.mrb[63].mxu1 }
 0x173   :  { %v1994_v31 = vadd.f32 %v1993_v51, %v1992_v23 }
 0x174   :  { %v1327_v32 = vadd.f32 %v1930_v30, %v2717_v6  ;;  %v1421_v5 = vadd.f32 %v1991_v22, %v1324_v28 }
 0x176   :  { %v2029_v53 = vpop.f32.mrb[64].mxu0  ;;  %v1424_v33 = vadd.f32 %v1994_v31, %v1327_v32 }
 0x177   :  { %v1470_v34 = vadd.f32 %v2029_v53, %v2727_v44  ;;  %v2037_v36 = vpop.f32.mrb[64].mxu1  ;;  %v1461_v7 = vpop.f32.mrb[65].mxu0 }
 0x178   :  { %v1502_v27 = vadd.f32 %v2037_v36, %v1405_v21  ;;  %v1462_v40 = vadd.f32 %v1461_v7, %v2721_v24  ;;  %v1493_v42 = vpop.f32.mrb[65].mxu1  ;;  %v2030_v29 = vpop.f32.mrb[66].mxu0 }
 0x179   :  { %v1494_v45 = vadd.f32 %v1493_v42, %v1397_v38  ;;  %v1473_v3 = vadd.f32 %v2030_v29, %v2729_v46  ;;  %v2038_v47 = vpop.f32.mrb[66].mxu1  ;;  %v1464_v48 = vpop.f32.mrb[67].mxu0 }
 0x17a   :  { %v1505_v49 = vadd.f32 %v2038_v47, %v1408_v59  ;;  %v1465_v6 = vadd.f32 %v1464_v48, %v2723_v26  ;;  %v1496_v50 = vpop.f32.mrb[67].mxu1 }
 0x17b   :  { %v1497_v52 = vadd.f32 %v1496_v50, %v2745_v39 }
 0x17e   :  { %v2033_v19 = vpop.f32.mrb[68].mxu0 }
 0x17f   :  { %v1486_v44 = vadd.f32 %v2033_v19, %v2739_v16  ;;  %v2041_v54 = vpop.f32.mrb[68].mxu1  ;;  %v1477_v56 = vpop.f32.mrb[69].mxu0  ;;  %v1719_v16 = vld [vmem:[%s2773_s2] ss:$0 sm:$0xff] }
 0x180   :  { %v1518_v58 = vadd.f32 %v2041_v54, %v1421_v5  ;;  %v1478_v24 = vadd.f32 %v1477_v56, %v2733_v62  ;;  %v1509_v21 = vpop.f32.mrb[69].mxu1  ;;  %v2034_v38 = vpop.f32.mrb[70].mxu0 }
 0x181   :  { %v1526_v41 = vmax.f32 %v1470_v34, %v1486_v44  ;;  %v1510_v46 = vadd.f32 %v1509_v21, %v1413_v55  ;;  %v1489_v60 = vadd.f32 %v2034_v38, %v2741_v18  ;;  %v2042_v59 = vpop.f32.mrb[70].mxu1  ;;  %v1480_v61 = vpop.f32.mrb[71].mxu0 }
 0x182   :  { %v1530_v26 = vmax.f32 %v1502_v27, %v1518_v58  ;;  %v1524_v43 = vmax.f32 %v1462_v40, %v1478_v24  ;;  %v1521_v63 = vadd.f32 %v2042_v59, %v1424_v33  ;;  %v1481_v39 = vadd.f32 %v1480_v61, %v2735_v0  ;;  %v1512_v1 = vpop.f32.mrb[71].mxu1 }
 0x183   :  { %v1528_v2 = vmax.f32 %v1494_v45, %v1510_v46  ;;  %v1527_v62 = vmax.f32 %v1473_v3, %v1489_v60  ;;  %v1513_v4 = vadd.f32 %v1512_v1, %v1416_v13 }
 0x184   :  { %v1534_v8 = vmax.f32 %v1526_v41, %v1530_v26  ;;  %v1531_v9 = vmax.f32 %v1505_v49, %v1521_v63  ;;  %v1525_v10 = vmax.f32 %v1465_v6, %v1481_v39 }
 0x185   :  { %v1532_v35 = vmax.f32 %v1524_v43, %v1528_v2  ;;  %v1529_v18 = vmax.f32 %v1497_v52, %v1513_v4 }
 0x186   :  { %v1545_v11 = vadd.f32 %v1719_v16, %v1534_v8  ;;  %v1535_v12 = vmax.f32 %v1527_v62, %v1531_v9 }
 0x187   :  { %v1543_v55 = vadd.f32 %v1719_v16, %v1532_v35  ;;  %v1533_v37 = vmax.f32 %v1525_v10, %v1529_v18 }
 0x188   :  { %v1546_v14 = vadd.f32 %v1719_v16, %v1535_v12  ;;  %v1549_v0 = vmax.f32 %v1545_v11, 0.0 }
 0x189   :  { %v1544_v15 = vadd.f32 %v1719_v16, %v1533_v37  ;;  %v1547_v17 = vmax.f32 %v1543_v55, 0.0 }
 0x18a   :  { %v1550_v57 = vmax.f32 %v1546_v14, 0.0 }
 0x18b   :  { %v1548_v20 = vmax.f32 %v1544_v15, 0.0 }
 0x18c   :  { %v1736_v22 = vpack.c.bf16 %v1550_v57, %v1549_v0 }
 0x18d   :  { %v1731_v23 = vpack.c.bf16 %v1548_v20, %v1547_v17 }
 0x18e   :  { %1738 = vst [vmem:[%s2774_s3 + $0x8] sm:$0xff] %v1736_v22  }
 0x18f   :  { %1732 = vst [vmem:[%s2774_s3] sm:$0xff] %v1731_v23  }

// kernel: forward.6
= control target key start
LH: loop header
LB: loop body
LE: loop exit
PB: predicated region body
PF: predicated region fallthrough
CT: control target
= control target key end

     0   :  { %s2259_s1 = inlined_call_operand.vmem [shape: bf16[1152,256], index: 1, kind: input, shape index: {}]   ;;  %s2260_s0 = inlined_call_operand.vmem [shape: bf16[32,1152], index: 0, kind: input, shape index: {}]   ;;  %s2261_s2 = inlined_call_operand.vmem [shape: f32[1,256], index: 2, kind: input, shape index: {}]   ;;  %s2262_s3 = inlined_call_operand.vmem [shape: bf16[8,256], index: 3, kind: output, shape index: {}]  }
   0x1   :  { %v1504_v0 = vld [vmem:[%s2259_s1 + $0x4] ss:$8 sps:$4 sm:$0xff]   ;;  %v1508_v2 = vld [vmem:[%s2259_s1] ss:$8 sps:$4 sm:$0xff]   ;;  %v1510_v4 = vld [vmem:[%s2259_s1 + $0x14] ss:$8 sps:$4 sm:$0xff]  }
   0x2   :  { %v1506_v1 = vld [vmem:[%s2259_s1 + $0x204] ss:$8 sps:$4 sm:$0xff]   ;;  %991 = vmatprep.subr.bf16.mxu1 %v1504_v0  ;;  %v1509_v3 = vld [vmem:[%s2259_s1 + $0x200] ss:$8 sps:$4 sm:$0xff]   ;;  %v1512_v5 = vld [vmem:[%s2259_s1 + $0x214] ss:$8 sps:$4 sm:$0xff]  }
   0x3   :  { %1097 = vmatprep.subr.bf16.mxu0 %v1506_v1  ;;  %992 = vmatpush1.bf16.msra.mxu1 %v1508_v2  ;;  %v1514_v6 = vld [vmem:[%s2259_s1 + $0x10] ss:$8 sps:$4 sm:$0xff]   ;;  %v1516_v8 = vld [vmem:[%s2259_s1 + $0x24] ss:$8 sps:$4 sm:$0xff]   ;;  %v1520_v10 = vld [vmem:[%s2259_s1 + $0x20] ss:$8 sps:$4 sm:$0xff]  }
   0x4   :  { %1098 = vmatpush1.bf16.msra.mxu0 %v1509_v3  ;;  %993 = vmatprep.subr.bf16.mxu1 %v1510_v4  ;;  %v1515_v7 = vld [vmem:[%s2259_s1 + $0x210] ss:$8 sps:$4 sm:$0xff]   ;;  %v1518_v9 = vld [vmem:[%s2259_s1 + $0x224] ss:$8 sps:$4 sm:$0xff]   ;;  %v1521_v11 = vld [vmem:[%s2259_s1 + $0x220] ss:$8 sps:$4 sm:$0xff]  }
   0x5   :  { %1099 = vmatprep.subr.bf16.mxu0 %v1512_v5  ;;  %v1522_v12 = vld [vmem:[%s2259_s1 + $0x34] ss:$8 sps:$4 sm:$0xff]   ;;  %v1526_v14 = vld [vmem:[%s2259_s1 + $0x30] ss:$8 sps:$4 sm:$0xff]   ;;  %v1528_v16 = vld [vmem:[%s2259_s1 + $0x44] ss:$8 sps:$4 sm:$0xff]  }
   0x6   :  { %v1524_v13 = vld [vmem:[%s2259_s1 + $0x234] ss:$8 sps:$4 sm:$0xff]   ;;  %v1527_v15 = vld [vmem:[%s2259_s1 + $0x230] ss:$8 sps:$4 sm:$0xff]   ;;  %v1530_v17 = vld [vmem:[%s2259_s1 + $0x244] ss:$8 sps:$4 sm:$0xff]  }
   0x7   :  { %994 = vmatpush1.bf16.msra.mxu1 %v1514_v6  ;;  %v1532_v18 = vld [vmem:[%s2259_s1 + $0x40] ss:$8 sps:$4 sm:$0xff]   ;;  %v1534_v20 = vld [vmem:[%s2259_s1 + $0x54] ss:$8 sps:$4 sm:$0xff]   ;;  %v1538_v22 = vld [vmem:[%s2259_s1 + $0x50] ss:$8 sps:$4 sm:$0xff]  }
   0x8   :  { %1100 = vmatpush1.bf16.msra.mxu0 %v1515_v7  ;;  %995 = vmatprep.subr.bf16.mxu1 %v1516_v8  ;;  %v1533_v19 = vld [vmem:[%s2259_s1 + $0x240] ss:$8 sps:$4 sm:$0xff]   ;;  %v1536_v21 = vld [vmem:[%s2259_s1 + $0x254] ss:$8 sps:$4 sm:$0xff]   ;;  %v1539_v23 = vld [vmem:[%s2259_s1 + $0x250] ss:$8 sps:$4 sm:$0xff]  }
   0x9   :  { %1101 = vmatprep.subr.bf16.mxu0 %v1518_v9  ;;  %v1540_v24 = vld [vmem:[%s2259_s1 + $0x64] ss:$8 sps:$4 sm:$0xff]   ;;  %v1544_v26 = vld [vmem:[%s2259_s1 + $0x60] ss:$8 sps:$4 sm:$0xff]   ;;  %v1546_v28 = vld [vmem:[%s2259_s1 + $0x74] ss:$8 sps:$4 sm:$0xff]  }
   0xa   :  { %v1542_v25 = vld [vmem:[%s2259_s1 + $0x264] ss:$8 sps:$4 sm:$0xff]   ;;  %v1545_v27 = vld [vmem:[%s2259_s1 + $0x260] ss:$8 sps:$4 sm:$0xff]   ;;  %v1548_v29 = vld [vmem:[%s2259_s1 + $0x274] ss:$8 sps:$4 sm:$0xff]  }
   0xb   :  { %996 = vmatpush1.bf16.msra.mxu1 %v1520_v10  ;;  %v1550_v30 = vld [vmem:[%s2259_s1 + $0x70] ss:$8 sps:$4 sm:$0xff]   ;;  %v1552_v32 = vld [vmem:[%s2259_s1 + $0x84] ss:$8 sps:$4 sm:$0xff]   ;;  %v1556_v34 = vld [vmem:[%s2259_s1 + $0x80] ss:$8 sps:$4 sm:$0xff]  }
   0xc   :  { %1102 = vmatpush1.bf16.msra.mxu0 %v1521_v11  ;;  %997 = vmatprep.subr.bf16.mxu1 %v1522_v12  ;;  %v1551_v31 = vld [vmem:[%s2259_s1 + $0x270] ss:$8 sps:$4 sm:$0xff]   ;;  %v1554_v33 = vld [vmem:[%s2259_s1 + $0x284] ss:$8 sps:$4 sm:$0xff]   ;;  %v1557_v35 = vld [vmem:[%s2259_s1 + $0x280] ss:$8 sps:$4 sm:$0xff]  }
   0xd   :  { %1103 = vmatprep.subr.bf16.mxu0 %v1524_v13  ;;  %v1558_v36 = vld [vmem:[%s2259_s1 + $0x94] ss:$8 sps:$4 sm:$0xff]   ;;  %v1562_v38 = vld [vmem:[%s2259_s1 + $0x90] ss:$8 sps:$4 sm:$0xff]   ;;  %v1564_v40 = vld [vmem:[%s2259_s1 + $0xa4] ss:$8 sps:$4 sm:$0xff]  }
   0xe   :  { %v1560_v37 = vld [vmem:[%s2259_s1 + $0x294] ss:$8 sps:$4 sm:$0xff]   ;;  %v1563_v39 = vld [vmem:[%s2259_s1 + $0x290] ss:$8 sps:$4 sm:$0xff]   ;;  %v1566_v41 = vld [vmem:[%s2259_s1 + $0x2a4] ss:$8 sps:$4 sm:$0xff]  }
   0xf   :  { %998 = vmatpush1.bf16.msra.mxu1 %v1526_v14  ;;  %v1568_v42 = vld [vmem:[%s2259_s1 + $0xa0] ss:$8 sps:$4 sm:$0xff]   ;;  %v1570_v44 = vld [vmem:[%s2259_s1 + $0xb4] ss:$8 sps:$4 sm:$0xff]   ;;  %v1574_v46 = vld [vmem:[%s2259_s1 + $0xb0] ss:$8 sps:$4 sm:$0xff]  }
  0x10   :  { %1104 = vmatpush1.bf16.msra.mxu0 %v1527_v15  ;;  %999 = vmatprep.subr.bf16.mxu1 %v1528_v16  ;;  %v1569_v43 = vld [vmem:[%s2259_s1 + $0x2a0] ss:$8 sps:$4 sm:$0xff]   ;;  %v1572_v45 = vld [vmem:[%s2259_s1 + $0x2b4] ss:$8 sps:$4 sm:$0xff]   ;;  %v1575_v47 = vld [vmem:[%s2259_s1 + $0x2b0] ss:$8 sps:$4 sm:$0xff]  }
  0x11   :  { %1105 = vmatprep.subr.bf16.mxu0 %v1530_v17  ;;  %v1602_v48 = vld [vmem:[%s2260_s0 + $0x4] ss:$36 sps:$4 sm:$0xff]   ;;  %v1608_v51 = vld [vmem:[%s2260_s0 + $0x14] ss:$36 sps:$4 sm:$0xff]  }
  0x12   :  { %v1576_v49 = vld [vmem:[%s2259_s1 + $0xc4] ss:$8 sps:$4 sm:$0xff]   ;;  %1023 = vmatprep.mubr.bf16.mxu1 %v1602_v48  ;;  %v1580_v52 = vld [vmem:[%s2259_s1 + $0xc0] ss:$8 sps:$4 sm:$0xff]   ;;  %v1582_v54 = vld [vmem:[%s2259_s1 + $0xd4] ss:$8 sps:$4 sm:$0xff]   ;;  %1129 = vmatprep.mubr.bf16.mxu0 %v1608_v51 }
  0x13   :  { %1000 = vmatpush1.bf16.msra.mxu1 %v1532_v18  ;;  %v1578_v50 = vld [vmem:[%s2259_s1 + $0x2c4] ss:$8 sps:$4 sm:$0xff]   ;;  %v1581_v53 = vld [vmem:[%s2259_s1 + $0x2c0] ss:$8 sps:$4 sm:$0xff]   ;;  %v1584_v55 = vld [vmem:[%s2259_s1 + $0x2d4] ss:$8 sps:$4 sm:$0xff]  }
  0x14   :  { %1106 = vmatpush1.bf16.msra.mxu0 %v1533_v19  ;;  %1001 = vmatprep.subr.bf16.mxu1 %v1534_v20  ;;  %v1586_v56 = vld [vmem:[%s2259_s1 + $0xd0] ss:$8 sps:$4 sm:$0xff]   ;;  %v1588_v58 = vld [vmem:[%s2259_s1 + $0xe4] ss:$8 sps:$4 sm:$0xff]   ;;  %v1592_v60 = vld [vmem:[%s2259_s1 + $0xe0] ss:$8 sps:$4 sm:$0xff]  }
  0x15   :  { %1107 = vmatprep.subr.bf16.mxu0 %v1536_v21  ;;  %v1587_v57 = vld [vmem:[%s2259_s1 + $0x2d0] ss:$8 sps:$4 sm:$0xff]   ;;  %v1590_v59 = vld [vmem:[%s2259_s1 + $0x2e4] ss:$8 sps:$4 sm:$0xff]   ;;  %v1593_v61 = vld [vmem:[%s2259_s1 + $0x2e0] ss:$8 sps:$4 sm:$0xff]  }
  0x16   :  { %v1594_v62 = vld [vmem:[%s2259_s1 + $0xf4] ss:$8 sps:$4 sm:$0xff]   ;;  %v1598_v0 = vld [vmem:[%s2259_s1 + $0xf0] ss:$8 sps:$4 sm:$0xff]   ;;  %v1605_v2 = vld [vmem:[%s2259_s1 + $0x104] ss:$8 sps:$4 sm:$0xff]  }
  0x17   :  { %1002 = vmatpush1.bf16.msra.mxu1 %v1538_v22  ;;  %v1596_v63 = vld [vmem:[%s2259_s1 + $0x2f4] ss:$8 sps:$4 sm:$0xff]   ;;  %v1599_v1 = vld [vmem:[%s2259_s1 + $0x2f0] ss:$8 sps:$4 sm:$0xff]   ;;  %v1611_v3 = vld [vmem:[%s2259_s1 + $0x304] ss:$8 sps:$4 sm:$0xff]  }
  0x18   :  { %1108 = vmatpush1.bf16.msra.mxu0 %v1539_v23  ;;  %1003 = vmatprep.subr.bf16.mxu1 %v1540_v24  ;;  %v1600_v4 = vld [vmem:[%s2260_s0] ss:$36 sps:$4 sm:$0xff]   ;;  %v1606_v6 = vld [vmem:[%s2260_s0 + $0x10] ss:$36 sps:$4 sm:$0xff]  }
  0x19   :  { %1109 = vmatprep.subr.bf16.mxu0 %v1542_v25  ;;  %v1603_v5 = vld [vmem:[%s2259_s1 + $0x100] ss:$8 sps:$4 sm:$0xff]   ;;  %v1614_v8 = vld [vmem:[%s2259_s1 + $0x114] ss:$8 sps:$4 sm:$0xff]   ;;  %v1612_v10 = vld [vmem:[%s2259_s1 + $0x110] ss:$8 sps:$4 sm:$0xff]  }
  0x1a   :  { %v1609_v7 = vld [vmem:[%s2259_s1 + $0x300] ss:$8 sps:$4 sm:$0xff]   ;;  %v1617_v9 = vld [vmem:[%s2259_s1 + $0x314] ss:$8 sps:$4 sm:$0xff]   ;;  %v1615_v11 = vld [vmem:[%s2259_s1 + $0x310] ss:$8 sps:$4 sm:$0xff]  }
  0x1b   :  { %1004 = vmatpush1.bf16.msra.mxu1 %v1544_v26  ;;  %v1620_v12 = vld [vmem:[%s2259_s1 + $0x124] ss:$8 sps:$4 sm:$0xff]   ;;  %v1618_v14 = vld [vmem:[%s2259_s1 + $0x120] ss:$8 sps:$4 sm:$0xff]   ;;  %v1626_v16 = vld [vmem:[%s2259_s1 + $0x134] ss:$8 sps:$4 sm:$0xff]  }
  0x1c   :  { %1110 = vmatpush1.bf16.msra.mxu0 %v1545_v27  ;;  %1005 = vmatprep.subr.bf16.mxu1 %v1546_v28  ;;  %v1623_v13 = vld [vmem:[%s2259_s1 + $0x324] ss:$8 sps:$4 sm:$0xff]   ;;  %v1621_v15 = vld [vmem:[%s2259_s1 + $0x320] ss:$8 sps:$4 sm:$0xff]   ;;  %v1629_v17 = vld [vmem:[%s2259_s1 + $0x334] ss:$8 sps:$4 sm:$0xff]  }
  0x1d   :  { %1111 = vmatprep.subr.bf16.mxu0 %v1548_v29  ;;  %v1624_v18 = vld [vmem:[%s2259_s1 + $0x130] ss:$8 sps:$4 sm:$0xff]   ;;  %v1632_v20 = vld [vmem:[%s2259_s1 + $0x144] ss:$8 sps:$4 sm:$0xff]   ;;  %v1630_v22 = vld [vmem:[%s2259_s1 + $0x140] ss:$8 sps:$4 sm:$0xff]  }
  0x1e   :  { %v1627_v19 = vld [vmem:[%s2259_s1 + $0x330] ss:$8 sps:$4 sm:$0xff]   ;;  %v1635_v21 = vld [vmem:[%s2259_s1 + $0x344] ss:$8 sps:$4 sm:$0xff]   ;;  %v1633_v23 = vld [vmem:[%s2259_s1 + $0x340] ss:$8 sps:$4 sm:$0xff]  }
  0x1f   :  { %1006 = vmatpush1.bf16.msra.mxu1 %v1550_v30  ;;  %v1638_v24 = vld [vmem:[%s2259_s1 + $0x154] ss:$8 sps:$4 sm:$0xff]   ;;  %v1636_v26 = vld [vmem:[%s2259_s1 + $0x150] ss:$8 sps:$4 sm:$0xff]   ;;  %v1644_v28 = vld [vmem:[%s2259_s1 + $0x164] ss:$8 sps:$4 sm:$0xff]  }
  0x20   :  { %1112 = vmatpush1.bf16.msra.mxu0 %v1551_v31  ;;  %1007 = vmatprep.subr.bf16.mxu1 %v1552_v32  ;;  %v1641_v25 = vld [vmem:[%s2259_s1 + $0x354] ss:$8 sps:$4 sm:$0xff]   ;;  %v1639_v27 = vld [vmem:[%s2259_s1 + $0x350] ss:$8 sps:$4 sm:$0xff]   ;;  %v1694_v31 = vld [vmem:[%s2260_s0 + $0x48] ss:$36 sps:$4 sm:$0xff]  }
  0x21   :  { %1113 = vmatprep.subr.bf16.mxu0 %v1554_v33  ;;  %v1690_v29 = vld [vmem:[%s2260_s0 + $0x4c] ss:$36 sps:$4 sm:$0xff]   ;;  %v1692_v30 = vld [vmem:[%s2260_s0 + $0x5c] ss:$36 sps:$4 sm:$0xff]  }
  0x22   :  { %v1647_v32 = vld [vmem:[%s2259_s1 + $0x364] ss:$8 sps:$4 sm:$0xff]   ;;  %v1698_v33 = vld [vmem:[%s2260_s0 + $0x58] ss:$36 sps:$4 sm:$0xff]  }
  0x23   :  { %1008 = vmatpush1.bf16.msra.mxu1 %v1556_v34  ;;  %v1642_v34 = vld [vmem:[%s2259_s1 + $0x160] ss:$8 sps:$4 sm:$0xff]   ;;  %v1660_v48 = vld [vmem:[%s2259_s1 + $0x190] ss:$8 sps:$4 sm:$0xff]   ;;  %v1671_v51 = vld [vmem:[%s2259_s1 + $0x3a4] ss:$8 sps:$4 sm:$0xff]  }
  0x24   :  { %1114 = vmatpush1.bf16.msra.mxu0 %v1557_v35  ;;  %1009 = vmatprep.subr.bf16.mxu1 %v1558_v36  ;;  %v1645_v35 = vld [vmem:[%s2259_s1 + $0x360] ss:$8 sps:$4 sm:$0xff]   ;;  %v1650_v36 = vld [vmem:[%s2259_s1 + $0x174] ss:$8 sps:$4 sm:$0xff]  }
  0x25   :  { %1115 = vmatprep.subr.bf16.mxu0 %v1560_v37  ;;  %v1653_v37 = vld [vmem:[%s2259_s1 + $0x374] ss:$8 sps:$4 sm:$0xff]  }
  0x27   :  { %1010 = vmatpush1.bf16.msra.mxu1 %v1562_v38  ;;  %v1648_v38 = vld [vmem:[%s2259_s1 + $0x170] ss:$8 sps:$4 sm:$0xff]  }
  0x28   :  { %1116 = vmatpush1.bf16.msra.mxu0 %v1563_v39  ;;  %1011 = vmatprep.subr.bf16.mxu1 %v1564_v40  ;;  %v1651_v39 = vld [vmem:[%s2259_s1 + $0x370] ss:$8 sps:$4 sm:$0xff]   ;;  %v1656_v40 = vld [vmem:[%s2259_s1 + $0x184] ss:$8 sps:$4 sm:$0xff]  }
  0x29   :  { %1117 = vmatprep.subr.bf16.mxu0 %v1566_v41  ;;  %v1710_v41 = vld [vmem:[%s2260_s0 + $0xc] ss:$36 sps:$4 sm:$0xff]  }
  0x2b   :  { %1012 = vmatpush1.bf16.msra.mxu1 %v1568_v42  ;;  %v1659_v42 = vld [vmem:[%s2259_s1 + $0x384] ss:$8 sps:$4 sm:$0xff]  }
  0x2c   :  { %1118 = vmatpush1.bf16.msra.mxu0 %v1569_v43  ;;  %1013 = vmatprep.subr.bf16.mxu1 %v1570_v44  ;;  %v1713_v43 = vld [vmem:[%s2260_s0 + $0x1c] ss:$36 sps:$4 sm:$0xff]  }
  0x2d   :  { %1119 = vmatprep.subr.bf16.mxu0 %v1572_v45  ;;  %v1654_v44 = vld [vmem:[%s2259_s1 + $0x180] ss:$8 sps:$4 sm:$0xff]  }
  0x2e   :  { %v1657_v45 = vld [vmem:[%s2259_s1 + $0x380] ss:$8 sps:$4 sm:$0xff]  }
  0x2f   :  { %1014 = vmatpush1.bf16.msra.mxu1 %v1574_v46  ;;  %v1662_v46 = vld [vmem:[%s2259_s1 + $0x194] ss:$8 sps:$4 sm:$0xff]  }
  0x30   :  { %1120 = vmatpush1.bf16.msra.mxu0 %v1575_v47  ;;  %1015 = vmatprep.subr.bf16.mxu1 %v1576_v49  ;;  %v1665_v47 = vld [vmem:[%s2259_s1 + $0x394] ss:$8 sps:$4 sm:$0xff]   ;;  %v1663_v49 = vld [vmem:[%s2259_s1 + $0x390] ss:$8 sps:$4 sm:$0xff]  }
  0x31   :  { %1121 = vmatprep.subr.bf16.mxu0 %v1578_v50  ;;  %v1668_v50 = vld [vmem:[%s2259_s1 + $0x1a4] ss:$8 sps:$4 sm:$0xff]  }
  0x33   :  { %1016 = vmatpush1.bf16.msra.mxu1 %v1580_v52  ;;  %v1666_v52 = vld [vmem:[%s2259_s1 + $0x1a0] ss:$8 sps:$4 sm:$0xff]  }
  0x34   :  { %1122 = vmatpush1.bf16.msra.mxu0 %v1581_v53  ;;  %1017 = vmatprep.subr.bf16.mxu1 %v1582_v54  ;;  %v1669_v53 = vld [vmem:[%s2259_s1 + $0x3a0] ss:$8 sps:$4 sm:$0xff]   ;;  %v1674_v54 = vld [vmem:[%s2259_s1 + $0x1b4] ss:$8 sps:$4 sm:$0xff]  }
  0x35   :  { %1123 = vmatprep.subr.bf16.mxu0 %v1584_v55  ;;  %v1677_v55 = vld [vmem:[%s2259_s1 + $0x3b4] ss:$8 sps:$4 sm:$0xff]  }
  0x37   :  { %1018 = vmatpush1.bf16.msra.mxu1 %v1586_v56  ;;  %v1672_v56 = vld [vmem:[%s2259_s1 + $0x1b0] ss:$8 sps:$4 sm:$0xff]  }
  0x38   :  { %1124 = vmatpush1.bf16.msra.mxu0 %v1587_v57  ;;  %1019 = vmatprep.subr.bf16.mxu1 %v1588_v58  ;;  %v1675_v57 = vld [vmem:[%s2259_s1 + $0x3b0] ss:$8 sps:$4 sm:$0xff]   ;;  %v1680_v58 = vld [vmem:[%s2259_s1 + $0x1c4] ss:$8 sps:$4 sm:$0xff]  }
  0x39   :  { %1125 = vmatprep.subr.bf16.mxu0 %v1590_v59  ;;  %v1683_v59 = vld [vmem:[%s2259_s1 + $0x3c4] ss:$8 sps:$4 sm:$0xff]  }
  0x3b   :  { %1020 = vmatpush1.bf16.msra.mxu1 %v1592_v60  ;;  %v1678_v60 = vld [vmem:[%s2259_s1 + $0x1c0] ss:$8 sps:$4 sm:$0xff]  }
  0x3c   :  { %1126 = vmatpush1.bf16.msra.mxu0 %v1593_v61  ;;  %1021 = vmatprep.subr.bf16.mxu1 %v1594_v62  ;;  %v1681_v61 = vld [vmem:[%s2259_s1 + $0x3c0] ss:$8 sps:$4 sm:$0xff]   ;;  %v1686_v62 = vld [vmem:[%s2259_s1 + $0x1d4] ss:$8 sps:$4 sm:$0xff]  }
  0x3d   :  { %1127 = vmatprep.subr.bf16.mxu0 %v1596_v63  ;;  %v1689_v63 = vld [vmem:[%s2259_s1 + $0x3d4] ss:$8 sps:$4 sm:$0xff]  }
  0x3f   :  { %1022 = vmatpush1.bf16.msra.mxu1 %v1598_v0  ;;  %v1684_v0 = vld [vmem:[%s2259_s1 + $0x1d0] ss:$8 sps:$4 sm:$0xff]  }
  0x40   :  { %1128 = vmatpush1.bf16.msra.mxu0 %v1599_v1  ;;  %1044 = vmatprep.subr.bf16.mxu1 %v1605_v2  ;;  %v1687_v1 = vld [vmem:[%s2259_s1 + $0x3d0] ss:$8 sps:$4 sm:$0xff]   ;;  %v1697_v2 = vld [vmem:[%s2259_s1 + $0x1e4] ss:$8 sps:$4 sm:$0xff]  }
  0x41   :  { %1150 = vmatprep.subr.bf16.mxu0 %v1611_v3  ;;  %v1701_v3 = vld [vmem:[%s2259_s1 + $0x3e4] ss:$8 sps:$4 sm:$0xff]  }
  0x42   :  { %1024 = vmatmul.mubr.bf16.vlgmr.msra.gmra.mrb[0].mxu1 %v1600_v4  ;;  %v1695_v4 = vld [vmem:[%s2259_s1 + $0x1e0] ss:$8 sps:$4 sm:$0xff]  }
  0x43   :  { %1130 = vmatmul.mubr.bf16.vlgmr.msra.gmra.mrb[0].mxu0 %v1606_v6  ;;  %1045 = vmatpush1.bf16.msra.mxu1 %v1603_v5  ;;  %v1699_v5 = vld [vmem:[%s2259_s1 + $0x3e0] ss:$8 sps:$4 sm:$0xff]   ;;  %v1704_v6 = vld [vmem:[%s2259_s1 + $0x1f4] ss:$8 sps:$4 sm:$0xff]  }
  0x44   :  { %1151 = vmatpush1.bf16.msra.mxu0 %v1609_v7  ;;  %1046 = vmatprep.subr.bf16.mxu1 %v1614_v8  ;;  %v1707_v7 = vld [vmem:[%s2259_s1 + $0x3f4] ss:$8 sps:$4 sm:$0xff]   ;;  %v1702_v8 = vld [vmem:[%s2259_s1 + $0x1f0] ss:$8 sps:$4 sm:$0xff]  }
  0x45   :  { %1152 = vmatprep.subr.bf16.mxu0 %v1617_v9  ;;  %1033 = vmatprep.mubr.bf16.mxu1 %v1690_v29  ;;  %v1705_v9 = vld [vmem:[%s2259_s1 + $0x3f0] ss:$8 sps:$4 sm:$0xff]   ;;  %v1740_v29 = vld [vmem:[%s2259_s1 + $0x464] ss:$8 sps:$4 sm:$0xff]  }
  0x46   :  { %1139 = vmatprep.mubr.bf16.mxu0 %v1692_v30  ;;  %v1738_v30 = vld [vmem:[%s2259_s1 + $0x460] ss:$8 sps:$4 sm:$0xff]  }
  0x47   :  { %1047 = vmatpush1.bf16.msra.mxu1 %v1612_v10  ;;  %v1716_v10 = vld [vmem:[%s2259_s1 + $0x404] ss:$8 sps:$4 sm:$0xff]  }
  0x48   :  { %1153 = vmatpush1.bf16.msra.mxu0 %v1615_v11  ;;  %1048 = vmatprep.subr.bf16.mxu1 %v1620_v12  ;;  %v1708_v11 = vld [vmem:[%s2260_s0 + $0x8] ss:$36 sps:$4 sm:$0xff]   ;;  %v1711_v12 = vld [vmem:[%s2260_s0 + $0x18] ss:$36 sps:$4 sm:$0xff]  }
  0x49   :  { %1154 = vmatprep.subr.bf16.mxu0 %v1623_v13  ;;  %v1714_v13 = vld [vmem:[%s2259_s1 + $0x400] ss:$8 sps:$4 sm:$0xff]  }
  0x4a   :  { %1034 = vmatmul.mubr.bf16.gmra.mrb[4].mxu1 %v1694_v31  ;;  %v1743_v31 = vld [vmem:[%s2259_s1 + $0x474] ss:$8 sps:$4 sm:$0xff]  }
  0x4b   :  { %1049 = vmatpush1.bf16.msra.mxu1 %v1618_v14  ;;  %1140 = vmatmul.mubr.bf16.gmra.mrb[4].mxu0 %v1698_v33  ;;  %v1719_v14 = vld [vmem:[%s2259_s1 + $0x414] ss:$8 sps:$4 sm:$0xff]   ;;  %v1744_v33 = vld [vmem:[%s2260_s0 + $0x20] ss:$36 sps:$4 sm:$0xff]  }
  0x4c   :  { %1155 = vmatpush1.bf16.msra.mxu0 %v1621_v15  ;;  %1050 = vmatprep.subr.bf16.mxu1 %v1626_v16  ;;  %v1720_v15 = vld [vmem:[%s2260_s0 + $0x54] ss:$36 sps:$4 sm:$0xff]   ;;  %v1722_v16 = vld [vmem:[%s2260_s0 + $0x64] ss:$36 sps:$4 sm:$0xff]  }
  0x4d   :  { %1156 = vmatprep.subr.bf16.mxu0 %v1629_v17  ;;  %1076 = vmatprep.mubr.bf16.mxu1 %v1710_v41  ;;  %v1717_v17 = vld [vmem:[%s2259_s1 + $0x410] ss:$8 sps:$4 sm:$0xff]  }
  0x4e   :  { %1182 = vmatprep.mubr.bf16.mxu0 %v1713_v43 }
  0x4f   :  { %1051 = vmatpush1.bf16.msra.mxu1 %v1624_v18  ;;  %v1728_v18 = vld [vmem:[%s2259_s1 + $0x424] ss:$8 sps:$4 sm:$0xff]  }
  0x50   :  { %1157 = vmatpush1.bf16.msra.mxu0 %v1627_v19  ;;  %1052 = vmatprep.subr.bf16.mxu1 %v1632_v20  ;;  %v1724_v19 = vld [vmem:[%s2260_s0 + $0x50] ss:$36 sps:$4 sm:$0xff]   ;;  %v1725_v20 = vld [vmem:[%s2260_s0 + $0x60] ss:$36 sps:$4 sm:$0xff]  }
  0x51   :  { %1158 = vmatprep.subr.bf16.mxu0 %v1635_v21  ;;  %v1726_v21 = vld [vmem:[%s2259_s1 + $0x420] ss:$8 sps:$4 sm:$0xff]  }
  0x53   :  { %1053 = vmatpush1.bf16.msra.mxu1 %v1630_v22  ;;  %v1731_v22 = vld [vmem:[%s2259_s1 + $0x434] ss:$8 sps:$4 sm:$0xff]  }
  0x54   :  { %1159 = vmatpush1.bf16.msra.mxu0 %v1633_v23  ;;  %1054 = vmatprep.subr.bf16.mxu1 %v1638_v24  ;;  %v1729_v23 = vld [vmem:[%s2259_s1 + $0x430] ss:$8 sps:$4 sm:$0xff]   ;;  %v1734_v24 = vld [vmem:[%s2259_s1 + $0x444] ss:$8 sps:$4 sm:$0xff]  }
  0x55   :  { %1160 = vmatprep.subr.bf16.mxu0 %v1641_v25  ;;  %v1746_v25 = vmov 0  }
  0x57   :  { %1055 = vmatpush1.bf16.msra.mxu1 %v1636_v26  ;;  %v1732_v26 = vld [vmem:[%s2259_s1 + $0x440] ss:$8 sps:$4 sm:$0xff]  }
  0x58   :  { %1161 = vmatpush1.bf16.msra.mxu0 %v1639_v27  ;;  %1056 = vmatprep.subr.bf16.mxu1 %v1644_v28  ;;  %v1737_v27 = vld [vmem:[%s2259_s1 + $0x454] ss:$8 sps:$4 sm:$0xff]   ;;  %v1735_v28 = vld [vmem:[%s2259_s1 + $0x450] ss:$8 sps:$4 sm:$0xff]  }
  0x59   :  { %1162 = vmatprep.subr.bf16.mxu0 %v1647_v32  ;;  %v1741_v32 = vld [vmem:[%s2259_s1 + $0x470] ss:$8 sps:$4 sm:$0xff]  }
  0x5b   :  { %1057 = vmatpush1.bf16.msra.mxu1 %v1642_v34  ;;  %v1745_v34 = vld [vmem:[%s2260_s0 + $0x68] ss:$36 sps:$4 sm:$0xff]  }
  0x5c   :  { %1163 = vmatpush1.bf16.msra.mxu0 %v1645_v35  ;;  %1058 = vmatprep.subr.bf16.mxu1 %v1650_v36 }
  0x5d   :  { %1164 = vmatprep.subr.bf16.mxu0 %v1653_v37 }
  0x5f   :  { %1059 = vmatpush1.bf16.msra.mxu1 %v1648_v38 }
  0x60   :  { %1165 = vmatpush1.bf16.msra.mxu0 %v1651_v39  ;;  %1060 = vmatprep.subr.bf16.mxu1 %v1656_v40 }
  0x61   :  { %1166 = vmatprep.subr.bf16.mxu0 %v1659_v42 }
  0x63   :  { %1061 = vmatpush1.bf16.msra.mxu1 %v1654_v44 }
  0x64   :  { %1167 = vmatpush1.bf16.msra.mxu0 %v1657_v45  ;;  %1062 = vmatprep.subr.bf16.mxu1 %v1662_v46 }
  0x65   :  { %1168 = vmatprep.subr.bf16.mxu0 %v1665_v47 }
  0x67   :  { %1063 = vmatpush1.bf16.msra.mxu1 %v1660_v48 }
  0x68   :  { %1169 = vmatpush1.bf16.msra.mxu0 %v1663_v49  ;;  %1064 = vmatprep.subr.bf16.mxu1 %v1668_v50 }
  0x69   :  { %1170 = vmatprep.subr.bf16.mxu0 %v1671_v51  ;;  %v1264_v51 = vlaneseq }
  0x6b   :  { %1065 = vmatpush1.bf16.msra.mxu1 %v1666_v52  ;;  %v1265_v52 = vshrl.u32 %v1264_v51, 7 }
  0x6c   :  { %1171 = vmatpush1.bf16.msra.mxu0 %v1669_v53  ;;  %1066 = vmatprep.subr.bf16.mxu1 %v1674_v54 }
  0x6d   :  { %1172 = vmatprep.subr.bf16.mxu0 %v1677_v55 }
  0x6f   :  { %1067 = vmatpush1.bf16.msra.mxu1 %v1672_v56 }
  0x70   :  { %1173 = vmatpush1.bf16.msra.mxu0 %v1675_v57  ;;  %1068 = vmatprep.subr.bf16.mxu1 %v1680_v58 }
  0x71   :  { %1174 = vmatprep.subr.bf16.mxu0 %v1683_v59  ;;  %v1266_v59 = vsub.s32 0, %v1265_v52 }
  0x73   :  { %1069 = vmatpush1.bf16.msra.mxu1 %v1678_v60 }
  0x74   :  { %1175 = vmatpush1.bf16.msra.mxu0 %v1681_v61  ;;  %1070 = vmatprep.subr.bf16.mxu1 %v1686_v62 }
  0x75   :  { %1176 = vmatprep.subr.bf16.mxu0 %v1689_v63 }
  0x77   :  { %1071 = vmatpush1.bf16.msra.mxu1 %v1684_v0  ;;  %v1262_v0 = vld [vmem:[%s2261_s2] sm:$0x3] }
  0x78   :  { %1177 = vmatpush1.bf16.msra.mxu0 %v1687_v1  ;;  %1072 = vmatprep.subr.bf16.mxu1 %v1697_v2  ;;  %v1270_v1 = vsub.s32 1, %v1265_v52 }
  0x79   :  { %1178 = vmatprep.subr.bf16.mxu0 %v1701_v3 }
  0x7b   :  { %1073 = vmatpush1.bf16.msra.mxu1 %v1695_v4 }
  0x7c   :  { %1179 = vmatpush1.bf16.msra.mxu0 %v1699_v5  ;;  %1074 = vmatprep.subr.bf16.mxu1 %v1704_v6 }
  0x7d   :  { %1180 = vmatprep.subr.bf16.mxu0 %v1707_v7 }
  0x7f   :  { %1075 = vmatpush1.bf16.msra.mxu1 %v1702_v8 }
  0x80   :  { %1181 = vmatpush1.bf16.msra.mxu0 %v1705_v9  ;;  %1455 = vmatprep.subr.bf16.mxu1 %v1716_v10 }
  0x81   :  { %1203 = vmatprep.subr.bf16.mxu0 %v1716_v10  ;;  %v1267_v10 = vrot.slane %v1262_v0, %v1266_v59 }
  0x82   :  { %1077 = vmatmul.mubr.bf16.vlgmr.msra.gmra.mrb[0].mxu1 %v1708_v11 }
  0x83   :  { %1183 = vmatmul.mubr.bf16.vlgmr.msra.gmra.mrb[0].mxu0 %v1711_v12  ;;  %1463 = vmatpush1.bf16.msra.mxu1 %v1714_v13 }
  0x84   :  { %1204 = vmatpush1.bf16.msra.mxu0 %v1714_v13  ;;  %1456 = vmatprep.subr.bf16.mxu1 %v1719_v14  ;;  %v1271_v13 = vrot.slane %v1262_v0, %v1270_v1 }
  0x85   :  { %1205 = vmatprep.subr.bf16.mxu0 %v1719_v14  ;;  %1086 = vmatprep.mubr.bf16.mxu1 %v1720_v15 }
  0x86   :  { %1192 = vmatprep.mubr.bf16.mxu0 %v1722_v16 }
  0x87   :  { %1464 = vmatpush1.bf16.msra.mxu1 %v1717_v17 }
  0x88   :  { %1206 = vmatpush1.bf16.msra.mxu0 %v1717_v17  ;;  %1457 = vmatprep.subr.bf16.mxu1 %v1728_v18 }
  0x89   :  { %1207 = vmatprep.subr.bf16.mxu0 %v1728_v18 }
  0x8a   :  { %1087 = vmatmul.mubr.bf16.gmra.mrb[4].mxu1 %v1724_v19 }
  0x8b   :  { %1193 = vmatmul.mubr.bf16.gmra.mrb[4].mxu0 %v1725_v20  ;;  %1465 = vmatpush1.bf16.msra.mxu1 %v1726_v21 }
  0x8c   :  { %1208 = vmatpush1.bf16.msra.mxu0 %v1726_v21  ;;  %1458 = vmatprep.subr.bf16.mxu1 %v1731_v22 }
  0x8d   :  { %1209 = vmatprep.subr.bf16.mxu0 %v1731_v22  ;;  %1235 = vmatprep.mubr.bf16.mxu0 %v1746_v25 }
  0x8e   :  { %1245 = vmatprep.mubr.bf16.mxu1 %v1746_v25 }
  0x8f   :  { %1466 = vmatpush1.bf16.msra.mxu1 %v1729_v23 }
  0x90   :  { %1210 = vmatpush1.bf16.msra.mxu0 %v1729_v23  ;;  %1459 = vmatprep.subr.bf16.mxu1 %v1734_v24 }
  0x91   :  { %1211 = vmatprep.subr.bf16.mxu0 %v1734_v24 }
  0x93   :  { %1467 = vmatpush1.bf16.msra.mxu1 %v1732_v26 }
  0x94   :  { %1212 = vmatpush1.bf16.msra.mxu0 %v1732_v26  ;;  %1460 = vmatprep.subr.bf16.mxu1 %v1737_v27 }
  0x95   :  { %1213 = vmatprep.subr.bf16.mxu0 %v1737_v27 }
  0x97   :  { %1468 = vmatpush1.bf16.msra.mxu1 %v1735_v28 }
  0x98   :  { %1214 = vmatpush1.bf16.msra.mxu0 %v1735_v28  ;;  %1461 = vmatprep.subr.bf16.mxu1 %v1740_v29 }
  0x99   :  { %1215 = vmatprep.subr.bf16.mxu0 %v1740_v29 }
  0x9b   :  { %1469 = vmatpush1.bf16.msra.mxu1 %v1738_v30 }
  0x9c   :  { %1216 = vmatpush1.bf16.msra.mxu0 %v1738_v30  ;;  %1462 = vmatprep.subr.bf16.mxu1 %v1743_v31 }
  0x9d   :  { %1217 = vmatprep.subr.bf16.mxu0 %v1743_v31 }
  0x9f   :  { %1470 = vmatpush1.bf16.msra.mxu1 %v1741_v32 }
  0xa0   :  { %1218 = vmatpush1.bf16.msra.mxu0 %v1741_v32 }
  0xa2   :  { %1246 = vmatmul.mubr.bf16.vlgmr.msra.gmra.mrb[8].mxu1 %v1745_v34 }
  0xa3   :  { %1236 = vmatmul.mubr.bf16.vlgmr.msra.gmra.mrb[0].mxu0 %v1744_v33 }
 0x155   :  { %v1078_v35 = vpop.f32.mrb[0].mxu1 }
 0x156   :  { %v1080_v36 = vpop.f32.mrb[1].mxu1 }
 0x157   :  { %v1082_v37 = vpop.f32.mrb[2].mxu1 }
 0x158   :  { %v1084_v38 = vpop.f32.mrb[3].mxu1 }
 0x15d   :  { %v1088_v39 = vpop.f32.mrb[4].mxu1 }
 0x15e   :  { %v1194_v40 = vpop.f32.mrb[4].mxu0  ;;  %v1090_v42 = vpop.f32.mrb[5].mxu1 }
 0x15f   :  { %v1475_v41 = vadd.f32 %v1194_v40, %v1088_v39  ;;  %v1196_v43 = vpop.f32.mrb[5].mxu0  ;;  %v1092_v45 = vpop.f32.mrb[6].mxu1 }
 0x160   :  { %v1477_v44 = vadd.f32 %v1196_v43, %v1090_v42  ;;  %v1198_v46 = vpop.f32.mrb[6].mxu0  ;;  %v1094_v48 = vpop.f32.mrb[7].mxu1 }
 0x161   :  { %v1479_v47 = vadd.f32 %v1198_v46, %v1092_v45  ;;  %v1200_v49 = vpop.f32.mrb[7].mxu0 }
 0x162   :  { %v1481_v50 = vadd.f32 %v1200_v49, %v1094_v48 }
 0x175   :  { %v1247_v54 = vpop.f32.mrb[8].mxu1 }
 0x176   :  { %v1237_v53 = vpop.f32.mrb[0].mxu0  ;;  %v1476_v56 = vadd.f32 %v1475_v41, %v1247_v54  ;;  %v1249_v58 = vpop.f32.mrb[9].mxu1 }
 0x177   :  { %v1471_v55 = vadd.f32 %v1237_v53, %v1078_v35  ;;  %v1239_v57 = vpop.f32.mrb[1].mxu0  ;;  %v1478_v61 = vadd.f32 %v1477_v44, %v1249_v58  ;;  %v1251_v63 = vpop.f32.mrb[10].mxu1 }
 0x178   :  { %v1472_v60 = vadd.f32 %v1239_v57, %v1080_v36  ;;  %v1241_v62 = vpop.f32.mrb[2].mxu0  ;;  %v1480_v3 = vadd.f32 %v1479_v47, %v1251_v63  ;;  %v1253_v5 = vpop.f32.mrb[11].mxu1 }
 0x179   :  { %v1473_v2 = vadd.f32 %v1241_v62, %v1082_v37  ;;  %v1243_v4 = vpop.f32.mrb[3].mxu0  ;;  %v1482_v7 = vadd.f32 %v1481_v50, %v1253_v5 }
 0x17a   :  { %v1474_v6 = vadd.f32 %v1243_v4, %v1084_v38  ;;  %v1258_v9 = vmax.f32 %v1476_v56, %v1480_v3 }
 0x17b   :  { %v1256_v8 = vmax.f32 %v1471_v55, %v1473_v2  ;;  %v1259_v12 = vmax.f32 %v1478_v61, %v1482_v7 }
 0x17c   :  { %v1257_v11 = vmax.f32 %v1472_v60, %v1474_v6 }
 0x17d   :  { %v1260_v14 = vmax.f32 %v1256_v8, %v1258_v9 }
 0x17e   :  { %v1261_v15 = vmax.f32 %v1257_v11, %v1259_v12 }
 0x17f   :  { %v1274_v16 = vadd.f32 %v1267_v10, %v1260_v14 }
 0x180   :  { %v1275_v17 = vadd.f32 %v1271_v13, %v1261_v15 }
 0x181   :  { %v1276_v18 = vmax.f32 %v1274_v16, 0.0 }
 0x182   :  { %v1277_v19 = vmax.f32 %v1275_v17, 0.0 }
 0x184   :  { %v1454_v20 = vpack.c.bf16 %v1277_v19, %v1276_v18 }
 0x186   :  { %1286 = vst [vmem:[%s2262_s3] sm:$0xff] %v1454_v20 }

// kernel: forward.7
= control target key start
LH: loop header
LB: loop body
LE: loop exit
PB: predicated region body
PF: predicated region fallthrough
CT: control target
= control target key end

     0   :  { %10 = vsyncpa [#allocation4], 0  ;;  %s10399_s0 = inlined_call_operand.vmem [shape: bf16[2,1024], index: 0, kind: input, shape index: {}]   ;;  %s10400_s1 = inlined_call_operand.vmem [shape: bf16[1024,1024], index: 1, kind: input, shape index: {}]   ;;  %s10401_s2 = inlined_call_operand.vmem [shape: f32[1,1024], index: 2, kind: input, shape index: {}]   ;;  %s10402_s3 = inlined_call_operand.vmem [shape: bf16[1024,768], index: 3, kind: input, shape index: {}]   ;;  %s10403_s4 = inlined_call_operand.vmem [shape: f32[1,768], index: 4, kind: input, shape index: {}]   ;;  %s10404_s5 = inlined_call_operand.hbm [shape: f32[2,768], index: 5, kind: output, shape index: {}]  }
   0x1   :  { %12 = vsyncpa [#allocation4 + $0x1], 0  ;;  %s7889_s18 = smov 0   ;;  %s7891_s19 = smov 0  }
   0x2   :  { %s7893_s20 = smov 0   ;;  %s7895_s21 = smov 0  }
   0x3 LB: > { %s7910_s22 = sadd.s32 4294967295, %s7854_s21   ;;  %s6364_s23 = sadd.s32 4294967294, %s7854_s21   ;;  %s7854_s21 = sphi %s7895_s21, %s10410_s21   ;;  %s7850_s20 = sphi %s7893_s20, %s10409_s20   ;;  %s7846_s19 = sphi %s7891_s19, %s10408_s19   ;;  %s7842_s18 = sphi %s7889_s18, %s10407_s18  }
   0x4   : > { %s7914_s24 = sadd.s32 1, %s7854_s21   ;;  %s88_s25 = sadd.s32 1, %s7850_s20 }
   0x5   : > { %s85_s26 = ssub.s32 %s7854_s21, %s7914_s24  ;;  %p95_p0 = scmp.ne.s32.totalorder %s7850_s20, %s7846_s19 }
   0x6   : > { %p86_p1 = scmp.eq.s32.totalorder %s85_s26, 0  ;;  %p96_p2 = scmp.eq.s32.totalorder %s7854_s21, 0 }
   0x7   : > { %p151_p3 = scmp.eq.s32.totalorder %s7910_s22, 1  ;;  %p156_p4 = scmp.ne.s32.totalorder %s7846_s19, %s7842_s18 }
   0x8   : > { %s7926_s27 = scalar_select %p86_p1, %s7850_s20, %s88_s25  }
   0x9   : > { %p97_p5 = por %p96_p2, %p95_p0  ;;  %p7928_p6 = por %p151_p3, %p95_p0 }
   0xa   : > { %p157_p7 = scmp.eq.s32.totalorder %s6364_s23, 1  ;;  %p6366_p9 = scmp.ge.s32.totalorder %s7854_s21, 2 }
   0xc   : > { %p7932_p8 = por %p157_p7, %p156_p4  ;;  %182 = sbr.rel (%p6366_p9) target bundleno = 173 (0xad), region = 28 }
  0x13   : > { %185 = sbr.rel (!%p97_p5) target bundleno = 173 (0xad), region = 32  ;;  %s187_s30 = sand.u32 (%p97_p5), 1, %s7850_s20  }
  0x14   : > { %s7332_s6 = smul.u32 (%p97_p5), 12, %s7854_s21 }
  0x15   : > { %s7490_s7 = smul.u32 (%p97_p5), 1536, %s187_s30 }
  0x16   : > { %s7944_s10 = scalar_lea.vmem (%p97_p5), %s10402_s3, %s7332_s6 }
  0x17   : > { %v207_v0 = vld [vmem:[%s7944_s10] sm:$0xff] (%p97_p5)  ;;  %v209_v1 = vld [vmem:[%s7944_s10 + $0x18] sm:$0xff] (%p97_p5)  ;;  %v211_v2 = vld [vmem:[%s7944_s10 + $0x30] sm:$0xff] (%p97_p5)  ;;  %s7949_s11 = scalar_lea.vmem (%p97_p5), [#allocation2], %s7490_s7 }
  0x18   : > { %208 = vst [vmem:[%s7949_s11] sm:$0xff] (%p97_p5), %v207_v0  ;;  %210 = vst [vmem:[%s7949_s11 + $0xc] sm:$0xff] (%p97_p5), %v209_v1  ;;  %v213_v3 = vld [vmem:[%s7944_s10 + $0x48] sm:$0xff] (%p97_p5)  ;;  %v215_v4 = vld [vmem:[%s7944_s10 + $0x60] sm:$0xff] (%p97_p5) }
  0x19   : > { %212 = vst [vmem:[%s7949_s11 + $0x18] sm:$0xff] (%p97_p5), %v211_v2  ;;  %v217_v5 = vld [vmem:[%s7944_s10 + $0x78] sm:$0xff] (%p97_p5)  ;;  %214 = vst [vmem:[%s7949_s11 + $0x24] sm:$0xff] (%p97_p5), %v213_v3  ;;  %v219_v6 = vld [vmem:[%s7944_s10 + $0x90] sm:$0xff] (%p97_p5) }
  0x1a   : > { %216 = vst [vmem:[%s7949_s11 + $0x30] sm:$0xff] %v215_v4  ;;  %218 = vst [vmem:[%s7949_s11 + $0x3c] sm:$0xff] %v217_v5  ;;  %v221_v7 = vld [vmem:[%s7944_s10 + $0xa8] sm:$0xff]  ;;  %v223_v8 = vld [vmem:[%s7944_s10 + $0xc0] sm:$0xff] }
  0x1b   : > { %220 = vst [vmem:[%s7949_s11 + $0x48] sm:$0xff] %v219_v6  ;;  %222 = vst [vmem:[%s7949_s11 + $0x54] sm:$0xff] %v221_v7  ;;  %v225_v9 = vld [vmem:[%s7944_s10 + $0xd8] sm:$0xff]  ;;  %v227_v10 = vld [vmem:[%s7944_s10 + $0xf0] sm:$0xff] }
  0x1c   : > { %224 = vst [vmem:[%s7949_s11 + $0x60] sm:$0xff] %v223_v8  ;;  %v229_v11 = vld [vmem:[%s7944_s10 + $0x108] sm:$0xff]  ;;  %226 = vst [vmem:[%s7949_s11 + $0x6c] sm:$0xff] %v225_v9  ;;  %v231_v12 = vld [vmem:[%s7944_s10 + $0x120] sm:$0xff] }
  0x1d   : > { %228 = vst [vmem:[%s7949_s11 + $0x78] sm:$0xff] %v227_v10  ;;  %230 = vst [vmem:[%s7949_s11 + $0x84] sm:$0xff] %v229_v11  ;;  %v233_v13 = vld [vmem:[%s7944_s10 + $0x138] sm:$0xff]  ;;  %v235_v14 = vld [vmem:[%s7944_s10 + $0x150] sm:$0xff] }
  0x1e   : > { %232 = vst [vmem:[%s7949_s11 + $0x90] sm:$0xff] %v231_v12  ;;  %234 = vst [vmem:[%s7949_s11 + $0x9c] sm:$0xff] %v233_v13  ;;  %v237_v15 = vld [vmem:[%s7944_s10 + $0x168] sm:$0xff]  ;;  %v239_v16 = vld [vmem:[%s7944_s10 + $0x180] sm:$0xff] }
  0x1f   : > { %236 = vst [vmem:[%s7949_s11 + $0xa8] sm:$0xff] %v235_v14  ;;  %v241_v17 = vld [vmem:[%s7944_s10 + $0x198] sm:$0xff]  ;;  %238 = vst [vmem:[%s7949_s11 + $0xb4] sm:$0xff] %v237_v15  ;;  %v243_v18 = vld [vmem:[%s7944_s10 + $0x1b0] sm:$0xff] }
  0x20   : > { %240 = vst [vmem:[%s7949_s11 + $0xc0] sm:$0xff] %v239_v16  ;;  %242 = vst [vmem:[%s7949_s11 + $0xcc] sm:$0xff] %v241_v17  ;;  %v245_v19 = vld [vmem:[%s7944_s10 + $0x1c8] sm:$0xff]  ;;  %v247_v20 = vld [vmem:[%s7944_s10 + $0x1e0] sm:$0xff] }
  0x21   : > { %244 = vst [vmem:[%s7949_s11 + $0xd8] sm:$0xff] %v243_v18  ;;  %246 = vst [vmem:[%s7949_s11 + $0xe4] sm:$0xff] %v245_v19  ;;  %v249_v21 = vld [vmem:[%s7944_s10 + $0x1f8] sm:$0xff]  ;;  %v251_v22 = vld [vmem:[%s7944_s10 + $0x210] sm:$0xff] }
  0x22   : > { %248 = vst [vmem:[%s7949_s11 + $0xf0] sm:$0xff] %v247_v20  ;;  %v253_v23 = vld [vmem:[%s7944_s10 + $0x228] sm:$0xff]  ;;  %250 = vst [vmem:[%s7949_s11 + $0xfc] sm:$0xff] %v249_v21  ;;  %v255_v24 = vld [vmem:[%s7944_s10 + $0x240] sm:$0xff] }
  0x23   : > { %252 = vst [vmem:[%s7949_s11 + $0x108] sm:$0xff] %v251_v22  ;;  %254 = vst [vmem:[%s7949_s11 + $0x114] sm:$0xff] %v253_v23  ;;  %v257_v25 = vld [vmem:[%s7944_s10 + $0x258] sm:$0xff]  ;;  %v259_v26 = vld [vmem:[%s7944_s10 + $0x270] sm:$0xff] }
  0x24   : > { %256 = vst [vmem:[%s7949_s11 + $0x120] sm:$0xff] %v255_v24  ;;  %258 = vst [vmem:[%s7949_s11 + $0x12c] sm:$0xff] %v257_v25  ;;  %v261_v27 = vld [vmem:[%s7944_s10 + $0x288] sm:$0xff]  ;;  %v263_v28 = vld [vmem:[%s7944_s10 + $0x2a0] sm:$0xff] }
  0x25   : > { %260 = vst [vmem:[%s7949_s11 + $0x138] sm:$0xff] %v259_v26  ;;  %v265_v29 = vld [vmem:[%s7944_s10 + $0x2b8] sm:$0xff]  ;;  %262 = vst [vmem:[%s7949_s11 + $0x144] sm:$0xff] %v261_v27  ;;  %v267_v30 = vld [vmem:[%s7944_s10 + $0x2d0] sm:$0xff] }
  0x26   : > { %264 = vst [vmem:[%s7949_s11 + $0x150] sm:$0xff] %v263_v28  ;;  %266 = vst [vmem:[%s7949_s11 + $0x15c] sm:$0xff] %v265_v29  ;;  %v269_v31 = vld [vmem:[%s7944_s10 + $0x2e8] sm:$0xff]  ;;  %v271_v32 = vld [vmem:[%s7944_s10 + $0x300] sm:$0xff] }
  0x27   : > { %268 = vst [vmem:[%s7949_s11 + $0x168] sm:$0xff] %v267_v30  ;;  %270 = vst [vmem:[%s7949_s11 + $0x174] sm:$0xff] %v269_v31  ;;  %v273_v33 = vld [vmem:[%s7944_s10 + $0x318] sm:$0xff]  ;;  %v275_v34 = vld [vmem:[%s7944_s10 + $0x330] sm:$0xff] }
  0x28   : > { %272 = vst [vmem:[%s7949_s11 + $0x180] sm:$0xff] %v271_v32  ;;  %v277_v35 = vld [vmem:[%s7944_s10 + $0x348] sm:$0xff]  ;;  %274 = vst [vmem:[%s7949_s11 + $0x18c] sm:$0xff] %v273_v33  ;;  %v279_v36 = vld [vmem:[%s7944_s10 + $0x360] sm:$0xff] }
  0x29   : > { %276 = vst [vmem:[%s7949_s11 + $0x198] sm:$0xff] %v275_v34  ;;  %278 = vst [vmem:[%s7949_s11 + $0x1a4] sm:$0xff] %v277_v35  ;;  %v281_v37 = vld [vmem:[%s7944_s10 + $0x378] sm:$0xff]  ;;  %v283_v38 = vld [vmem:[%s7944_s10 + $0x390] sm:$0xff] }
  0x2a   : > { %280 = vst [vmem:[%s7949_s11 + $0x1b0] sm:$0xff] %v279_v36  ;;  %282 = vst [vmem:[%s7949_s11 + $0x1bc] sm:$0xff] %v281_v37  ;;  %v285_v39 = vld [vmem:[%s7944_s10 + $0x3a8] sm:$0xff]  ;;  %v287_v40 = vld [vmem:[%s7944_s10 + $0x3c0] sm:$0xff] }
  0x2b   : > { %284 = vst [vmem:[%s7949_s11 + $0x1c8] sm:$0xff] %v283_v38  ;;  %v289_v41 = vld [vmem:[%s7944_s10 + $0x3d8] sm:$0xff]  ;;  %286 = vst [vmem:[%s7949_s11 + $0x1d4] sm:$0xff] %v285_v39  ;;  %v291_v42 = vld [vmem:[%s7944_s10 + $0x3f0] sm:$0xff] }
  0x2c   : > { %288 = vst [vmem:[%s7949_s11 + $0x1e0] sm:$0xff] %v287_v40  ;;  %290 = vst [vmem:[%s7949_s11 + $0x1ec] sm:$0xff] %v289_v41  ;;  %v293_v43 = vld [vmem:[%s7944_s10 + $0x408] sm:$0xff]  ;;  %v295_v44 = vld [vmem:[%s7944_s10 + $0x420] sm:$0xff] }
  0x2d   : > { %292 = vst [vmem:[%s7949_s11 + $0x1f8] sm:$0xff] %v291_v42  ;;  %294 = vst [vmem:[%s7949_s11 + $0x204] sm:$0xff] %v293_v43  ;;  %v297_v45 = vld [vmem:[%s7944_s10 + $0x438] sm:$0xff]  ;;  %v299_v46 = vld [vmem:[%s7944_s10 + $0x450] sm:$0xff] }
  0x2e   : > { %296 = vst [vmem:[%s7949_s11 + $0x210] sm:$0xff] %v295_v44  ;;  %v301_v47 = vld [vmem:[%s7944_s10 + $0x468] sm:$0xff]  ;;  %298 = vst [vmem:[%s7949_s11 + $0x21c] sm:$0xff] %v297_v45  ;;  %v303_v48 = vld [vmem:[%s7944_s10 + $0x480] sm:$0xff] }
  0x2f   : > { %300 = vst [vmem:[%s7949_s11 + $0x228] sm:$0xff] %v299_v46  ;;  %302 = vst [vmem:[%s7949_s11 + $0x234] sm:$0xff] %v301_v47  ;;  %v305_v49 = vld [vmem:[%s7944_s10 + $0x498] sm:$0xff]  ;;  %v307_v50 = vld [vmem:[%s7944_s10 + $0x4b0] sm:$0xff] }
  0x30   : > { %304 = vst [vmem:[%s7949_s11 + $0x240] sm:$0xff] %v303_v48  ;;  %306 = vst [vmem:[%s7949_s11 + $0x24c] sm:$0xff] %v305_v49  ;;  %v309_v51 = vld [vmem:[%s7944_s10 + $0x4c8] sm:$0xff]  ;;  %v311_v52 = vld [vmem:[%s7944_s10 + $0x4e0] sm:$0xff] }
  0x31   : > { %308 = vst [vmem:[%s7949_s11 + $0x258] sm:$0xff] %v307_v50  ;;  %v313_v53 = vld [vmem:[%s7944_s10 + $0x4f8] sm:$0xff]  ;;  %310 = vst [vmem:[%s7949_s11 + $0x264] sm:$0xff] %v309_v51  ;;  %v315_v54 = vld [vmem:[%s7944_s10 + $0x510] sm:$0xff] }
  0x32   : > { %312 = vst [vmem:[%s7949_s11 + $0x270] sm:$0xff] %v311_v52  ;;  %314 = vst [vmem:[%s7949_s11 + $0x27c] sm:$0xff] %v313_v53  ;;  %v317_v55 = vld [vmem:[%s7944_s10 + $0x528] sm:$0xff]  ;;  %v319_v56 = vld [vmem:[%s7944_s10 + $0x540] sm:$0xff] }
  0x33   : > { %316 = vst [vmem:[%s7949_s11 + $0x288] sm:$0xff] %v315_v54  ;;  %318 = vst [vmem:[%s7949_s11 + $0x294] sm:$0xff] %v317_v55  ;;  %v321_v57 = vld [vmem:[%s7944_s10 + $0x558] sm:$0xff]  ;;  %v323_v58 = vld [vmem:[%s7944_s10 + $0x570] sm:$0xff] }
  0x34   : > { %320 = vst [vmem:[%s7949_s11 + $0x2a0] sm:$0xff] %v319_v56  ;;  %v325_v59 = vld [vmem:[%s7944_s10 + $0x588] sm:$0xff]  ;;  %322 = vst [vmem:[%s7949_s11 + $0x2ac] sm:$0xff] %v321_v57  ;;  %v327_v60 = vld [vmem:[%s7944_s10 + $0x5a0] sm:$0xff] }
  0x35   : > { %324 = vst [vmem:[%s7949_s11 + $0x2b8] sm:$0xff] %v323_v58  ;;  %326 = vst [vmem:[%s7949_s11 + $0x2c4] sm:$0xff] %v325_v59  ;;  %v329_v61 = vld [vmem:[%s7944_s10 + $0x5b8] sm:$0xff]  ;;  %v331_v62 = vld [vmem:[%s7944_s10 + $0x5d0] sm:$0xff] }
  0x36   : > { %328 = vst [vmem:[%s7949_s11 + $0x2d0] sm:$0xff] %v327_v60  ;;  %330 = vst [vmem:[%s7949_s11 + $0x2dc] sm:$0xff] %v329_v61  ;;  %v333_v63 = vld [vmem:[%s7944_s10 + $0x5e8] sm:$0xff]  ;;  %v335_v0 = vld [vmem:[%s7944_s10 + $0x600] sm:$0xff] }
  0x37   : > { %332 = vst [vmem:[%s7949_s11 + $0x2e8] sm:$0xff] %v331_v62  ;;  %v337_v1 = vld [vmem:[%s7944_s10 + $0x618] sm:$0xff]  ;;  %334 = vst [vmem:[%s7949_s11 + $0x2f4] sm:$0xff] %v333_v63  ;;  %v339_v2 = vld [vmem:[%s7944_s10 + $0x630] sm:$0xff] }
  0x38   : > { %336 = vst [vmem:[%s7949_s11 + $0x300] sm:$0xff] %v335_v0  ;;  %338 = vst [vmem:[%s7949_s11 + $0x30c] sm:$0xff] %v337_v1  ;;  %v341_v3 = vld [vmem:[%s7944_s10 + $0x648] sm:$0xff]  ;;  %v343_v4 = vld [vmem:[%s7944_s10 + $0x660] sm:$0xff] }
  0x39   : > { %340 = vst [vmem:[%s7949_s11 + $0x318] sm:$0xff] %v339_v2  ;;  %342 = vst [vmem:[%s7949_s11 + $0x324] sm:$0xff] %v341_v3  ;;  %v345_v5 = vld [vmem:[%s7944_s10 + $0x678] sm:$0xff]  ;;  %v347_v6 = vld [vmem:[%s7944_s10 + $0x690] sm:$0xff] }
  0x3a   : > { %344 = vst [vmem:[%s7949_s11 + $0x330] sm:$0xff] %v343_v4  ;;  %v349_v7 = vld [vmem:[%s7944_s10 + $0x6a8] sm:$0xff]  ;;  %346 = vst [vmem:[%s7949_s11 + $0x33c] sm:$0xff] %v345_v5  ;;  %v351_v8 = vld [vmem:[%s7944_s10 + $0x6c0] sm:$0xff] }
  0x3b   : > { %348 = vst [vmem:[%s7949_s11 + $0x348] sm:$0xff] %v347_v6  ;;  %350 = vst [vmem:[%s7949_s11 + $0x354] sm:$0xff] %v349_v7  ;;  %v353_v9 = vld [vmem:[%s7944_s10 + $0x6d8] sm:$0xff]  ;;  %v355_v10 = vld [vmem:[%s7944_s10 + $0x6f0] sm:$0xff] }
  0x3c   : > { %352 = vst [vmem:[%s7949_s11 + $0x360] sm:$0xff] %v351_v8  ;;  %354 = vst [vmem:[%s7949_s11 + $0x36c] sm:$0xff] %v353_v9  ;;  %v357_v11 = vld [vmem:[%s7944_s10 + $0x708] sm:$0xff]  ;;  %v359_v12 = vld [vmem:[%s7944_s10 + $0x720] sm:$0xff] }
  0x3d   : > { %356 = vst [vmem:[%s7949_s11 + $0x378] sm:$0xff] %v355_v10  ;;  %v361_v13 = vld [vmem:[%s7944_s10 + $0x738] sm:$0xff]  ;;  %358 = vst [vmem:[%s7949_s11 + $0x384] sm:$0xff] %v357_v11  ;;  %v363_v14 = vld [vmem:[%s7944_s10 + $0x750] sm:$0xff] }
  0x3e   : > { %360 = vst [vmem:[%s7949_s11 + $0x390] sm:$0xff] %v359_v12  ;;  %362 = vst [vmem:[%s7949_s11 + $0x39c] sm:$0xff] %v361_v13  ;;  %v365_v15 = vld [vmem:[%s7944_s10 + $0x768] sm:$0xff]  ;;  %v367_v16 = vld [vmem:[%s7944_s10 + $0x780] sm:$0xff] }
  0x3f   : > { %364 = vst [vmem:[%s7949_s11 + $0x3a8] sm:$0xff] %v363_v14  ;;  %366 = vst [vmem:[%s7949_s11 + $0x3b4] sm:$0xff] %v365_v15  ;;  %v369_v17 = vld [vmem:[%s7944_s10 + $0x798] sm:$0xff]  ;;  %v371_v18 = vld [vmem:[%s7944_s10 + $0x7b0] sm:$0xff] }
  0x40   : > { %368 = vst [vmem:[%s7949_s11 + $0x3c0] sm:$0xff] %v367_v16  ;;  %v373_v19 = vld [vmem:[%s7944_s10 + $0x7c8] sm:$0xff]  ;;  %370 = vst [vmem:[%s7949_s11 + $0x3cc] sm:$0xff] %v369_v17  ;;  %v375_v20 = vld [vmem:[%s7944_s10 + $0x7e0] sm:$0xff] }
  0x41   : > { %372 = vst [vmem:[%s7949_s11 + $0x3d8] sm:$0xff] %v371_v18  ;;  %374 = vst [vmem:[%s7949_s11 + $0x3e4] sm:$0xff] %v373_v19  ;;  %v377_v21 = vld [vmem:[%s7944_s10 + $0x7f8] sm:$0xff]  ;;  %v379_v22 = vld [vmem:[%s7944_s10 + $0x810] sm:$0xff] }
  0x42   : > { %376 = vst [vmem:[%s7949_s11 + $0x3f0] sm:$0xff] %v375_v20  ;;  %378 = vst [vmem:[%s7949_s11 + $0x3fc] sm:$0xff] %v377_v21  ;;  %v381_v23 = vld [vmem:[%s7944_s10 + $0x828] sm:$0xff]  ;;  %v383_v24 = vld [vmem:[%s7944_s10 + $0x840] sm:$0xff] }
  0x43   : > { %380 = vst [vmem:[%s7949_s11 + $0x408] sm:$0xff] %v379_v22  ;;  %v385_v25 = vld [vmem:[%s7944_s10 + $0x858] sm:$0xff]  ;;  %382 = vst [vmem:[%s7949_s11 + $0x414] sm:$0xff] %v381_v23  ;;  %v387_v26 = vld [vmem:[%s7944_s10 + $0x870] sm:$0xff] }
  0x44   : > { %384 = vst [vmem:[%s7949_s11 + $0x420] sm:$0xff] %v383_v24  ;;  %386 = vst [vmem:[%s7949_s11 + $0x42c] sm:$0xff] %v385_v25  ;;  %v389_v27 = vld [vmem:[%s7944_s10 + $0x888] sm:$0xff]  ;;  %v391_v28 = vld [vmem:[%s7944_s10 + $0x8a0] sm:$0xff] }
  0x45   : > { %388 = vst [vmem:[%s7949_s11 + $0x438] sm:$0xff] %v387_v26  ;;  %390 = vst [vmem:[%s7949_s11 + $0x444] sm:$0xff] %v389_v27  ;;  %v393_v29 = vld [vmem:[%s7944_s10 + $0x8b8] sm:$0xff]  ;;  %v395_v30 = vld [vmem:[%s7944_s10 + $0x8d0] sm:$0xff] }
  0x46   : > { %392 = vst [vmem:[%s7949_s11 + $0x450] sm:$0xff] %v391_v28  ;;  %v397_v31 = vld [vmem:[%s7944_s10 + $0x8e8] sm:$0xff]  ;;  %394 = vst [vmem:[%s7949_s11 + $0x45c] sm:$0xff] %v393_v29  ;;  %v399_v32 = vld [vmem:[%s7944_s10 + $0x900] sm:$0xff] }
  0x47   : > { %396 = vst [vmem:[%s7949_s11 + $0x468] sm:$0xff] %v395_v30  ;;  %398 = vst [vmem:[%s7949_s11 + $0x474] sm:$0xff] %v397_v31  ;;  %v401_v33 = vld [vmem:[%s7944_s10 + $0x918] sm:$0xff]  ;;  %v403_v34 = vld [vmem:[%s7944_s10 + $0x930] sm:$0xff] }
  0x48   : > { %400 = vst [vmem:[%s7949_s11 + $0x480] sm:$0xff] %v399_v32  ;;  %402 = vst [vmem:[%s7949_s11 + $0x48c] sm:$0xff] %v401_v33  ;;  %v405_v35 = vld [vmem:[%s7944_s10 + $0x948] sm:$0xff]  ;;  %v407_v36 = vld [vmem:[%s7944_s10 + $0x960] sm:$0xff] }
  0x49   : > { %404 = vst [vmem:[%s7949_s11 + $0x498] sm:$0xff] %v403_v34  ;;  %v409_v37 = vld [vmem:[%s7944_s10 + $0x978] sm:$0xff]  ;;  %406 = vst [vmem:[%s7949_s11 + $0x4a4] sm:$0xff] %v405_v35  ;;  %v411_v38 = vld [vmem:[%s7944_s10 + $0x990] sm:$0xff] }
  0x4a   : > { %408 = vst [vmem:[%s7949_s11 + $0x4b0] sm:$0xff] %v407_v36  ;;  %410 = vst [vmem:[%s7949_s11 + $0x4bc] sm:$0xff] %v409_v37  ;;  %v413_v39 = vld [vmem:[%s7944_s10 + $0x9a8] sm:$0xff]  ;;  %v415_v40 = vld [vmem:[%s7944_s10 + $0x9c0] sm:$0xff] }
  0x4b   : > { %412 = vst [vmem:[%s7949_s11 + $0x4c8] sm:$0xff] %v411_v38  ;;  %414 = vst [vmem:[%s7949_s11 + $0x4d4] sm:$0xff] %v413_v39  ;;  %v417_v41 = vld [vmem:[%s7944_s10 + $0x9d8] sm:$0xff]  ;;  %v419_v42 = vld [vmem:[%s7944_s10 + $0x9f0] sm:$0xff] }
  0x4c   : > { %416 = vst [vmem:[%s7949_s11 + $0x4e0] sm:$0xff] %v415_v40  ;;  %v421_v43 = vld [vmem:[%s7944_s10 + $0xa08] sm:$0xff]  ;;  %418 = vst [vmem:[%s7949_s11 + $0x4ec] sm:$0xff] %v417_v41  ;;  %v423_v44 = vld [vmem:[%s7944_s10 + $0xa20] sm:$0xff] }
  0x4d   : > { %420 = vst [vmem:[%s7949_s11 + $0x4f8] sm:$0xff] %v419_v42  ;;  %422 = vst [vmem:[%s7949_s11 + $0x504] sm:$0xff] %v421_v43  ;;  %v425_v45 = vld [vmem:[%s7944_s10 + $0xa38] sm:$0xff]  ;;  %v427_v46 = vld [vmem:[%s7944_s10 + $0xa50] sm:$0xff] }
  0x4e   : > { %424 = vst [vmem:[%s7949_s11 + $0x510] sm:$0xff] %v423_v44  ;;  %426 = vst [vmem:[%s7949_s11 + $0x51c] sm:$0xff] %v425_v45  ;;  %v429_v47 = vld [vmem:[%s7944_s10 + $0xa68] sm:$0xff]  ;;  %v431_v48 = vld [vmem:[%s7944_s10 + $0xa80] sm:$0xff] }
  0x4f   : > { %428 = vst [vmem:[%s7949_s11 + $0x528] sm:$0xff] %v427_v46  ;;  %v433_v49 = vld [vmem:[%s7944_s10 + $0xa98] sm:$0xff]  ;;  %430 = vst [vmem:[%s7949_s11 + $0x534] sm:$0xff] %v429_v47  ;;  %v435_v50 = vld [vmem:[%s7944_s10 + $0xab0] sm:$0xff] }
  0x50   : > { %432 = vst [vmem:[%s7949_s11 + $0x540] sm:$0xff] %v431_v48  ;;  %434 = vst [vmem:[%s7949_s11 + $0x54c] sm:$0xff] %v433_v49  ;;  %v437_v51 = vld [vmem:[%s7944_s10 + $0xac8] sm:$0xff]  ;;  %v439_v52 = vld [vmem:[%s7944_s10 + $0xae0] sm:$0xff] }
  0x51   : > { %436 = vst [vmem:[%s7949_s11 + $0x558] sm:$0xff] %v435_v50  ;;  %438 = vst [vmem:[%s7949_s11 + $0x564] sm:$0xff] %v437_v51  ;;  %v441_v53 = vld [vmem:[%s7944_s10 + $0xaf8] sm:$0xff]  ;;  %v443_v54 = vld [vmem:[%s7944_s10 + $0xb10] sm:$0xff] }
  0x52   : > { %440 = vst [vmem:[%s7949_s11 + $0x570] sm:$0xff] %v439_v52  ;;  %v445_v55 = vld [vmem:[%s7944_s10 + $0xb28] sm:$0xff]  ;;  %442 = vst [vmem:[%s7949_s11 + $0x57c] sm:$0xff] %v441_v53  ;;  %v447_v56 = vld [vmem:[%s7944_s10 + $0xb40] sm:$0xff] }
  0x53   : > { %444 = vst [vmem:[%s7949_s11 + $0x588] sm:$0xff] %v443_v54  ;;  %446 = vst [vmem:[%s7949_s11 + $0x594] sm:$0xff] %v445_v55  ;;  %v449_v57 = vld [vmem:[%s7944_s10 + $0xb58] sm:$0xff]  ;;  %v451_v58 = vld [vmem:[%s7944_s10 + $0xb70] sm:$0xff] }
  0x54   : > { %448 = vst [vmem:[%s7949_s11 + $0x5a0] sm:$0xff] %v447_v56  ;;  %450 = vst [vmem:[%s7949_s11 + $0x5ac] sm:$0xff] %v449_v57  ;;  %v453_v59 = vld [vmem:[%s7944_s10 + $0xb88] sm:$0xff]  ;;  %v455_v60 = vld [vmem:[%s7944_s10 + $0xba0] sm:$0xff] }
  0x55   : > { %452 = vst [vmem:[%s7949_s11 + $0x5b8] sm:$0xff] %v451_v58  ;;  %v457_v61 = vld [vmem:[%s7944_s10 + $0xbb8] sm:$0xff]  ;;  %454 = vst [vmem:[%s7949_s11 + $0x5c4] sm:$0xff] %v453_v59  ;;  %v459_v62 = vld [vmem:[%s7944_s10 + $0xbd0] sm:$0xff] }
  0x56   : > { %456 = vst [vmem:[%s7949_s11 + $0x5d0] sm:$0xff] %v455_v60  ;;  %458 = vst [vmem:[%s7949_s11 + $0x5dc] sm:$0xff] %v457_v61  ;;  %v461_v63 = vld [vmem:[%s7944_s10 + $0xbe8] sm:$0xff]  ;;  %v6370_v1 = vld [vmem:[%s7944_s10 + $0x20] sm:$0xf] }
  0x57   : > { %v6368_v0 = vld [vmem:[%s7944_s10 + $0x8] sm:$0xf]  ;;  %460 = vst [vmem:[%s7949_s11 + $0x5e8] sm:$0xff] %v459_v62  ;;  %462 = vst [vmem:[%s7949_s11 + $0x5f4] sm:$0xff] %v461_v63  ;;  %v6372_v2 = vld [vmem:[%s7944_s10 + $0x38] sm:$0xf] }
  0x58   : > { %6369 = vst [vmem:[%s7949_s11 + $0x8] sm:$0xf] %v6368_v0  ;;  %v6374_v3 = vld [vmem:[%s7944_s10 + $0x50] sm:$0xf]  ;;  %6371 = vst [vmem:[%s7949_s11 + $0x14] sm:$0xf] %v6370_v1 }
  0x59   : > { %6373 = vst [vmem:[%s7949_s11 + $0x20] sm:$0xf] %v6372_v2  ;;  %6375 = vst [vmem:[%s7949_s11 + $0x2c] sm:$0xf] %v6374_v3  ;;  %v6376_v4 = vld [vmem:[%s7944_s10 + $0x68] sm:$0xf] }
  0x5a   : > { %v6378_v5 = vld [vmem:[%s7944_s10 + $0x80] sm:$0xf]  ;;  %v6380_v6 = vld [vmem:[%s7944_s10 + $0x98] sm:$0xf]  ;;  %6377 = vst [vmem:[%s7949_s11 + $0x38] sm:$0xf] %v6376_v4 }
  0x5b   : > { %6379 = vst [vmem:[%s7949_s11 + $0x44] sm:$0xf] %v6378_v5  ;;  %6381 = vst [vmem:[%s7949_s11 + $0x50] sm:$0xf] %v6380_v6  ;;  %v6382_v7 = vld [vmem:[%s7944_s10 + $0xb0] sm:$0xf] }
  0x5c   : > { %v6384_v8 = vld [vmem:[%s7944_s10 + $0xc8] sm:$0xf]  ;;  %v6386_v9 = vld [vmem:[%s7944_s10 + $0xe0] sm:$0xf]  ;;  %6383 = vst [vmem:[%s7949_s11 + $0x5c] sm:$0xf] %v6382_v7 }
  0x5d   : > { %6385 = vst [vmem:[%s7949_s11 + $0x68] sm:$0xf] %v6384_v8  ;;  %6387 = vst [vmem:[%s7949_s11 + $0x74] sm:$0xf] %v6386_v9  ;;  %v6388_v10 = vld [vmem:[%s7944_s10 + $0xf8] sm:$0xf] }
  0x5e   : > { %v6390_v11 = vld [vmem:[%s7944_s10 + $0x110] sm:$0xf]  ;;  %v6392_v12 = vld [vmem:[%s7944_s10 + $0x128] sm:$0xf]  ;;  %6389 = vst [vmem:[%s7949_s11 + $0x80] sm:$0xf] %v6388_v10 }
  0x5f   : > { %6391 = vst [vmem:[%s7949_s11 + $0x8c] sm:$0xf] %v6390_v11  ;;  %6393 = vst [vmem:[%s7949_s11 + $0x98] sm:$0xf] %v6392_v12  ;;  %v6394_v13 = vld [vmem:[%s7944_s10 + $0x140] sm:$0xf] }
  0x60   : > { %v6396_v14 = vld [vmem:[%s7944_s10 + $0x158] sm:$0xf]  ;;  %v6398_v15 = vld [vmem:[%s7944_s10 + $0x170] sm:$0xf]  ;;  %6395 = vst [vmem:[%s7949_s11 + $0xa4] sm:$0xf] %v6394_v13 }
  0x61   : > { %6397 = vst [vmem:[%s7949_s11 + $0xb0] sm:$0xf] %v6396_v14  ;;  %6399 = vst [vmem:[%s7949_s11 + $0xbc] sm:$0xf] %v6398_v15  ;;  %v6400_v16 = vld [vmem:[%s7944_s10 + $0x188] sm:$0xf] }
  0x62   : > { %v6402_v17 = vld [vmem:[%s7944_s10 + $0x1a0] sm:$0xf]  ;;  %v6404_v18 = vld [vmem:[%s7944_s10 + $0x1b8] sm:$0xf]  ;;  %6401 = vst [vmem:[%s7949_s11 + $0xc8] sm:$0xf] %v6400_v16 }
  0x63   : > { %6403 = vst [vmem:[%s7949_s11 + $0xd4] sm:$0xf] %v6402_v17  ;;  %6405 = vst [vmem:[%s7949_s11 + $0xe0] sm:$0xf] %v6404_v18  ;;  %v6406_v19 = vld [vmem:[%s7944_s10 + $0x1d0] sm:$0xf] }
  0x64   : > { %v6408_v20 = vld [vmem:[%s7944_s10 + $0x1e8] sm:$0xf]  ;;  %v6410_v21 = vld [vmem:[%s7944_s10 + $0x200] sm:$0xf]  ;;  %6407 = vst [vmem:[%s7949_s11 + $0xec] sm:$0xf] %v6406_v19 }
  0x65   : > { %6409 = vst [vmem:[%s7949_s11 + $0xf8] sm:$0xf] %v6408_v20  ;;  %6411 = vst [vmem:[%s7949_s11 + $0x104] sm:$0xf] %v6410_v21  ;;  %v6412_v22 = vld [vmem:[%s7944_s10 + $0x218] sm:$0xf] }
  0x66   : > { %v6414_v23 = vld [vmem:[%s7944_s10 + $0x230] sm:$0xf]  ;;  %v6416_v24 = vld [vmem:[%s7944_s10 + $0x248] sm:$0xf]  ;;  %6413 = vst [vmem:[%s7949_s11 + $0x110] sm:$0xf] %v6412_v22 }
  0x67   : > { %6415 = vst [vmem:[%s7949_s11 + $0x11c] sm:$0xf] %v6414_v23  ;;  %6417 = vst [vmem:[%s7949_s11 + $0x128] sm:$0xf] %v6416_v24  ;;  %v6418_v25 = vld [vmem:[%s7944_s10 + $0x260] sm:$0xf] }
  0x68   : > { %v6420_v26 = vld [vmem:[%s7944_s10 + $0x278] sm:$0xf]  ;;  %v6422_v27 = vld [vmem:[%s7944_s10 + $0x290] sm:$0xf]  ;;  %6419 = vst [vmem:[%s7949_s11 + $0x134] sm:$0xf] %v6418_v25 }
  0x69   : > { %6421 = vst [vmem:[%s7949_s11 + $0x140] sm:$0xf] %v6420_v26  ;;  %6423 = vst [vmem:[%s7949_s11 + $0x14c] sm:$0xf] %v6422_v27  ;;  %v6424_v28 = vld [vmem:[%s7944_s10 + $0x2a8] sm:$0xf] }
  0x6a   : > { %v6426_v29 = vld [vmem:[%s7944_s10 + $0x2c0] sm:$0xf]  ;;  %v6428_v30 = vld [vmem:[%s7944_s10 + $0x2d8] sm:$0xf]  ;;  %6425 = vst [vmem:[%s7949_s11 + $0x158] sm:$0xf] %v6424_v28 }
  0x6b   : > { %6427 = vst [vmem:[%s7949_s11 + $0x164] sm:$0xf] %v6426_v29  ;;  %6429 = vst [vmem:[%s7949_s11 + $0x170] sm:$0xf] %v6428_v30  ;;  %v6430_v31 = vld [vmem:[%s7944_s10 + $0x2f0] sm:$0xf] }
  0x6c   : > { %v6432_v32 = vld [vmem:[%s7944_s10 + $0x308] sm:$0xf]  ;;  %v6434_v33 = vld [vmem:[%s7944_s10 + $0x320] sm:$0xf]  ;;  %6431 = vst [vmem:[%s7949_s11 + $0x17c] sm:$0xf] %v6430_v31 }
  0x6d   : > { %6433 = vst [vmem:[%s7949_s11 + $0x188] sm:$0xf] %v6432_v32  ;;  %6435 = vst [vmem:[%s7949_s11 + $0x194] sm:$0xf] %v6434_v33  ;;  %v6436_v34 = vld [vmem:[%s7944_s10 + $0x338] sm:$0xf] }
  0x6e   : > { %v6438_v35 = vld [vmem:[%s7944_s10 + $0x350] sm:$0xf]  ;;  %v6440_v36 = vld [vmem:[%s7944_s10 + $0x368] sm:$0xf]  ;;  %6437 = vst [vmem:[%s7949_s11 + $0x1a0] sm:$0xf] %v6436_v34 }
  0x6f   : > { %6439 = vst [vmem:[%s7949_s11 + $0x1ac] sm:$0xf] %v6438_v35  ;;  %6441 = vst [vmem:[%s7949_s11 + $0x1b8] sm:$0xf] %v6440_v36  ;;  %v6442_v37 = vld [vmem:[%s7944_s10 + $0x380] sm:$0xf] }
  0x70   : > { %v6444_v38 = vld [vmem:[%s7944_s10 + $0x398] sm:$0xf]  ;;  %v6446_v39 = vld [vmem:[%s7944_s10 + $0x3b0] sm:$0xf]  ;;  %6443 = vst [vmem:[%s7949_s11 + $0x1c4] sm:$0xf] %v6442_v37 }
  0x71   : > { %6445 = vst [vmem:[%s7949_s11 + $0x1d0] sm:$0xf] %v6444_v38  ;;  %6447 = vst [vmem:[%s7949_s11 + $0x1dc] sm:$0xf] %v6446_v39  ;;  %v6448_v40 = vld [vmem:[%s7944_s10 + $0x3c8] sm:$0xf] }
  0x72   : > { %v6450_v41 = vld [vmem:[%s7944_s10 + $0x3e0] sm:$0xf]  ;;  %v6452_v42 = vld [vmem:[%s7944_s10 + $0x3f8] sm:$0xf]  ;;  %6449 = vst [vmem:[%s7949_s11 + $0x1e8] sm:$0xf] %v6448_v40 }
  0x73   : > { %6451 = vst [vmem:[%s7949_s11 + $0x1f4] sm:$0xf] %v6450_v41  ;;  %6453 = vst [vmem:[%s7949_s11 + $0x200] sm:$0xf] %v6452_v42  ;;  %v6454_v43 = vld [vmem:[%s7944_s10 + $0x410] sm:$0xf] }
  0x74   : > { %v6456_v44 = vld [vmem:[%s7944_s10 + $0x428] sm:$0xf]  ;;  %v6458_v45 = vld [vmem:[%s7944_s10 + $0x440] sm:$0xf]  ;;  %6455 = vst [vmem:[%s7949_s11 + $0x20c] sm:$0xf] %v6454_v43 }
  0x75   : > { %6457 = vst [vmem:[%s7949_s11 + $0x218] sm:$0xf] %v6456_v44  ;;  %6459 = vst [vmem:[%s7949_s11 + $0x224] sm:$0xf] %v6458_v45  ;;  %v6460_v46 = vld [vmem:[%s7944_s10 + $0x458] sm:$0xf] }
  0x76   : > { %v6462_v47 = vld [vmem:[%s7944_s10 + $0x470] sm:$0xf]  ;;  %v6464_v48 = vld [vmem:[%s7944_s10 + $0x488] sm:$0xf]  ;;  %6461 = vst [vmem:[%s7949_s11 + $0x230] sm:$0xf] %v6460_v46 }
  0x77   : > { %6463 = vst [vmem:[%s7949_s11 + $0x23c] sm:$0xf] %v6462_v47  ;;  %6465 = vst [vmem:[%s7949_s11 + $0x248] sm:$0xf] %v6464_v48  ;;  %v6466_v49 = vld [vmem:[%s7944_s10 + $0x4a0] sm:$0xf] }
  0x78   : > { %v6468_v50 = vld [vmem:[%s7944_s10 + $0x4b8] sm:$0xf]  ;;  %v6470_v51 = vld [vmem:[%s7944_s10 + $0x4d0] sm:$0xf]  ;;  %6467 = vst [vmem:[%s7949_s11 + $0x254] sm:$0xf] %v6466_v49 }
  0x79   : > { %6469 = vst [vmem:[%s7949_s11 + $0x260] sm:$0xf] %v6468_v50  ;;  %6471 = vst [vmem:[%s7949_s11 + $0x26c] sm:$0xf] %v6470_v51  ;;  %v6472_v52 = vld [vmem:[%s7944_s10 + $0x4e8] sm:$0xf] }
  0x7a   : > { %v6474_v53 = vld [vmem:[%s7944_s10 + $0x500] sm:$0xf]  ;;  %v6476_v54 = vld [vmem:[%s7944_s10 + $0x518] sm:$0xf]  ;;  %6473 = vst [vmem:[%s7949_s11 + $0x278] sm:$0xf] %v6472_v52 }
  0x7b   : > { %6475 = vst [vmem:[%s7949_s11 + $0x284] sm:$0xf] %v6474_v53  ;;  %6477 = vst [vmem:[%s7949_s11 + $0x290] sm:$0xf] %v6476_v54  ;;  %v6478_v55 = vld [vmem:[%s7944_s10 + $0x530] sm:$0xf] }
  0x7c   : > { %v6480_v56 = vld [vmem:[%s7944_s10 + $0x548] sm:$0xf]  ;;  %v6482_v57 = vld [vmem:[%s7944_s10 + $0x560] sm:$0xf]  ;;  %6479 = vst [vmem:[%s7949_s11 + $0x29c] sm:$0xf] %v6478_v55 }
  0x7d   : > { %6481 = vst [vmem:[%s7949_s11 + $0x2a8] sm:$0xf] %v6480_v56  ;;  %6483 = vst [vmem:[%s7949_s11 + $0x2b4] sm:$0xf] %v6482_v57  ;;  %v6484_v58 = vld [vmem:[%s7944_s10 + $0x578] sm:$0xf] }
  0x7e   : > { %v6486_v59 = vld [vmem:[%s7944_s10 + $0x590] sm:$0xf]  ;;  %v6488_v60 = vld [vmem:[%s7944_s10 + $0x5a8] sm:$0xf]  ;;  %6485 = vst [vmem:[%s7949_s11 + $0x2c0] sm:$0xf] %v6484_v58 }
  0x7f   : > { %6487 = vst [vmem:[%s7949_s11 + $0x2cc] sm:$0xf] %v6486_v59  ;;  %6489 = vst [vmem:[%s7949_s11 + $0x2d8] sm:$0xf] %v6488_v60  ;;  %v6490_v61 = vld [vmem:[%s7944_s10 + $0x5c0] sm:$0xf] }
  0x80   : > { %v6492_v62 = vld [vmem:[%s7944_s10 + $0x5d8] sm:$0xf]  ;;  %v6494_v63 = vld [vmem:[%s7944_s10 + $0x5f0] sm:$0xf]  ;;  %6491 = vst [vmem:[%s7949_s11 + $0x2e4] sm:$0xf] %v6490_v61 }
  0x81   : > { %6493 = vst [vmem:[%s7949_s11 + $0x2f0] sm:$0xf] %v6492_v62  ;;  %6495 = vst [vmem:[%s7949_s11 + $0x2fc] sm:$0xf] %v6494_v63  ;;  %v6496_v0 = vld [vmem:[%s7944_s10 + $0x608] sm:$0xf] }
  0x82   : > { %v6498_v1 = vld [vmem:[%s7944_s10 + $0x620] sm:$0xf]  ;;  %v6500_v2 = vld [vmem:[%s7944_s10 + $0x638] sm:$0xf]  ;;  %6497 = vst [vmem:[%s7949_s11 + $0x308] sm:$0xf] %v6496_v0 }
  0x83   : > { %6499 = vst [vmem:[%s7949_s11 + $0x314] sm:$0xf] %v6498_v1  ;;  %6501 = vst [vmem:[%s7949_s11 + $0x320] sm:$0xf] %v6500_v2  ;;  %v6502_v3 = vld [vmem:[%s7944_s10 + $0x650] sm:$0xf] }
  0x84   : > { %v6504_v4 = vld [vmem:[%s7944_s10 + $0x668] sm:$0xf]  ;;  %v6506_v5 = vld [vmem:[%s7944_s10 + $0x680] sm:$0xf]  ;;  %6503 = vst [vmem:[%s7949_s11 + $0x32c] sm:$0xf] %v6502_v3 }
  0x85   : > { %6505 = vst [vmem:[%s7949_s11 + $0x338] sm:$0xf] %v6504_v4  ;;  %6507 = vst [vmem:[%s7949_s11 + $0x344] sm:$0xf] %v6506_v5  ;;  %v6508_v6 = vld [vmem:[%s7944_s10 + $0x698] sm:$0xf] }
  0x86   : > { %v6510_v7 = vld [vmem:[%s7944_s10 + $0x6b0] sm:$0xf]  ;;  %v6512_v8 = vld [vmem:[%s7944_s10 + $0x6c8] sm:$0xf]  ;;  %6509 = vst [vmem:[%s7949_s11 + $0x350] sm:$0xf] %v6508_v6 }
  0x87   : > { %6511 = vst [vmem:[%s7949_s11 + $0x35c] sm:$0xf] %v6510_v7  ;;  %6513 = vst [vmem:[%s7949_s11 + $0x368] sm:$0xf] %v6512_v8  ;;  %v6514_v9 = vld [vmem:[%s7944_s10 + $0x6e0] sm:$0xf] }
  0x88   : > { %v6516_v10 = vld [vmem:[%s7944_s10 + $0x6f8] sm:$0xf]  ;;  %v6518_v11 = vld [vmem:[%s7944_s10 + $0x710] sm:$0xf]  ;;  %6515 = vst [vmem:[%s7949_s11 + $0x374] sm:$0xf] %v6514_v9 }
  0x89   : > { %6517 = vst [vmem:[%s7949_s11 + $0x380] sm:$0xf] %v6516_v10  ;;  %6519 = vst [vmem:[%s7949_s11 + $0x38c] sm:$0xf] %v6518_v11  ;;  %v6520_v12 = vld [vmem:[%s7944_s10 + $0x728] sm:$0xf] }
  0x8a   : > { %v6522_v13 = vld [vmem:[%s7944_s10 + $0x740] sm:$0xf]  ;;  %v6524_v14 = vld [vmem:[%s7944_s10 + $0x758] sm:$0xf]  ;;  %6521 = vst [vmem:[%s7949_s11 + $0x398] sm:$0xf] %v6520_v12 }
  0x8b   : > { %6523 = vst [vmem:[%s7949_s11 + $0x3a4] sm:$0xf] %v6522_v13  ;;  %6525 = vst [vmem:[%s7949_s11 + $0x3b0] sm:$0xf] %v6524_v14  ;;  %v6526_v15 = vld [vmem:[%s7944_s10 + $0x770] sm:$0xf] }
  0x8c   : > { %v6528_v16 = vld [vmem:[%s7944_s10 + $0x788] sm:$0xf]  ;;  %v6530_v17 = vld [vmem:[%s7944_s10 + $0x7a0] sm:$0xf]  ;;  %6527 = vst [vmem:[%s7949_s11 + $0x3bc] sm:$0xf] %v6526_v15 }
  0x8d   : > { %6529 = vst [vmem:[%s7949_s11 + $0x3c8] sm:$0xf] %v6528_v16  ;;  %6531 = vst [vmem:[%s7949_s11 + $0x3d4] sm:$0xf] %v6530_v17  ;;  %v6532_v18 = vld [vmem:[%s7944_s10 + $0x7b8] sm:$0xf] }
  0x8e   : > { %v6534_v19 = vld [vmem:[%s7944_s10 + $0x7d0] sm:$0xf]  ;;  %v6536_v20 = vld [vmem:[%s7944_s10 + $0x7e8] sm:$0xf]  ;;  %6533 = vst [vmem:[%s7949_s11 + $0x3e0] sm:$0xf] %v6532_v18 }
  0x8f   : > { %6535 = vst [vmem:[%s7949_s11 + $0x3ec] sm:$0xf] %v6534_v19  ;;  %6537 = vst [vmem:[%s7949_s11 + $0x3f8] sm:$0xf] %v6536_v20  ;;  %v6538_v21 = vld [vmem:[%s7944_s10 + $0x800] sm:$0xf] }
  0x90   : > { %v6540_v22 = vld [vmem:[%s7944_s10 + $0x818] sm:$0xf]  ;;  %v6542_v23 = vld [vmem:[%s7944_s10 + $0x830] sm:$0xf]  ;;  %6539 = vst [vmem:[%s7949_s11 + $0x404] sm:$0xf] %v6538_v21 }
  0x91   : > { %6541 = vst [vmem:[%s7949_s11 + $0x410] sm:$0xf] %v6540_v22  ;;  %6543 = vst [vmem:[%s7949_s11 + $0x41c] sm:$0xf] %v6542_v23  ;;  %v6544_v24 = vld [vmem:[%s7944_s10 + $0x848] sm:$0xf] }
  0x92   : > { %v6546_v25 = vld [vmem:[%s7944_s10 + $0x860] sm:$0xf]  ;;  %v6548_v26 = vld [vmem:[%s7944_s10 + $0x878] sm:$0xf]  ;;  %6545 = vst [vmem:[%s7949_s11 + $0x428] sm:$0xf] %v6544_v24 }
  0x93   : > { %6547 = vst [vmem:[%s7949_s11 + $0x434] sm:$0xf] %v6546_v25  ;;  %6549 = vst [vmem:[%s7949_s11 + $0x440] sm:$0xf] %v6548_v26  ;;  %v6550_v27 = vld [vmem:[%s7944_s10 + $0x890] sm:$0xf] }
  0x94   : > { %v6552_v28 = vld [vmem:[%s7944_s10 + $0x8a8] sm:$0xf]  ;;  %v6554_v29 = vld [vmem:[%s7944_s10 + $0x8c0] sm:$0xf]  ;;  %6551 = vst [vmem:[%s7949_s11 + $0x44c] sm:$0xf] %v6550_v27 }
  0x95   : > { %6553 = vst [vmem:[%s7949_s11 + $0x458] sm:$0xf] %v6552_v28  ;;  %6555 = vst [vmem:[%s7949_s11 + $0x464] sm:$0xf] %v6554_v29  ;;  %v6556_v30 = vld [vmem:[%s7944_s10 + $0x8d8] sm:$0xf] }
  0x96   : > { %v6558_v31 = vld [vmem:[%s7944_s10 + $0x8f0] sm:$0xf]  ;;  %v6560_v32 = vld [vmem:[%s7944_s10 + $0x908] sm:$0xf]  ;;  %6557 = vst [vmem:[%s7949_s11 + $0x470] sm:$0xf] %v6556_v30 }
  0x97   : > { %6559 = vst [vmem:[%s7949_s11 + $0x47c] sm:$0xf] %v6558_v31  ;;  %6561 = vst [vmem:[%s7949_s11 + $0x488] sm:$0xf] %v6560_v32  ;;  %v6562_v33 = vld [vmem:[%s7944_s10 + $0x920] sm:$0xf] }
  0x98   : > { %v6564_v34 = vld [vmem:[%s7944_s10 + $0x938] sm:$0xf]  ;;  %v6566_v35 = vld [vmem:[%s7944_s10 + $0x950] sm:$0xf]  ;;  %6563 = vst [vmem:[%s7949_s11 + $0x494] sm:$0xf] %v6562_v33 }
  0x99   : > { %6565 = vst [vmem:[%s7949_s11 + $0x4a0] sm:$0xf] %v6564_v34  ;;  %6567 = vst [vmem:[%s7949_s11 + $0x4ac] sm:$0xf] %v6566_v35  ;;  %v6568_v36 = vld [vmem:[%s7944_s10 + $0x968] sm:$0xf] }
  0x9a   : > { %v6570_v37 = vld [vmem:[%s7944_s10 + $0x980] sm:$0xf]  ;;  %v6572_v38 = vld [vmem:[%s7944_s10 + $0x998] sm:$0xf]  ;;  %6569 = vst [vmem:[%s7949_s11 + $0x4b8] sm:$0xf] %v6568_v36 }
  0x9b   : > { %6571 = vst [vmem:[%s7949_s11 + $0x4c4] sm:$0xf] %v6570_v37  ;;  %6573 = vst [vmem:[%s7949_s11 + $0x4d0] sm:$0xf] %v6572_v38  ;;  %v6574_v39 = vld [vmem:[%s7944_s10 + $0x9b0] sm:$0xf] }
  0x9c   : > { %v6576_v40 = vld [vmem:[%s7944_s10 + $0x9c8] sm:$0xf]  ;;  %v6578_v41 = vld [vmem:[%s7944_s10 + $0x9e0] sm:$0xf]  ;;  %6575 = vst [vmem:[%s7949_s11 + $0x4dc] sm:$0xf] %v6574_v39 }
  0x9d   : > { %6577 = vst [vmem:[%s7949_s11 + $0x4e8] sm:$0xf] %v6576_v40  ;;  %6579 = vst [vmem:[%s7949_s11 + $0x4f4] sm:$0xf] %v6578_v41  ;;  %v6580_v42 = vld [vmem:[%s7944_s10 + $0x9f8] sm:$0xf] }
  0x9e   : > { %v6582_v43 = vld [vmem:[%s7944_s10 + $0xa10] sm:$0xf]  ;;  %v6584_v44 = vld [vmem:[%s7944_s10 + $0xa28] sm:$0xf]  ;;  %6581 = vst [vmem:[%s7949_s11 + $0x500] sm:$0xf] %v6580_v42 }
  0x9f   : > { %6583 = vst [vmem:[%s7949_s11 + $0x50c] sm:$0xf] %v6582_v43  ;;  %6585 = vst [vmem:[%s7949_s11 + $0x518] sm:$0xf] %v6584_v44  ;;  %v6586_v45 = vld [vmem:[%s7944_s10 + $0xa40] sm:$0xf] }
  0xa0   : > { %v6588_v46 = vld [vmem:[%s7944_s10 + $0xa58] sm:$0xf]  ;;  %v6590_v47 = vld [vmem:[%s7944_s10 + $0xa70] sm:$0xf]  ;;  %6587 = vst [vmem:[%s7949_s11 + $0x524] sm:$0xf] %v6586_v45 }
  0xa1   : > { %6589 = vst [vmem:[%s7949_s11 + $0x530] sm:$0xf] %v6588_v46  ;;  %6591 = vst [vmem:[%s7949_s11 + $0x53c] sm:$0xf] %v6590_v47  ;;  %v6592_v48 = vld [vmem:[%s7944_s10 + $0xa88] sm:$0xf] }
  0xa2   : > { %v6594_v49 = vld [vmem:[%s7944_s10 + $0xaa0] sm:$0xf]  ;;  %v6596_v50 = vld [vmem:[%s7944_s10 + $0xab8] sm:$0xf]  ;;  %6593 = vst [vmem:[%s7949_s11 + $0x548] sm:$0xf] %v6592_v48 }
  0xa3   : > { %6595 = vst [vmem:[%s7949_s11 + $0x554] sm:$0xf] %v6594_v49  ;;  %6597 = vst [vmem:[%s7949_s11 + $0x560] sm:$0xf] %v6596_v50  ;;  %v6598_v51 = vld [vmem:[%s7944_s10 + $0xad0] sm:$0xf] }
  0xa4   : > { %v6600_v52 = vld [vmem:[%s7944_s10 + $0xae8] sm:$0xf]  ;;  %v6602_v53 = vld [vmem:[%s7944_s10 + $0xb00] sm:$0xf]  ;;  %6599 = vst [vmem:[%s7949_s11 + $0x56c] sm:$0xf] %v6598_v51 }
  0xa5   : > { %6601 = vst [vmem:[%s7949_s11 + $0x578] sm:$0xf] %v6600_v52  ;;  %6603 = vst [vmem:[%s7949_s11 + $0x584] sm:$0xf] %v6602_v53  ;;  %v6604_v54 = vld [vmem:[%s7944_s10 + $0xb18] sm:$0xf] }
  0xa6   : > { %v6606_v55 = vld [vmem:[%s7944_s10 + $0xb30] sm:$0xf]  ;;  %v6608_v56 = vld [vmem:[%s7944_s10 + $0xb48] sm:$0xf]  ;;  %6605 = vst [vmem:[%s7949_s11 + $0x590] sm:$0xf] %v6604_v54 }
  0xa7   : > { %6607 = vst [vmem:[%s7949_s11 + $0x59c] sm:$0xf] %v6606_v55  ;;  %6609 = vst [vmem:[%s7949_s11 + $0x5a8] sm:$0xf] %v6608_v56  ;;  %v6610_v57 = vld [vmem:[%s7944_s10 + $0xb60] sm:$0xf] }
  0xa8   : > { %v6612_v58 = vld [vmem:[%s7944_s10 + $0xb78] sm:$0xf]  ;;  %v6614_v59 = vld [vmem:[%s7944_s10 + $0xb90] sm:$0xf]  ;;  %6611 = vst [vmem:[%s7949_s11 + $0x5b4] sm:$0xf] %v6610_v57 }
  0xa9   : > { %6613 = vst [vmem:[%s7949_s11 + $0x5c0] sm:$0xf] %v6612_v58  ;;  %6615 = vst [vmem:[%s7949_s11 + $0x5cc] sm:$0xf] %v6614_v59  ;;  %v6616_v60 = vld [vmem:[%s7944_s10 + $0xba8] sm:$0xf] }
  0xaa   : > { %v6618_v61 = vld [vmem:[%s7944_s10 + $0xbc0] sm:$0xf]  ;;  %v6620_v62 = vld [vmem:[%s7944_s10 + $0xbd8] sm:$0xf]  ;;  %6617 = vst [vmem:[%s7949_s11 + $0x5d8] sm:$0xf] %v6616_v60 }
  0xab   : > { %6619 = vst [vmem:[%s7949_s11 + $0x5e4] sm:$0xf] %v6618_v61  ;;  %6621 = vst [vmem:[%s7949_s11 + $0x5f0] sm:$0xf] %v6620_v62  ;;  %v6622_v63 = vld [vmem:[%s7944_s10 + $0xbf0] sm:$0xf] }
  0xac   : > { %6623 = vst [vmem:[%s7949_s11 + $0x5fc] sm:$0xf] %v6622_v63 }
  0xad PF: > { %p6624_p10 = scmp.ge.s32.totalorder %s7854_s21, 1  ;;  %p738_p11 = scmp.lt.s32.totalorder %s7854_s21, 3 }
  0xaf   : > { %p739_p12 = pnand %p6624_p10, %p738_p11 }
  0xb0   : > { %v785_v0 = vld [vmem:[%s10400_s1] sm:$0xff] (!%p739_p12)  ;;  %v1299_v32 = vlaneseq (!%p739_p12)  ;;  %v7856_v33 = vmov (!%p739_p12), 1966171168   ;;  %s9511_s10 = sand.u32 (!%p739_p12), 1, %s7846_s19   ;;  %s7333_s14 = smul.u32 (!%p739_p12), 96, %s7910_s22 }
  0xb1   : > { %742 = sbr.rel (%p739_p12) target bundleno = 1212 (0x4bc), region = 62  ;;  %v789_v1 = vld [vmem:[%s10400_s1 + $0x20] sm:$0xff] (!%p739_p12)  ;;  %v1342_v34 = vunpack.c.l.s4 (!%p739_p12), %v7856_v33  ;;  %s6272_s26 = scalar_lea.sflag (!%p739_p12), [#allocation4], %s9511_s10 }
  0xb2   : > { %v913_v2 = vld [vmem:[%s10400_s1 + $0x400] sm:$0xff] (!%p739_p12)  ;;  %v6626_v3 = vcombine.high (!%p739_p12), %v785_v0, %v789_v1  ;;  %v6625_v5 = vcombine.low (!%p739_p12), %v785_v0, %v789_v1  ;;  %v8528_v43 = vshrl.u32 (!%p739_p12), %v1299_v32, 7  ;;  %s7491_s15 = smul.u32 (!%p739_p12), 1536, %s9511_s10  ;;  %s10355_s25 = scalar_lea.hbm (!%p739_p12), %s10404_s5, %s7333_s14 }
  0xb3   : > { %v917_v4 = vld [vmem:[%s10400_s1 + $0x420] sm:$0xff] (!%p739_p12)  ;;  %v1343_v44 = vunpack.c.0.s8 (!%p739_p12), %v1342_v34  ;;  %s7492_s13 = smul.u32 (!%p739_p12), 6, %s9511_s10 }
  0xb4   : > { %v793_v6 = vld [vmem:[%s10400_s1 + $0x40] sm:$0xff] (!%p739_p12)  ;;  %v6754_v8 = vcombine.high (!%p739_p12), %v913_v2, %v917_v4  ;;  %v6753_v9 = vcombine.low (!%p739_p12), %v913_v2, %v917_v4  ;;  %3957 = vmatprep.subr.bf16.mxu1 (!%p739_p12), %v6626_v3  ;;  %s9529_s6 = scalar_lea.vmem (!%p739_p12), [#allocation2], %s7491_s15 }
  0xb5   : > { %v797_v7 = vld [vmem:[%s10400_s1 + $0x60] sm:$0xff] (!%p739_p12)  ;;  %3958 = vmatpush1.bf16.msra.mxu1 (!%p739_p12), %v6625_v5  ;;  %v8543_v53 = vsub.s32 (!%p739_p12), %v1343_v44, %v8528_v43  ;;  %s775_s15 = scalar_lea.vmem (!%p739_p12), [#allocation3], %s7492_s13 }
  0xb6   : > { %v6634_v10 = vcombine.high (!%p739_p12), %v793_v6, %v797_v7  ;;  %v921_v11 = vld [vmem:[%s10400_s1 + $0x440] sm:$0xff] (!%p739_p12)  ;;  %3998 = vmatprep.subr.bf16.mxu0 (!%p739_p12), %v6754_v8  ;;  %v6633_v18 = vcombine.low (!%p739_p12), %v793_v6, %v797_v7  ;;  %s6286_s16 = sshll.u32 (!%p739_p12), %s775_s15, 4  ;;  %s10357_s16 = int_to_ptr.vmem [resolvable:$true] %s6286_s16 }
  0xb7   : > { %v925_v12 = vld [vmem:[%s10400_s1 + $0x460] sm:$0xff] (!%p739_p12)  ;;  %3999 = vmatpush1.bf16.msra.mxu0 (!%p739_p12), %v6753_v9  ;;  %s7792_s30 = scalar_lea.vmem (!%p739_p12), %s10357_s16, 96 }
  0xb8   : > { %v801_v13 = vld [vmem:[%s10400_s1 + $0x80] sm:$0xff]  ;;  %v6762_v14 = vcombine.high %v921_v11, %v925_v12  ;;  %3959 = vmatprep.subr.bf16.mxu1 %v6634_v10  ;;  %v6761_v19 = vcombine.low %v921_v11, %v925_v12  ;;  %p7793_p0 = scmp.ne.s32.totalorder %s10357_s16, %s7792_s30 }
  0xb9   : > { %v805_v15 = vld [vmem:[%s10400_s1 + $0xa0] sm:$0xff]  ;;  %3960 = vmatpush1.bf16.msra.mxu1 %v6633_v18 }
  0xba   : > { %v929_v16 = vld [vmem:[%s10400_s1 + $0x480] sm:$0xff]  ;;  %v6642_v20 = vcombine.high %v801_v13, %v805_v15  ;;  %4000 = vmatprep.subr.bf16.mxu0 %v6762_v14  ;;  %v6641_v26 = vcombine.low %v801_v13, %v805_v15  ;;  %p7794_p1 = pnand %p7793_p0, %p7928_p6 }
  0xbb   : > { %v933_v17 = vld [vmem:[%s10400_s1 + $0x4a0] sm:$0xff]  ;;  %4001 = vmatpush1.bf16.msra.mxu0 %v6761_v19 }
  0xbc   : > { %v6770_v21 = vcombine.high %v929_v16, %v933_v17  ;;  %v809_v22 = vld [vmem:[%s10400_s1 + $0xc0] sm:$0xff]  ;;  %3961 = vmatprep.subr.bf16.mxu1 %v6642_v20  ;;  %v6769_v27 = vcombine.low %v929_v16, %v933_v17  ;;  %p7795_p2 = pneg %p7794_p1 }
  0xbd   : > { %v813_v23 = vld [vmem:[%s10400_s1 + $0xe0] sm:$0xff]  ;;  %3962 = vmatpush1.bf16.msra.mxu1 %v6641_v26 }
  0xbe   : > { %v937_v24 = vld [vmem:[%s10400_s1 + $0x4c0] sm:$0xff]  ;;  %v6650_v28 = vcombine.high %v809_v22, %v813_v23  ;;  %4002 = vmatprep.subr.bf16.mxu0 %v6770_v21  ;;  %v6649_v37 = vcombine.low %v809_v22, %v813_v23 }
  0xbf   : > { %v941_v25 = vld [vmem:[%s10400_s1 + $0x4e0] sm:$0xff]  ;;  %4003 = vmatpush1.bf16.msra.mxu0 %v6769_v27 }
  0xc0   : > { %v6778_v29 = vcombine.high %v937_v24, %v941_v25  ;;  %v817_v30 = vld [vmem:[%s10400_s1 + $0x100] sm:$0xff]  ;;  %3963 = vmatprep.subr.bf16.mxu1 %v6650_v28  ;;  %v6777_v38 = vcombine.low %v937_v24, %v941_v25 }
  0xc1   : > { %v821_v31 = vld [vmem:[%s10400_s1 + $0x120] sm:$0xff]  ;;  %3964 = vmatpush1.bf16.msra.mxu1 %v6649_v37 }
  0xc2   : > { %v945_v35 = vld [vmem:[%s10400_s1 + $0x500] sm:$0xff]  ;;  %v6658_v39 = vcombine.high %v817_v30, %v821_v31  ;;  %4004 = vmatprep.subr.bf16.mxu0 %v6778_v29  ;;  %v6657_v47 = vcombine.low %v817_v30, %v821_v31 }
  0xc3   : > { %v949_v36 = vld [vmem:[%s10400_s1 + $0x520] sm:$0xff]  ;;  %4005 = vmatpush1.bf16.msra.mxu0 %v6777_v38 }
  0xc4   : > { %v6786_v40 = vcombine.high %v945_v35, %v949_v36  ;;  %v825_v41 = vld [vmem:[%s10400_s1 + $0x140] sm:$0xff]  ;;  %3965 = vmatprep.subr.bf16.mxu1 %v6658_v39  ;;  %v6785_v48 = vcombine.low %v945_v35, %v949_v36 }
  0xc5   : > { %v829_v42 = vld [vmem:[%s10400_s1 + $0x160] sm:$0xff]  ;;  %3966 = vmatpush1.bf16.msra.mxu1 %v6657_v47 }
  0xc6   : > { %v953_v45 = vld [vmem:[%s10400_s1 + $0x540] sm:$0xff]  ;;  %v6666_v49 = vcombine.high %v825_v41, %v829_v42  ;;  %4006 = vmatprep.subr.bf16.mxu0 %v6786_v40  ;;  %v6665_v56 = vcombine.low %v825_v41, %v829_v42 }
  0xc7   : > { %v957_v46 = vld [vmem:[%s10400_s1 + $0x560] sm:$0xff]  ;;  %4007 = vmatpush1.bf16.msra.mxu0 %v6785_v48 }
  0xc8   : > { %v6794_v50 = vcombine.high %v953_v45, %v957_v46  ;;  %v833_v51 = vld [vmem:[%s10400_s1 + $0x180] sm:$0xff]  ;;  %3967 = vmatprep.subr.bf16.mxu1 %v6666_v49  ;;  %v6793_v57 = vcombine.low %v953_v45, %v957_v46 }
  0xc9   : > { %v837_v52 = vld [vmem:[%s10400_s1 + $0x1a0] sm:$0xff]  ;;  %3968 = vmatpush1.bf16.msra.mxu1 %v6665_v56 }
  0xca   : > { %v961_v54 = vld [vmem:[%s10400_s1 + $0x580] sm:$0xff]  ;;  %v6674_v58 = vcombine.high %v833_v51, %v837_v52  ;;  %4008 = vmatprep.subr.bf16.mxu0 %v6794_v50  ;;  %v6673_v2 = vcombine.low %v833_v51, %v837_v52 }
  0xcb   : > { %v965_v55 = vld [vmem:[%s10400_s1 + $0x5a0] sm:$0xff]  ;;  %4009 = vmatpush1.bf16.msra.mxu0 %v6793_v57 }
  0xcc   : > { %v784_v59 = vld [vmem:[%s10399_s0] sm:$0xff]  ;;  %v6802_v60 = vcombine.high %v961_v54, %v965_v55  ;;  %3969 = vmatprep.subr.bf16.mxu1 %v6674_v58  ;;  %v6801_v4 = vcombine.low %v961_v54, %v965_v55 }
  0xcd   : > { %v841_v61 = vld [vmem:[%s10400_s1 + $0x1c0] sm:$0xff]  ;;  %v8561_v63 = vrot.slane %v784_v59, %v8543_v53  ;;  %3970 = vmatpush1.bf16.msra.mxu1 %v6673_v2  ;;  %v1340_v19 = vcombine.high %v784_v59, %v784_v59 }
  0xce   : > { %v845_v62 = vld [vmem:[%s10400_s1 + $0x1e0] sm:$0xff]  ;;  %4010 = vmatprep.subr.bf16.mxu0 %v6802_v60 }
  0xcf   : > { %v969_v0 = vld [vmem:[%s10400_s1 + $0x5c0] sm:$0xff]  ;;  %v1355_v3 = vcombine.high %v8561_v63, %v8561_v63  ;;  %v6682_v5 = vcombine.high %v841_v61, %v845_v62  ;;  %v6681_v12 = vcombine.low %v841_v61, %v845_v62  ;;  %4011 = vmatpush1.bf16.msra.mxu0 %v6801_v4  ;;  %v8611_v28 = vrot.slane %v1340_v19, %v8543_v53 }
  0xd0   : > { %v973_v1 = vld [vmem:[%s10400_s1 + $0x5e0] sm:$0xff] }
  0xd1   : > { %v6810_v6 = vcombine.high %v969_v0, %v973_v1  ;;  %v849_v7 = vld [vmem:[%s10400_s1 + $0x200] sm:$0xff]  ;;  %v8578_v9 = vrot.slane %v1355_v3, %v8543_v53  ;;  %3971 = vmatprep.subr.bf16.mxu1 %v6682_v5  ;;  %v6809_v14 = vcombine.low %v969_v0, %v973_v1  ;;  %v8621_v32 = vrot.slane %v8611_v28, %v8543_v53 }
  0xd2   : > { %v853_v8 = vld [vmem:[%s10400_s1 + $0x220] sm:$0xff]  ;;  %3972 = vmatpush1.bf16.msra.mxu1 %v6681_v12 }
  0xd3   : > { %v977_v10 = vld [vmem:[%s10400_s1 + $0x600] sm:$0xff]  ;;  %3989 = vmatprep.mubr.bf16.mxu1 %v8578_v9  ;;  %v8589_v13 = vcombine.high %v8578_v9, %v8578_v9  ;;  %v6690_v15 = vcombine.high %v849_v7, %v853_v8  ;;  %4012 = vmatprep.subr.bf16.mxu0 %v6810_v6  ;;  %v6689_v22 = vcombine.low %v849_v7, %v853_v8 }
  0xd4   : > { %v981_v11 = vld [vmem:[%s10400_s1 + $0x620] sm:$0xff]  ;;  %4013 = vmatpush1.bf16.msra.mxu0 %v6809_v14 }
  0xd5   : > { %v6818_v16 = vcombine.high %v977_v10, %v981_v11  ;;  %v857_v17 = vld [vmem:[%s10400_s1 + $0x240] sm:$0xff]  ;;  %4030 = vmatprep.mubr.bf16.mxu0 %v8589_v13  ;;  %3973 = vmatprep.subr.bf16.mxu1 %v6690_v15  ;;  %v6817_v23 = vcombine.low %v977_v10, %v981_v11 }
  0xd6   : > { %v861_v18 = vld [vmem:[%s10400_s1 + $0x260] sm:$0xff]  ;;  %3974 = vmatpush1.bf16.msra.mxu1 %v6689_v22  ;;  %v8697_v22 = vrot.slane %v8561_v63, %v8543_v53 }
  0xd7   : > { %v985_v20 = vld [vmem:[%s10400_s1 + $0x640] sm:$0xff]  ;;  %v6698_v24 = vcombine.high %v857_v17, %v861_v18  ;;  %4014 = vmatprep.subr.bf16.mxu0 %v6818_v16  ;;  %v6697_v31 = vcombine.low %v857_v17, %v861_v18  ;;  %v786_v17 = vld [vmem:[%s10400_s1 + $0x8] sm:$0xff] }
  0xd8   : > { %v989_v21 = vld [vmem:[%s10400_s1 + $0x660] sm:$0xff]  ;;  %4015 = vmatpush1.bf16.msra.mxu0 %v6817_v23  ;;  %v790_v18 = vld [vmem:[%s10400_s1 + $0x28] sm:$0xff] }
  0xd9   : > { %v6826_v25 = vcombine.high %v985_v20, %v989_v21  ;;  %v865_v26 = vld [vmem:[%s10400_s1 + $0x280] sm:$0xff]  ;;  %3975 = vmatprep.subr.bf16.mxu1 %v6698_v24  ;;  %v6825_v33 = vcombine.low %v985_v20, %v989_v21  ;;  %v6628_v24 = vcombine.high %v786_v17, %v790_v18 }
  0xda   : > { %v869_v27 = vld [vmem:[%s10400_s1 + $0x2a0] sm:$0xff]  ;;  %3976 = vmatpush1.bf16.msra.mxu1 %v6697_v31  ;;  %v6627_v31 = vcombine.low %v786_v17, %v790_v18  ;;  %v842_v17 = vld [vmem:[%s10400_s1 + $0x1c8] sm:$0xff] }
  0xdb   : > { %v993_v29 = vld [vmem:[%s10400_s1 + $0x680] sm:$0xff]  ;;  %v6706_v34 = vcombine.high %v865_v26, %v869_v27  ;;  %4016 = vmatprep.subr.bf16.mxu0 %v6826_v25  ;;  %v6705_v40 = vcombine.low %v865_v26, %v869_v27  ;;  %v794_v26 = vld [vmem:[%s10400_s1 + $0x48] sm:$0xff] }
  0xdc   : > { %v997_v30 = vld [vmem:[%s10400_s1 + $0x6a0] sm:$0xff]  ;;  %4017 = vmatpush1.bf16.msra.mxu0 %v6825_v33  ;;  %v798_v27 = vld [vmem:[%s10400_s1 + $0x68] sm:$0xff]  ;;  %v8715_v33 = vcombine.high %v8697_v22, %v8697_v22 }
  0xdd   : > { %v6834_v35 = vcombine.high %v993_v29, %v997_v30  ;;  %v873_v36 = vld [vmem:[%s10400_s1 + $0x2c0] sm:$0xff]  ;;  %3977 = vmatprep.subr.bf16.mxu1 %v6706_v34  ;;  %v6833_v41 = vcombine.low %v993_v29, %v997_v30  ;;  %v1356_v29 = vcombine.high %v8611_v28, %v8611_v28  ;;  %v846_v18 = vld [vmem:[%s10400_s1 + $0x1e8] sm:$0xff] }
  0xde   : > { %v877_v37 = vld [vmem:[%s10400_s1 + $0x2e0] sm:$0xff]  ;;  %3978 = vmatpush1.bf16.msra.mxu1 %v6705_v40 }
  0xdf   : > { %v1001_v38 = vld [vmem:[%s10400_s1 + $0x6c0] sm:$0xff]  ;;  %v6714_v42 = vcombine.high %v873_v36, %v877_v37  ;;  %4018 = vmatprep.subr.bf16.mxu0 %v6834_v35  ;;  %v6713_v49 = vcombine.low %v873_v36, %v877_v37  ;;  %v6636_v35 = vcombine.high %v794_v26, %v798_v27  ;;  %v802_v36 = vld [vmem:[%s10400_s1 + $0x88] sm:$0xff] }
  0xe0   : > { %v1005_v39 = vld [vmem:[%s10400_s1 + $0x6e0] sm:$0xff]  ;;  %4019 = vmatpush1.bf16.msra.mxu0 %v6833_v41  ;;  %v806_v37 = vld [vmem:[%s10400_s1 + $0xa8] sm:$0xff]  ;;  %v6635_v41 = vcombine.low %v794_v26, %v798_v27 }
  0xe1   : > { %v6842_v44 = vcombine.high %v1001_v38, %v1005_v39  ;;  %v881_v45 = vld [vmem:[%s10400_s1 + $0x300] sm:$0xff]  ;;  %3979 = vmatprep.subr.bf16.mxu1 %v6714_v42  ;;  %v6841_v50 = vcombine.low %v1001_v38, %v1005_v39  ;;  %v8724_v38 = vrot.slane %v1356_v29, %v8543_v53  ;;  %v850_v26 = vld [vmem:[%s10400_s1 + $0x208] sm:$0xff] }
  0xe2   : > { %v885_v46 = vld [vmem:[%s10400_s1 + $0x320] sm:$0xff]  ;;  %3980 = vmatpush1.bf16.msra.mxu1 %v6713_v49  ;;  %v6643_v49 = vcombine.low %v802_v36, %v806_v37  ;;  %v854_v27 = vld [vmem:[%s10400_s1 + $0x228] sm:$0xff] }
  0xe3   : > { %v1009_v47 = vld [vmem:[%s10400_s1 + $0x700] sm:$0xff]  ;;  %v6722_v51 = vcombine.high %v881_v45, %v885_v46  ;;  %4020 = vmatprep.subr.bf16.mxu0 %v6842_v44  ;;  %v6721_v58 = vcombine.low %v881_v45, %v885_v46  ;;  %v6644_v44 = vcombine.high %v802_v36, %v806_v37  ;;  %v810_v45 = vld [vmem:[%s10400_s1 + $0xc8] sm:$0xff] }
  0xe4   : > { %v1013_v48 = vld [vmem:[%s10400_s1 + $0x720] sm:$0xff]  ;;  %4021 = vmatpush1.bf16.msra.mxu0 %v6841_v50  ;;  %v814_v46 = vld [vmem:[%s10400_s1 + $0xe8] sm:$0xff] }
  0xe5   : > { %v6850_v52 = vcombine.high %v1009_v47, %v1013_v48  ;;  %v889_v54 = vld [vmem:[%s10400_s1 + $0x340] sm:$0xff]  ;;  %3981 = vmatprep.subr.bf16.mxu1 %v6722_v51  ;;  %v6849_v59 = vcombine.low %v1009_v47, %v1013_v48  ;;  %v6652_v51 = vcombine.high %v810_v45, %v814_v46  ;;  %v862_v36 = vld [vmem:[%s10400_s1 + $0x268] sm:$0xff] }
  0xe6   : > { %v893_v55 = vld [vmem:[%s10400_s1 + $0x360] sm:$0xff]  ;;  %3982 = vmatpush1.bf16.msra.mxu1 %v6721_v58  ;;  %v6651_v58 = vcombine.low %v810_v45, %v814_v46  ;;  %v870_v45 = vld [vmem:[%s10400_s1 + $0x2a8] sm:$0xff] }
  0xe7   : > { %v1017_v56 = vld [vmem:[%s10400_s1 + $0x740] sm:$0xff]  ;;  %v6730_v60 = vcombine.high %v889_v54, %v893_v55  ;;  %4022 = vmatprep.subr.bf16.mxu0 %v6850_v52  ;;  %v6729_v3 = vcombine.low %v889_v54, %v893_v55  ;;  %v818_v54 = vld [vmem:[%s10400_s1 + $0x108] sm:$0xff] }
  0xe8   : > { %v1021_v57 = vld [vmem:[%s10400_s1 + $0x760] sm:$0xff]  ;;  %4023 = vmatpush1.bf16.msra.mxu0 %v6849_v59  ;;  %v822_v55 = vld [vmem:[%s10400_s1 + $0x128] sm:$0xff] }
  0xe9   : > { %v6858_v61 = vcombine.high %v1017_v56, %v1021_v57  ;;  %v897_v62 = vld [vmem:[%s10400_s1 + $0x380] sm:$0xff]  ;;  %3983 = vmatprep.subr.bf16.mxu1 %v6730_v60  ;;  %v6857_v4 = vcombine.low %v1017_v56, %v1021_v57  ;;  %v6660_v60 = vcombine.high %v818_v54, %v822_v55 }
  0xea   : > { %v901_v0 = vld [vmem:[%s10400_s1 + $0x3a0] sm:$0xff]  ;;  %3984 = vmatpush1.bf16.msra.mxu1 %v6729_v3  ;;  %v6659_v3 = vcombine.low %v818_v54, %v822_v55  ;;  %v878_v54 = vld [vmem:[%s10400_s1 + $0x2e8] sm:$0xff] }
  0xeb   : > { %v1025_v1 = vld [vmem:[%s10400_s1 + $0x780] sm:$0xff]  ;;  %v6738_v5 = vcombine.high %v897_v62, %v901_v0  ;;  %4024 = vmatprep.subr.bf16.mxu0 %v6858_v61  ;;  %v6737_v12 = vcombine.low %v897_v62, %v901_v0  ;;  %v826_v62 = vld [vmem:[%s10400_s1 + $0x148] sm:$0xff] }
  0xec   : > { %v1029_v2 = vld [vmem:[%s10400_s1 + $0x7a0] sm:$0xff]  ;;  %4025 = vmatpush1.bf16.msra.mxu0 %v6857_v4  ;;  %v830_v0 = vld [vmem:[%s10400_s1 + $0x168] sm:$0xff] }
  0xed   : > { %v6866_v6 = vcombine.high %v1025_v1, %v1029_v2  ;;  %v905_v7 = vld [vmem:[%s10400_s1 + $0x3c0] sm:$0xff]  ;;  %3985 = vmatprep.subr.bf16.mxu1 %v6738_v5  ;;  %v6865_v14 = vcombine.low %v1025_v1, %v1029_v2  ;;  %v6668_v5 = vcombine.high %v826_v62, %v830_v0 }
  0xee   : > { %v909_v8 = vld [vmem:[%s10400_s1 + $0x3e0] sm:$0xff]  ;;  %3986 = vmatpush1.bf16.msra.mxu1 %v6737_v12  ;;  %v6667_v12 = vcombine.low %v826_v62, %v830_v0  ;;  %v886_v62 = vld [vmem:[%s10400_s1 + $0x328] sm:$0xff] }
  0xef   : > { %v1033_v10 = vld [vmem:[%s10400_s1 + $0x7c0] sm:$0xff]  ;;  %v6746_v15 = vcombine.high %v905_v7, %v909_v8  ;;  %4026 = vmatprep.subr.bf16.mxu0 %v6866_v6  ;;  %v6745_v21 = vcombine.low %v905_v7, %v909_v8  ;;  %v834_v7 = vld [vmem:[%s10400_s1 + $0x188] sm:$0xff] }
  0xf0   : > { %v1037_v11 = vld [vmem:[%s10400_s1 + $0x7e0] sm:$0xff]  ;;  %4027 = vmatpush1.bf16.msra.mxu0 %v6865_v14  ;;  %v838_v8 = vld [vmem:[%s10400_s1 + $0x1a8] sm:$0xff] }
  0xf1   : > { %v6874_v16 = vcombine.high %v1033_v10, %v1037_v11  ;;  %v1041_v19 = vld [vmem:[%s10400_s1 + $0x800] sm:$0xff]  ;;  %3987 = vmatprep.subr.bf16.mxu1 %v6746_v15  ;;  %v6873_v23 = vcombine.low %v1033_v10, %v1037_v11  ;;  %v6676_v15 = vcombine.high %v834_v7, %v838_v8 }
  0xf2   : > { %v1045_v20 = vld [vmem:[%s10400_s1 + $0x820] sm:$0xff]  ;;  %3988 = vmatpush1.bf16.msra.mxu1 %v6745_v21  ;;  %v6675_v21 = vcombine.low %v834_v7, %v838_v8  ;;  %v894_v7 = vld [vmem:[%s10400_s1 + $0x368] sm:$0xff] }
  0xf3   : > { %4028 = vmatprep.subr.bf16.mxu0 %v6874_v16  ;;  %v6882_v25 = vcombine.high %v1041_v19, %v1045_v20  ;;  %v1049_v63 = vld [vmem:[%s10400_s1 + $0x840] sm:$0xff]  ;;  %v6881_v34 = vcombine.low %v1041_v19, %v1045_v20  ;;  %4121 = vmatprep.subr.bf16.mxu1 %v6628_v24  ;;  %v6684_v24 = vcombine.high %v842_v17, %v846_v18 }
  0xf4   : > { %v1053_v30 = vld [vmem:[%s10400_s1 + $0x860] sm:$0xff]  ;;  %4029 = vmatpush1.bf16.msra.mxu0 %v6873_v23 }
  0xf5   : > { %4039 = vmatprep.subr.bf16.mxu0 %v6882_v25  ;;  %v6890_v28 = vcombine.high %v1049_v63, %v1053_v30  ;;  %3990 = vmatmul.mubr.bf16.vlgmr.msra.gmra.mrb[0].mxu1 %v8697_v22  ;;  %v1057_v39 = vld [vmem:[%s10400_s1 + $0x880] sm:$0xff]  ;;  %v6889_v42 = vcombine.low %v1049_v63, %v1053_v30  ;;  %v6683_v30 = vcombine.low %v842_v17, %v846_v18  ;;  %v902_v17 = vld [vmem:[%s10400_s1 + $0x3a8] sm:$0xff] }
  0xf6   : > { %v1061_v40 = vld [vmem:[%s10400_s1 + $0x8a0] sm:$0xff]  ;;  %4122 = vmatpush1.bf16.msra.mxu1 %v6627_v31  ;;  %4153 = vmatprep.mubr.bf16.mxu1 %v8578_v9 }
  0xf7   : > { %4031 = vmatmul.mubr.bf16.vlgmr.msra.gmra.mrb[0].mxu0 %v8715_v33  ;;  %4123 = vmatprep.subr.bf16.mxu1 %v6636_v35  ;;  %v6898_v53 = vcombine.high %v1057_v39, %v1061_v40  ;;  %v1065_v47 = vld [vmem:[%s10400_s1 + $0x8c0] sm:$0xff]  ;;  %v6897_v50 = vcombine.low %v1057_v39, %v1061_v40  ;;  %v6691_v40 = vcombine.low %v850_v26, %v854_v27 }
  0xf8   : > { %4040 = vmatpush1.bf16.msra.mxu0 %v6881_v34  ;;  %4071 = vmatprep.mubr.bf16.mxu0 %v8724_v38  ;;  %v1069_v48 = vld [vmem:[%s10400_s1 + $0x8e0] sm:$0xff]  ;;  %v6692_v34 = vcombine.high %v850_v26, %v854_v27  ;;  %v910_v26 = vld [vmem:[%s10400_s1 + $0x3e8] sm:$0xff] }
  0xf9   : > { %4041 = vmatprep.subr.bf16.mxu0 %v6890_v28  ;;  %v6906_v52 = vcombine.high %v1065_v47, %v1069_v48  ;;  %v1073_v56 = vld [vmem:[%s10400_s1 + $0x900] sm:$0xff]  ;;  %v6905_v59 = vcombine.low %v1065_v47, %v1069_v48  ;;  %v858_v28 = vld [vmem:[%s10400_s1 + $0x248] sm:$0xff] }
  0xfa   : > { %4124 = vmatpush1.bf16.msra.mxu1 %v6635_v41  ;;  %v1077_v57 = vld [vmem:[%s10400_s1 + $0x920] sm:$0xff]  ;;  %v6699_v48 = vcombine.low %v858_v28, %v862_v36 }
  0xfb   : > { %4125 = vmatprep.subr.bf16.mxu1 %v6644_v44  ;;  %v6914_v61 = vcombine.high %v1073_v56, %v1077_v57  ;;  %v1081_v1 = vld [vmem:[%s10400_s1 + $0x940] sm:$0xff]  ;;  %v6913_v4 = vcombine.low %v1073_v56, %v1077_v57 }
  0xfc   : > { %4042 = vmatpush1.bf16.msra.mxu0 %v6889_v42  ;;  %v1085_v2 = vld [vmem:[%s10400_s1 + $0x960] sm:$0xff]  ;;  %v6700_v42 = vcombine.high %v858_v28, %v862_v36  ;;  %v918_v28 = vld [vmem:[%s10400_s1 + $0x428] sm:$0xff] }
  0xfd   : > { %4043 = vmatprep.subr.bf16.mxu0 %v6898_v53  ;;  %v6922_v6 = vcombine.high %v1081_v1, %v1085_v2  ;;  %v1089_v10 = vld [vmem:[%s10400_s1 + $0x980] sm:$0xff]  ;;  %v6921_v14 = vcombine.low %v1081_v1, %v1085_v2  ;;  %v866_v53 = vld [vmem:[%s10400_s1 + $0x288] sm:$0xff] }
  0xfe   : > { %4126 = vmatpush1.bf16.msra.mxu1 %v6643_v49  ;;  %v1093_v11 = vld [vmem:[%s10400_s1 + $0x9a0] sm:$0xff]  ;;  %v6707_v57 = vcombine.low %v866_v53, %v870_v45 }
  0xff   : > { %4127 = vmatprep.subr.bf16.mxu1 %v6652_v51  ;;  %v6930_v16 = vcombine.high %v1089_v10, %v1093_v11  ;;  %v1097_v19 = vld [vmem:[%s10400_s1 + $0x9c0] sm:$0xff]  ;;  %v6929_v23 = vcombine.low %v1089_v10, %v1093_v11 }
 0x100   : > { %4044 = vmatpush1.bf16.msra.mxu0 %v6897_v50  ;;  %v1101_v20 = vld [vmem:[%s10400_s1 + $0x9e0] sm:$0xff]  ;;  %v6708_v50 = vcombine.high %v866_v53, %v870_v45  ;;  %v926_v53 = vld [vmem:[%s10400_s1 + $0x468] sm:$0xff] }
 0x101   : > { %4045 = vmatprep.subr.bf16.mxu0 %v6906_v52  ;;  %v6938_v25 = vcombine.high %v1097_v19, %v1101_v20  ;;  %v1105_v29 = vld [vmem:[%s10400_s1 + $0xa00] sm:$0xff]  ;;  %v6937_v31 = vcombine.low %v1097_v19, %v1101_v20  ;;  %v874_v52 = vld [vmem:[%s10400_s1 + $0x2c8] sm:$0xff] }
 0x102   : > { %4128 = vmatpush1.bf16.msra.mxu1 %v6651_v58  ;;  %v1109_v63 = vld [vmem:[%s10400_s1 + $0xa20] sm:$0xff]  ;;  %v6715_v2 = vcombine.low %v874_v52, %v878_v54 }
 0x103   : > { %4129 = vmatprep.subr.bf16.mxu1 %v6660_v60  ;;  %v6946_v35 = vcombine.high %v1105_v29, %v1109_v63  ;;  %v1113_v37 = vld [vmem:[%s10400_s1 + $0xa40] sm:$0xff]  ;;  %v6945_v41 = vcombine.low %v1105_v29, %v1109_v63 }
 0x104   : > { %4046 = vmatpush1.bf16.msra.mxu0 %v6905_v59  ;;  %v1117_v39 = vld [vmem:[%s10400_s1 + $0xa60] sm:$0xff]  ;;  %v6716_v59 = vcombine.high %v874_v52, %v878_v54  ;;  %v934_v52 = vld [vmem:[%s10400_s1 + $0x4a8] sm:$0xff]  ;;  %v8924_v54 = vcombine.high %v8724_v38, %v8724_v38 }
 0x105   : > { %4047 = vmatprep.subr.bf16.mxu0 %v6914_v61  ;;  %v6954_v44 = vcombine.high %v1113_v37, %v1117_v39  ;;  %v1121_v46 = vld [vmem:[%s10400_s1 + $0xa80] sm:$0xff]  ;;  %v6953_v49 = vcombine.low %v1113_v37, %v1117_v39  ;;  %v882_v61 = vld [vmem:[%s10400_s1 + $0x308] sm:$0xff] }
 0x106   : > { %4130 = vmatpush1.bf16.msra.mxu1 %v6659_v3  ;;  %v1125_v47 = vld [vmem:[%s10400_s1 + $0xaa0] sm:$0xff]  ;;  %v6723_v11 = vcombine.low %v882_v61, %v886_v62 }
 0x107   : > { %4131 = vmatprep.subr.bf16.mxu1 %v6668_v5  ;;  %v6962_v51 = vcombine.high %v1121_v46, %v1125_v47  ;;  %v1129_v55 = vld [vmem:[%s10400_s1 + $0xac0] sm:$0xff]  ;;  %v6961_v58 = vcombine.low %v1121_v46, %v1125_v47 }
 0x108   : > { %4048 = vmatpush1.bf16.msra.mxu0 %v6913_v4  ;;  %v1133_v56 = vld [vmem:[%s10400_s1 + $0xae0] sm:$0xff]  ;;  %v6724_v4 = vcombine.high %v882_v61, %v886_v62  ;;  %v938_v61 = vld [vmem:[%s10400_s1 + $0x4c8] sm:$0xff] }
 0x109   : > { %4049 = vmatprep.subr.bf16.mxu0 %v6922_v6  ;;  %v6970_v60 = vcombine.high %v1129_v55, %v1133_v56  ;;  %v1137_v0 = vld [vmem:[%s10400_s1 + $0xb00] sm:$0xff]  ;;  %v6969_v3 = vcombine.low %v1129_v55, %v1133_v56  ;;  %v890_v6 = vld [vmem:[%s10400_s1 + $0x348] sm:$0xff] }
 0x10a   : > { %4132 = vmatpush1.bf16.msra.mxu1 %v6667_v12  ;;  %v1141_v1 = vld [vmem:[%s10400_s1 + $0xb20] sm:$0xff]  ;;  %v6731_v20 = vcombine.low %v890_v6, %v894_v7  ;;  %v942_v62 = vld [vmem:[%s10400_s1 + $0x4e8] sm:$0xff] }
 0x10b   : > { %4133 = vmatprep.subr.bf16.mxu1 %v6676_v15  ;;  %v6978_v5 = vcombine.high %v1137_v0, %v1141_v1  ;;  %v1145_v8 = vld [vmem:[%s10400_s1 + $0xb40] sm:$0xff]  ;;  %v6977_v12 = vcombine.low %v1137_v0, %v1141_v1 }
 0x10c   : > { %4050 = vmatpush1.bf16.msra.mxu0 %v6921_v14  ;;  %v1149_v10 = vld [vmem:[%s10400_s1 + $0xb60] sm:$0xff]  ;;  %v6732_v14 = vcombine.high %v890_v6, %v894_v7  ;;  %v946_v6 = vld [vmem:[%s10400_s1 + $0x508] sm:$0xff] }
 0x10d   : > { %4051 = vmatprep.subr.bf16.mxu0 %v6930_v16  ;;  %v6986_v15 = vcombine.high %v1145_v8, %v1149_v10  ;;  %v898_v16 = vld [vmem:[%s10400_s1 + $0x388] sm:$0xff]  ;;  %v1153_v18 = vld [vmem:[%s10400_s1 + $0xb80] sm:$0xff] }
 0x10e   : > { %4134 = vmatpush1.bf16.msra.mxu1 %v6675_v21  ;;  %v1157_v19 = vld [vmem:[%s10400_s1 + $0xba0] sm:$0xff]  ;;  %v6985_v21 = vcombine.low %v1145_v8, %v1149_v10  ;;  %v6739_v63 = vcombine.low %v898_v16, %v902_v17  ;;  %v950_v7 = vld [vmem:[%s10400_s1 + $0x528] sm:$0xff] }
 0x10f   : > { %4135 = vmatprep.subr.bf16.mxu1 %v6684_v24  ;;  %v6994_v24 = vcombine.high %v1153_v18, %v1157_v19  ;;  %v1161_v27 = vld [vmem:[%s10400_s1 + $0xbc0] sm:$0xff] }
 0x110   : > { %4052 = vmatpush1.bf16.msra.mxu0 %v6929_v23  ;;  %v6740_v23 = vcombine.high %v898_v16, %v902_v17  ;;  %v1165_v29 = vld [vmem:[%s10400_s1 + $0xbe0] sm:$0xff]  ;;  %v954_v16 = vld [vmem:[%s10400_s1 + $0x548] sm:$0xff] }
 0x111   : > { %4053 = vmatprep.subr.bf16.mxu0 %v6938_v25  ;;  %v906_v25 = vld [vmem:[%s10400_s1 + $0x3c8] sm:$0xff]  ;;  %v1169_v36 = vld [vmem:[%s10400_s1 + $0xc00] sm:$0xff] }
 0x112   : > { %4136 = vmatpush1.bf16.msra.mxu1 %v6683_v30  ;;  %v6993_v30 = vcombine.low %v1153_v18, %v1157_v19  ;;  %v1173_v37 = vld [vmem:[%s10400_s1 + $0xc20] sm:$0xff]  ;;  %v6747_v39 = vcombine.low %v906_v25, %v910_v26  ;;  %v958_v17 = vld [vmem:[%s10400_s1 + $0x568] sm:$0xff] }
 0x113   : > { %4137 = vmatprep.subr.bf16.mxu1 %v6692_v34  ;;  %v7002_v34 = vcombine.high %v1161_v27, %v1165_v29  ;;  %v1177_v45 = vld [vmem:[%s10400_s1 + $0xc40] sm:$0xff] }
 0x114   : > { %4054 = vmatpush1.bf16.msra.mxu0 %v6937_v31  ;;  %v6748_v31 = vcombine.high %v906_v25, %v910_v26  ;;  %v1181_v46 = vld [vmem:[%s10400_s1 + $0xc60] sm:$0xff]  ;;  %v962_v25 = vld [vmem:[%s10400_s1 + $0x588] sm:$0xff] }
 0x115   : > { %4055 = vmatprep.subr.bf16.mxu0 %v6946_v35  ;;  %v914_v35 = vld [vmem:[%s10400_s1 + $0x408] sm:$0xff]  ;;  %v1185_v55 = vld [vmem:[%s10400_s1 + $0xc80] sm:$0xff] }
 0x116   : > { %4138 = vmatpush1.bf16.msra.mxu1 %v6691_v40  ;;  %v7001_v40 = vcombine.low %v1161_v27, %v1165_v29  ;;  %v6755_v47 = vcombine.low %v914_v35, %v918_v28  ;;  %v1189_v56 = vld [vmem:[%s10400_s1 + $0xca0] sm:$0xff]  ;;  %v966_v26 = vld [vmem:[%s10400_s1 + $0x5a8] sm:$0xff] }
 0x117   : > { %4139 = vmatprep.subr.bf16.mxu1 %v6700_v42  ;;  %v7010_v42 = vcombine.high %v1169_v36, %v1173_v37  ;;  %v1193_v0 = vld [vmem:[%s10400_s1 + $0xcc0] sm:$0xff] }
 0x118   : > { %4056 = vmatpush1.bf16.msra.mxu0 %v6945_v41  ;;  %v6756_v41 = vcombine.high %v914_v35, %v918_v28  ;;  %v1197_v1 = vld [vmem:[%s10400_s1 + $0xce0] sm:$0xff]  ;;  %v970_v35 = vld [vmem:[%s10400_s1 + $0x5c8] sm:$0xff] }
 0x119   : > { %4057 = vmatprep.subr.bf16.mxu0 %v6954_v44  ;;  %v922_v44 = vld [vmem:[%s10400_s1 + $0x448] sm:$0xff]  ;;  %v1201_v8 = vld [vmem:[%s10400_s1 + $0xd00] sm:$0xff] }
 0x11a   : > { %4140 = vmatpush1.bf16.msra.mxu1 %v6699_v48  ;;  %v7009_v48 = vcombine.low %v1169_v36, %v1173_v37  ;;  %v1205_v10 = vld [vmem:[%s10400_s1 + $0xd20] sm:$0xff]  ;;  %v974_v28 = vld [vmem:[%s10400_s1 + $0x5e8] sm:$0xff] }
 0x11b   : > { %4141 = vmatprep.subr.bf16.mxu1 %v6708_v50  ;;  %v7018_v50 = vcombine.high %v1177_v45, %v1181_v46  ;;  %v1209_v18 = vld [vmem:[%s10400_s1 + $0xd40] sm:$0xff] }
 0x11c   : > { %4058 = vmatpush1.bf16.msra.mxu0 %v6953_v49  ;;  %v6764_v49 = vcombine.high %v922_v44, %v926_v53  ;;  %v1213_v19 = vld [vmem:[%s10400_s1 + $0xd60] sm:$0xff] }
 0x11d   : > { %4059 = vmatprep.subr.bf16.mxu0 %v6962_v51  ;;  %v930_v51 = vld [vmem:[%s10400_s1 + $0x488] sm:$0xff]  ;;  %v1217_v27 = vld [vmem:[%s10400_s1 + $0xd80] sm:$0xff] }
 0x11e   : > { %4142 = vmatpush1.bf16.msra.mxu1 %v6707_v57  ;;  %v6763_v57 = vcombine.low %v922_v44, %v926_v53  ;;  %v1221_v29 = vld [vmem:[%s10400_s1 + $0xda0] sm:$0xff]  ;;  %v978_v44 = vld [vmem:[%s10400_s1 + $0x608] sm:$0xff] }
 0x11f   : > { %4143 = vmatprep.subr.bf16.mxu1 %v6716_v59  ;;  %v6772_v59 = vcombine.high %v930_v51, %v934_v52  ;;  %v1225_v36 = vld [vmem:[%s10400_s1 + $0xdc0] sm:$0xff]  ;;  %v982_v53 = vld [vmem:[%s10400_s1 + $0x628] sm:$0xff] }
 0x120   : > { %4060 = vmatpush1.bf16.msra.mxu0 %v6961_v58  ;;  %v7017_v58 = vcombine.low %v1177_v45, %v1181_v46  ;;  %v1229_v37 = vld [vmem:[%s10400_s1 + $0xde0] sm:$0xff] }
 0x121   : > { %4061 = vmatprep.subr.bf16.mxu0 %v6970_v60  ;;  %v7026_v60 = vcombine.high %v1185_v55, %v1189_v56  ;;  %v1233_v45 = vld [vmem:[%s10400_s1 + $0xe00] sm:$0xff] }
 0x122   : > { %4144 = vmatpush1.bf16.msra.mxu1 %v6715_v2  ;;  %v6771_v2 = vcombine.low %v930_v51, %v934_v52  ;;  %v1237_v46 = vld [vmem:[%s10400_s1 + $0xe20] sm:$0xff]  ;;  %v986_v51 = vld [vmem:[%s10400_s1 + $0x648] sm:$0xff] }
 0x123   : > { %4145 = vmatprep.subr.bf16.mxu1 %v6724_v4  ;;  %v6780_v4 = vcombine.high %v938_v61, %v942_v62  ;;  %v990_v52 = vld [vmem:[%s10400_s1 + $0x668] sm:$0xff] }
 0x124   : > { %4062 = vmatpush1.bf16.msra.mxu0 %v6969_v3  ;;  %v7025_v3 = vcombine.low %v1185_v55, %v1189_v56  ;;  %v1241_v55 = vld [vmem:[%s10400_s1 + $0xe40] sm:$0xff] }
 0x125   : > { %4063 = vmatprep.subr.bf16.mxu0 %v6978_v5  ;;  %v7034_v5 = vcombine.high %v1193_v0, %v1197_v1  ;;  %v1245_v56 = vld [vmem:[%s10400_s1 + $0xe60] sm:$0xff] }
 0x126   : > { %4146 = vmatpush1.bf16.msra.mxu1 %v6723_v11  ;;  %v6779_v11 = vcombine.low %v938_v61, %v942_v62  ;;  %v994_v61 = vld [vmem:[%s10400_s1 + $0x688] sm:$0xff] }
 0x127   : > { %4147 = vmatprep.subr.bf16.mxu1 %v6732_v14  ;;  %v6788_v14 = vcombine.high %v946_v6, %v950_v7  ;;  %v998_v62 = vld [vmem:[%s10400_s1 + $0x6a8] sm:$0xff] }
 0x128   : > { %4064 = vmatpush1.bf16.msra.mxu0 %v6977_v12  ;;  %v7033_v12 = vcombine.low %v1193_v0, %v1197_v1  ;;  %v1249_v0 = vld [vmem:[%s10400_s1 + $0xe80] sm:$0xff] }
 0x129   : > { %4065 = vmatprep.subr.bf16.mxu0 %v6986_v15  ;;  %v7042_v15 = vcombine.high %v1201_v8, %v1205_v10  ;;  %v1253_v1 = vld [vmem:[%s10400_s1 + $0xea0] sm:$0xff] }
 0x12a   : > { %4148 = vmatpush1.bf16.msra.mxu1 %v6731_v20  ;;  %v6787_v20 = vcombine.low %v946_v6, %v950_v7  ;;  %v1002_v6 = vld [vmem:[%s10400_s1 + $0x6c8] sm:$0xff] }
 0x12b   : > { %4149 = vmatprep.subr.bf16.mxu1 %v6740_v23  ;;  %v6796_v23 = vcombine.high %v954_v16, %v958_v17  ;;  %v1006_v7 = vld [vmem:[%s10400_s1 + $0x6e8] sm:$0xff] }
 0x12c   : > { %4066 = vmatpush1.bf16.msra.mxu0 %v6985_v21  ;;  %v7041_v21 = vcombine.low %v1201_v8, %v1205_v10  ;;  %v1257_v8 = vld [vmem:[%s10400_s1 + $0xec0] sm:$0xff] }
 0x12d   : > { %4067 = vmatprep.subr.bf16.mxu0 %v6994_v24  ;;  %v7050_v24 = vcombine.high %v1209_v18, %v1213_v19  ;;  %v1261_v10 = vld [vmem:[%s10400_s1 + $0xee0] sm:$0xff] }
 0x12e   : > { %4150 = vmatpush1.bf16.msra.mxu1 %v6739_v63  ;;  %v6795_v63 = vcombine.low %v954_v16, %v958_v17  ;;  %v1010_v16 = vld [vmem:[%s10400_s1 + $0x708] sm:$0xff] }
 0x12f   : > { %4151 = vmatprep.subr.bf16.mxu1 %v6748_v31  ;;  %v6804_v31 = vcombine.high %v962_v25, %v966_v26  ;;  %v1014_v17 = vld [vmem:[%s10400_s1 + $0x728] sm:$0xff] }
 0x130   : > { %4068 = vmatpush1.bf16.msra.mxu0 %v6993_v30  ;;  %v7049_v30 = vcombine.low %v1209_v18, %v1213_v19  ;;  %v1265_v18 = vld [vmem:[%s10400_s1 + $0xf00] sm:$0xff] }
 0x131   : > { %4069 = vmatprep.subr.bf16.mxu0 %v7002_v34  ;;  %v7058_v34 = vcombine.high %v1217_v27, %v1221_v29  ;;  %v1269_v19 = vld [vmem:[%s10400_s1 + $0xf20] sm:$0xff] }
 0x132   : > { %4152 = vmatpush1.bf16.msra.mxu1 %v6747_v39  ;;  %v6803_v39 = vcombine.low %v962_v25, %v966_v26  ;;  %v1018_v25 = vld [vmem:[%s10400_s1 + $0x748] sm:$0xff] }
 0x133   : > { %4162 = vmatprep.subr.bf16.mxu1 %v6756_v41  ;;  %v6812_v41 = vcombine.high %v970_v35, %v974_v28  ;;  %v1022_v26 = vld [vmem:[%s10400_s1 + $0x768] sm:$0xff] }
 0x134   : > { %4070 = vmatpush1.bf16.msra.mxu0 %v7001_v40  ;;  %v7057_v40 = vcombine.low %v1217_v27, %v1221_v29  ;;  %v1273_v27 = vld [vmem:[%s10400_s1 + $0xf40] sm:$0xff] }
 0x135   : > { %4080 = vmatprep.subr.bf16.mxu0 %v7010_v42  ;;  %4154 = vmatmul.mubr.bf16.vlgmr.msra.gmra.mrb[4].mxu1 %v8697_v22  ;;  %v7066_v42 = vcombine.high %v1225_v36, %v1229_v37  ;;  %v1277_v29 = vld [vmem:[%s10400_s1 + $0xf60] sm:$0xff] }
 0x136   : > { %4163 = vmatpush1.bf16.msra.mxu1 %v6755_v47  ;;  %4194 = vmatprep.mubr.bf16.mxu1 %v8589_v13  ;;  %v6811_v47 = vcombine.low %v970_v35, %v974_v28  ;;  %v1026_v35 = vld [vmem:[%s10400_s1 + $0x788] sm:$0xff] }
 0x137   : > { %4072 = vmatmul.mubr.bf16.vlgmr.msra.gmra.mrb[0].mxu0 %v8621_v32  ;;  %4164 = vmatprep.subr.bf16.mxu1 %v6764_v49  ;;  %v6820_v49 = vcombine.high %v978_v44, %v982_v53  ;;  %v1030_v28 = vld [vmem:[%s10400_s1 + $0x7a8] sm:$0xff] }
 0x138   : > { %4081 = vmatpush1.bf16.msra.mxu0 %v7009_v48  ;;  %4112 = vmatprep.mubr.bf16.mxu0 %v8924_v54  ;;  %v7065_v48 = vcombine.low %v1225_v36, %v1229_v37  ;;  %v1281_v36 = vld [vmem:[%s10400_s1 + $0xf80] sm:$0xff] }
 0x139   : > { %4082 = vmatprep.subr.bf16.mxu0 %v7018_v50  ;;  %v7074_v50 = vcombine.high %v1233_v45, %v1237_v46  ;;  %v1285_v37 = vld [vmem:[%s10400_s1 + $0xfa0] sm:$0xff] }
 0x13a   : > { %4165 = vmatpush1.bf16.msra.mxu1 %v6763_v57  ;;  %v6819_v57 = vcombine.low %v978_v44, %v982_v53  ;;  %v1034_v44 = vld [vmem:[%s10400_s1 + $0x7c8] sm:$0xff] }
 0x13b   : > { %4166 = vmatprep.subr.bf16.mxu1 %v6772_v59  ;;  %v6828_v59 = vcombine.high %v986_v51, %v990_v52  ;;  %v1038_v53 = vld [vmem:[%s10400_s1 + $0x7e8] sm:$0xff] }
 0x13c   : > { %4083 = vmatpush1.bf16.msra.mxu0 %v7017_v58  ;;  %v7073_v58 = vcombine.low %v1233_v45, %v1237_v46  ;;  %v1289_v45 = vld [vmem:[%s10400_s1 + $0xfc0] sm:$0xff] }
 0x13d   : > { %4084 = vmatprep.subr.bf16.mxu0 %v7026_v60  ;;  %v7082_v60 = vcombine.high %v1241_v55, %v1245_v56  ;;  %v1293_v46 = vld [vmem:[%s10400_s1 + $0xfe0] sm:$0xff] }
 0x13e   : > { %4167 = vmatpush1.bf16.msra.mxu1 %v6771_v2  ;;  %v6827_v2 = vcombine.low %v986_v51, %v990_v52  ;;  %v1042_v51 = vld [vmem:[%s10400_s1 + $0x808] sm:$0xff] }
 0x13f   : > { %4168 = vmatprep.subr.bf16.mxu1 %v6780_v4  ;;  %v6836_v4 = vcombine.high %v994_v61, %v998_v62  ;;  %v1046_v52 = vld [vmem:[%s10400_s1 + $0x828] sm:$0xff] }
 0x140   : > { %4085 = vmatpush1.bf16.msra.mxu0 %v7025_v3  ;;  %v7081_v3 = vcombine.low %v1241_v55, %v1245_v56  ;;  %v787_v55 = vld [vmem:[%s10400_s1 + $0x10] sm:$0xff] }
 0x141   : > { %4086 = vmatprep.subr.bf16.mxu0 %v7034_v5  ;;  %v7090_v5 = vcombine.high %v1249_v0, %v1253_v1  ;;  %v791_v56 = vld [vmem:[%s10400_s1 + $0x30] sm:$0xff] }
 0x142   : > { %4169 = vmatpush1.bf16.msra.mxu1 %v6779_v11  ;;  %v6835_v11 = vcombine.low %v994_v61, %v998_v62  ;;  %v1050_v61 = vld [vmem:[%s10400_s1 + $0x848] sm:$0xff] }
 0x143   : > { %4170 = vmatprep.subr.bf16.mxu1 %v6788_v14  ;;  %v6844_v14 = vcombine.high %v1002_v6, %v1006_v7  ;;  %v1054_v62 = vld [vmem:[%s10400_s1 + $0x868] sm:$0xff] }
 0x144   : > { %4087 = vmatpush1.bf16.msra.mxu0 %v7033_v12  ;;  %v7089_v12 = vcombine.low %v1249_v0, %v1253_v1  ;;  %v795_v0 = vld [vmem:[%s10400_s1 + $0x50] sm:$0xff] }
 0x145   : > { %4088 = vmatprep.subr.bf16.mxu0 %v7042_v15  ;;  %v7098_v15 = vcombine.high %v1257_v8, %v1261_v10  ;;  %v799_v1 = vld [vmem:[%s10400_s1 + $0x70] sm:$0xff] }
 0x146   : > { %4171 = vmatpush1.bf16.msra.mxu1 %v6787_v20  ;;  %v6843_v20 = vcombine.low %v1002_v6, %v1006_v7  ;;  %v6638_v6 = vcombine.high %v795_v0, %v799_v1  ;;  %v1058_v7 = vld [vmem:[%s10400_s1 + $0x888] sm:$0xff] }
 0x147   : > { %4172 = vmatprep.subr.bf16.mxu1 %v6796_v23  ;;  %v6852_v23 = vcombine.high %v1010_v16, %v1014_v17 }
 0x148   : > { %4089 = vmatpush1.bf16.msra.mxu0 %v7041_v21  ;;  %v7097_v21 = vcombine.low %v1257_v8, %v1261_v10  ;;  %v1062_v8 = vld [vmem:[%s10400_s1 + $0x8a8] sm:$0xff]  ;;  %v803_v10 = vld [vmem:[%s10400_s1 + $0x90] sm:$0xff] }
 0x149   : > { %4090 = vmatprep.subr.bf16.mxu0 %v7050_v24  ;;  %v7106_v24 = vcombine.high %v1265_v18, %v1269_v19 }
 0x14a   : > { %4173 = vmatpush1.bf16.msra.mxu1 %v6795_v63  ;;  %v6851_v63 = vcombine.low %v1010_v16, %v1014_v17  ;;  %v1066_v17 = vld [vmem:[%s10400_s1 + $0x8c8] sm:$0xff] }
 0x14b   : > { %4174 = vmatprep.subr.bf16.mxu1 %v6804_v31  ;;  %v6860_v31 = vcombine.high %v1018_v25, %v1022_v26 }
 0x14c   : > { %4091 = vmatpush1.bf16.msra.mxu0 %v7049_v30  ;;  %v7105_v30 = vcombine.low %v1265_v18, %v1269_v19  ;;  %v1070_v18 = vld [vmem:[%s10400_s1 + $0x8e8] sm:$0xff]  ;;  %v811_v19 = vld [vmem:[%s10400_s1 + $0xd0] sm:$0xff] }
 0x14d   : > { %4092 = vmatprep.subr.bf16.mxu0 %v7058_v34  ;;  %v7114_v34 = vcombine.high %v1273_v27, %v1277_v29 }
 0x14e   : > { %4175 = vmatpush1.bf16.msra.mxu1 %v6803_v39  ;;  %v6859_v39 = vcombine.low %v1018_v25, %v1022_v26  ;;  %v1074_v26 = vld [vmem:[%s10400_s1 + $0x908] sm:$0xff] }
 0x14f   : > { %4176 = vmatprep.subr.bf16.mxu1 %v6812_v41  ;;  %v6868_v41 = vcombine.high %v1026_v35, %v1030_v28 }
 0x150   : > { %4093 = vmatpush1.bf16.msra.mxu0 %v7057_v40  ;;  %v7113_v40 = vcombine.low %v1273_v27, %v1277_v29  ;;  %v1078_v27 = vld [vmem:[%s10400_s1 + $0x928] sm:$0xff]  ;;  %v819_v29 = vld [vmem:[%s10400_s1 + $0x110] sm:$0xff] }
 0x151   : > { %4094 = vmatprep.subr.bf16.mxu0 %v7066_v42  ;;  %v7122_v42 = vcombine.high %v1281_v36, %v1285_v37 }
 0x152   : > { %4177 = vmatpush1.bf16.msra.mxu1 %v6811_v47  ;;  %v6867_v47 = vcombine.low %v1026_v35, %v1030_v28  ;;  %v1082_v28 = vld [vmem:[%s10400_s1 + $0x948] sm:$0xff] }
 0x153   : > { %4178 = vmatprep.subr.bf16.mxu1 %v6820_v49  ;;  %v6876_v49 = vcombine.high %v1034_v44, %v1038_v53 }
 0x154   : > { %4095 = vmatpush1.bf16.msra.mxu0 %v7065_v48  ;;  %v7121_v48 = vcombine.low %v1281_v36, %v1285_v37  ;;  %v1086_v36 = vld [vmem:[%s10400_s1 + $0x968] sm:$0xff]  ;;  %v827_v37 = vld [vmem:[%s10400_s1 + $0x150] sm:$0xff] }
 0x155   : > { %4096 = vmatprep.subr.bf16.mxu0 %v7074_v50  ;;  %v7130_v50 = vcombine.high %v1289_v45, %v1293_v46 }
 0x156   : > { %4179 = vmatpush1.bf16.msra.mxu1 %v6819_v57  ;;  %v6875_v57 = vcombine.low %v1034_v44, %v1038_v53  ;;  %v1090_v53 = vld [vmem:[%s10400_s1 + $0x988] sm:$0xff] }
 0x157   : > { %4180 = vmatprep.subr.bf16.mxu1 %v6828_v59  ;;  %v6884_v59 = vcombine.high %v1042_v51, %v1046_v52 }
 0x158   : > { %4097 = vmatpush1.bf16.msra.mxu0 %v7073_v58  ;;  %v7129_v58 = vcombine.low %v1289_v45, %v1293_v46  ;;  %v1094_v45 = vld [vmem:[%s10400_s1 + $0x9a8] sm:$0xff]  ;;  %v835_v46 = vld [vmem:[%s10400_s1 + $0x190] sm:$0xff] }
 0x159   : > { %4098 = vmatprep.subr.bf16.mxu0 %v7082_v60  ;;  %v6630_v60 = vcombine.high %v787_v55, %v791_v56 }
 0x15a   : > { %4181 = vmatpush1.bf16.msra.mxu1 %v6827_v2  ;;  %v9118_v2 = vcombine.high %v8621_v32, %v8621_v32 }
 0x15b   : > { %4182 = vmatprep.subr.bf16.mxu1 %v6836_v4  ;;  %v6629_v4 = vcombine.low %v787_v55, %v791_v56  ;;  %v1102_v55 = vld [vmem:[%s10400_s1 + $0x9e8] sm:$0xff]  ;;  %v843_v56 = vld [vmem:[%s10400_s1 + $0x1d0] sm:$0xff] }
 0x15c   : > { %4099 = vmatpush1.bf16.msra.mxu0 %v7081_v3  ;;  %v6883_v3 = vcombine.low %v1042_v51, %v1046_v52  ;;  %v1098_v52 = vld [vmem:[%s10400_s1 + $0x9c8] sm:$0xff] }
 0x15d   : > { %4100 = vmatprep.subr.bf16.mxu0 %v7090_v5  ;;  %v6892_v5 = vcombine.high %v1050_v61, %v1054_v62 }
 0x15e   : > { %4183 = vmatpush1.bf16.msra.mxu1 %v6835_v11  ;;  %v807_v11 = vld [vmem:[%s10400_s1 + $0xb0] sm:$0xff] }
 0x15f   : > { %4184 = vmatprep.subr.bf16.mxu1 %v6844_v14  ;;  %v6637_v14 = vcombine.low %v795_v0, %v799_v1  ;;  %v6646_v16 = vcombine.high %v803_v10, %v807_v11  ;;  %v1110_v0 = vld [vmem:[%s10400_s1 + $0xa28] sm:$0xff]  ;;  %v851_v1 = vld [vmem:[%s10400_s1 + $0x210] sm:$0xff] }
 0x160   : > { %4101 = vmatpush1.bf16.msra.mxu0 %v7089_v12  ;;  %v6891_v12 = vcombine.low %v1050_v61, %v1054_v62  ;;  %v1106_v62 = vld [vmem:[%s10400_s1 + $0xa08] sm:$0xff] }
 0x161   : > { %4102 = vmatprep.subr.bf16.mxu0 %v7098_v15  ;;  %v6900_v15 = vcombine.high %v1058_v7, %v1062_v8 }
 0x162   : > { %4185 = vmatpush1.bf16.msra.mxu1 %v6843_v20  ;;  %v815_v20 = vld [vmem:[%s10400_s1 + $0xf0] sm:$0xff] }
 0x163   : > { %4186 = vmatprep.subr.bf16.mxu1 %v6852_v23  ;;  %v6645_v23 = vcombine.low %v803_v10, %v807_v11  ;;  %v6654_v25 = vcombine.high %v811_v19, %v815_v20  ;;  %v1118_v10 = vld [vmem:[%s10400_s1 + $0xa68] sm:$0xff]  ;;  %v859_v11 = vld [vmem:[%s10400_s1 + $0x250] sm:$0xff] }
 0x164   : > { %4103 = vmatpush1.bf16.msra.mxu0 %v7097_v21  ;;  %v6899_v21 = vcombine.low %v1058_v7, %v1062_v8  ;;  %v1114_v8 = vld [vmem:[%s10400_s1 + $0xa48] sm:$0xff] }
 0x165   : > { %4104 = vmatprep.subr.bf16.mxu0 %v7106_v24  ;;  %v6908_v24 = vcombine.high %v1066_v17, %v1070_v18 }
 0x166   : > { %4187 = vmatpush1.bf16.msra.mxu1 %v6851_v63  ;;  %v823_v63 = vld [vmem:[%s10400_s1 + $0x130] sm:$0xff] }
 0x167   : > { %4188 = vmatprep.subr.bf16.mxu1 %v6860_v31  ;;  %v6653_v31 = vcombine.low %v811_v19, %v815_v20  ;;  %v6662_v35 = vcombine.high %v819_v29, %v823_v63  ;;  %v1126_v19 = vld [vmem:[%s10400_s1 + $0xaa8] sm:$0xff]  ;;  %v867_v20 = vld [vmem:[%s10400_s1 + $0x290] sm:$0xff] }
 0x168   : > { %4105 = vmatpush1.bf16.msra.mxu0 %v7105_v30  ;;  %v6907_v30 = vcombine.low %v1066_v17, %v1070_v18  ;;  %v1122_v18 = vld [vmem:[%s10400_s1 + $0xa88] sm:$0xff] }
 0x169   : > { %4106 = vmatprep.subr.bf16.mxu0 %v7114_v34  ;;  %v6916_v34 = vcombine.high %v1074_v26, %v1078_v27 }
 0x16a   : > { %4189 = vmatpush1.bf16.msra.mxu1 %v6859_v39  ;;  %v831_v39 = vld [vmem:[%s10400_s1 + $0x170] sm:$0xff] }
 0x16b   : > { %4190 = vmatprep.subr.bf16.mxu1 %v6868_v41  ;;  %v6661_v41 = vcombine.low %v819_v29, %v823_v63  ;;  %v6670_v44 = vcombine.high %v827_v37, %v831_v39  ;;  %v1134_v29 = vld [vmem:[%s10400_s1 + $0xae8] sm:$0xff]  ;;  %v875_v63 = vld [vmem:[%s10400_s1 + $0x2d0] sm:$0xff] }
 0x16c   : > { %4107 = vmatpush1.bf16.msra.mxu0 %v7113_v40  ;;  %v6915_v40 = vcombine.low %v1074_v26, %v1078_v27  ;;  %v1130_v27 = vld [vmem:[%s10400_s1 + $0xac8] sm:$0xff] }
 0x16d   : > { %4108 = vmatprep.subr.bf16.mxu0 %v7122_v42  ;;  %v6924_v42 = vcombine.high %v1082_v28, %v1086_v36 }
 0x16e   : > { %4191 = vmatpush1.bf16.msra.mxu1 %v6867_v47  ;;  %v839_v47 = vld [vmem:[%s10400_s1 + $0x1b0] sm:$0xff] }
 0x16f   : > { %4192 = vmatprep.subr.bf16.mxu1 %v6876_v49  ;;  %v6669_v49 = vcombine.low %v827_v37, %v831_v39  ;;  %v6678_v51 = vcombine.high %v835_v46, %v839_v47  ;;  %v1142_v37 = vld [vmem:[%s10400_s1 + $0xb28] sm:$0xff]  ;;  %v883_v39 = vld [vmem:[%s10400_s1 + $0x310] sm:$0xff] }
 0x170   : > { %4109 = vmatpush1.bf16.msra.mxu0 %v7121_v48  ;;  %v6923_v48 = vcombine.low %v1082_v28, %v1086_v36  ;;  %v1138_v36 = vld [vmem:[%s10400_s1 + $0xb08] sm:$0xff] }
 0x171   : > { %4110 = vmatprep.subr.bf16.mxu0 %v7130_v50  ;;  %v6932_v50 = vcombine.high %v1090_v53, %v1094_v45 }
 0x172   : > { %4193 = vmatpush1.bf16.msra.mxu1 %v6875_v57  ;;  %v847_v57 = vld [vmem:[%s10400_s1 + $0x1f0] sm:$0xff] }
 0x173   : > { %4203 = vmatprep.subr.bf16.mxu1 %v6884_v59  ;;  %v6677_v59 = vcombine.low %v835_v46, %v839_v47  ;;  %v6686_v61 = vcombine.high %v843_v56, %v847_v57  ;;  %v1150_v46 = vld [vmem:[%s10400_s1 + $0xb68] sm:$0xff]  ;;  %v891_v47 = vld [vmem:[%s10400_s1 + $0x350] sm:$0xff] }
 0x174   : > { %4111 = vmatpush1.bf16.msra.mxu0 %v7129_v58  ;;  %v6931_v58 = vcombine.low %v1090_v53, %v1094_v45  ;;  %v1146_v45 = vld [vmem:[%s10400_s1 + $0xb48] sm:$0xff] }
 0x175   : > { %4285 = vmatprep.subr.bf16.mxu0 %v6630_v60  ;;  %4195 = vmatmul.mubr.bf16.vlgmr.msra.gmra.mrb[4].mxu1 %v8715_v33  ;;  %v6940_v60 = vcombine.high %v1098_v52, %v1102_v55 }
 0x176   : > { %4204 = vmatpush1.bf16.msra.mxu1 %v6883_v3  ;;  %4235 = vmatprep.mubr.bf16.mxu1 %v8724_v38  ;;  %v855_v3 = vld [vmem:[%s10400_s1 + $0x230] sm:$0xff] }
 0x177   : > { %4113 = vmatmul.mubr.bf16.vlgmr.msra.gmra.mrb[0].mxu0 %v9118_v2  ;;  %4205 = vmatprep.subr.bf16.mxu1 %v6892_v5  ;;  %v6685_v5 = vcombine.low %v843_v56, %v847_v57  ;;  %v6694_v7 = vcombine.high %v851_v1, %v855_v3  ;;  %v1158_v56 = vld [vmem:[%s10400_s1 + $0xba8] sm:$0xff]  ;;  %v899_v57 = vld [vmem:[%s10400_s1 + $0x390] sm:$0xff] }
 0x178   : > { %4286 = vmatpush1.bf16.msra.mxu0 %v6629_v4  ;;  %4317 = vmatprep.mubr.bf16.mxu0 %v8578_v9  ;;  %v6939_v4 = vcombine.low %v1098_v52, %v1102_v55  ;;  %v1154_v55 = vld [vmem:[%s10400_s1 + $0xb88] sm:$0xff] }
 0x179   : > { %4287 = vmatprep.subr.bf16.mxu0 %v6638_v6  ;;  %v6948_v6 = vcombine.high %v1106_v62, %v1110_v0 }
 0x17a   : > { %4206 = vmatpush1.bf16.msra.mxu1 %v6891_v12  ;;  %v863_v12 = vld [vmem:[%s10400_s1 + $0x270] sm:$0xff] }
 0x17b   : > { %4207 = vmatprep.subr.bf16.mxu1 %v6900_v15  ;;  %v6693_v15 = vcombine.low %v851_v1, %v855_v3  ;;  %v6702_v17 = vcombine.high %v859_v11, %v863_v12  ;;  %v1166_v1 = vld [vmem:[%s10400_s1 + $0xbe8] sm:$0xff]  ;;  %v907_v3 = vld [vmem:[%s10400_s1 + $0x3d0] sm:$0xff] }
 0x17c   : > { %4288 = vmatpush1.bf16.msra.mxu0 %v6637_v14  ;;  %v6947_v14 = vcombine.low %v1106_v62, %v1110_v0  ;;  %v1162_v0 = vld [vmem:[%s10400_s1 + $0xbc8] sm:$0xff] }
 0x17d   : > { %4289 = vmatprep.subr.bf16.mxu0 %v6646_v16  ;;  %v6956_v16 = vcombine.high %v1114_v8, %v1118_v10 }
 0x17e   : > { %4208 = vmatpush1.bf16.msra.mxu1 %v6899_v21  ;;  %v871_v21 = vld [vmem:[%s10400_s1 + $0x2b0] sm:$0xff] }
 0x17f   : > { %4209 = vmatprep.subr.bf16.mxu1 %v6908_v24  ;;  %v6701_v24 = vcombine.low %v859_v11, %v863_v12  ;;  %v6710_v26 = vcombine.high %v867_v20, %v871_v21  ;;  %v1174_v11 = vld [vmem:[%s10400_s1 + $0xc28] sm:$0xff]  ;;  %v915_v12 = vld [vmem:[%s10400_s1 + $0x410] sm:$0xff] }
 0x180   : > { %4290 = vmatpush1.bf16.msra.mxu0 %v6645_v23  ;;  %v6955_v23 = vcombine.low %v1114_v8, %v1118_v10  ;;  %v1170_v10 = vld [vmem:[%s10400_s1 + $0xc08] sm:$0xff] }
 0x181   : > { %4291 = vmatprep.subr.bf16.mxu0 %v6654_v25  ;;  %v6964_v25 = vcombine.high %v1122_v18, %v1126_v19 }
 0x182   : > { %4210 = vmatpush1.bf16.msra.mxu1 %v6907_v30  ;;  %v879_v30 = vld [vmem:[%s10400_s1 + $0x2f0] sm:$0xff] }
 0x183   : > { %4211 = vmatprep.subr.bf16.mxu1 %v6916_v34  ;;  %v6709_v34 = vcombine.low %v867_v20, %v871_v21  ;;  %v6718_v28 = vcombine.high %v875_v63, %v879_v30  ;;  %v1182_v20 = vld [vmem:[%s10400_s1 + $0xc68] sm:$0xff]  ;;  %v923_v21 = vld [vmem:[%s10400_s1 + $0x450] sm:$0xff] }
 0x184   : > { %4292 = vmatpush1.bf16.msra.mxu0 %v6653_v31  ;;  %v6963_v31 = vcombine.low %v1122_v18, %v1126_v19  ;;  %v1178_v19 = vld [vmem:[%s10400_s1 + $0xc48] sm:$0xff] }
 0x185   : > { %4293 = vmatprep.subr.bf16.mxu0 %v6662_v35  ;;  %v6972_v35 = vcombine.high %v1130_v27, %v1134_v29 }
 0x186   : > { %4212 = vmatpush1.bf16.msra.mxu1 %v6915_v40  ;;  %v887_v40 = vld [vmem:[%s10400_s1 + $0x330] sm:$0xff] }
 0x187   : > { %4213 = vmatprep.subr.bf16.mxu1 %v6924_v42  ;;  %v6717_v42 = vcombine.low %v875_v63, %v879_v30  ;;  %v6726_v53 = vcombine.high %v883_v39, %v887_v40  ;;  %v1190_v63 = vld [vmem:[%s10400_s1 + $0xca8] sm:$0xff]  ;;  %v931_v30 = vld [vmem:[%s10400_s1 + $0x490] sm:$0xff] }
 0x188   : > { %4294 = vmatpush1.bf16.msra.mxu0 %v6661_v41  ;;  %v6971_v41 = vcombine.low %v1130_v27, %v1134_v29  ;;  %v1186_v29 = vld [vmem:[%s10400_s1 + $0xc88] sm:$0xff] }
 0x189   : > { %4295 = vmatprep.subr.bf16.mxu0 %v6670_v44  ;;  %v6980_v44 = vcombine.high %v1138_v36, %v1142_v37 }
 0x18a   : > { %4214 = vmatpush1.bf16.msra.mxu1 %v6923_v48  ;;  %v895_v48 = vld [vmem:[%s10400_s1 + $0x370] sm:$0xff] }
 0x18b   : > { %4215 = vmatprep.subr.bf16.mxu1 %v6932_v50  ;;  %v6725_v50 = vcombine.low %v883_v39, %v887_v40  ;;  %v6734_v52 = vcombine.high %v891_v47, %v895_v48  ;;  %v1198_v39 = vld [vmem:[%s10400_s1 + $0xce8] sm:$0xff]  ;;  %v939_v40 = vld [vmem:[%s10400_s1 + $0x4d0] sm:$0xff] }
 0x18c   : > { %4296 = vmatpush1.bf16.msra.mxu0 %v6669_v49  ;;  %v6979_v49 = vcombine.low %v1138_v36, %v1142_v37  ;;  %v1194_v37 = vld [vmem:[%s10400_s1 + $0xcc8] sm:$0xff] }
 0x18d   : > { %4297 = vmatprep.subr.bf16.mxu0 %v6678_v51  ;;  %v6988_v51 = vcombine.high %v1146_v45, %v1150_v46 }
 0x18e   : > { %4216 = vmatpush1.bf16.msra.mxu1 %v6931_v58  ;;  %v903_v58 = vld [vmem:[%s10400_s1 + $0x3b0] sm:$0xff] }
 0x18f   : > { %4217 = vmatprep.subr.bf16.mxu1 %v6940_v60  ;;  %v6733_v60 = vcombine.low %v891_v47, %v895_v48  ;;  %v6742_v62 = vcombine.high %v899_v57, %v903_v58  ;;  %v1206_v47 = vld [vmem:[%s10400_s1 + $0xd28] sm:$0xff]  ;;  %v947_v48 = vld [vmem:[%s10400_s1 + $0x510] sm:$0xff] }
 0x190   : > { %4298 = vmatpush1.bf16.msra.mxu0 %v6677_v59  ;;  %v6987_v59 = vcombine.low %v1146_v45, %v1150_v46  ;;  %v1202_v46 = vld [vmem:[%s10400_s1 + $0xd08] sm:$0xff] }
 0x191   : > { %4299 = vmatprep.subr.bf16.mxu0 %v6686_v61  ;;  %v6996_v61 = vcombine.high %v1154_v55, %v1158_v56 }
 0x192   : > { %4218 = vmatpush1.bf16.msra.mxu1 %v6939_v4  ;;  %v911_v4 = vld [vmem:[%s10400_s1 + $0x3f0] sm:$0xff] }
 0x193   : > { %4219 = vmatprep.subr.bf16.mxu1 %v6948_v6  ;;  %v6741_v6 = vcombine.low %v899_v57, %v903_v58  ;;  %v6750_v8 = vcombine.high %v907_v3, %v911_v4  ;;  %v1214_v57 = vld [vmem:[%s10400_s1 + $0xd68] sm:$0xff]  ;;  %v955_v58 = vld [vmem:[%s10400_s1 + $0x550] sm:$0xff] }
 0x194   : > { %4300 = vmatpush1.bf16.msra.mxu0 %v6685_v5  ;;  %v6995_v5 = vcombine.low %v1154_v55, %v1158_v56  ;;  %v1210_v56 = vld [vmem:[%s10400_s1 + $0xd48] sm:$0xff] }
 0x195   : > { %4301 = vmatprep.subr.bf16.mxu0 %v6694_v7  ;;  %v7004_v7 = vcombine.high %v1162_v0, %v1166_v1 }
 0x196   : > { %4220 = vmatpush1.bf16.msra.mxu1 %v6947_v14  ;;  %v919_v14 = vld [vmem:[%s10400_s1 + $0x430] sm:$0xff] }
 0x197   : > { %4221 = vmatprep.subr.bf16.mxu1 %v6956_v16  ;;  %v6749_v16 = vcombine.low %v907_v3, %v911_v4  ;;  %v6758_v18 = vcombine.high %v915_v12, %v919_v14  ;;  %v1222_v3 = vld [vmem:[%s10400_s1 + $0xda8] sm:$0xff]  ;;  %v963_v4 = vld [vmem:[%s10400_s1 + $0x590] sm:$0xff] }
 0x198   : > { %4302 = vmatpush1.bf16.msra.mxu0 %v6693_v15  ;;  %v7003_v15 = vcombine.low %v1162_v0, %v1166_v1  ;;  %v1218_v1 = vld [vmem:[%s10400_s1 + $0xd88] sm:$0xff] }
 0x199   : > { %4303 = vmatprep.subr.bf16.mxu0 %v6702_v17  ;;  %v7012_v17 = vcombine.high %v1170_v10, %v1174_v11 }
 0x19a   : > { %4222 = vmatpush1.bf16.msra.mxu1 %v6955_v23  ;;  %v927_v23 = vld [vmem:[%s10400_s1 + $0x470] sm:$0xff] }
 0x19b   : > { %4223 = vmatprep.subr.bf16.mxu1 %v6964_v25  ;;  %v6757_v25 = vcombine.low %v915_v12, %v919_v14  ;;  %v6766_v27 = vcombine.high %v923_v21, %v927_v23  ;;  %v1226_v12 = vld [vmem:[%s10400_s1 + $0xdc8] sm:$0xff] }
 0x19c   : > { %4304 = vmatpush1.bf16.msra.mxu0 %v6701_v24  ;;  %v7011_v24 = vcombine.low %v1170_v10, %v1174_v11  ;;  %v1230_v14 = vld [vmem:[%s10400_s1 + $0xde8] sm:$0xff] }
 0x19d   : > { %4305 = vmatprep.subr.bf16.mxu0 %v6710_v26  ;;  %v7020_v26 = vcombine.high %v1178_v19, %v1182_v20 }
 0x19e   : > { %4224 = vmatpush1.bf16.msra.mxu1 %v6963_v31  ;;  %v935_v31 = vld [vmem:[%s10400_s1 + $0x4b0] sm:$0xff] }
 0x19f   : > { %4225 = vmatprep.subr.bf16.mxu1 %v6972_v35  ;;  %v6765_v35 = vcombine.low %v923_v21, %v927_v23  ;;  %v6774_v36 = vcombine.high %v931_v30, %v935_v31  ;;  %v7068_v23 = vcombine.high %v1226_v12, %v1230_v14 }
 0x1a0   : > { %4306 = vmatpush1.bf16.msra.mxu0 %v6709_v34  ;;  %v7019_v34 = vcombine.low %v1178_v19, %v1182_v20  ;;  %v7059_v19 = vcombine.low %v1218_v1, %v1222_v3 }
 0x1a1   : > { %4307 = vmatprep.subr.bf16.mxu0 %v6718_v28  ;;  %v7028_v28 = vcombine.high %v1186_v29, %v1190_v63 }
 0x1a2   : > { %4226 = vmatpush1.bf16.msra.mxu1 %v6971_v41  ;;  %v943_v41 = vld [vmem:[%s10400_s1 + $0x4f0] sm:$0xff] }
 0x1a3   : > { %4227 = vmatprep.subr.bf16.mxu1 %v6980_v44  ;;  %v6773_v44 = vcombine.low %v931_v30, %v935_v31  ;;  %v6782_v45 = vcombine.high %v939_v40, %v943_v41 }
 0x1a4   : > { %4308 = vmatpush1.bf16.msra.mxu0 %v6717_v42  ;;  %v7027_v42 = vcombine.low %v1186_v29, %v1190_v63  ;;  %v983_v29 = vld [vmem:[%s10400_s1 + $0x630] sm:$0xff]  ;;  %v7067_v63 = vcombine.low %v1226_v12, %v1230_v14 }
 0x1a5   : > { %4309 = vmatprep.subr.bf16.mxu0 %v6726_v53  ;;  %v7036_v53 = vcombine.high %v1194_v37, %v1198_v39  ;;  %v1023_v12 = vld [vmem:[%s10400_s1 + $0x770] sm:$0xff] }
 0x1a6   : > { %4228 = vmatpush1.bf16.msra.mxu1 %v6979_v49  ;;  %v951_v49 = vld [vmem:[%s10400_s1 + $0x530] sm:$0xff] }
 0x1a7   : > { %4229 = vmatprep.subr.bf16.mxu1 %v6988_v51  ;;  %v6781_v51 = vcombine.low %v939_v40, %v943_v41  ;;  %v6790_v55 = vcombine.high %v947_v48, %v951_v49 }
 0x1a8   : > { %4310 = vmatpush1.bf16.msra.mxu0 %v6725_v50  ;;  %v7035_v50 = vcombine.low %v1194_v37, %v1198_v39  ;;  %v991_v37 = vld [vmem:[%s10400_s1 + $0x670] sm:$0xff] }
 0x1a9   : > { %4311 = vmatprep.subr.bf16.mxu0 %v6734_v52  ;;  %v7044_v52 = vcombine.high %v1202_v46, %v1206_v47 }
 0x1aa   : > { %4230 = vmatpush1.bf16.msra.mxu1 %v6987_v59  ;;  %v959_v59 = vld [vmem:[%s10400_s1 + $0x570] sm:$0xff] }
 0x1ab   : > { %4231 = vmatprep.subr.bf16.mxu1 %v6996_v61  ;;  %v6789_v61 = vcombine.low %v947_v48, %v951_v49  ;;  %v6798_v0 = vcombine.high %v955_v58, %v959_v59 }
 0x1ac   : > { %4312 = vmatpush1.bf16.msra.mxu0 %v6733_v60  ;;  %v7043_v60 = vcombine.low %v1202_v46, %v1206_v47  ;;  %v999_v46 = vld [vmem:[%s10400_s1 + $0x6b0] sm:$0xff] }
 0x1ad   : > { %4313 = vmatprep.subr.bf16.mxu0 %v6742_v62  ;;  %v7052_v62 = vcombine.high %v1210_v56, %v1214_v57 }
 0x1ae   : > { %4232 = vmatpush1.bf16.msra.mxu1 %v6995_v5  ;;  %v967_v5 = vld [vmem:[%s10400_s1 + $0x5b0] sm:$0xff] }
 0x1af   : > { %4233 = vmatprep.subr.bf16.mxu1 %v7004_v7  ;;  %v6797_v7 = vcombine.low %v955_v58, %v959_v59  ;;  %v6806_v11 = vcombine.high %v963_v4, %v967_v5  ;;  %v6805_v21 = vcombine.low %v963_v4, %v967_v5 }
 0x1b0   : > { %4314 = vmatpush1.bf16.msra.mxu0 %v6741_v6  ;;  %v7051_v6 = vcombine.low %v1210_v56, %v1214_v57  ;;  %v1007_v56 = vld [vmem:[%s10400_s1 + $0x6f0] sm:$0xff] }
 0x1b1   : > { %4315 = vmatprep.subr.bf16.mxu0 %v6750_v8  ;;  %v7060_v8 = vcombine.high %v1218_v1, %v1222_v3  ;;  %v1015_v1 = vld [vmem:[%s10400_s1 + $0x730] sm:$0xff] }
 0x1b2   : > { %4234 = vmatpush1.bf16.msra.mxu1 %v7003_v15 }
 0x1b3   : > { %4244 = vmatprep.subr.bf16.mxu1 %v7012_v17  ;;  %v975_v17 = vld [vmem:[%s10400_s1 + $0x5f0] sm:$0xff] }
 0x1b4   : > { %4316 = vmatpush1.bf16.msra.mxu0 %v6749_v16  ;;  %v971_v16 = vld [vmem:[%s10400_s1 + $0x5d0] sm:$0xff] }
 0x1b5   : > { %4326 = vmatprep.subr.bf16.mxu0 %v6758_v18  ;;  %4236 = vmatmul.mubr.bf16.vlgmr.msra.gmra.mrb[4].mxu1 %v8621_v32  ;;  %v6813_v30 = vcombine.low %v971_v16, %v975_v17 }
 0x1b6   : > { %4245 = vmatpush1.bf16.msra.mxu1 %v7011_v24  ;;  %4276 = vmatprep.mubr.bf16.mxu1 %v8924_v54  ;;  %v6814_v24 = vcombine.high %v971_v16, %v975_v17 }
 0x1b7   : > { %4318 = vmatmul.mubr.bf16.vlgmr.msra.gmra.mrb[4].mxu0 %v8697_v22  ;;  %4246 = vmatprep.subr.bf16.mxu1 %v7020_v26  ;;  %v1238_v26 = vld [vmem:[%s10400_s1 + $0xe28] sm:$0xff] }
 0x1b8   : > { %4327 = vmatpush1.bf16.msra.mxu0 %v6757_v25  ;;  %4358 = vmatprep.mubr.bf16.mxu0 %v8589_v13  ;;  %v1234_v25 = vld [vmem:[%s10400_s1 + $0xe08] sm:$0xff] }
 0x1b9   : > { %4328 = vmatprep.subr.bf16.mxu0 %v6766_v27  ;;  %v979_v27 = vld [vmem:[%s10400_s1 + $0x610] sm:$0xff]  ;;  %v7076_v31 = vcombine.high %v1234_v25, %v1238_v26  ;;  %v7075_v39 = vcombine.low %v1234_v25, %v1238_v26 }
 0x1ba   : > { %4247 = vmatpush1.bf16.msra.mxu1 %v7019_v34  ;;  %v6822_v34 = vcombine.high %v979_v27, %v983_v29  ;;  %v6821_v40 = vcombine.low %v979_v27, %v983_v29  ;;  %v1290_v29 = vld [vmem:[%s10400_s1 + $0xfc8] sm:$0xff] }
 0x1bb   : > { %4248 = vmatprep.subr.bf16.mxu1 %v7028_v28  ;;  %v1246_v28 = vld [vmem:[%s10400_s1 + $0xe68] sm:$0xff] }
 0x1bc   : > { %4329 = vmatpush1.bf16.msra.mxu0 %v6765_v35  ;;  %v1242_v35 = vld [vmem:[%s10400_s1 + $0xe48] sm:$0xff] }
 0x1bd   : > { %4330 = vmatprep.subr.bf16.mxu0 %v6774_v36  ;;  %v987_v36 = vld [vmem:[%s10400_s1 + $0x650] sm:$0xff]  ;;  %v7084_v41 = vcombine.high %v1242_v35, %v1246_v28  ;;  %v7083_v47 = vcombine.low %v1242_v35, %v1246_v28 }
 0x1be   : > { %4249 = vmatpush1.bf16.msra.mxu1 %v7027_v42  ;;  %v6830_v42 = vcombine.high %v987_v36, %v991_v37  ;;  %v6829_v48 = vcombine.low %v987_v36, %v991_v37  ;;  %v788_v37 = vld [vmem:[%s10400_s1 + $0x18] sm:$0xff] }
 0x1bf   : > { %4250 = vmatprep.subr.bf16.mxu1 %v7036_v53  ;;  %v1254_v53 = vld [vmem:[%s10400_s1 + $0xea8] sm:$0xff] }
 0x1c0   : > { %4331 = vmatpush1.bf16.msra.mxu0 %v6773_v44  ;;  %v1250_v44 = vld [vmem:[%s10400_s1 + $0xe88] sm:$0xff] }
 0x1c1   : > { %4332 = vmatprep.subr.bf16.mxu0 %v6782_v45  ;;  %v995_v45 = vld [vmem:[%s10400_s1 + $0x690] sm:$0xff]  ;;  %v7092_v49 = vcombine.high %v1250_v44, %v1254_v53  ;;  %v7091_v57 = vcombine.low %v1250_v44, %v1254_v53 }
 0x1c2   : > { %4251 = vmatpush1.bf16.msra.mxu1 %v7035_v50  ;;  %v6838_v50 = vcombine.high %v995_v45, %v999_v46  ;;  %v6837_v58 = vcombine.low %v995_v45, %v999_v46  ;;  %v796_v46 = vld [vmem:[%s10400_s1 + $0x58] sm:$0xff] }
 0x1c3   : > { %4252 = vmatprep.subr.bf16.mxu1 %v7044_v52  ;;  %v1262_v52 = vld [vmem:[%s10400_s1 + $0xee8] sm:$0xff] }
 0x1c4   : > { %4333 = vmatpush1.bf16.msra.mxu0 %v6781_v51  ;;  %v1258_v51 = vld [vmem:[%s10400_s1 + $0xec8] sm:$0xff] }
 0x1c5   : > { %4334 = vmatprep.subr.bf16.mxu0 %v6790_v55  ;;  %v1003_v55 = vld [vmem:[%s10400_s1 + $0x6d0] sm:$0xff]  ;;  %v7100_v59 = vcombine.high %v1258_v51, %v1262_v52  ;;  %v7099_v3 = vcombine.low %v1258_v51, %v1262_v52 }
 0x1c6   : > { %4253 = vmatpush1.bf16.msra.mxu1 %v7043_v60  ;;  %v6846_v60 = vcombine.high %v1003_v55, %v1007_v56  ;;  %v6845_v4 = vcombine.low %v1003_v55, %v1007_v56  ;;  %v1059_v55 = vld [vmem:[%s10400_s1 + $0x890] sm:$0xff]  ;;  %v804_v56 = vld [vmem:[%s10400_s1 + $0x98] sm:$0xff] }
 0x1c7   : > { %4254 = vmatprep.subr.bf16.mxu1 %v7052_v62  ;;  %v1270_v62 = vld [vmem:[%s10400_s1 + $0xf28] sm:$0xff] }
 0x1c8   : > { %4335 = vmatpush1.bf16.msra.mxu0 %v6789_v61  ;;  %v9380_v10 = vpop.f32.mrb[0].mxu1  ;;  %v1266_v61 = vld [vmem:[%s10400_s1 + $0xf08] sm:$0xff] }
 0x1c9   : > { %4336 = vmatprep.subr.bf16.mxu0 %v6798_v0  ;;  %v9388_v15 = vpop.f32.mrb[1].mxu1  ;;  %v1011_v0 = vld [vmem:[%s10400_s1 + $0x710] sm:$0xff]  ;;  %v7108_v5 = vcombine.high %v1266_v61, %v1270_v62  ;;  %v7107_v14 = vcombine.low %v1266_v61, %v1270_v62 }
 0x1ca   : > { %v3995_v18 = vpop.f32.mrb[2].mxu1  ;;  %4255 = vmatpush1.bf16.msra.mxu1 %v7051_v6  ;;  %v6854_v6 = vcombine.high %v1011_v0, %v1015_v1  ;;  %v6853_v16 = vcombine.low %v1011_v0, %v1015_v1  ;;  %v1067_v0 = vld [vmem:[%s10400_s1 + $0x8d0] sm:$0xff] }
 0x1cb   : > { %v3996_v20 = vpop.f32.mrb[3].mxu1  ;;  %4256 = vmatprep.subr.bf16.mxu1 %v7060_v8  ;;  %v1278_v8 = vld [vmem:[%s10400_s1 + $0xf68] sm:$0xff]  ;;  %v1071_v1 = vld [vmem:[%s10400_s1 + $0x8f0] sm:$0xff] }
 0x1cc   : > { %4337 = vmatpush1.bf16.msra.mxu0 %v6797_v7  ;;  %v1274_v7 = vld [vmem:[%s10400_s1 + $0xf48] sm:$0xff] }
 0x1cd   : > { %4338 = vmatprep.subr.bf16.mxu0 %v6806_v11  ;;  %v1019_v11 = vld [vmem:[%s10400_s1 + $0x750] sm:$0xff]  ;;  %v7116_v17 = vcombine.high %v1274_v7, %v1278_v8  ;;  %v1286_v20 = vld [vmem:[%s10400_s1 + $0xfa8] sm:$0xff] }
 0x1ce   : > { %4257 = vmatpush1.bf16.msra.mxu1 %v7059_v19  ;;  %v6862_v18 = vcombine.high %v1019_v11, %v1023_v12  ;;  %v1282_v19 = vld [vmem:[%s10400_s1 + $0xf88] sm:$0xff]  ;;  %v6861_v25 = vcombine.low %v1019_v11, %v1023_v12  ;;  %v1075_v11 = vld [vmem:[%s10400_s1 + $0x910] sm:$0xff] }
 0x1cf   : > { %4258 = vmatprep.subr.bf16.mxu1 %v7068_v23  ;;  %v1031_v23 = vld [vmem:[%s10400_s1 + $0x7b0] sm:$0xff]  ;;  %v7124_v26 = vcombine.high %v1282_v19, %v1286_v20 }
 0x1d0   : > { %4339 = vmatpush1.bf16.msra.mxu0 %v6805_v21  ;;  %v1027_v21 = vld [vmem:[%s10400_s1 + $0x790] sm:$0xff] }
 0x1d1   : > { %4340 = vmatprep.subr.bf16.mxu0 %v6814_v24  ;;  %v7115_v24 = vcombine.low %v1274_v7, %v1278_v8  ;;  %v6870_v27 = vcombine.high %v1027_v21, %v1031_v23  ;;  %v6869_v35 = vcombine.low %v1027_v21, %v1031_v23  ;;  %v1079_v12 = vld [vmem:[%s10400_s1 + $0x930] sm:$0xff]  ;;  %v828_v23 = vld [vmem:[%s10400_s1 + $0x158] sm:$0xff] }
 0x1d2   : > { %4259 = vmatpush1.bf16.msra.mxu1 %v7067_v63  ;;  %v1294_v63 = vld [vmem:[%s10400_s1 + $0xfe8] sm:$0xff]  ;;  %v1087_v21 = vld [vmem:[%s10400_s1 + $0x970] sm:$0xff] }
 0x1d3   : > { %4260 = vmatprep.subr.bf16.mxu1 %v7076_v31  ;;  %v1039_v31 = vld [vmem:[%s10400_s1 + $0x7f0] sm:$0xff]  ;;  %v7132_v28 = vcombine.high %v1290_v29, %v1294_v63 }
 0x1d4   : > { %4341 = vmatpush1.bf16.msra.mxu0 %v6813_v30  ;;  %v1035_v30 = vld [vmem:[%s10400_s1 + $0x7d0] sm:$0xff] }
 0x1d5   : > { %4342 = vmatprep.subr.bf16.mxu0 %v6822_v34  ;;  %v7123_v34 = vcombine.low %v1282_v19, %v1286_v20  ;;  %v6878_v36 = vcombine.high %v1035_v30, %v1039_v31  ;;  %v6877_v44 = vcombine.low %v1035_v30, %v1039_v31  ;;  %v1083_v20 = vld [vmem:[%s10400_s1 + $0x950] sm:$0xff]  ;;  %v836_v31 = vld [vmem:[%s10400_s1 + $0x198] sm:$0xff] }
 0x1d6   : > { %4261 = vmatpush1.bf16.msra.mxu1 %v7075_v39  ;;  %v792_v39 = vld [vmem:[%s10400_s1 + $0x38] sm:$0xff]  ;;  %v1095_v30 = vld [vmem:[%s10400_s1 + $0x9b0] sm:$0xff] }
 0x1d7   : > { %4262 = vmatprep.subr.bf16.mxu1 %v7084_v41  ;;  %v1047_v41 = vld [vmem:[%s10400_s1 + $0x830] sm:$0xff]  ;;  %v6632_v53 = vcombine.high %v788_v37, %v792_v39 }
 0x1d8   : > { %4343 = vmatpush1.bf16.msra.mxu0 %v6821_v40  ;;  %v1043_v40 = vld [vmem:[%s10400_s1 + $0x810] sm:$0xff] }
 0x1d9   : > { %4344 = vmatprep.subr.bf16.mxu0 %v6830_v42  ;;  %v7131_v42 = vcombine.low %v1290_v29, %v1294_v63  ;;  %v6886_v45 = vcombine.high %v1043_v40, %v1047_v41  ;;  %v6885_v51 = vcombine.low %v1043_v40, %v1047_v41  ;;  %v1091_v63 = vld [vmem:[%s10400_s1 + $0x990] sm:$0xff]  ;;  %v844_v41 = vld [vmem:[%s10400_s1 + $0x1d8] sm:$0xff] }
 0x1da   : > { %4263 = vmatpush1.bf16.msra.mxu1 %v7083_v47  ;;  %v800_v47 = vld [vmem:[%s10400_s1 + $0x78] sm:$0xff]  ;;  %v1103_v40 = vld [vmem:[%s10400_s1 + $0x9f0] sm:$0xff] }
 0x1db   : > { %4264 = vmatprep.subr.bf16.mxu1 %v7092_v49  ;;  %v1055_v49 = vld [vmem:[%s10400_s1 + $0x870] sm:$0xff]  ;;  %v6640_v52 = vcombine.high %v796_v46, %v800_v47 }
 0x1dc   : > { %4345 = vmatpush1.bf16.msra.mxu0 %v6829_v48  ;;  %v1051_v48 = vld [vmem:[%s10400_s1 + $0x850] sm:$0xff] }
 0x1dd   : > { %4346 = vmatprep.subr.bf16.mxu0 %v6838_v50  ;;  %v6631_v50 = vcombine.low %v788_v37, %v792_v39  ;;  %v6893_v61 = vcombine.low %v1051_v48, %v1055_v49  ;;  %v1099_v39 = vld [vmem:[%s10400_s1 + $0x9d0] sm:$0xff] }
 0x1de   : > { %4265 = vmatpush1.bf16.msra.mxu1 %v7091_v57  ;;  %v6894_v57 = vcombine.high %v1051_v48, %v1055_v49  ;;  %v1111_v48 = vld [vmem:[%s10400_s1 + $0xa30] sm:$0xff]  ;;  %v852_v49 = vld [vmem:[%s10400_s1 + $0x218] sm:$0xff] }
 0x1df   : > { %4266 = vmatprep.subr.bf16.mxu1 %v7100_v59  ;;  %v1063_v59 = vld [vmem:[%s10400_s1 + $0x8b0] sm:$0xff] }
 0x1e0   : > { %4347 = vmatpush1.bf16.msra.mxu0 %v6837_v58  ;;  %v808_v58 = vld [vmem:[%s10400_s1 + $0xb8] sm:$0xff]  ;;  %v6901_v7 = vcombine.low %v1059_v55, %v1063_v59 }
 0x1e1   : > { %4348 = vmatprep.subr.bf16.mxu0 %v6846_v60  ;;  %v6639_v60 = vcombine.low %v796_v46, %v800_v47  ;;  %v6648_v62 = vcombine.high %v804_v56, %v808_v58  ;;  %v1107_v47 = vld [vmem:[%s10400_s1 + $0xa10] sm:$0xff] }
 0x1e2   : > { %4267 = vmatpush1.bf16.msra.mxu1 %v7099_v3  ;;  %v6902_v3 = vcombine.high %v1059_v55, %v1063_v59  ;;  %v6941_v55 = vcombine.low %v1099_v39, %v1103_v40  ;;  %v860_v59 = vld [vmem:[%s10400_s1 + $0x258] sm:$0xff] }
 0x1e3   : > { %4268 = vmatprep.subr.bf16.mxu1 %v7108_v5  ;;  %v816_v5 = vld [vmem:[%s10400_s1 + $0xf8] sm:$0xff] }
 0x1e4   : > { %4349 = vmatpush1.bf16.msra.mxu0 %v6845_v4  ;;  %v812_v4 = vld [vmem:[%s10400_s1 + $0xd8] sm:$0xff] }
 0x1e5   : > { %4350 = vmatprep.subr.bf16.mxu0 %v6854_v6  ;;  %v6647_v6 = vcombine.low %v804_v56, %v808_v58  ;;  %v6656_v8 = vcombine.high %v812_v4, %v816_v5  ;;  %v1119_v58 = vld [vmem:[%s10400_s1 + $0xa70] sm:$0xff] }
 0x1e6   : > { %4269 = vmatpush1.bf16.msra.mxu1 %v7107_v14  ;;  %v820_v14 = vld [vmem:[%s10400_s1 + $0x118] sm:$0xff] }
 0x1e7   : > { %4270 = vmatprep.subr.bf16.mxu1 %v7116_v17  ;;  %v6655_v17 = vcombine.low %v812_v4, %v816_v5  ;;  %v1127_v4 = vld [vmem:[%s10400_s1 + $0xab0] sm:$0xff]  ;;  %v868_v5 = vld [vmem:[%s10400_s1 + $0x298] sm:$0xff] }
 0x1e8   : > { %4351 = vmatpush1.bf16.msra.mxu0 %v6853_v16  ;;  %v824_v16 = vld [vmem:[%s10400_s1 + $0x138] sm:$0xff] }
 0x1e9   : > { %4352 = vmatprep.subr.bf16.mxu0 %v6862_v18  ;;  %v6909_v18 = vcombine.low %v1067_v0, %v1071_v1  ;;  %v6664_v19 = vcombine.high %v820_v14, %v824_v16 }
 0x1ea   : > { %4271 = vmatpush1.bf16.msra.mxu1 %v7115_v24  ;;  %v6918_v24 = vcombine.high %v1075_v11, %v1079_v12 }
 0x1eb   : > { %4272 = vmatprep.subr.bf16.mxu1 %v7124_v26  ;;  %v6663_v26 = vcombine.low %v820_v14, %v824_v16  ;;  %v1131_v14 = vld [vmem:[%s10400_s1 + $0xad0] sm:$0xff]  ;;  %v876_v16 = vld [vmem:[%s10400_s1 + $0x2d8] sm:$0xff] }
 0x1ec   : > { %4353 = vmatpush1.bf16.msra.mxu0 %v6861_v25  ;;  %v832_v25 = vld [vmem:[%s10400_s1 + $0x178] sm:$0xff] }
 0x1ed   : > { %4354 = vmatprep.subr.bf16.mxu0 %v6870_v27  ;;  %v6917_v27 = vcombine.low %v1075_v11, %v1079_v12  ;;  %v6672_v29 = vcombine.high %v828_v23, %v832_v25 }
 0x1ee   : > { %4273 = vmatpush1.bf16.msra.mxu1 %v7123_v34  ;;  %v6926_v34 = vcombine.high %v1083_v20, %v1087_v21 }
 0x1ef   : > { %4274 = vmatprep.subr.bf16.mxu1 %v7132_v28  ;;  %v6671_v28 = vcombine.low %v828_v23, %v832_v25  ;;  %v1139_v23 = vld [vmem:[%s10400_s1 + $0xb10] sm:$0xff]  ;;  %v884_v25 = vld [vmem:[%s10400_s1 + $0x318] sm:$0xff] }
 0x1f0   : > { %4355 = vmatpush1.bf16.msra.mxu0 %v6869_v35  ;;  %v840_v35 = vld [vmem:[%s10400_s1 + $0x1b8] sm:$0xff] }
 0x1f1   : > { %4356 = vmatprep.subr.bf16.mxu0 %v6878_v36  ;;  %v6925_v36 = vcombine.low %v1083_v20, %v1087_v21  ;;  %v6680_v37 = vcombine.high %v836_v31, %v840_v35 }
 0x1f2   : > { %4275 = vmatpush1.bf16.msra.mxu1 %v7131_v42  ;;  %v6934_v42 = vcombine.high %v1091_v63, %v1095_v30 }
 0x1f3   : > { %4449 = vmatprep.subr.bf16.mxu1 %v6632_v53  ;;  %v6679_v53 = vcombine.low %v836_v31, %v840_v35  ;;  %v1147_v31 = vld [vmem:[%s10400_s1 + $0xb50] sm:$0xff]  ;;  %v892_v35 = vld [vmem:[%s10400_s1 + $0x358] sm:$0xff] }
 0x1f4   : > { %4357 = vmatpush1.bf16.msra.mxu0 %v6877_v44  ;;  %v848_v44 = vld [vmem:[%s10400_s1 + $0x1f8] sm:$0xff] }
 0x1f5   : > { %4367 = vmatprep.subr.bf16.mxu0 %v6886_v45  ;;  %4277 = vmatmul.mubr.bf16.vlgmr.msra.gmra.mrb[4].mxu1 %v9118_v2  ;;  %v6933_v45 = vcombine.low %v1091_v63, %v1095_v30  ;;  %v6688_v46 = vcombine.high %v844_v41, %v848_v44 }
 0x1f6   : > { %4450 = vmatpush1.bf16.msra.mxu1 %v6631_v50  ;;  %4481 = vmatprep.mubr.bf16.mxu1 %v8578_v9  ;;  %v6910_v9 = vcombine.high %v1067_v0, %v1071_v1  ;;  %v6942_v50 = vcombine.high %v1099_v39, %v1103_v40  ;;  %v6949_v0 = vcombine.low %v1107_v47, %v1111_v48 }
 0x1f7   : > { %4359 = vmatmul.mubr.bf16.vlgmr.msra.gmra.mrb[4].mxu0 %v8715_v33  ;;  %4451 = vmatprep.subr.bf16.mxu1 %v6640_v52  ;;  %v6687_v52 = vcombine.low %v844_v41, %v848_v44  ;;  %v1155_v41 = vld [vmem:[%s10400_s1 + $0xb90] sm:$0xff]  ;;  %v900_v44 = vld [vmem:[%s10400_s1 + $0x398] sm:$0xff] }
 0x1f8   : > { %4368 = vmatpush1.bf16.msra.mxu0 %v6885_v51  ;;  %4399 = vmatprep.mubr.bf16.mxu0 %v8724_v38  ;;  %v856_v51 = vld [vmem:[%s10400_s1 + $0x238] sm:$0xff] }
 0x1f9   : > { %4369 = vmatprep.subr.bf16.mxu0 %v6894_v57  ;;  %v6696_v56 = vcombine.high %v852_v49, %v856_v51  ;;  %v1115_v57 = vld [vmem:[%s10400_s1 + $0xa50] sm:$0xff] }
 0x1fa   : > { %4452 = vmatpush1.bf16.msra.mxu1 %v6639_v60  ;;  %v6950_v60 = vcombine.high %v1107_v47, %v1111_v48  ;;  %v6957_v11 = vcombine.low %v1115_v57, %v1119_v58 }
 0x1fb   : > { %4453 = vmatprep.subr.bf16.mxu1 %v6648_v62  ;;  %v6695_v62 = vcombine.low %v852_v49, %v856_v51  ;;  %v1163_v49 = vld [vmem:[%s10400_s1 + $0xbd0] sm:$0xff]  ;;  %v908_v51 = vld [vmem:[%s10400_s1 + $0x3d8] sm:$0xff] }
 0x1fc   : > { %4370 = vmatpush1.bf16.msra.mxu0 %v6893_v61  ;;  %v864_v61 = vld [vmem:[%s10400_s1 + $0x278] sm:$0xff] }
 0x1fd   : > { %4371 = vmatprep.subr.bf16.mxu0 %v6902_v3  ;;  %v6704_v1 = vcombine.high %v860_v59, %v864_v61  ;;  %v1123_v3 = vld [vmem:[%s10400_s1 + $0xa90] sm:$0xff] }
 0x1fe   : > { %4454 = vmatpush1.bf16.msra.mxu1 %v6647_v6  ;;  %v6958_v6 = vcombine.high %v1115_v57, %v1119_v58  ;;  %v6965_v20 = vcombine.low %v1123_v3, %v1127_v4 }
 0x1ff   : > { %4455 = vmatprep.subr.bf16.mxu1 %v6656_v8  ;;  %v6703_v8 = vcombine.low %v860_v59, %v864_v61  ;;  %v1171_v59 = vld [vmem:[%s10400_s1 + $0xc10] sm:$0xff]  ;;  %v916_v61 = vld [vmem:[%s10400_s1 + $0x418] sm:$0xff] }
 0x200   : > { %4372 = vmatpush1.bf16.msra.mxu0 %v6901_v7  ;;  %v872_v7 = vld [vmem:[%s10400_s1 + $0x2b8] sm:$0xff] }
 0x201   : > { %4373 = vmatprep.subr.bf16.mxu0 %v6910_v9  ;;  %v6712_v12 = vcombine.high %v868_v5, %v872_v7  ;;  %v1135_v9 = vld [vmem:[%s10400_s1 + $0xaf0] sm:$0xff] }
 0x202   : > { %4456 = vmatpush1.bf16.msra.mxu1 %v6655_v17  ;;  %v6966_v17 = vcombine.high %v1123_v3, %v1127_v4  ;;  %v6973_v63 = vcombine.low %v1131_v14, %v1135_v9 }
 0x203   : > { %4457 = vmatprep.subr.bf16.mxu1 %v6664_v19  ;;  %v6711_v19 = vcombine.low %v868_v5, %v872_v7  ;;  %v1179_v5 = vld [vmem:[%s10400_s1 + $0xc50] sm:$0xff]  ;;  %v924_v7 = vld [vmem:[%s10400_s1 + $0x458] sm:$0xff] }
 0x204   : > { %4374 = vmatpush1.bf16.msra.mxu0 %v6909_v18  ;;  %v880_v18 = vld [vmem:[%s10400_s1 + $0x2f8] sm:$0xff] }
 0x205   : > { %4375 = vmatprep.subr.bf16.mxu0 %v6918_v24  ;;  %v6720_v21 = vcombine.high %v876_v16, %v880_v18  ;;  %v1143_v24 = vld [vmem:[%s10400_s1 + $0xb30] sm:$0xff] }
 0x206   : > { %4458 = vmatpush1.bf16.msra.mxu1 %v6663_v26  ;;  %v6974_v26 = vcombine.high %v1131_v14, %v1135_v9  ;;  %v6981_v39 = vcombine.low %v1139_v23, %v1143_v24 }
 0x207   : > { %4459 = vmatprep.subr.bf16.mxu1 %v6672_v29  ;;  %v6719_v29 = vcombine.low %v876_v16, %v880_v18  ;;  %v1187_v16 = vld [vmem:[%s10400_s1 + $0xc90] sm:$0xff] }
 0x208   : > { %4376 = vmatpush1.bf16.msra.mxu0 %v6917_v27  ;;  %v888_v27 = vld [vmem:[%s10400_s1 + $0x338] sm:$0xff] }
 0x209   : > { %4377 = vmatprep.subr.bf16.mxu0 %v6926_v34  ;;  %v6728_v30 = vcombine.high %v884_v25, %v888_v27  ;;  %v1151_v34 = vld [vmem:[%s10400_s1 + $0xb70] sm:$0xff] }
 0x20a   : > { %4460 = vmatpush1.bf16.msra.mxu1 %v6671_v28  ;;  %v6982_v28 = vcombine.high %v1139_v23, %v1143_v24  ;;  %v6989_v47 = vcombine.low %v1147_v31, %v1151_v34 }
 0x20b   : > { %4461 = vmatprep.subr.bf16.mxu1 %v6680_v37  ;;  %v6727_v37 = vcombine.low %v884_v25, %v888_v27  ;;  %v1195_v25 = vld [vmem:[%s10400_s1 + $0xcd0] sm:$0xff] }
 0x20c   : > { %4378 = vmatpush1.bf16.msra.mxu0 %v6925_v36  ;;  %v896_v36 = vld [vmem:[%s10400_s1 + $0x378] sm:$0xff] }
 0x20d   : > { %4379 = vmatprep.subr.bf16.mxu0 %v6934_v42  ;;  %v6736_v40 = vcombine.high %v892_v35, %v896_v36  ;;  %v1159_v42 = vld [vmem:[%s10400_s1 + $0xbb0] sm:$0xff] }
 0x20e   : > { %4462 = vmatpush1.bf16.msra.mxu1 %v6679_v53  ;;  %v6990_v53 = vcombine.high %v1147_v31, %v1151_v34  ;;  %v6997_v57 = vcombine.low %v1155_v41, %v1159_v42  ;;  %v1203_v34 = vld [vmem:[%s10400_s1 + $0xd10] sm:$0xff] }
 0x20f   : > { %4463 = vmatprep.subr.bf16.mxu1 %v6688_v46  ;;  %v6735_v46 = vcombine.low %v892_v35, %v896_v36  ;;  %v1207_v35 = vld [vmem:[%s10400_s1 + $0xd30] sm:$0xff]  ;;  %v952_v36 = vld [vmem:[%s10400_s1 + $0x538] sm:$0xff] }
 0x210   : > { %4380 = vmatpush1.bf16.msra.mxu0 %v6933_v45  ;;  %v904_v45 = vld [vmem:[%s10400_s1 + $0x3b8] sm:$0xff] }
 0x211   : > { %4381 = vmatprep.subr.bf16.mxu0 %v6942_v50  ;;  %v6744_v48 = vcombine.high %v900_v44, %v904_v45  ;;  %v1167_v50 = vld [vmem:[%s10400_s1 + $0xbf0] sm:$0xff] }
 0x212   : > { %4464 = vmatpush1.bf16.msra.mxu1 %v6687_v52  ;;  %v6998_v52 = vcombine.high %v1155_v41, %v1159_v42  ;;  %v7005_v3 = vcombine.low %v1163_v49, %v1167_v50  ;;  %v1211_v42 = vld [vmem:[%s10400_s1 + $0xd50] sm:$0xff] }
 0x213   : > { %4465 = vmatprep.subr.bf16.mxu1 %v6696_v56  ;;  %v6743_v56 = vcombine.low %v900_v44, %v904_v45  ;;  %v1215_v44 = vld [vmem:[%s10400_s1 + $0xd70] sm:$0xff]  ;;  %v1301_v45 = vsub.s32 0, %v8528_v43 }
 0x214   : > { %4382 = vmatpush1.bf16.msra.mxu0 %v6941_v55  ;;  %v912_v55 = vld [vmem:[%s10400_s1 + $0x3f8] sm:$0xff] }
 0x215   : > { %4383 = vmatprep.subr.bf16.mxu0 %v6950_v60  ;;  %v6752_v58 = vcombine.high %v908_v51, %v912_v55  ;;  %v1175_v60 = vld [vmem:[%s10400_s1 + $0xc30] sm:$0xff] }
 0x216   : > { %4466 = vmatpush1.bf16.msra.mxu1 %v6695_v62  ;;  %v7006_v62 = vcombine.high %v1163_v49, %v1167_v50  ;;  %v7013_v14 = vcombine.low %v1171_v59, %v1175_v60  ;;  %v7045_v50 = vcombine.low %v1203_v34, %v1207_v35 }
 0x217   : > { %4467 = vmatprep.subr.bf16.mxu1 %v6704_v1  ;;  %v6751_v1 = vcombine.low %v908_v51, %v912_v55  ;;  %v1223_v55 = vld [vmem:[%s10400_s1 + $0xdb0] sm:$0xff] }
 0x218   : > { %4384 = vmatpush1.bf16.msra.mxu0 %v6949_v0  ;;  %v920_v0 = vld [vmem:[%s10400_s1 + $0x438] sm:$0xff] }
 0x219   : > { %4385 = vmatprep.subr.bf16.mxu0 %v6958_v6  ;;  %v6760_v4 = vcombine.high %v916_v61, %v920_v0  ;;  %v1183_v6 = vld [vmem:[%s10400_s1 + $0xc70] sm:$0xff] }
 0x21a   : > { %4468 = vmatpush1.bf16.msra.mxu1 %v6703_v8  ;;  %v7014_v8 = vcombine.high %v1171_v59, %v1175_v60  ;;  %v7022_v18 = vcombine.high %v1179_v5, %v1183_v6  ;;  %v7021_v23 = vcombine.low %v1179_v5, %v1183_v6  ;;  %v968_v59 = vld [vmem:[%s10400_s1 + $0x5b8] sm:$0xff] }
 0x21b   : > { %4469 = vmatprep.subr.bf16.mxu1 %v6712_v12  ;;  %v6759_v12 = vcombine.low %v916_v61, %v920_v0  ;;  %v976_v6 = vld [vmem:[%s10400_s1 + $0x5f8] sm:$0xff] }
 0x21c   : > { %4386 = vmatpush1.bf16.msra.mxu0 %v6957_v11  ;;  %v928_v11 = vld [vmem:[%s10400_s1 + $0x478] sm:$0xff] }
 0x21d   : > { %4387 = vmatprep.subr.bf16.mxu0 %v6966_v17  ;;  %v6768_v9 = vcombine.high %v924_v7, %v928_v11  ;;  %v932_v17 = vld [vmem:[%s10400_s1 + $0x498] sm:$0xff] }
 0x21e   : > { %4470 = vmatpush1.bf16.msra.mxu1 %v6711_v19  ;;  %v936_v19 = vld [vmem:[%s10400_s1 + $0x4b8] sm:$0xff] }
 0x21f   : > { %4471 = vmatprep.subr.bf16.mxu1 %v6720_v21  ;;  %v6767_v21 = vcombine.low %v924_v7, %v928_v11  ;;  %v6776_v24 = vcombine.high %v932_v17, %v936_v19  ;;  %v1231_v11 = vld [vmem:[%s10400_s1 + $0xdf0] sm:$0xff] }
 0x220   : > { %4388 = vmatpush1.bf16.msra.mxu0 %v6965_v20  ;;  %v1191_v20 = vld [vmem:[%s10400_s1 + $0xcb0] sm:$0xff] }
 0x221   : > { %4389 = vmatprep.subr.bf16.mxu0 %v6974_v26  ;;  %v940_v26 = vld [vmem:[%s10400_s1 + $0x4d8] sm:$0xff]  ;;  %v7030_v27 = vcombine.high %v1187_v16, %v1191_v20 }
 0x222   : > { %4472 = vmatpush1.bf16.msra.mxu1 %v6719_v29  ;;  %v944_v29 = vld [vmem:[%s10400_s1 + $0x4f8] sm:$0xff] }
 0x223   : > { %4473 = vmatprep.subr.bf16.mxu1 %v6728_v30  ;;  %v7029_v30 = vcombine.low %v1187_v16, %v1191_v20  ;;  %v6784_v31 = vcombine.high %v940_v26, %v944_v29 }
 0x224   : > { %4390 = vmatpush1.bf16.msra.mxu0 %v6973_v63  ;;  %v6775_v63 = vcombine.low %v932_v17, %v936_v19 }
 0x225   : > { %4391 = vmatprep.subr.bf16.mxu0 %v6982_v28  ;;  %v948_v28 = vld [vmem:[%s10400_s1 + $0x518] sm:$0xff] }
 0x226   : > { %4474 = vmatpush1.bf16.msra.mxu1 %v6727_v37  ;;  %v6783_v37 = vcombine.low %v940_v26, %v944_v29  ;;  %v6792_v41 = vcombine.high %v948_v28, %v952_v36  ;;  %v6791_v49 = vcombine.low %v948_v28, %v952_v36  ;;  %v1247_v29 = vld [vmem:[%s10400_s1 + $0xe70] sm:$0xff] }
 0x227   : > { %4475 = vmatprep.subr.bf16.mxu1 %v6736_v40  ;;  %v1255_v36 = vld [vmem:[%s10400_s1 + $0xeb0] sm:$0xff] }
 0x228   : > { %4392 = vmatpush1.bf16.msra.mxu0 %v6981_v39  ;;  %v9761_v39 = vld [vmem:[%s10401_s2] sm:$0xff] }
 0x229   : > { %4393 = vmatprep.subr.bf16.mxu0 %v6990_v53  ;;  %v956_v53 = vld [vmem:[%s10400_s1 + $0x558] sm:$0xff] }
 0x22a   : > { %4476 = vmatpush1.bf16.msra.mxu1 %v6735_v46  ;;  %v7046_v46 = vcombine.high %v1203_v34, %v1207_v35 }
 0x22b   : > { %4477 = vmatprep.subr.bf16.mxu1 %v6744_v48  ;;  %v1305_v48 = vsub.s32 1, %v8528_v43 }
 0x22c   : > { %4394 = vmatpush1.bf16.msra.mxu0 %v6989_v47  ;;  %v960_v47 = vld [vmem:[%s10400_s1 + $0x578] sm:$0xff] }
 0x22d   : > { %4395 = vmatprep.subr.bf16.mxu0 %v6998_v52  ;;  %v6800_v51 = vcombine.high %v956_v53, %v960_v47  ;;  %v1219_v52 = vld [vmem:[%s10400_s1 + $0xd90] sm:$0xff]  ;;  %v1306_v60 = vrot.slane %v9761_v39, %v1305_v48  ;;  %v6799_v61 = vcombine.low %v956_v53, %v960_v47 }
 0x22e   : > { %4478 = vmatpush1.bf16.msra.mxu1 %v6743_v56  ;;  %v964_v56 = vld [vmem:[%s10400_s1 + $0x598] sm:$0xff]  ;;  %v7062_v5 = vcombine.high %v1219_v52, %v1223_v55  ;;  %v7061_v17 = vcombine.low %v1219_v52, %v1223_v55  ;;  %v1263_v47 = vld [vmem:[%s10400_s1 + $0xef0] sm:$0xff] }
 0x22f   : > { %4479 = vmatprep.subr.bf16.mxu1 %v6752_v58  ;;  %v7054_v58 = vcombine.high %v1211_v42, %v1215_v44  ;;  %v6808_v0 = vcombine.high %v964_v56, %v968_v59  ;;  %v3994_v7 = vadd.f32 %v9388_v15, %v1306_v60  ;;  %v1235_v15 = vld [vmem:[%s10400_s1 + $0xe10] sm:$0xff] }
 0x230   : > { %4396 = vmatpush1.bf16.msra.mxu0 %v6997_v57  ;;  %v1302_v57 = vrot.slane %v9761_v39, %v1301_v45 }
 0x231   : > { %4397 = vmatprep.subr.bf16.mxu0 %v7006_v62  ;;  %v7053_v62 = vcombine.low %v1211_v42, %v1215_v44 }
 0x232   : > { %4480 = vmatpush1.bf16.msra.mxu1 %v6751_v1  ;;  %v1227_v1 = vld [vmem:[%s10400_s1 + $0xdd0] sm:$0xff] }
 0x233   : > { %4490 = vmatprep.subr.bf16.mxu1 %v6760_v4  ;;  %v3992_v4 = vadd.f32 %v9380_v10, %v1302_v57  ;;  %v7070_v20 = vcombine.high %v1227_v1, %v1231_v11  ;;  %v1267_v57 = vld [vmem:[%s10400_s1 + $0xf10] sm:$0xff] }
 0x234   : > { %4398 = vmatpush1.bf16.msra.mxu0 %v7005_v3  ;;  %v972_v3 = vld [vmem:[%s10400_s1 + $0x5d8] sm:$0xff] }
 0x235   : > { %4408 = vmatprep.subr.bf16.mxu0 %v7014_v8  ;;  %4482 = vmatmul.mubr.bf16.vlgmr.msra.gmra.mrb[8].mxu1 %v8697_v22  ;;  %v1199_v22 = vld [vmem:[%s10400_s1 + $0xcf0] sm:$0xff] }
 0x236   : > { %4491 = vmatpush1.bf16.msra.mxu1 %v6759_v12  ;;  %4522 = vmatprep.mubr.bf16.mxu1 %v8589_v13  ;;  %v7038_v13 = vcombine.high %v1195_v25, %v1199_v22  ;;  %v7037_v40 = vcombine.low %v1195_v25, %v1199_v22  ;;  %v6815_v25 = vcombine.low %v972_v3, %v976_v6 }
 0x237   : > { %4400 = vmatmul.mubr.bf16.vlgmr.msra.gmra.mrb[4].mxu0 %v8621_v32  ;;  %4492 = vmatprep.subr.bf16.mxu1 %v6768_v9  ;;  %v6807_v9 = vcombine.low %v964_v56, %v968_v59  ;;  %v7069_v22 = vcombine.low %v1227_v1, %v1231_v11  ;;  %v1012_v59 = vld [vmem:[%s10400_s1 + $0x718] sm:$0xff] }
 0x238   : > { %4409 = vmatpush1.bf16.msra.mxu0 %v7013_v14  ;;  %4440 = vmatprep.mubr.bf16.mxu0 %v8924_v54 }
 0x239   : > { %4410 = vmatprep.subr.bf16.mxu0 %v7022_v18  ;;  %v6816_v18 = vcombine.high %v972_v3, %v976_v6  ;;  %v1275_v3 = vld [vmem:[%s10400_s1 + $0xf50] sm:$0xff] }
 0x23a   : > { %4493 = vmatpush1.bf16.msra.mxu1 %v6767_v21  ;;  %v980_v21 = vld [vmem:[%s10400_s1 + $0x618] sm:$0xff] }
 0x23b   : > { %4494 = vmatprep.subr.bf16.mxu1 %v6776_v24  ;;  %v1239_v24 = vld [vmem:[%s10400_s1 + $0xe30] sm:$0xff] }
 0x23c   : > { %4411 = vmatpush1.bf16.msra.mxu0 %v7021_v23  ;;  %v984_v23 = vld [vmem:[%s10400_s1 + $0x638] sm:$0xff]  ;;  %v7077_v35 = vcombine.low %v1235_v15, %v1239_v24 }
 0x23d   : > { %4412 = vmatprep.subr.bf16.mxu0 %v7030_v27  ;;  %v6824_v26 = vcombine.high %v980_v21, %v984_v23  ;;  %v1243_v27 = vld [vmem:[%s10400_s1 + $0xe50] sm:$0xff]  ;;  %v6823_v34 = vcombine.low %v980_v21, %v984_v23 }
 0x23e   : > { %4495 = vmatpush1.bf16.msra.mxu1 %v6775_v63  ;;  %v7078_v63 = vcombine.high %v1235_v15, %v1239_v24  ;;  %v7085_v44 = vcombine.low %v1243_v27, %v1247_v29  ;;  %v1032_v15 = vld [vmem:[%s10400_s1 + $0x7b8] sm:$0xff]  ;;  %v1291_v23 = vld [vmem:[%s10400_s1 + $0xfd0] sm:$0xff] }
 0x23f   : > { %4496 = vmatprep.subr.bf16.mxu1 %v6784_v31  ;;  %v992_v31 = vld [vmem:[%s10400_s1 + $0x678] sm:$0xff]  ;;  %v1295_v24 = vld [vmem:[%s10400_s1 + $0xff0] sm:$0xff] }
 0x240   : > { %4413 = vmatpush1.bf16.msra.mxu0 %v7029_v30  ;;  %v988_v30 = vld [vmem:[%s10400_s1 + $0x658] sm:$0xff] }
 0x241   : > { %4414 = vmatprep.subr.bf16.mxu0 %v7038_v13  ;;  %v6832_v28 = vcombine.high %v988_v30, %v992_v31  ;;  %v1251_v13 = vld [vmem:[%s10400_s1 + $0xe90] sm:$0xff]  ;;  %v6831_v42 = vcombine.low %v988_v30, %v992_v31  ;;  %v1044_v30 = vld [vmem:[%s10400_s1 + $0x818] sm:$0xff]  ;;  %v7134_v31 = vcombine.high %v1291_v23, %v1295_v24 }
 0x242   : > { %4497 = vmatpush1.bf16.msra.mxu1 %v6783_v37  ;;  %v996_v37 = vld [vmem:[%s10400_s1 + $0x698] sm:$0xff]  ;;  %v7093_v55 = vcombine.low %v1251_v13, %v1255_v36 }
 0x243   : > { %4498 = vmatprep.subr.bf16.mxu1 %v6792_v41  ;;  %v1000_v41 = vld [vmem:[%s10400_s1 + $0x6b8] sm:$0xff] }
 0x244   : > { %4415 = vmatpush1.bf16.msra.mxu0 %v7037_v40  ;;  %v7086_v40 = vcombine.high %v1243_v27, %v1247_v29  ;;  %v6840_v53 = vcombine.high %v996_v37, %v1000_v41  ;;  %v6839_v52 = vcombine.low %v996_v37, %v1000_v41  ;;  %v1052_v37 = vld [vmem:[%s10400_s1 + $0x858] sm:$0xff] }
 0x245   : > { %4416 = vmatprep.subr.bf16.mxu0 %v7046_v46  ;;  %v1259_v46 = vld [vmem:[%s10400_s1 + $0xed0] sm:$0xff] }
 0x246   : > { %4499 = vmatpush1.bf16.msra.mxu1 %v6791_v49  ;;  %v1004_v49 = vld [vmem:[%s10400_s1 + $0x6d8] sm:$0xff]  ;;  %v7102_v60 = vcombine.high %v1259_v46, %v1263_v47 }
 0x247   : > { %4500 = vmatprep.subr.bf16.mxu1 %v6800_v51  ;;  %v1008_v51 = vld [vmem:[%s10400_s1 + $0x6f8] sm:$0xff] }
 0x248   : > { %4417 = vmatpush1.bf16.msra.mxu0 %v7045_v50  ;;  %v7094_v50 = vcombine.high %v1251_v13, %v1255_v36  ;;  %v6848_v56 = vcombine.high %v1004_v49, %v1008_v51  ;;  %v7537_v36 = vld [vmem:[%s9529_s6 + $0x4] ss:$12 sps:$4 sm:$0xff]  }
 0x249   : > { %4418 = vmatprep.subr.bf16.mxu0 %v7054_v58  ;;  %v1271_v58 = vld [vmem:[%s10400_s1 + $0xf30] sm:$0xff] }
 0x24a   : > { %v4114_v8 = vpop.f32.mrb[0].mxu0  ;;  %4501 = vmatpush1.bf16.msra.mxu1 %v6799_v61  ;;  %v1016_v61 = vld [vmem:[%s10400_s1 + $0x738] sm:$0xff]  ;;  %v7110_v6 = vcombine.high %v1267_v57, %v1271_v58  ;;  %v7109_v11 = vcombine.low %v1267_v57, %v1271_v58 }
 0x24b   : > { %v9809_v12 = vadd.f32 %v4114_v8, %v3992_v4  ;;  %v4116_v14 = vpop.f32.mrb[1].mxu0  ;;  %4502 = vmatprep.subr.bf16.mxu1 %v6808_v0  ;;  %v7101_v0 = vcombine.low %v1259_v46, %v1263_v47  ;;  %v6856_v1 = vcombine.high %v1012_v59, %v1016_v61  ;;  %v1279_v4 = vld [vmem:[%s10400_s1 + $0xf70] sm:$0xff]  ;;  %v6855_v8 = vcombine.low %v1012_v59, %v1016_v61  ;;  %v7540_v46 = vld [vmem:[%s9529_s6 + $0x1c] ss:$12 sps:$4 sm:$0xff]  }
 0x24c   : > { %v9811_v16 = vadd.f32 %v4116_v14, %v3994_v7  ;;  %v4118_v10 = vpop.f32.mrb[2].mxu0  ;;  %4419 = vmatpush1.bf16.msra.mxu0 %v7053_v62  ;;  %v6847_v62 = vcombine.low %v1004_v49, %v1008_v51  ;;  %v1024_v7 = vld [vmem:[%s10400_s1 + $0x778] sm:$0xff] }
 0x24d   : > { %v4119_v19 = vpop.f32.mrb[3].mxu0  ;;  %4420 = vmatprep.subr.bf16.mxu0 %v7062_v5  ;;  %v1020_v5 = vld [vmem:[%s10400_s1 + $0x758] sm:$0xff]  ;;  %v1287_v10 = vld [vmem:[%s10400_s1 + $0xfb0] sm:$0xff] }
 0x24e   : > { %4503 = vmatpush1.bf16.msra.mxu1 %v6807_v9  ;;  %v6864_v14 = vcombine.high %v1020_v5, %v1024_v7  ;;  %v1283_v9 = vld [vmem:[%s10400_s1 + $0xf90] sm:$0xff]  ;;  %v6863_v19 = vcombine.low %v1020_v5, %v1024_v7  ;;  %v4614_v41 = vmax.f32 %v9811_v16, 0.0  ;;  %v1060_v47 = vld [vmem:[%s10400_s1 + $0x898] sm:$0xff]  ;;  %v7547_v7 = vld [vmem:[%s9529_s6 + $0x60] ss:$12 sps:$4 sm:$0xff]  }
 0x24f   : > { %4504 = vmatprep.subr.bf16.mxu1 %v6816_v18  ;;  %v7118_v18 = vcombine.high %v1275_v3, %v1279_v4  ;;  %v7125_v29 = vcombine.low %v1283_v9, %v1287_v10  ;;  %v1064_v49 = vld [vmem:[%s10400_s1 + $0x8b8] sm:$0xff] }
 0x250   : > { %4421 = vmatpush1.bf16.msra.mxu0 %v7061_v17  ;;  %v1028_v17 = vld [vmem:[%s10400_s1 + $0x798] sm:$0xff]  ;;  %v6903_v57 = vcombine.low %v1060_v47, %v1064_v49 }
 0x251   : > { %4422 = vmatprep.subr.bf16.mxu0 %v7070_v20  ;;  %v7117_v20 = vcombine.low %v1275_v3, %v1279_v4  ;;  %v6872_v21 = vcombine.high %v1028_v17, %v1032_v15  ;;  %v6871_v27 = vcombine.low %v1028_v17, %v1032_v15  ;;  %v7538_v51 = vld [vmem:[%s9529_s6 + $0x18] ss:$12 sps:$4 sm:$0xff]   ;;  %v7541_v58 = vld [vmem:[%s9529_s6 + $0x30] ss:$12 sps:$4 sm:$0xff]   ;;  %v7555_v15 = vld [vmem:[%s9529_s6 + $0x94] ss:$12 sps:$4 sm:$0xff]  }
 0x252   : > { %4505 = vmatpush1.bf16.msra.mxu1 %v6815_v25  ;;  %v1036_v25 = vld [vmem:[%s10400_s1 + $0x7d8] sm:$0xff]  ;;  %v7549_v3 = vld [vmem:[%s9529_s6 + $0x64] ss:$12 sps:$4 sm:$0xff]  }
 0x253   : > { %4506 = vmatprep.subr.bf16.mxu1 %v6824_v26  ;;  %v1040_v26 = vld [vmem:[%s10400_s1 + $0x7f8] sm:$0xff] }
 0x254   : > { %4423 = vmatpush1.bf16.msra.mxu0 %v7069_v22  ;;  %v7126_v22 = vcombine.high %v1283_v9, %v1287_v10  ;;  %v1076_v61 = vld [vmem:[%s10400_s1 + $0x918] sm:$0xff] }
 0x255   : > { %4424 = vmatprep.subr.bf16.mxu0 %v7078_v63  ;;  %v6880_v63 = vcombine.high %v1036_v25, %v1040_v26  ;;  %v1084_v4 = vld [vmem:[%s10400_s1 + $0x958] sm:$0xff] }
 0x256   : > { %4507 = vmatpush1.bf16.msra.mxu1 %v6823_v34  ;;  %v1048_v34 = vld [vmem:[%s10400_s1 + $0x838] sm:$0xff] }
 0x257   : > { %4508 = vmatprep.subr.bf16.mxu1 %v6832_v28  ;;  %v7133_v28 = vcombine.low %v1291_v23, %v1295_v24  ;;  %v6888_v13 = vcombine.high %v1044_v30, %v1048_v34  ;;  %v1088_v5 = vld [vmem:[%s10400_s1 + $0x978] sm:$0xff] }
 0x258   : > { %4425 = vmatpush1.bf16.msra.mxu0 %v7077_v35  ;;  %v6879_v35 = vcombine.low %v1036_v25, %v1040_v26  ;;  %v1096_v9 = vld [vmem:[%s10400_s1 + $0x9b8] sm:$0xff]  ;;  %v6927_v10 = vcombine.low %v1084_v4, %v1088_v5 }
 0x259   : > { %4426 = vmatprep.subr.bf16.mxu0 %v7086_v40  ;;  %v1056_v40 = vld [vmem:[%s10400_s1 + $0x878] sm:$0xff] }
 0x25a   : > { %4509 = vmatpush1.bf16.msra.mxu1 %v6831_v42  ;;  %v6887_v42 = vcombine.low %v1044_v30, %v1048_v34  ;;  %v6895_v16 = vcombine.low %v1052_v37, %v1056_v40  ;;  %v7550_v17 = vld [vmem:[%s9529_s6 + $0x78] ss:$12 sps:$4 sm:$0xff]   ;;  %v7553_v23 = vld [vmem:[%s9529_s6 + $0x90] ss:$12 sps:$4 sm:$0xff]  }
 0x25b   : > { %4510 = vmatprep.subr.bf16.mxu1 %v6840_v53  ;;  %v6896_v53 = vcombine.high %v1052_v37, %v1056_v40  ;;  %v7558_v25 = vld [vmem:[%s9529_s6 + $0xac] ss:$12 sps:$4 sm:$0xff]   ;;  %v7561_v30 = vld [vmem:[%s9529_s6 + $0xc4] ss:$12 sps:$4 sm:$0xff]  }
 0x25c   : > { %4427 = vmatpush1.bf16.msra.mxu0 %v7085_v44  ;;  %v7535_v44 = vld [vmem:[%s9529_s6] ss:$12 sps:$4 sm:$0xff]   ;;  %v1112_v26 = vld [vmem:[%s10400_s1 + $0xa38] sm:$0xff] }
 0x25d   : > { %4428 = vmatprep.subr.bf16.mxu0 %v7094_v50  ;;  %v9931_v50 = vpack.c.bf16 %v4614_v41, %v4614_v41  ;;  %v1120_v34 = vld [vmem:[%s10400_s1 + $0xa78] sm:$0xff] }
 0x25e   : > { %4511 = vmatpush1.bf16.msra.mxu1 %v6839_v52  ;;  %v6904_v52 = vcombine.high %v1060_v47, %v1064_v49  ;;  %v1124_v37 = vld [vmem:[%s10400_s1 + $0xa98] sm:$0xff] }
 0x25f   : > { %4512 = vmatprep.subr.bf16.mxu1 %v6848_v56  ;;  %v1068_v56 = vld [vmem:[%s10400_s1 + $0x8d8] sm:$0xff] }
 0x260   : > { %4429 = vmatpush1.bf16.msra.mxu0 %v7093_v55  ;;  %v7543_v55 = vld [vmem:[%s9529_s6 + $0x34] ss:$12 sps:$4 sm:$0xff]   ;;  %v1128_v40 = vld [vmem:[%s10400_s1 + $0xab8] sm:$0xff] }
 0x261   : > { %4430 = vmatprep.subr.bf16.mxu0 %v7102_v60  ;;  %v7546_v60 = vld [vmem:[%s9529_s6 + $0x4c] ss:$12 sps:$4 sm:$0xff]   ;;  %v6967_v49 = vcombine.low %v1124_v37, %v1128_v40 }
 0x262   : > { %4513 = vmatpush1.bf16.msra.mxu1 %v6847_v62  ;;  %v1080_v62 = vld [vmem:[%s10400_s1 + $0x938] sm:$0xff] }
 0x263   : > { %4514 = vmatprep.subr.bf16.mxu1 %v6856_v1  ;;  %v6920_v1 = vcombine.high %v1076_v61, %v1080_v62  ;;  %v1136_v47 = vld [vmem:[%s10400_s1 + $0xaf8] sm:$0xff] }
 0x264   : > { %4431 = vmatpush1.bf16.msra.mxu0 %v7101_v0  ;;  %v7544_v0 = vld [vmem:[%s9529_s6 + $0x48] ss:$12 sps:$4 sm:$0xff]  }
 0x265   : > { %4432 = vmatprep.subr.bf16.mxu0 %v7110_v6  ;;  %v6919_v6 = vcombine.low %v1076_v61, %v1080_v62  ;;  %v1152_v61 = vld [vmem:[%s10400_s1 + $0xb78] sm:$0xff] }
 0x266   : > { %4515 = vmatpush1.bf16.msra.mxu1 %v6855_v8  ;;  %v6928_v8 = vcombine.high %v1084_v4, %v1088_v5  ;;  %v1160_v4 = vld [vmem:[%s10400_s1 + $0xbb8] sm:$0xff] }
 0x267   : > { %4516 = vmatprep.subr.bf16.mxu1 %v6864_v14  ;;  %v1092_v14 = vld [vmem:[%s10400_s1 + $0x998] sm:$0xff] }
 0x268   : > { %4433 = vmatpush1.bf16.msra.mxu0 %v7109_v11  ;;  %v7552_v11 = vld [vmem:[%s9529_s6 + $0x7c] ss:$12 sps:$4 sm:$0xff]  }
 0x269   : > { %4434 = vmatprep.subr.bf16.mxu0 %v7118_v18  ;;  %v6936_v18 = vcombine.high %v1092_v14, %v1096_v9 }
 0x26a   : > { %4517 = vmatpush1.bf16.msra.mxu1 %v6863_v19  ;;  %v1100_v19 = vld [vmem:[%s10400_s1 + $0x9d8] sm:$0xff] }
 0x26b   : > { %4518 = vmatprep.subr.bf16.mxu1 %v6872_v21  ;;  %v6935_v21 = vcombine.low %v1092_v14, %v1096_v9  ;;  %v1168_v14 = vld [vmem:[%s10400_s1 + $0xbf8] sm:$0xff] }
 0x26c   : > { %4435 = vmatpush1.bf16.msra.mxu0 %v7117_v20  ;;  %v1104_v20 = vld [vmem:[%s10400_s1 + $0x9f8] sm:$0xff] }
 0x26d   : > { %4436 = vmatprep.subr.bf16.mxu0 %v7126_v22  ;;  %v6944_v24 = vcombine.high %v1100_v19, %v1104_v20  ;;  %v1108_v22 = vld [vmem:[%s10400_s1 + $0xa18] sm:$0xff] }
 0x26e   : > { %4519 = vmatpush1.bf16.msra.mxu1 %v6871_v27  ;;  %v6943_v27 = vcombine.low %v1100_v19, %v1104_v20  ;;  %v1176_v19 = vld [vmem:[%s10400_s1 + $0xc38] sm:$0xff] }
 0x26f   : > { %4520 = vmatprep.subr.bf16.mxu1 %v6880_v63  ;;  %v6952_v63 = vcombine.high %v1108_v22, %v1112_v26 }
 0x270   : > { %4437 = vmatpush1.bf16.msra.mxu0 %v7125_v29  ;;  %v7556_v29 = vld [vmem:[%s9529_s6 + $0xa8] ss:$12 sps:$4 sm:$0xff]  }
 0x271   : > { %4438 = vmatprep.subr.bf16.mxu0 %v7134_v31  ;;  %v1116_v31 = vld [vmem:[%s10400_s1 + $0xa58] sm:$0xff] }
 0x272   : > { %4521 = vmatpush1.bf16.msra.mxu1 %v6879_v35  ;;  %v6951_v35 = vcombine.low %v1108_v22, %v1112_v26  ;;  %v6959_v41 = vcombine.low %v1116_v31, %v1120_v34  ;;  %v1180_v22 = vld [vmem:[%s10400_s1 + $0xc58] sm:$0xff] }
 0x273   : > { %4531 = vmatprep.subr.bf16.mxu1 %v6888_v13  ;;  %v6960_v13 = vcombine.high %v1116_v31, %v1120_v34  ;;  %v1184_v26 = vld [vmem:[%s10400_s1 + $0xc78] sm:$0xff] }
 0x274   : > { %4439 = vmatpush1.bf16.msra.mxu0 %v7133_v28  ;;  %v7559_v28 = vld [vmem:[%s9529_s6 + $0xc0] ss:$12 sps:$4 sm:$0xff]   ;;  %v1188_v31 = vld [vmem:[%s10400_s1 + $0xc98] sm:$0xff] }
 0x275   : > { %5926 = vmatprep.subr.bf16.mxu0 %v7537_v36  ;;  %4523 = vmatmul.mubr.bf16.vlgmr.msra.gmra.mrb[8].mxu1 %v8715_v33  ;;  %v1072_v33 = vld [vmem:[%s10400_s1 + $0x8f8] sm:$0xff] }
 0x276   : > { %4532 = vmatpush1.bf16.msra.mxu1 %v6887_v42  ;;  %4563 = vmatprep.mubr.bf16.mxu1 %v8724_v38  ;;  %v6912_v59 = vcombine.high %v1068_v56, %v1072_v33  ;;  %v6911_v38 = vcombine.low %v1068_v56, %v1072_v33  ;;  %v7564_v36 = vld [vmem:[%s9529_s6 + $0xdc] ss:$12 sps:$4 sm:$0xff]   ;;  %v7562_v42 = vld [vmem:[%s9529_s6 + $0xd8] ss:$12 sps:$4 sm:$0xff]  }
 0x277   : > { %4441 = vmatmul.mubr.bf16.vlgmr.msra.gmra.mrb[4].mxu0 %v9118_v2  ;;  %4533 = vmatprep.subr.bf16.mxu1 %v6896_v53  ;;  %v7567_v53 = vld [vmem:[%s9529_s6 + $0xf4] ss:$12 sps:$4 sm:$0xff]   ;;  %v1144_v56 = vld [vmem:[%s10400_s1 + $0xb38] sm:$0xff] }
 0x278   : > { %5927 = vmatpush1.bf16.msra.mxu0 %v7535_v44  ;;  %5958 = vmatprep.mubr.bf16.mxu0 %v9931_v50  ;;  %v6968_v44 = vcombine.high %v1124_v37, %v1128_v40  ;;  %v1192_v34 = vld [vmem:[%s10400_s1 + $0xcb8] sm:$0xff] }
 0x279   : > { %5928 = vmatprep.subr.bf16.mxu0 %v7540_v46  ;;  %v1132_v46 = vld [vmem:[%s10400_s1 + $0xad8] sm:$0xff]  ;;  %v7031_v40 = vcombine.low %v1188_v31, %v1192_v34 }
 0x27a   : > { %4534 = vmatpush1.bf16.msra.mxu1 %v6895_v16  ;;  %v7565_v16 = vld [vmem:[%s9529_s6 + $0xf0] ss:$12 sps:$4 sm:$0xff]   ;;  %v6975_v33 = vcombine.low %v1132_v46, %v1136_v47 }
 0x27b   : > { %4535 = vmatprep.subr.bf16.mxu1 %v6904_v52  ;;  %v7570_v52 = vld [vmem:[%s9529_s6 + $0x10c] ss:$12 sps:$4 sm:$0xff]  }
 0x27c   : > { %5929 = vmatpush1.bf16.msra.mxu0 %v7538_v51  ;;  %v6976_v51 = vcombine.high %v1132_v46, %v1136_v47  ;;  %v1196_v37 = vld [vmem:[%s10400_s1 + $0xcd8] sm:$0xff]  ;;  %v7592_v47 = vld [vmem:[%s9529_s6 + $0x1c8] ss:$12 sps:$4 sm:$0xff]  }
 0x27d   : > { %5930 = vmatprep.subr.bf16.mxu0 %v7543_v55  ;;  %v1140_v55 = vld [vmem:[%s10400_s1 + $0xb18] sm:$0xff] }
 0x27e   : > { %4536 = vmatpush1.bf16.msra.mxu1 %v6903_v57  ;;  %v7568_v57 = vld [vmem:[%s9529_s6 + $0x108] ss:$12 sps:$4 sm:$0xff]   ;;  %v6983_v62 = vcombine.low %v1140_v55, %v1144_v56  ;;  %v1208_v46 = vld [vmem:[%s10400_s1 + $0xd38] sm:$0xff] }
 0x27f   : > { %4537 = vmatprep.subr.bf16.mxu1 %v6912_v59  ;;  %v7573_v59 = vld [vmem:[%s9529_s6 + $0x124] ss:$12 sps:$4 sm:$0xff]  }
 0x280   : > { %5931 = vmatpush1.bf16.msra.mxu0 %v7541_v58  ;;  %v6984_v58 = vcombine.high %v1140_v55, %v1144_v56  ;;  %v1313_v56 = vsub.s32 3, %v8528_v43 }
 0x281   : > { %5932 = vmatprep.subr.bf16.mxu0 %v7546_v60  ;;  %v1148_v60 = vld [vmem:[%s10400_s1 + $0xb58] sm:$0xff] }
 0x282   : > { %4538 = vmatpush1.bf16.msra.mxu1 %v6911_v38  ;;  %v7571_v38 = vld [vmem:[%s9529_s6 + $0x120] ss:$12 sps:$4 sm:$0xff]   ;;  %v6991_v5 = vcombine.low %v1148_v60, %v1152_v61 }
 0x283   : > { %4539 = vmatprep.subr.bf16.mxu1 %v6920_v1  ;;  %v7576_v1 = vld [vmem:[%s9529_s6 + $0x13c] ss:$12 sps:$4 sm:$0xff]  }
 0x284   : > { %5933 = vmatpush1.bf16.msra.mxu0 %v7544_v0  ;;  %v6992_v0 = vcombine.high %v1148_v60, %v1152_v61  ;;  %v1224_v60 = vld [vmem:[%s10400_s1 + $0xdb8] sm:$0xff]  ;;  %v1314_v61 = vrot.slane %v9761_v39, %v1313_v56 }
 0x285   : > { %5934 = vmatprep.subr.bf16.mxu0 %v7549_v3  ;;  %v1156_v3 = vld [vmem:[%s10400_s1 + $0xb98] sm:$0xff] }
 0x286   : > { %4540 = vmatpush1.bf16.msra.mxu1 %v6919_v6  ;;  %v7574_v6 = vld [vmem:[%s9529_s6 + $0x138] ss:$12 sps:$4 sm:$0xff]   ;;  %v6999_v9 = vcombine.low %v1156_v3, %v1160_v4 }
 0x287   : > { %4541 = vmatprep.subr.bf16.mxu1 %v6928_v8  ;;  %v7579_v8 = vld [vmem:[%s9529_s6 + $0x154] ss:$12 sps:$4 sm:$0xff]  }
 0x288   : > { %5935 = vmatpush1.bf16.msra.mxu0 %v7547_v7  ;;  %v7000_v7 = vcombine.high %v1156_v3, %v1160_v4  ;;  %v7603_v3 = vld [vmem:[%s9529_s6 + $0x214] ss:$12 sps:$4 sm:$0xff]   ;;  %v1228_v4 = vld [vmem:[%s10400_s1 + $0xdd8] sm:$0xff] }
 0x289   : > { %5936 = vmatprep.subr.bf16.mxu0 %v7552_v11  ;;  %v1164_v11 = vld [vmem:[%s10400_s1 + $0xbd8] sm:$0xff] }
 0x28a   : > { %4542 = vmatpush1.bf16.msra.mxu1 %v6927_v10  ;;  %v7577_v10 = vld [vmem:[%s9529_s6 + $0x150] ss:$12 sps:$4 sm:$0xff]   ;;  %v7007_v20 = vcombine.low %v1164_v11, %v1168_v14 }
 0x28b   : > { %4543 = vmatprep.subr.bf16.mxu1 %v6936_v18  ;;  %v7582_v18 = vld [vmem:[%s9529_s6 + $0x16c] ss:$12 sps:$4 sm:$0xff]  }
 0x28c   : > { %5937 = vmatpush1.bf16.msra.mxu0 %v7550_v17  ;;  %v7008_v17 = vcombine.high %v1164_v11, %v1168_v14  ;;  %v7601_v14 = vld [vmem:[%s9529_s6 + $0x210] ss:$12 sps:$4 sm:$0xff]  }
 0x28d   : > { %5938 = vmatprep.subr.bf16.mxu0 %v7555_v15  ;;  %v1172_v15 = vld [vmem:[%s10400_s1 + $0xc18] sm:$0xff] }
 0x28e   : > { %4544 = vmatpush1.bf16.msra.mxu1 %v6935_v21  ;;  %v7580_v21 = vld [vmem:[%s9529_s6 + $0x168] ss:$12 sps:$4 sm:$0xff]  }
 0x28f   : > { %4545 = vmatprep.subr.bf16.mxu1 %v6944_v24  ;;  %v4613_v24 = vmax.f32 %v9809_v12, 0.0  ;;  %v7588_v12 = vld [vmem:[%s9529_s6 + $0x19c] ss:$12 sps:$4 sm:$0xff]  }
 0x290   : > { %5939 = vmatpush1.bf16.msra.mxu0 %v7553_v23  ;;  %v7016_v23 = vcombine.high %v1172_v15, %v1176_v19 }
 0x291   : > { %5940 = vmatprep.subr.bf16.mxu0 %v7558_v25  ;;  %v7585_v25 = vld [vmem:[%s9529_s6 + $0x184] ss:$12 sps:$4 sm:$0xff]  }
 0x292   : > { %4546 = vmatpush1.bf16.msra.mxu1 %v6943_v27  ;;  %v7015_v27 = vcombine.low %v1172_v15, %v1176_v19  ;;  %v1240_v15 = vld [vmem:[%s10400_s1 + $0xe38] sm:$0xff] }
 0x293   : > { %4547 = vmatprep.subr.bf16.mxu1 %v6952_v63  ;;  %v7024_v63 = vcombine.high %v1180_v22, %v1184_v26 }
 0x294   : > { %5941 = vmatpush1.bf16.msra.mxu0 %v7556_v29  ;;  %v7583_v29 = vld [vmem:[%s9529_s6 + $0x180] ss:$12 sps:$4 sm:$0xff]  }
 0x295   : > { %5942 = vmatprep.subr.bf16.mxu0 %v7561_v30  ;;  %v10059_v30 = vpack.c.bf16 %v4613_v24, %v4613_v24  ;;  %v7609_v24 = vld [vmem:[%s9529_s6 + $0x244] ss:$12 sps:$4 sm:$0xff]  }
 0x296   : > { %4548 = vmatpush1.bf16.msra.mxu1 %v6951_v35  ;;  %v7023_v35 = vcombine.low %v1180_v22, %v1184_v26  ;;  %v1248_v22 = vld [vmem:[%s10400_s1 + $0xe78] sm:$0xff] }
 0x297   : > { %4549 = vmatprep.subr.bf16.mxu1 %v6960_v13  ;;  %v7032_v13 = vcombine.high %v1188_v31, %v1192_v34  ;;  %v1256_v31 = vld [vmem:[%s10400_s1 + $0xeb8] sm:$0xff] }
 0x298   : > { %5943 = vmatpush1.bf16.msra.mxu0 %v7559_v28  ;;  %v7586_v28 = vld [vmem:[%s9529_s6 + $0x198] ss:$12 sps:$4 sm:$0xff]  }
 0x299   : > { %5944 = vmatprep.subr.bf16.mxu0 %v7564_v36  ;;  %v7591_v36 = vld [vmem:[%s9529_s6 + $0x1b4] ss:$12 sps:$4 sm:$0xff]  }
 0x29a   : > { %4550 = vmatpush1.bf16.msra.mxu1 %v6959_v41  ;;  %v7589_v41 = vld [vmem:[%s9529_s6 + $0x1b0] ss:$12 sps:$4 sm:$0xff]  }
 0x29b   : > { %4551 = vmatprep.subr.bf16.mxu1 %v6968_v44  ;;  %v7594_v44 = vld [vmem:[%s9529_s6 + $0x1cc] ss:$12 sps:$4 sm:$0xff]  }
 0x29c   : > { %5945 = vmatpush1.bf16.msra.mxu0 %v7562_v42 }
 0x29d   : > { %5946 = vmatprep.subr.bf16.mxu0 %v7567_v53  ;;  %v1204_v53 = vld [vmem:[%s10400_s1 + $0xd18] sm:$0xff] }
 0x29e   : > { %4552 = vmatpush1.bf16.msra.mxu1 %v6967_v49  ;;  %v7048_v49 = vcombine.high %v1204_v53, %v1208_v46  ;;  %v7047_v55 = vcombine.low %v1204_v53, %v1208_v46  ;;  %v1272_v53 = vld [vmem:[%s10400_s1 + $0xf38] sm:$0xff] }
 0x29f   : > { %4553 = vmatprep.subr.bf16.mxu1 %v6976_v51  ;;  %v1212_v51 = vld [vmem:[%s10400_s1 + $0xd58] sm:$0xff] }
 0x2a0   : > { %5947 = vmatpush1.bf16.msra.mxu0 %v7565_v16  ;;  %v7597_v16 = vld [vmem:[%s9529_s6 + $0x1e4] ss:$12 sps:$4 sm:$0xff]  }
 0x2a1   : > { %5948 = vmatprep.subr.bf16.mxu0 %v7570_v52  ;;  %v1216_v52 = vld [vmem:[%s10400_s1 + $0xd78] sm:$0xff] }
 0x2a2   : > { %4554 = vmatpush1.bf16.msra.mxu1 %v6975_v33  ;;  %v7595_v33 = vld [vmem:[%s9529_s6 + $0x1e0] ss:$12 sps:$4 sm:$0xff]  }
 0x2a3   : > { %4555 = vmatprep.subr.bf16.mxu1 %v6984_v58  ;;  %v7600_v58 = vld [vmem:[%s9529_s6 + $0x1fc] ss:$12 sps:$4 sm:$0xff]  }
 0x2a4   : > { %5949 = vmatpush1.bf16.msra.mxu0 %v7568_v57  ;;  %v7056_v57 = vcombine.high %v1212_v51, %v1216_v52 }
 0x2a5   : > { %5950 = vmatprep.subr.bf16.mxu0 %v7573_v59  ;;  %v1220_v59 = vld [vmem:[%s10400_s1 + $0xd98] sm:$0xff] }
 0x2a6   : > { %4556 = vmatpush1.bf16.msra.mxu1 %v6983_v62  ;;  %v7055_v62 = vcombine.low %v1212_v51, %v1216_v52  ;;  %v1280_v51 = vld [vmem:[%s10400_s1 + $0xf78] sm:$0xff] }
 0x2a7   : > { %4557 = vmatprep.subr.bf16.mxu1 %v6992_v0  ;;  %v7064_v0 = vcombine.high %v1220_v59, %v1224_v60 }
 0x2a8   : > { %5951 = vmatpush1.bf16.msra.mxu0 %v7571_v38  ;;  %v7598_v38 = vld [vmem:[%s9529_s6 + $0x1f8] ss:$12 sps:$4 sm:$0xff]  }
 0x2a9   : > { %5952 = vmatprep.subr.bf16.mxu0 %v7576_v1 }
 0x2aa   : > { %4558 = vmatpush1.bf16.msra.mxu1 %v6991_v5  ;;  %v1232_v5 = vld [vmem:[%s10400_s1 + $0xdf8] sm:$0xff] }
 0x2ab   : > { %4559 = vmatprep.subr.bf16.mxu1 %v7000_v7 }
 0x2ac   : > { %5953 = vmatpush1.bf16.msra.mxu0 %v7574_v6 }
 0x2ad   : > { %5954 = vmatprep.subr.bf16.mxu0 %v7579_v8  ;;  %v7063_v8 = vcombine.low %v1220_v59, %v1224_v60  ;;  %v1288_v59 = vld [vmem:[%s10400_s1 + $0xfb8] sm:$0xff] }
 0x2ae   : > { %4560 = vmatpush1.bf16.msra.mxu1 %v6999_v9  ;;  %v7072_v9 = vcombine.high %v1228_v4, %v1232_v5 }
 0x2af   : > { %4561 = vmatprep.subr.bf16.mxu1 %v7008_v17  ;;  %v7606_v17 = vld [vmem:[%s9529_s6 + $0x22c] ss:$12 sps:$4 sm:$0xff]  }
 0x2b0   : > { %5955 = vmatpush1.bf16.msra.mxu0 %v7577_v10 }
 0x2b1   : > { %5956 = vmatprep.subr.bf16.mxu0 %v7582_v18  ;;  %v1236_v18 = vld [vmem:[%s10400_s1 + $0xe18] sm:$0xff] }
 0x2b2   : > { %4562 = vmatpush1.bf16.msra.mxu1 %v7007_v20  ;;  %v7071_v20 = vcombine.low %v1228_v4, %v1232_v5  ;;  %v7079_v26 = vcombine.low %v1236_v18, %v1240_v15  ;;  %v1292_v4 = vld [vmem:[%s10400_s1 + $0xfd8] sm:$0xff] }
 0x2b3   : > { %4572 = vmatprep.subr.bf16.mxu1 %v7016_v23  ;;  %v7080_v23 = vcombine.high %v1236_v18, %v1240_v15  ;;  %v1296_v5 = vld [vmem:[%s10400_s1 + $0xff8] sm:$0xff]  ;;  %v7647_v18 = vld [vmem:[%s9529_s6 + $0x304] ss:$12 sps:$4 sm:$0xff]   ;;  %v7632_v15 = vld [vmem:[%s9529_s6 + $0x8] ss:$12 sps:$4 sm:$0xff]  }
 0x2b4   : > { %5957 = vmatpush1.bf16.msra.mxu0 %v7580_v21  ;;  %v7604_v21 = vld [vmem:[%s9529_s6 + $0x228] ss:$12 sps:$4 sm:$0xff]  }
 0x2b5   : > { %5967 = vmatprep.subr.bf16.mxu0 %v7585_v25  ;;  %4564 = vmatmul.mubr.bf16.vlgmr.msra.gmra.mrb[8].mxu1 %v8621_v32  ;;  %v1200_v32 = vld [vmem:[%s10400_s1 + $0xcf8] sm:$0xff] }
 0x2b6   : > { %4573 = vmatpush1.bf16.msra.mxu1 %v7015_v27  ;;  %4604 = vmatprep.mubr.bf16.mxu1 %v8924_v54  ;;  %v7040_v42 = vcombine.high %v1196_v37, %v1200_v32  ;;  %v7039_v54 = vcombine.low %v1196_v37, %v1200_v32  ;;  %v1244_v25 = vld [vmem:[%s10400_s1 + $0xe58] sm:$0xff]  ;;  %v7607_v27 = vld [vmem:[%s9529_s6 + $0x240] ss:$12 sps:$4 sm:$0xff]  }
 0x2b7   : > { %5959 = vmatmul.mubr.bf16.vlgmr.msra.gmra.mrb[8].mxu0 %v10059_v30  ;;  %4574 = vmatprep.subr.bf16.mxu1 %v7024_v63  ;;  %v7612_v63 = vld [vmem:[%s9529_s6 + $0x25c] ss:$12 sps:$4 sm:$0xff]   ;;  %v7087_v34 = vcombine.low %v1244_v25, %v1248_v22 }
 0x2b8   : > { %5968 = vmatpush1.bf16.msra.mxu0 %v7583_v29  ;;  %v7088_v29 = vcombine.high %v1244_v25, %v1248_v22  ;;  %v1264_v37 = vld [vmem:[%s10400_s1 + $0xef8] sm:$0xff] }
 0x2b9   : > { %5969 = vmatprep.subr.bf16.mxu0 %v7588_v12  ;;  %v1252_v12 = vld [vmem:[%s10400_s1 + $0xe98] sm:$0xff] }
 0x2ba   : > { %4575 = vmatpush1.bf16.msra.mxu1 %v7023_v35  ;;  %v7610_v35 = vld [vmem:[%s9529_s6 + $0x258] ss:$12 sps:$4 sm:$0xff]   ;;  %v7095_v32 = vcombine.low %v1252_v12, %v1256_v31 }
 0x2bb   : > { %4576 = vmatprep.subr.bf16.mxu1 %v7032_v13  ;;  %v7615_v13 = vld [vmem:[%s9529_s6 + $0x274] ss:$12 sps:$4 sm:$0xff]   ;;  %v7635_v25 = vld [vmem:[%s9529_s6 + $0xf8] ss:$12 sps:$4 sm:$0xff]  }
 0x2bc   : > { %5970 = vmatpush1.bf16.msra.mxu0 %v7586_v28  ;;  %v7096_v28 = vcombine.high %v1252_v12, %v1256_v31  ;;  %v7650_v22 = vld [vmem:[%s9529_s6 + $0x318] ss:$12 sps:$4 sm:$0xff]   ;;  %v7639_v12 = vld [vmem:[%s9529_s6 + $0x128] ss:$12 sps:$4 sm:$0xff]  }
 0x2bd   : > { %5971 = vmatprep.subr.bf16.mxu0 %v7591_v36  ;;  %v1260_v36 = vld [vmem:[%s10400_s1 + $0xed8] sm:$0xff]  ;;  %v7660_v31 = vld [vmem:[%s9529_s6 + $0x348] ss:$12 sps:$4 sm:$0xff]  }
 0x2be   : > { %4577 = vmatpush1.bf16.msra.mxu1 %v7031_v40  ;;  %v7613_v40 = vld [vmem:[%s9529_s6 + $0x270] ss:$12 sps:$4 sm:$0xff]   ;;  %v7103_v46 = vcombine.low %v1260_v36, %v1264_v37 }
 0x2bf   : > { %4578 = vmatprep.subr.bf16.mxu1 %v7040_v42  ;;  %v7618_v42 = vld [vmem:[%s9529_s6 + $0x28c] ss:$12 sps:$4 sm:$0xff]  }
 0x2c0   : > { %5972 = vmatpush1.bf16.msra.mxu0 %v7589_v41  ;;  %v7104_v41 = vcombine.high %v1260_v36, %v1264_v37  ;;  %v7672_v36 = vld [vmem:[%s9529_s6 + $0x37c] ss:$12 sps:$4 sm:$0xff]   ;;  %v7642_v37 = vld [vmem:[%s9529_s6 + $0x80] ss:$12 sps:$4 sm:$0xff]  }
 0x2c1   : > { %5973 = vmatprep.subr.bf16.mxu0 %v7594_v44  ;;  %v1268_v44 = vld [vmem:[%s10400_s1 + $0xf18] sm:$0xff] }
 0x2c2   : > { %4579 = vmatpush1.bf16.msra.mxu1 %v7039_v54  ;;  %v7616_v54 = vld [vmem:[%s9529_s6 + $0x288] ss:$12 sps:$4 sm:$0xff]   ;;  %v7111_v52 = vcombine.low %v1268_v44, %v1272_v53 }
 0x2c3   : > { %4580 = vmatprep.subr.bf16.mxu1 %v7048_v49  ;;  %v7621_v49 = vld [vmem:[%s9529_s6 + $0x2a4] ss:$12 sps:$4 sm:$0xff]  }
 0x2c4   : > { %5974 = vmatpush1.bf16.msra.mxu0 %v7592_v47  ;;  %v7112_v47 = vcombine.high %v1268_v44, %v1272_v53  ;;  %v7648_v44 = vld [vmem:[%s9529_s6 + $0x170] ss:$12 sps:$4 sm:$0xff]  }
 0x2c5   : > { %5975 = vmatprep.subr.bf16.mxu0 %v7597_v16  ;;  %v1276_v16 = vld [vmem:[%s10400_s1 + $0xf58] sm:$0xff] }
 0x2c6   : > { %4581 = vmatpush1.bf16.msra.mxu1 %v7047_v55  ;;  %v7619_v55 = vld [vmem:[%s9529_s6 + $0x2a0] ss:$12 sps:$4 sm:$0xff]   ;;  %v7120_v56 = vcombine.high %v1276_v16, %v1280_v51  ;;  %v7119_v60 = vcombine.low %v1276_v16, %v1280_v51  ;;  %v7675_v53 = vld [vmem:[%s9529_s6 + $0x390] ss:$12 sps:$4 sm:$0xff]   ;;  %v7654_v51 = vld [vmem:[%s9529_s6 + $0x188] ss:$12 sps:$4 sm:$0xff]  }
 0x2c7   : > { %4582 = vmatprep.subr.bf16.mxu1 %v7056_v57  ;;  %v7624_v57 = vld [vmem:[%s9529_s6 + $0x2bc] ss:$12 sps:$4 sm:$0xff]   ;;  %v7687_v16 = vld [vmem:[%s9529_s6 + $0x3c4] ss:$12 sps:$4 sm:$0xff]  }
 0x2c8   : > { %5976 = vmatpush1.bf16.msra.mxu0 %v7595_v33  ;;  %v10106_v1 = vpop.f32.mrb[4].mxu1  ;;  %v1309_v33 = vsub.s32 2, %v8528_v43 }
 0x2c9   : > { %5977 = vmatprep.subr.bf16.mxu0 %v7600_v58  ;;  %v4280_v39 = vpop.f32.mrb[5].mxu1  ;;  %v1284_v58 = vld [vmem:[%s10400_s1 + $0xf98] sm:$0xff] }
 0x2ca   : > { %v7427_v6 = vadd.f32 %v4280_v39, %v1314_v61  ;;  %v4282_v7 = vpop.f32.mrb[6].mxu1  ;;  %4583 = vmatpush1.bf16.msra.mxu1 %v7055_v62  ;;  %v7622_v61 = vld [vmem:[%s9529_s6 + $0x2b8] ss:$12 sps:$4 sm:$0xff]   ;;  %v7128_v62 = vcombine.high %v1284_v58, %v1288_v59  ;;  %v7127_v39 = vcombine.low %v1284_v58, %v1288_v59 }
 0x2cb   : > { %v4283_v11 = vpop.f32.mrb[7].mxu1  ;;  %4584 = vmatprep.subr.bf16.mxu1 %v7064_v0  ;;  %v7136_v7 = vcombine.high %v1292_v4, %v1296_v5  ;;  %v7663_v58 = vld [vmem:[%s9529_s6 + $0x278] ss:$12 sps:$4 sm:$0xff]  }
 0x2cc   : > { %5978 = vmatpush1.bf16.msra.mxu0 %v7598_v38  ;;  %v4616_v10 = vmax.f32 %v7427_v6, 0.0  ;;  %v10179_v38 = vld [vmem:[%s10401_s2] sm:$0xff]  ;;  %v7625_v6 = vld [vmem:[%s9529_s6 + $0x2d0] ss:$12 sps:$4 sm:$0xff]   ;;  %v7630_v11 = vld [vmem:[%s9529_s6 + $0x2ec] ss:$12 sps:$4 sm:$0xff]  }
 0x2cd   : > { %5979 = vmatprep.subr.bf16.mxu0 %v7603_v3  ;;  %v1310_v0 = vrot.slane %v10179_v38, %v1309_v33  ;;  %v7627_v3 = vld [vmem:[%s9529_s6 + $0x2d4] ss:$12 sps:$4 sm:$0xff]   ;;  %v7690_v59 = vld [vmem:[%s9529_s6 + $0x3d8] ss:$12 sps:$4 sm:$0xff]  }
 0x2ce   : > { %v10123_v19 = vpack.c.bf16 %v4616_v10, %v4616_v10  ;;  %4585 = vmatpush1.bf16.msra.mxu1 %v7063_v8  ;;  %v7631_v10 = vld [vmem:[%s9529_s6 + $0xc8] ss:$12 sps:$4 sm:$0xff]  }
 0x2cf   : > { %4586 = vmatprep.subr.bf16.mxu1 %v7072_v9  ;;  %v7426_v8 = vadd.f32 %v10106_v1, %v1310_v0  ;;  %v7628_v9 = vld [vmem:[%s9529_s6 + $0x2e8] ss:$12 sps:$4 sm:$0xff]   ;;  %v7633_v1 = vld [vmem:[%s9529_s6 + $0xe0] ss:$12 sps:$4 sm:$0xff]   ;;  %v7669_v0 = vld [vmem:[%s9529_s6 + $0x1d0] ss:$12 sps:$4 sm:$0xff]  }
 0x2d0   : > { %5980 = vmatpush1.bf16.msra.mxu0 %v7601_v14  ;;  %5999 = vmatprep.mubr.bf16.mxu0 %v10123_v19  ;;  %v7135_v14 = vcombine.low %v1292_v4, %v1296_v5  ;;  %v7700_v4 = vld [vmem:[%s9529_s6 + $0x408] ss:$12 sps:$4 sm:$0xff]   ;;  %v7707_v5 = vld [vmem:[%s9529_s6 + $0x424] ss:$12 sps:$4 sm:$0xff]  }
 0x2d1   : > { %5981 = vmatprep.subr.bf16.mxu0 %v7606_v17  ;;  %v4615_v17 = vmax.f32 %v7426_v8, 0.0  ;;  %v7712_v8 = vld [vmem:[%s9529_s6 + $0x43c] ss:$12 sps:$4 sm:$0xff]  }
 0x2d2   : > { %4587 = vmatpush1.bf16.msra.mxu1 %v7071_v20 }
 0x2d3   : > { %4588 = vmatprep.subr.bf16.mxu1 %v7080_v23  ;;  %v10199_v20 = vpack.c.bf16 %v4615_v17, %v4615_v17  ;;  %v7652_v23 = vld [vmem:[%s9529_s6 + $0x31c] ss:$12 sps:$4 sm:$0xff]   ;;  %v7684_v17 = vld [vmem:[%s9529_s6 + $0x218] ss:$12 sps:$4 sm:$0xff]  }
 0x2d4   : > { %5982 = vmatpush1.bf16.msra.mxu0 %v7604_v21  ;;  %v7645_v21 = vld [vmem:[%s9529_s6 + $0x300] ss:$12 sps:$4 sm:$0xff]  }
 0x2d5   : > { %5983 = vmatprep.subr.bf16.mxu0 %v7609_v24  ;;  %v7634_v24 = vld [vmem:[%s9529_s6 + $0x20] ss:$12 sps:$4 sm:$0xff]  }
 0x2d6   : > { %4589 = vmatpush1.bf16.msra.mxu1 %v7079_v26  ;;  %v7657_v26 = vld [vmem:[%s9529_s6 + $0x334] ss:$12 sps:$4 sm:$0xff]  }
 0x2d7   : > { %4590 = vmatprep.subr.bf16.mxu1 %v7088_v29  ;;  %v7655_v29 = vld [vmem:[%s9529_s6 + $0x330] ss:$12 sps:$4 sm:$0xff]  }
 0x2d8   : > { %5984 = vmatpush1.bf16.msra.mxu0 %v7607_v27  ;;  %v7637_v27 = vld [vmem:[%s9529_s6 + $0x110] ss:$12 sps:$4 sm:$0xff]  }
 0x2d9   : > { %5985 = vmatprep.subr.bf16.mxu0 %v7612_v63  ;;  %v7638_v63 = vld [vmem:[%s9529_s6 + $0x50] ss:$12 sps:$4 sm:$0xff]  }
 0x2da   : > { %4591 = vmatpush1.bf16.msra.mxu1 %v7087_v34  ;;  %v7667_v34 = vld [vmem:[%s9529_s6 + $0x364] ss:$12 sps:$4 sm:$0xff]  }
 0x2db   : > { %4592 = vmatprep.subr.bf16.mxu1 %v7096_v28  ;;  %v7641_v28 = vld [vmem:[%s9529_s6 + $0x140] ss:$12 sps:$4 sm:$0xff]  }
 0x2dc   : > { %5986 = vmatpush1.bf16.msra.mxu0 %v7610_v35  ;;  %v7640_v35 = vld [vmem:[%s9529_s6 + $0x68] ss:$12 sps:$4 sm:$0xff]  }
 0x2dd   : > { %5987 = vmatprep.subr.bf16.mxu0 %v7615_v13  ;;  %v7665_v13 = vld [vmem:[%s9529_s6 + $0x360] ss:$12 sps:$4 sm:$0xff]  }
 0x2de   : > { %4593 = vmatpush1.bf16.msra.mxu1 %v7095_v32  ;;  %v7643_v32 = vld [vmem:[%s9529_s6 + $0x158] ss:$12 sps:$4 sm:$0xff]  }
 0x2df   : > { %4594 = vmatprep.subr.bf16.mxu1 %v7104_v41  ;;  %v7677_v41 = vld [vmem:[%s9529_s6 + $0x394] ss:$12 sps:$4 sm:$0xff]  }
 0x2e0   : > { %5988 = vmatpush1.bf16.msra.mxu0 %v7613_v40  ;;  %v7670_v40 = vld [vmem:[%s9529_s6 + $0x378] ss:$12 sps:$4 sm:$0xff]  }
 0x2e1   : > { %5989 = vmatprep.subr.bf16.mxu0 %v7618_v42  ;;  %v7644_v42 = vld [vmem:[%s9529_s6 + $0x98] ss:$12 sps:$4 sm:$0xff]  }
 0x2e2   : > { %4595 = vmatpush1.bf16.msra.mxu1 %v7103_v46  ;;  %v7682_v46 = vld [vmem:[%s9529_s6 + $0x3ac] ss:$12 sps:$4 sm:$0xff]  }
 0x2e3   : > { %4596 = vmatprep.subr.bf16.mxu1 %v7112_v47  ;;  %v7653_v47 = vld [vmem:[%s9529_s6 + $0x248] ss:$12 sps:$4 sm:$0xff]  }
 0x2e4   : > { %5990 = vmatpush1.bf16.msra.mxu0 %v7616_v54  ;;  %v7649_v54 = vld [vmem:[%s9529_s6 + $0xb0] ss:$12 sps:$4 sm:$0xff]  }
 0x2e5   : > { %5991 = vmatprep.subr.bf16.mxu0 %v7621_v49  ;;  %v7680_v49 = vld [vmem:[%s9529_s6 + $0x3a8] ss:$12 sps:$4 sm:$0xff]  }
 0x2e6   : > { %4597 = vmatpush1.bf16.msra.mxu1 %v7111_v52  ;;  %v7658_v52 = vld [vmem:[%s9529_s6 + $0x260] ss:$12 sps:$4 sm:$0xff]  }
 0x2e7   : > { %4598 = vmatprep.subr.bf16.mxu1 %v7120_v56  ;;  %v7692_v56 = vld [vmem:[%s9529_s6 + $0x3dc] ss:$12 sps:$4 sm:$0xff]  }
 0x2e8   : > { %5992 = vmatpush1.bf16.msra.mxu0 %v7619_v55  ;;  %v7685_v55 = vld [vmem:[%s9529_s6 + $0x3c0] ss:$12 sps:$4 sm:$0xff]  }
 0x2e9   : > { %5993 = vmatprep.subr.bf16.mxu0 %v7624_v57  ;;  %v7659_v57 = vld [vmem:[%s9529_s6 + $0x1a0] ss:$12 sps:$4 sm:$0xff]  }
 0x2ea   : > { %4599 = vmatpush1.bf16.msra.mxu1 %v7119_v60  ;;  %v7697_v60 = vld [vmem:[%s9529_s6 + $0x3f4] ss:$12 sps:$4 sm:$0xff]  }
 0x2eb   : > { %4600 = vmatprep.subr.bf16.mxu1 %v7128_v62  ;;  %v7695_v62 = vld [vmem:[%s9529_s6 + $0x3f0] ss:$12 sps:$4 sm:$0xff]  }
 0x2ec   : > { %5994 = vmatpush1.bf16.msra.mxu0 %v7622_v61  ;;  %v7668_v61 = vld [vmem:[%s9529_s6 + $0x290] ss:$12 sps:$4 sm:$0xff]  }
 0x2ed   : > { %5995 = vmatprep.subr.bf16.mxu0 %v7627_v3  ;;  %v7673_v3 = vld [vmem:[%s9529_s6 + $0x2a8] ss:$12 sps:$4 sm:$0xff]  }
 0x2ee   : > { %4601 = vmatpush1.bf16.msra.mxu1 %v7127_v39  ;;  %v7674_v39 = vld [vmem:[%s9529_s6 + $0x1e8] ss:$12 sps:$4 sm:$0xff]  }
 0x2ef   : > { %4602 = vmatprep.subr.bf16.mxu1 %v7136_v7  ;;  %v7705_v7 = vld [vmem:[%s9529_s6 + $0x420] ss:$12 sps:$4 sm:$0xff]  }
 0x2f0   : > { %5996 = vmatpush1.bf16.msra.mxu0 %v7625_v6  ;;  %v7678_v6 = vld [vmem:[%s9529_s6 + $0x2c0] ss:$12 sps:$4 sm:$0xff]  }
 0x2f1   : > { %5997 = vmatprep.subr.bf16.mxu0 %v7630_v11  ;;  %v7679_v11 = vld [vmem:[%s9529_s6 + $0x200] ss:$12 sps:$4 sm:$0xff]  }
 0x2f2   : > { %4603 = vmatpush1.bf16.msra.mxu1 %v7135_v14  ;;  %v7683_v14 = vld [vmem:[%s9529_s6 + $0x2d8] ss:$12 sps:$4 sm:$0xff]  }
 0x2f3   : > { %7334 = vmatprep.subr.bf16.mxu1 %v7631_v10  ;;  %v7717_v10 = vld [vmem:[%s9529_s6 + $0x454] ss:$12 sps:$4 sm:$0xff]  }
 0x2f4   : > { %5998 = vmatpush1.bf16.msra.mxu0 %v7628_v9  ;;  %v7710_v9 = vld [vmem:[%s9529_s6 + $0x438] ss:$12 sps:$4 sm:$0xff]  }
 0x2f5   : > { %6008 = vmatprep.subr.bf16.mxu0 %v7647_v18  ;;  %4605 = vmatmul.mubr.bf16.vlgmr.msra.gmra.mrb[8].mxu1 %v9118_v2  ;;  %v7636_v2 = vld [vmem:[%s9529_s6 + $0x38] ss:$12 sps:$4 sm:$0xff]   ;;  %v7688_v18 = vld [vmem:[%s9529_s6 + $0x2f0] ss:$12 sps:$4 sm:$0xff]  }
 0x2f6   : > { %7335 = vmatpush3.bf16.msra.mxu1 %v7632_v15  ;;  %6122 = vmatprep.mubr.bf16.mxu1 %v9931_v50  ;;  %v7662_v50 = vld [vmem:[%s9529_s6 + $0x34c] ss:$12 sps:$4 sm:$0xff]   ;;  %v7715_v15 = vld [vmem:[%s9529_s6 + $0x450] ss:$12 sps:$4 sm:$0xff]  }
 0x2f7   : > { %6000 = vmatmul.mubr.bf16.vlgmr.msra.gmra.mrb[8].mxu0 %v10199_v20  ;;  %7336 = vmatprep.subr.bf16.mxu1 %v7633_v1  ;;  %v7722_v1 = vld [vmem:[%s9529_s6 + $0x46c] ss:$12 sps:$4 sm:$0xff]  }
 0x2f8   : > { %6009 = vmatpush1.bf16.msra.mxu0 %v7645_v21  ;;  %v7689_v21 = vld [vmem:[%s9529_s6 + $0x230] ss:$12 sps:$4 sm:$0xff]  }
 0x2f9   : > { %6010 = vmatprep.subr.bf16.mxu0 %v7652_v23  ;;  %v7693_v23 = vld [vmem:[%s9529_s6 + $0x3c8] ss:$12 sps:$4 sm:$0xff]  }
 0x2fa   : > { %7337 = vmatpush3.bf16.msra.mxu1 %v7634_v24  ;;  %v7720_v24 = vld [vmem:[%s9529_s6 + $0x468] ss:$12 sps:$4 sm:$0xff]  }
 0x2fb   : > { %7338 = vmatprep.subr.bf16.mxu1 %v7635_v25  ;;  %v7729_v25 = vld [vmem:[%s9529_s6 + $0x484] ss:$12 sps:$4 sm:$0xff]  }
 0x2fc   : > { %6011 = vmatpush1.bf16.msra.mxu0 %v7650_v22  ;;  %v7694_v22 = vld [vmem:[%s9529_s6 + $0x308] ss:$12 sps:$4 sm:$0xff]  }
 0x2fd   : > { %6012 = vmatprep.subr.bf16.mxu0 %v7657_v26  ;;  %v7698_v26 = vld [vmem:[%s9529_s6 + $0x3e0] ss:$12 sps:$4 sm:$0xff]  }
 0x2fe   : > { %7339 = vmatpush3.bf16.msra.mxu1 %v7636_v2  ;;  %v7699_v2 = vld [vmem:[%s9529_s6 + $0x320] ss:$12 sps:$4 sm:$0xff]  }
 0x2ff   : > { %7340 = vmatprep.subr.bf16.mxu1 %v7637_v27  ;;  %v7703_v27 = vld [vmem:[%s9529_s6 + $0x3f8] ss:$12 sps:$4 sm:$0xff]  }
 0x300   : > { %6013 = vmatpush1.bf16.msra.mxu0 %v7655_v29  ;;  %v7704_v29 = vld [vmem:[%s9529_s6 + $0x338] ss:$12 sps:$4 sm:$0xff]  }
 0x301   : > { %6014 = vmatprep.subr.bf16.mxu0 %v7662_v50  ;;  %v7708_v50 = vld [vmem:[%s9529_s6 + $0x410] ss:$12 sps:$4 sm:$0xff]  }
 0x302   : > { %7341 = vmatpush3.bf16.msra.mxu1 %v7638_v63  ;;  %v7709_v63 = vld [vmem:[%s9529_s6 + $0x350] ss:$12 sps:$4 sm:$0xff]  }
 0x303   : > { %7342 = vmatprep.subr.bf16.mxu1 %v7639_v12  ;;  %v7713_v12 = vld [vmem:[%s9529_s6 + $0x428] ss:$12 sps:$4 sm:$0xff]  }
 0x304   : > { %6015 = vmatpush1.bf16.msra.mxu0 %v7660_v31  ;;  %v7714_v31 = vld [vmem:[%s9529_s6 + $0x368] ss:$12 sps:$4 sm:$0xff]  }
 0x305   : > { %6016 = vmatprep.subr.bf16.mxu0 %v7667_v34  ;;  %v1321_v34 = vsub.s32 5, %v8528_v43 }
 0x306   : > { %7343 = vmatpush3.bf16.msra.mxu1 %v7640_v35  ;;  %v7718_v35 = vld [vmem:[%s9529_s6 + $0x440] ss:$12 sps:$4 sm:$0xff]  }
 0x307   : > { %7344 = vmatprep.subr.bf16.mxu1 %v7641_v28 }
 0x308   : > { %6017 = vmatpush1.bf16.msra.mxu0 %v7665_v13  ;;  %v7719_v13 = vld [vmem:[%s9529_s6 + $0x380] ss:$12 sps:$4 sm:$0xff]  }
 0x309   : > { %6018 = vmatprep.subr.bf16.mxu0 %v7672_v36  ;;  %v1322_v36 = vrot.slane %v10179_v38, %v1321_v34  ;;  %v7771_v34 = vld [vmem:[%s9529_s6 + $0x5a0] ss:$12 sps:$4 sm:$0xff]  }
 0x30a   : > { %7345 = vmatpush3.bf16.msra.mxu1 %v7642_v37  ;;  %v7723_v37 = vld [vmem:[%s9529_s6 + $0x458] ss:$12 sps:$4 sm:$0xff]  }
 0x30b   : > { %7346 = vmatprep.subr.bf16.mxu1 %v7643_v32 }
 0x30c   : > { %6019 = vmatpush1.bf16.msra.mxu0 %v7670_v40 }
 0x30d   : > { %6020 = vmatprep.subr.bf16.mxu0 %v7677_v41 }
 0x30e   : > { %7347 = vmatpush3.bf16.msra.mxu1 %v7644_v42  ;;  %v7724_v42 = vld [vmem:[%s9529_s6 + $0x398] ss:$12 sps:$4 sm:$0xff]  }
 0x30f   : > { %7348 = vmatprep.subr.bf16.mxu1 %v7648_v44 }
 0x310   : > { %6021 = vmatpush1.bf16.msra.mxu0 %v7675_v53 }
 0x311   : > { %6022 = vmatprep.subr.bf16.mxu0 %v7682_v46  ;;  %v7725_v46 = vld [vmem:[%s9529_s6 + $0x470] ss:$12 sps:$4 sm:$0xff]  }
 0x312   : > { %7349 = vmatpush3.bf16.msra.mxu1 %v7649_v54 }
 0x313   : > { %7356 = vmatprep.subr.bf16.mxu1 %v7653_v47 }
 0x314   : > { %6023 = vmatpush1.bf16.msra.mxu0 %v7680_v49 }
 0x315   : > { %6123 = vmatmul.mubr.bf16.vlgmr.msra.gmra.mrb[12].mxu1 %v10059_v30  ;;  %6024 = vmatprep.subr.bf16.mxu0 %v7687_v16  ;;  %v7664_v30 = vld [vmem:[%s9529_s6 + $0x1b8] ss:$12 sps:$4 sm:$0xff]   ;;  %v7726_v16 = vld [vmem:[%s9529_s6 + $0x3b0] ss:$12 sps:$4 sm:$0xff]  }
 0x316   : > { %7357 = vmatpush3.bf16.msra.mxu1 %v7654_v51  ;;  %6162 = vmatprep.mubr.bf16.mxu1 %v10123_v19  ;;  %v7702_v19 = vld [vmem:[%s9529_s6 + $0x40c] ss:$12 sps:$4 sm:$0xff]  }
 0x317   : > { %7358 = vmatprep.subr.bf16.mxu1 %v7658_v52  ;;  %v7727_v52 = vld [vmem:[%s9529_s6 + $0x480] ss:$12 sps:$4 sm:$0xff]  }
 0x318   : > { %6025 = vmatpush1.bf16.msra.mxu0 %v7685_v55  ;;  %v7754_v55 = vld [vmem:[%s9529_s6 + $0x548] ss:$12 sps:$4 sm:$0xff]  }
 0x319   : > { %6026 = vmatprep.subr.bf16.mxu0 %v7692_v56 }
 0x31a   : > { %7359 = vmatpush3.bf16.msra.mxu1 %v7659_v57  ;;  %v7732_v57 = vld [vmem:[%s9529_s6 + $0x49c] ss:$12 sps:$4 sm:$0xff]  }
 0x31b   : > { %7360 = vmatprep.subr.bf16.mxu1 %v7663_v58  ;;  %v7755_v58 = vld [vmem:[%s9529_s6 + $0x488] ss:$12 sps:$4 sm:$0xff]  }
 0x31c   : > { %6027 = vmatpush1.bf16.msra.mxu0 %v7690_v59  ;;  %v7730_v59 = vld [vmem:[%s9529_s6 + $0x498] ss:$12 sps:$4 sm:$0xff]  }
 0x31d   : > { %6028 = vmatprep.subr.bf16.mxu0 %v7697_v60  ;;  %v7759_v60 = vld [vmem:[%s9529_s6 + $0x560] ss:$12 sps:$4 sm:$0xff]  }
 0x31e   : > { %7361 = vmatpush3.bf16.msra.mxu1 %v7664_v30  ;;  %v7735_v30 = vld [vmem:[%s9529_s6 + $0x4b4] ss:$12 sps:$4 sm:$0xff]  }
 0x31f   : > { %7362 = vmatprep.subr.bf16.mxu1 %v7668_v61  ;;  %v7760_v61 = vld [vmem:[%s9529_s6 + $0x4a0] ss:$12 sps:$4 sm:$0xff]  }
 0x320   : > { %6029 = vmatpush1.bf16.msra.mxu0 %v7695_v62  ;;  %v7733_v62 = vld [vmem:[%s9529_s6 + $0x4b0] ss:$12 sps:$4 sm:$0xff]  }
 0x321   : > { %6030 = vmatprep.subr.bf16.mxu0 %v7702_v19  ;;  %v7764_v19 = vld [vmem:[%s9529_s6 + $0x578] ss:$12 sps:$4 sm:$0xff]  }
 0x322   : > { %7363 = vmatpush3.bf16.msra.mxu1 %v7669_v0  ;;  %v7738_v0 = vld [vmem:[%s9529_s6 + $0x4cc] ss:$12 sps:$4 sm:$0xff]  }
 0x323   : > { %7364 = vmatprep.subr.bf16.mxu1 %v7673_v3  ;;  %v7765_v3 = vld [vmem:[%s9529_s6 + $0x4b8] ss:$12 sps:$4 sm:$0xff]  }
 0x324   : > { %6031 = vmatpush1.bf16.msra.mxu0 %v7700_v4  ;;  %v7736_v4 = vld [vmem:[%s9529_s6 + $0x4c8] ss:$12 sps:$4 sm:$0xff]  }
 0x325   : > { %6032 = vmatprep.subr.bf16.mxu0 %v7707_v5  ;;  %v7769_v5 = vld [vmem:[%s9529_s6 + $0x590] ss:$12 sps:$4 sm:$0xff]  }
 0x326   : > { %7365 = vmatpush3.bf16.msra.mxu1 %v7674_v39  ;;  %v7741_v39 = vld [vmem:[%s9529_s6 + $0x4e4] ss:$12 sps:$4 sm:$0xff]  }
 0x327   : > { %7366 = vmatprep.subr.bf16.mxu1 %v7678_v6  ;;  %v7770_v6 = vld [vmem:[%s9529_s6 + $0x4d0] ss:$12 sps:$4 sm:$0xff]  }
 0x328   : > { %6033 = vmatpush1.bf16.msra.mxu0 %v7705_v7  ;;  %v7739_v7 = vld [vmem:[%s9529_s6 + $0x4e0] ss:$12 sps:$4 sm:$0xff]  }
 0x329   : > { %6034 = vmatprep.subr.bf16.mxu0 %v7712_v8  ;;  %v7774_v8 = vld [vmem:[%s9529_s6 + $0x5a8] ss:$12 sps:$4 sm:$0xff]  }
 0x32a   : > { %7367 = vmatpush3.bf16.msra.mxu1 %v7679_v11  ;;  %v7744_v11 = vld [vmem:[%s9529_s6 + $0x4fc] ss:$12 sps:$4 sm:$0xff]  }
 0x32b   : > { %7368 = vmatprep.subr.bf16.mxu1 %v7683_v14  ;;  %v7775_v14 = vld [vmem:[%s9529_s6 + $0x4e8] ss:$12 sps:$4 sm:$0xff]  }
 0x32c   : > { %6035 = vmatpush1.bf16.msra.mxu0 %v7710_v9  ;;  %v7742_v9 = vld [vmem:[%s9529_s6 + $0x4f8] ss:$12 sps:$4 sm:$0xff]  }
 0x32d   : > { %6036 = vmatprep.subr.bf16.mxu0 %v7717_v10  ;;  %v7779_v10 = vld [vmem:[%s9529_s6 + $0x5c0] ss:$12 sps:$4 sm:$0xff]  }
 0x32e   : > { %7369 = vmatpush3.bf16.msra.mxu1 %v7684_v17  ;;  %v7747_v17 = vld [vmem:[%s9529_s6 + $0x514] ss:$12 sps:$4 sm:$0xff]  }
 0x32f   : > { %7370 = vmatprep.subr.bf16.mxu1 %v7688_v18  ;;  %v7780_v18 = vld [vmem:[%s9529_s6 + $0x500] ss:$12 sps:$4 sm:$0xff]  }
 0x330   : > { %6037 = vmatpush1.bf16.msra.mxu0 %v7715_v15  ;;  %v7745_v15 = vld [vmem:[%s9529_s6 + $0x510] ss:$12 sps:$4 sm:$0xff]  }
 0x331   : > { %6038 = vmatprep.subr.bf16.mxu0 %v7722_v1  ;;  %v7784_v1 = vld [vmem:[%s9529_s6 + $0x5d8] ss:$12 sps:$4 sm:$0xff]  }
 0x332   : > { %7371 = vmatpush3.bf16.msra.mxu1 %v7689_v21  ;;  %v7750_v21 = vld [vmem:[%s9529_s6 + $0x52c] ss:$12 sps:$4 sm:$0xff]  }
 0x333   : > { %7378 = vmatprep.subr.bf16.mxu1 %v7693_v23  ;;  %v7785_v23 = vld [vmem:[%s9529_s6 + $0x518] ss:$12 sps:$4 sm:$0xff]  }
 0x334   : > { %6039 = vmatpush1.bf16.msra.mxu0 %v7720_v24  ;;  %v7748_v24 = vld [vmem:[%s9529_s6 + $0x528] ss:$12 sps:$4 sm:$0xff]  }
 0x335   : > { %6163 = vmatmul.mubr.bf16.vlgmr.msra.gmra.mrb[16].mxu1 %v10199_v20  ;;  %6049 = vmatprep.subr.bf16.mxu0 %v7729_v25  ;;  %v1317_v20 = vsub.s32 4, %v8528_v43  ;;  %v7789_v25 = vld [vmem:[%s9529_s6 + $0x5f0] ss:$12 sps:$4 sm:$0xff]  }
 0x336   : > { %7379 = vmatpush3.bf16.msra.mxu1 %v7694_v22  ;;  %v7753_v22 = vld [vmem:[%s9529_s6 + $0x544] ss:$12 sps:$4 sm:$0xff]  }
 0x337   : > { %7380 = vmatprep.subr.bf16.mxu1 %v7698_v26  ;;  %v1318_v28 = vrot.slane %v10179_v38, %v1317_v20  ;;  %v7790_v26 = vld [vmem:[%s9529_s6 + $0x530] ss:$12 sps:$4 sm:$0xff]  }
 0x338   : > { %v7773_v20 = vld [vmem:[%s9529_s6 + $0x5a4] ss:$12 sps:$4 sm:$0xff]  }
 0x33a   : > { %7381 = vmatpush3.bf16.msra.mxu1 %v7699_v2  ;;  %v7751_v2 = vld [vmem:[%s9529_s6 + $0x540] ss:$12 sps:$4 sm:$0xff]  }
 0x33b   : > { %7382 = vmatprep.subr.bf16.mxu1 %v7703_v27  ;;  %v7758_v27 = vld [vmem:[%s9529_s6 + $0x55c] ss:$12 sps:$4 sm:$0xff]  }
 0x33e   : > { %7383 = vmatpush3.bf16.msra.mxu1 %v7704_v29  ;;  %v7756_v29 = vld [vmem:[%s9529_s6 + $0x558] ss:$12 sps:$4 sm:$0xff]  }
 0x33f   : > { %7384 = vmatprep.subr.bf16.mxu1 %v7708_v50  ;;  %v7763_v50 = vld [vmem:[%s9529_s6 + $0x574] ss:$12 sps:$4 sm:$0xff]  }
 0x342   : > { %7385 = vmatpush3.bf16.msra.mxu1 %v7709_v63  ;;  %v7761_v63 = vld [vmem:[%s9529_s6 + $0x570] ss:$12 sps:$4 sm:$0xff]  }
 0x343   : > { %7386 = vmatprep.subr.bf16.mxu1 %v7713_v12  ;;  %v7768_v12 = vld [vmem:[%s9529_s6 + $0x58c] ss:$12 sps:$4 sm:$0xff]  }
 0x346   : > { %7387 = vmatpush3.bf16.msra.mxu1 %v7714_v31  ;;  %v7766_v31 = vld [vmem:[%s9529_s6 + $0x588] ss:$12 sps:$4 sm:$0xff]  }
 0x347   : > { %7388 = vmatprep.subr.bf16.mxu1 %v7718_v35  ;;  %v7778_v35 = vld [vmem:[%s9529_s6 + $0x5bc] ss:$12 sps:$4 sm:$0xff]  }
 0x34a   : > { %v4442_v32 = vpop.f32.mrb[4].mxu0  ;;  %7389 = vmatpush3.bf16.msra.mxu1 %v7719_v13  ;;  %v7783_v13 = vld [vmem:[%s9529_s6 + $0x5d4] ss:$12 sps:$4 sm:$0xff]  }
 0x34b   : > { %v7428_v40 = vadd.f32 %v4442_v32, %v1318_v28  ;;  %v4444_v41 = vpop.f32.mrb[5].mxu0  ;;  %7390 = vmatprep.subr.bf16.mxu1 %v7723_v37  ;;  %v7776_v28 = vld [vmem:[%s9529_s6 + $0x5b8] ss:$12 sps:$4 sm:$0xff]   ;;  %v7786_v32 = vld [vmem:[%s9529_s6 + $0x5e8] ss:$12 sps:$4 sm:$0xff]  }
 0x34c   : > { %v7429_v44 = vadd.f32 %v4444_v41, %v1322_v36  ;;  %v4446_v53 = vpop.f32.mrb[6].mxu0  ;;  %v7781_v36 = vld [vmem:[%s9529_s6 + $0x5d0] ss:$12 sps:$4 sm:$0xff]   ;;  %v7788_v37 = vld [vmem:[%s9529_s6 + $0x5ec] ss:$12 sps:$4 sm:$0xff]   ;;  %v1329_v41 = vsub.s32 7, %v8528_v43 }
 0x34d   : > { %v4617_v54 = vmax.f32 %v7428_v40, 0.0  ;;  %v4447_v47 = vpop.f32.mrb[7].mxu0  ;;  %v1325_v40 = vsub.s32 6, %v8528_v43  ;;  %s777_s6 = smul.u32 3, %s7910_s22  ;;  %s7858_s22 = smov [#allocation3]  }
 0x34e   : > { %v4618_v49 = vmax.f32 %v7429_v44, 0.0  ;;  %7391 = vmatpush3.bf16.msra.mxu1 %v7724_v42  ;;  %v1330_v44 = vrot.slane %v10179_v38, %v1329_v41  ;;  %s7796_s7 = sshll.u32 %s7858_s22, 4  ;;  %s7797_s7 = int_to_ptr.vmem [resolvable:$false] %s7796_s7 }
 0x34f   : > { %7392 = vmatprep.subr.bf16.mxu1 %v7725_v46  ;;  %v4625_v56 = vpack.c.bf16 %v4617_v54, %v4617_v54  ;;  %v1326_v42 = vrot.slane %v10179_v38, %v1325_v40  ;;  %p778_p13 = scmp.lt.s32.totalorder %s777_s6, 5  ;;  %s7798_s8 = scalar_lea.vmem %s7797_s7, 192 }
 0x350   : > { %v4626_v51 = vpack.c.bf16 %v4618_v49, %v4618_v49  ;;  %p7799_p3 = scmp.lt.s32.totalorder %s10357_s16, %s7797_s7  ;;  %p7800_p4 = scmp.lt.s32.totalorder %s7798_s8, %s7792_s30 }
 0x351   : > { %s10412_s6 = smov (!%p778_p13, %s777_s6), 5 }
 0x352   : > { %6040 = vmatprep.mubr.bf16.mxu0 %v4626_v51  ;;  %6202 = vmatprep.mubr.bf16.mxu1 %v4626_v51  ;;  %s780_s12 = scalar_lea.vmem %s10403_s4, %s10412_s6  ;;  %p7801_p5 = por %p7800_p4, %p7799_p3 }
 0x353   : > { %6041 = vmatmul.mubr.bf16.vlgmr.msra.gmra.mrb[8].mxu0 %v4625_v56  ;;  %7393 = vmatpush3.bf16.msra.mxu1 %v7726_v16 }
 0x354   : > { %6050 = vmatpush1.bf16.msra.mxu0 %v7727_v52  ;;  %7400 = vmatprep.subr.bf16.mxu1 %v7754_v55  ;;  %p7802_p7 = pnand %p7801_p5, %p7795_p2 }
 0x355   : > { %6051 = vmatprep.subr.bf16.mxu0 %v7732_v57 }
 0x356   : > { %6203 = vmatmul.mubr.bf16.vlgmr.msra.gmra.mrb[20].mxu1 %v4625_v56 }
 0x357   : > { %7401 = vmatpush3.bf16.msra.mxu1 %v7755_v58 }
 0x358   : > { %6052 = vmatpush1.bf16.msra.mxu0 %v7730_v59  ;;  %7402 = vmatprep.subr.bf16.mxu1 %v7759_v60 }
 0x359   : > { %6053 = vmatprep.subr.bf16.mxu0 %v7735_v30  ;;  %v4885_v30 = vld [vmem:[%s780_s12] sm:$0x7] }
 0x35b   : > { %7403 = vmatpush3.bf16.msra.mxu1 %v7760_v61  ;;  %v4898_v61 = vrot.slane %v4885_v30, %v1309_v33  ;;  %v4894_v33 = vrot.slane %v4885_v30, %v1305_v48 }
 0x35c   : > { %6054 = vmatpush1.bf16.msra.mxu0 %v7733_v62  ;;  %7404 = vmatprep.subr.bf16.mxu1 %v7764_v19 }
 0x35d   : > { %6055 = vmatprep.subr.bf16.mxu0 %v7738_v0 }
 0x35f   : > { %7405 = vmatpush3.bf16.msra.mxu1 %v7765_v3 }
 0x360   : > { %6056 = vmatpush1.bf16.msra.mxu0 %v7736_v4  ;;  %7406 = vmatprep.subr.bf16.mxu1 %v7769_v5 }
 0x361   : > { %6057 = vmatprep.subr.bf16.mxu0 %v7741_v39 }
 0x363   : > { %7407 = vmatpush3.bf16.msra.mxu1 %v7770_v6 }
 0x364   : > { %6058 = vmatpush1.bf16.msra.mxu0 %v7739_v7  ;;  %7408 = vmatprep.subr.bf16.mxu1 %v7774_v8 }
 0x365   : > { %6059 = vmatprep.subr.bf16.mxu0 %v7744_v11 }
 0x367   : > { %7409 = vmatpush3.bf16.msra.mxu1 %v7775_v14 }
 0x368   : > { %6060 = vmatpush1.bf16.msra.mxu0 %v7742_v9  ;;  %7410 = vmatprep.subr.bf16.mxu1 %v7779_v10  ;;  %v7857_v10 = vmov 1983009808  }
 0x369   : > { %6061 = vmatprep.subr.bf16.mxu0 %v7747_v17  ;;  %v6255_v17 = vunpack.c.l.s4 %v7857_v10 }
 0x36b   : > { %7411 = vmatpush3.bf16.msra.mxu1 %v7780_v18  ;;  %v4890_v18 = vrot.slane %v4885_v30, %v1301_v45 }
 0x36c   : > { %6062 = vmatpush1.bf16.msra.mxu0 %v7745_v15  ;;  %7412 = vmatprep.subr.bf16.mxu1 %v7784_v1  ;;  %v6256_v15 = vunpack.c.0.s8 %v6255_v17 }
 0x36d   : > { %6063 = vmatprep.subr.bf16.mxu0 %v7750_v21 }
 0x36f   : > { %7413 = vmatpush3.bf16.msra.mxu1 %v7785_v23 }
 0x370   : > { %6064 = vmatpush1.bf16.msra.mxu0 %v7748_v24  ;;  %7414 = vmatprep.subr.bf16.mxu1 %v7789_v25 }
 0x371   : > { %6065 = vmatprep.subr.bf16.mxu0 %v7753_v22 }
 0x373   : > { %7415 = vmatpush3.bf16.msra.mxu1 %v7790_v26  ;;  %v6259_v26 = vsub.s32 %v6256_v15, %v8528_v43 }
 0x374   : > { %6066 = vmatpush1.bf16.msra.mxu0 %v7751_v2 }
 0x375   : > { %6067 = vmatprep.subr.bf16.mxu0 %v7758_v27 }
 0x378   : > { %6068 = vmatpush1.bf16.msra.mxu0 %v7756_v29 }
 0x379   : > { %6069 = vmatprep.subr.bf16.mxu0 %v7763_v50 }
 0x37c   : > { %6070 = vmatpush1.bf16.msra.mxu0 %v7761_v63 }
 0x37d   : > { %6071 = vmatprep.subr.bf16.mxu0 %v7768_v12 }
 0x380   : > { %6072 = vmatpush1.bf16.msra.mxu0 %v7766_v31 }
 0x381   : > { %6073 = vmatprep.subr.bf16.mxu0 %v7773_v20 }
 0x384   : > { %6074 = vmatpush1.bf16.msra.mxu0 %v7771_v34 }
 0x385   : > { %6075 = vmatprep.subr.bf16.mxu0 %v7778_v35 }
 0x388   : > { %6076 = vmatpush1.bf16.msra.mxu0 %v7776_v28 }
 0x389   : > { %6077 = vmatprep.subr.bf16.mxu0 %v7783_v13 }
 0x38c   : > { %6078 = vmatpush1.bf16.msra.mxu0 %v7781_v36 }
 0x38d   : > { %6079 = vmatprep.subr.bf16.mxu0 %v7788_v37 }
 0x390   : > { %6080 = vmatpush1.bf16.msra.mxu0 %v7786_v32 }
 0x3c8   : > { %v4606_v53 = vpop.f32.mrb[8].mxu1 }
 0x3c9   : > { %v7430_v46 = vadd.f32 %v4606_v53, %v1326_v42  ;;  %v4608_v54 = vpop.f32.mrb[9].mxu1 }
 0x3ca   : > { %v7431_v47 = vadd.f32 %v4608_v54, %v1330_v44  ;;  %v4610_v49 = vpop.f32.mrb[10].mxu1 }
 0x3cb   : > { %v4619_v16 = vmax.f32 %v7430_v46, 0.0  ;;  %v4611_v51 = vpop.f32.mrb[11].mxu1 }
 0x3cc   : > { %v4620_v52 = vmax.f32 %v7431_v47, 0.0 }
 0x3cd   : > { %v4627_v56 = vpack.c.bf16 %v4619_v16, %v4619_v16 }
 0x3ce   : > { %v4628_v55 = vpack.c.bf16 %v4620_v52, %v4620_v52 }
 0x3d0   : > { %6081 = vmatprep.mubr.bf16.mxu0 %v4628_v55  ;;  %6242 = vmatprep.mubr.bf16.mxu1 %v4628_v55 }
 0x3d1   : > { %6082 = vmatmul.mubr.bf16.vlgmr.msra.gmra.mrb[8].mxu0 %v4627_v56  ;;  %6243 = vmatmul.mubr.bf16.vlgmr.msra.gmra.mrb[24].mxu1 %v4627_v56 }
 0x3e8   : > { %v7350_v57 = vpop.f32.mrb[12].mxu1 }
 0x3e9   : > { %v7351_v58 = vpop.f32.mrb[13].mxu1 }
 0x3ea   : > { %v7352_v59 = vadd.f32 %v7351_v58, %v7350_v57  ;;  %v7353_v60 = vpop.f32.mrb[14].mxu1 }
 0x3eb   : > { %v7354_v38 = vpop.f32.mrb[15].mxu1 }
 0x3ec   : > { %v6125_v0 = vadd.f32 %v7352_v59, %v4898_v61 }
 0x408   : > { %v7372_v62 = vpop.f32.mrb[16].mxu1 }
 0x409   : > { %v7373_v19 = vpop.f32.mrb[17].mxu1 }
 0x40a   : > { %v7374_v3 = vadd.f32 %v7373_v19, %v7372_v62  ;;  %v7375_v4 = vpop.f32.mrb[18].mxu1 }
 0x40b   : > { %v7376_v5 = vpop.f32.mrb[19].mxu1 }
 0x40c   : > { %v6165_v39 = vadd.f32 %v7374_v3, %v6125_v0 }
 0x429   : > { %v7394_v6 = vpop.f32.mrb[20].mxu1 }
 0x42a   : > { %v7395_v7 = vpop.f32.mrb[21].mxu1 }
 0x42b   : > { %v7396_v8 = vadd.f32 %v7395_v7, %v7394_v6  ;;  %v7397_v11 = vpop.f32.mrb[22].mxu1 }
 0x42c   : > { %v7398_v14 = vpop.f32.mrb[23].mxu1 }
 0x42d   : > { %v6205_v9 = vadd.f32 %v7396_v8, %v6165_v39 }
 0x4a4   : > { %v6083_v1 = vpop.f32.mrb[8].mxu0  ;;  %v7416_v21 = vpop.f32.mrb[24].mxu1 }
 0x4a5   : > { %v7432_v23 = vadd.f32 %v6083_v1, %v4890_v18  ;;  %v6085_v24 = vpop.f32.mrb[9].mxu0  ;;  %v7417_v25 = vpop.f32.mrb[25].mxu1 }
 0x4a6   : > { %v7433_v22 = vadd.f32 %v6085_v24, %v4894_v33  ;;  %v7418_v2 = vadd.f32 %v7417_v25, %v7416_v21  ;;  %v6087_v27 = vpop.f32.mrb[10].mxu0  ;;  %v7419_v29 = vpop.f32.mrb[26].mxu1 }
 0x4a7   : > { %v6088_v50 = vpop.f32.mrb[11].mxu0  ;;  %v7420_v45 = vpop.f32.mrb[27].mxu1 }
 0x4a8   : > { %v6253_v63 = vcombine.low %v7432_v23, %v7433_v22  ;;  %v6245_v48 = vadd.f32 %v7418_v2, %v6205_v9 }
 0x4aa   : > { %v6260_v12 = vrot.slane %v6253_v63, %v6259_v26  ;;  %v6267_v31 = vrot.slane %v6245_v48, %v6259_v26 }
 0x4ac   : > { %v6268_v20 = vcombine.low %v6260_v12, %v6267_v31 }
 0x4ae   : > { %6270 = vst [vmem:[%s775_s15] sm:$0x3f] %v6268_v20 }
 0x4af   : > { %7805 = shalt.err (!%p7802_p7)
}
 0x4b0   : > { %s7806_s10 = scalar_lea.hbm %s10355_s25, 96  ;;  %s7810_s11 = scalar_lea.hbm %s10404_s5, 192 }
 0x4b1   : > { %p7807_p10 = scmp.ne.s32.totalorder %s10355_s25, %s7806_s10  ;;  %p7811_p13 = scmp.lt.u32.totalorder %s10355_s25, %s10404_s5 }
 0x4b2   : > { %p7812_p0 = scmp.lt.u32.totalorder %s7810_s11, %s7806_s10  ;;  %p7814_p2 = scmp.lt.u32.totalorder %s7806_s10, %s10355_s25 }
 0x4b3   : > { %p7808_p11 = pnand %p7807_p10, %p7928_p6 }
 0x4b4   : > { %p7813_p1 = por %p7812_p0, %p7811_p13 }
 0x4b5   : > { %p7809_p12 = pneg %p7808_p11 }
 0x4b6   : > { %p7815_p3 = por %p7814_p2, %p7813_p1 }
 0x4b8   : > { %p7816_p4 = pnand %p7815_p3, %p7809_p12 }
 0x4ba   : > { %7819 = shalt.err (!%p7816_p4)
}
 0x4bb   : > { %7493 = dma.vmem_to_hbm [thread:$0]  (%p7928_p6), %s10357_s16, 96, %s10355_s25, %s6272_s26  }
 0x4bc PF: > { %s6298_s14 = sand.u32 1, %s7842_s18   ;;  %p7496_p5 = pnand %p6366_p9, %p7932_p8 }
 0x4bd   : > { %s6299_s15 = scalar_lea.sflag [#allocation4], %s6298_s14 }
 0x4be   : > { %7837 = dma.done.wait (!%p7496_p5), %s6299_s15, 96  }
 0x4bf   : > { %7839 = vsyncadd (!%p7496_p5), %s6299_s15, 4294967200  ;;  %p15_p7 = scmp.ge.s32.totalorder %s7914_s24, 4   ;;  %s10407_s18 = smov %s7846_s19 }
 0x4c0   : > { %s10408_s19 = smov %s7850_s20  ;;  %s10409_s20 = smov %s7926_s27 }
 0x4c1   : > { %s10410_s21 = smov %s7914_s24  ;;  %17 = sbr.rel (!%p15_p7) target bundleno = 3 (0x3), region = 115 }
 0x4c8   :  { %6304 = vsyncpa [#allocation4], 1 }
 0x4c9   :  { %6306 = vsyncpa [#allocation4 + $0x1], 1 }

</bundles_post_ra>
